<compile_context>
chip_gen: v6e
topology: v6e:2x2x1
jax: 0.10.0
libtpu: 0.0.40
codegen_flags: <defaults>
</compile_context>

<pallas_src>
import numpy as np
import jax
import jax.numpy as jnp
from jax import lax
from jax.experimental import pallas as pl
from jax.experimental.pallas import tpu as pltpu

H = W = 15
HW = H * W          # 225 logical board positions
NPAD = 256          # lane-padded board width (2 x 128 lanes)
BT = 8              # boards per grid step (C1*BT = 256 rows for the mixes)
C1, C2, C3 = 32, 16, 8


# ----------------------------------------------------------------------------
# Host-side constants (taps as lane-roll amounts + boundary masks)
# ----------------------------------------------------------------------------
def _tap_shifts(ksize, pad):
    """roll amount per tap so rolled[:, p] == x[:, p + (dy-pad)*W + (dx-pad)]."""
    shifts = []
    for dy in range(ksize):
        for dx in range(ksize):
            s = (dy - pad) * W + (dx - pad)
            shifts.append((-s) % NPAD)
    return tuple(shifts)


def _tap_masks(ksize, pad):
    """mask[k, 0, p] = 1 iff p is a valid board pos AND tap k is in-bounds.

    Pad lanes (p >= 225) are always 0, so bias/garbage living in pad lanes of
    an activation can never reach a valid output position of the next layer.
    """
    m = np.zeros((ksize * ksize, 1, NPAD), np.float32)
    for dy in range(ksize):
        for dx in range(ksize):
            k = dy * ksize + dx
            oy, ox = dy - pad, dx - pad
            for i in range(H):
                for j in range(W):
                    if 0 <= i + oy < H and 0 <= j + ox < W:
                        m[k, 0, i * W + j] = 1.0
    return m


SHIFT5 = _tap_shifts(5, 2)
SHIFT3 = _tap_shifts(3, 1)


def _kron_block(wk, bt):
    """(Cout, Cin) -> (Cout*bt, Cin*bt): block[(o*bt+a),(c*bt+b)] = wk[o,c]*(a==b)."""
    co, ci = wk.shape
    eye = np.eye(bt, dtype=np.float32)
    return np.einsum('oc,ab->oacb', wk, eye).reshape(co * bt, ci * bt)


def prepare_params(torch_params, bt=BT):
    """Fold/pack PyTorch OIHW parameters into kernel-ready constants (once)."""
    w1t, b1t, w2t, b2t, w3t, b3t, w4t, b4t = [
        np.asarray(p, np.float32) for p in torch_params]

    w1taps = w1t.reshape(C1, 25)                   # (32, 25), k = dy*5+dx
    wk1 = _kron_block(w1taps, bt)                  # (C1*bt, 25*bt) = (256, 200)

    w2taps = w2t.reshape(C2, C1, 9)                # (16, 32, 9), k = dy*3+dx
    w3taps = w3t.reshape(C3, C2, 9)                # (8, 16, 9)
    w2blk = np.stack([_kron_block(w2taps[:, :, k], bt) for k in range(9)])
    w3blk = np.stack([_kron_block(w3taps[:, :, k], bt) for k in range(9)])
    w4blk = _kron_block(w4t.reshape(1, C3), bt)    # (bt, C3*bt)

    b1rep = np.repeat(b1t, bt).reshape(C1 * bt, 1)
    b2rep = np.repeat(b2t, bt).reshape(C2 * bt, 1)
    b3rep = np.repeat(b3t, bt).reshape(C3 * bt, 1)
    b4s = b4t.reshape(1, 1)

    return (jnp.asarray(wk1, jnp.bfloat16),        # all matmul weights bf16
            jnp.asarray(w2blk, jnp.bfloat16),
            jnp.asarray(w3blk, jnp.bfloat16),
            jnp.asarray(w4blk, jnp.bfloat16),
            jnp.asarray(_tap_masks(5, 2), jnp.float32),
            jnp.asarray(_tap_masks(3, 1), jnp.float32),
            jnp.asarray(b1rep, jnp.float32),
            jnp.asarray(b2rep, jnp.float32),
            jnp.asarray(b3rep, jnp.float32),
            jnp.asarray(b4s, jnp.float32))


# ----------------------------------------------------------------------------
# Kernel: one grid step = BT boards
# ----------------------------------------------------------------------------
def _policy_kernel(x_ref, wk1_ref, w2_ref, w3_ref, w4_ref,
                   m5_ref, m3_ref, b1_ref, b2_ref, b3_ref, b4_ref,
                   out_ref, xs_scr, a1_scr, acc2_scr, a2_scr, acc3_scr):
    # ---- conv1: build im2col slab via 25 lane rolls + masks, one bf16 matmul
    xb = x_ref[...]                                               # (BT, 256) f32
    for k in range(25):
        r = xb if SHIFT5[k] == 0 else pltpu.roll(xb, SHIFT5[k], axis=1)
        xs_scr[k * BT:(k + 1) * BT, :] = r * m5_ref[k]            # (BT, 256)
    a1 = jnp.dot(wk1_ref[...], xs_scr[...].astype(jnp.bfloat16),
                 preferred_element_type=jnp.float32)              # (256, 256)
    a1_scr[...] = jnp.maximum(a1 + b1_ref[...], 0.0).astype(jnp.bfloat16)

    # ---- conv2: 32 -> 16, 3x3: bf16 channel mix, then roll+mask per tap ----
    acc2_scr[...] = jnp.broadcast_to(b2_ref[...], (C2 * BT, NPAD))
    for k in range(9):
        t = jnp.dot(w2_ref[k], a1_scr[...],
                    preferred_element_type=jnp.float32)           # (128, 256)
        r = t if SHIFT3[k] == 0 else pltpu.roll(t, SHIFT3[k], axis=1)
        acc2_scr[...] += r * m3_ref[k]
    a2_scr[...] = jnp.maximum(acc2_scr[...], 0.0).astype(jnp.bfloat16)

    # ---- conv3: 16 -> 8, 3x3 ------------------------------------------------
    acc3_scr[...] = jnp.broadcast_to(b3_ref[...], (C3 * BT, NPAD))
    for k in range(9):
        t = jnp.dot(w3_ref[k], a2_scr[...],
                    preferred_element_type=jnp.float32)           # (64, 256)
        r = t if SHIFT3[k] == 0 else pltpu.roll(t, SHIFT3[k], axis=1)
        acc3_scr[...] += r * m3_ref[k]
    a3 = jnp.maximum(acc3_scr[...], 0.0).astype(jnp.bfloat16)     # (64, 256)

    # ---- conv4: 8 -> 1, 1x1 + bias ------------------------------------------
    z = jnp.dot(w4_ref[...], a3,
                preferred_element_type=jnp.float32) + b4_ref[...]  # (BT, 256)

    # ---- log-softmax over the 225 valid lanes (pad lanes masked out) --------
    col = lax.broadcasted_iota(jnp.int32, (BT, NPAD), 1)
    zm = jnp.where(col < HW, z, -1e30)
    m = jnp.max(zm, axis=-1, keepdims=True)
    e = jnp.exp(zm - m)
    s = jnp.sum(e, axis=-1, keepdims=True)
    out_ref[...] = zm - m - jnp.log(s)


# ----------------------------------------------------------------------------
# Wrapper
# ----------------------------------------------------------------------------
def policy_net_forward(x, prepared):
    """x: (B, 15, 15) float32; prepared = prepare_params(torch_params)."""
    wk1, w2blk, w3blk, w4blk, m5, m3, b1r, b2r, b3r, b4s = prepared
    B = x.shape[0]
    nblk = pl.cdiv(B, BT)
    Bpad = nblk * BT

    xf = jnp.asarray(x, jnp.float32).reshape(B, HW)
    xp = jnp.zeros((Bpad, NPAD), jnp.float32).at[:B, :HW].set(xf)

    def cspec(a):
        zeros = (0,) * a.ndim
        return pl.BlockSpec(a.shape, lambda i, _z=zeros: _z)

    out = pl.pallas_call(
        _policy_kernel,
        out_shape=jax.ShapeDtypeStruct((Bpad, NPAD), jnp.float32),
        grid=(nblk,),
        in_specs=[
            pl.BlockSpec((BT, NPAD), lambda i: (i, 0)),   # BT boards per step
            cspec(wk1), cspec(w2blk), cspec(w3blk), cspec(w4blk),
            cspec(m5), cspec(m3),
            cspec(b1r), cspec(b2r), cspec(b3r), cspec(b4s),
        ],
        out_specs=pl.BlockSpec((BT, NPAD), lambda i: (i, 0)),
        scratch_shapes=[
            pltpu.VMEM((25 * BT, NPAD), jnp.float32),     # im2col slab
            pltpu.VMEM((C1 * BT, NPAD), jnp.bfloat16),    # a1
            pltpu.VMEM((C2 * BT, NPAD), jnp.float32),     # conv2 accumulator
            pltpu.VMEM((C2 * BT, NPAD), jnp.bfloat16),    # a2
            pltpu.VMEM((C3 * BT, NPAD), jnp.float32),     # conv3 accumulator
        ],
        compiler_params=pltpu.CompilerParams(
            dimension_semantics=("parallel",),        # batch blocks independent
            vmem_limit_bytes=32 * 1024 * 1024,        # generous; ~3 MiB used
        ),
    )(xp, wk1, w2blk, w3blk, w4blk, m5, m3, b1r, b2r, b3r, b4s)

    return out[:B, :HW].reshape(B, H, W)


# ----------------------------------------------------------------------------
# Pure-JAX reference (matches the PyTorch module, f32 NCHW convs)
# ----------------------------------------------------------------------------
def _ref_forward(x, torch_params):
    w1, b1, w2, b2, w3, b3, w4, b4 = torch_params
    a = x.reshape(-1, 1, H, W)

    def conv(a, w, b, pad):
        y = lax.conv_general_dilated(
            a, w, (1, 1), [(pad, pad), (pad, pad)],
            dimension_numbers=("NCHW", "OIHW", "NCHW"))
        return y + b.reshape(1, -1, 1, 1)

    a = jnp.maximum(conv(a, w1, b1, 2), 0.0)
    a = jnp.maximum(conv(a, w2, b2, 1), 0.0)
    a = jnp.maximum(conv(a, w3, b3, 1), 0.0)
    z = conv(a, w4, b4, 0).reshape(-1, HW)
    return jax.nn.log_softmax(z, axis=1).reshape(-1, H, W)


if __name__ == "__main__":
    key = jax.random.PRNGKey(0)
    ks = jax.random.split(key, 9)
    # Deterministic synthetic parameters (same shapes as the PyTorch module).
    w1 = 0.2 * jax.random.normal(ks[0], (32, 1, 5, 5), jnp.float32)
    b1 = 0.1 * jax.random.normal(ks[1], (32,), jnp.float32)
    w2 = 0.2 * jax.random.normal(ks[2], (16, 32, 3, 3), jnp.float32)
    b2 = 0.1 * jax.random.normal(ks[3], (16,), jnp.float32)
    w3 = 0.2 * jax.random.normal(ks[4], (8, 16, 3, 3), jnp.float32)
    b3 = 0.1 * jax.random.normal(ks[5], (8,), jnp.float32)
    w4 = 0.2 * jax.random.normal(ks[6], (1, 8, 1, 1), jnp.float32)
    b4 = 0.1 * jax.random.normal(ks[7], (1,), jnp.float32)
    params = (w1, b1, w2, b2, w3, b3, w4, b4)

    prepared = prepare_params(params)               # folded/packed once

    x = jax.random.normal(ks[8], (2, H, W), jnp.float32)   # batch=2 boards

    out = policy_net_forward(x, prepared)
    out = jax.block_until_ready(out)
    assert out.shape == (2, H, W)

    ref = _ref_forward(x, params)
    # Tolerance sized for the bf16 weight/activation rounding (accumulation
    # stays f32; rolls and 0/1 masks are exact).
    np.testing.assert_allclose(np.asarray(out), np.asarray(ref),
                               atol=5e-2, rtol=5e-2)
    print("KERNEL_OK")
</pallas_src>

<mosaic_0001>
module attributes {stable_mosaic.version = 11 : i64} {
  func.func @_policy_kernel(%arg0: i32, %arg1: memref<8x256xf32, #tpu.memory_space<vmem>>, %arg2: memref<256x200xbf16, #tpu.memory_space<vmem>>, %arg3: memref<9x128x256xbf16, #tpu.memory_space<vmem>>, %arg4: memref<9x64x128xbf16, #tpu.memory_space<vmem>>, %arg5: memref<8x64xbf16, #tpu.memory_space<vmem>>, %arg6: memref<25x1x256xf32, #tpu.memory_space<vmem>>, %arg7: memref<9x1x256xf32, #tpu.memory_space<vmem>>, %arg8: memref<256x1xf32, #tpu.memory_space<vmem>>, %arg9: memref<128x1xf32, #tpu.memory_space<vmem>>, %arg10: memref<64x1xf32, #tpu.memory_space<vmem>>, %arg11: memref<1x1xf32, #tpu.memory_space<vmem>>, %arg12: memref<8x256xf32, #tpu.memory_space<vmem>>, %arg13: memref<200x256xf32, #tpu.memory_space<vmem>>, %arg14: memref<256x256xbf16, #tpu.memory_space<vmem>>, %arg15: memref<128x256xf32, #tpu.memory_space<vmem>>, %arg16: memref<128x256xbf16, #tpu.memory_space<vmem>>, %arg17: memref<64x256xf32, #tpu.memory_space<vmem>>) attributes {dimension_semantics = [#tpu.dimension_semantics<parallel>], iteration_bounds = array<i64: 1>, scalar_prefetch = 0 : i64, scratch_operands = 5 : i64, tpu.core_type = #tpu.core_type<tc>, window_params = [{transform_indices = @transform_0, window_bounds = array<i64: 8, 256>}, {pipeline_mode = #tpu.pipeline_mode<synchronous>, transform_indices = @transform_1, window_bounds = array<i64: 256, 200>}, {pipeline_mode = #tpu.pipeline_mode<synchronous>, transform_indices = @transform_2, window_bounds = array<i64: 9, 128, 256>}, {pipeline_mode = #tpu.pipeline_mode<synchronous>, transform_indices = @transform_3, window_bounds = array<i64: 9, 64, 128>}, {pipeline_mode = #tpu.pipeline_mode<synchronous>, transform_indices = @transform_4, window_bounds = array<i64: 8, 64>}, {pipeline_mode = #tpu.pipeline_mode<synchronous>, transform_indices = @transform_5, window_bounds = array<i64: 25, 1, 256>}, {pipeline_mode = #tpu.pipeline_mode<synchronous>, transform_indices = @transform_6, window_bounds = array<i64: 9, 1, 256>}, {pipeline_mode = #tpu.pipeline_mode<synchronous>, transform_indices = @transform_7, window_bounds = array<i64: 256, 1>}, {pipeline_mode = #tpu.pipeline_mode<synchronous>, transform_indices = @transform_8, window_bounds = array<i64: 128, 1>}, {pipeline_mode = #tpu.pipeline_mode<synchronous>, transform_indices = @transform_9, window_bounds = array<i64: 64, 1>}, {pipeline_mode = #tpu.pipeline_mode<synchronous>, transform_indices = @transform_10, window_bounds = array<i64: 1, 1>}, {transform_indices = @transform_11, window_bounds = array<i64: 8, 256>}]} {
    %c0 = arith.constant 0 : index
    %c0_0 = arith.constant 0 : index
    %0 = vector.load %arg1[%c0, %c0_0] : memref<8x256xf32, #tpu.memory_space<vmem>>, vector<8x256xf32>
    %c32_i32 = arith.constant 32 : i32
    %1 = tpu.dynamic_rotate %0 by %c32_i32 dim 1 : vector<8x256xf32>, i32 -> vector<8x256xf32>
    %c0_1 = arith.constant 0 : index
    %c0_2 = arith.constant 0 : index
    %c0_3 = arith.constant 0 : index
    %2 = vector.load %arg6[%c0_1, %c0_2, %c0_3] : memref<25x1x256xf32, #tpu.memory_space<vmem>>, vector<1x1x256xf32>
    %3 = vector.shape_cast %2 : vector<1x1x256xf32> to vector<1x256xf32>
    %4 = vector.broadcast %3 : vector<1x256xf32> to vector<8x256xf32>
    %5 = arith.mulf %1, %4 : vector<8x256xf32>
    %c0_4 = arith.constant 0 : index
    %c0_5 = arith.constant 0 : index
    %6 = vector.load %arg13[%c0_4, %c0_5] : memref<200x256xf32, #tpu.memory_space<vmem>>, vector<8x256xf32>
    tpu.vector_store %arg13[%c0_4, %c0_5], %5 {strides = array<i32>} : memref<200x256xf32, #tpu.memory_space<vmem>>, vector<8x256xf32>,
    %c31_i32 = arith.constant 31 : i32
    %7 = tpu.dynamic_rotate %0 by %c31_i32 dim 1 : vector<8x256xf32>, i32 -> vector<8x256xf32>
    %c1 = arith.constant 1 : index
    %c0_6 = arith.constant 0 : index
    %c0_7 = arith.constant 0 : index
    %8 = vector.load %arg6[%c1, %c0_6, %c0_7] : memref<25x1x256xf32, #tpu.memory_space<vmem>>, vector<1x1x256xf32>
    %9 = vector.shape_cast %8 : vector<1x1x256xf32> to vector<1x256xf32>
    %10 = vector.broadcast %9 : vector<1x256xf32> to vector<8x256xf32>
    %11 = arith.mulf %7, %10 : vector<8x256xf32>
    %c8 = arith.constant 8 : index
    %c0_8 = arith.constant 0 : index
    %12 = vector.load %arg13[%c8, %c0_8] : memref<200x256xf32, #tpu.memory_space<vmem>>, vector<8x256xf32>
    tpu.vector_store %arg13[%c8, %c0_8], %11 {strides = array<i32>} : memref<200x256xf32, #tpu.memory_space<vmem>>, vector<8x256xf32>,
    %c30_i32 = arith.constant 30 : i32
    %13 = tpu.dynamic_rotate %0 by %c30_i32 dim 1 : vector<8x256xf32>, i32 -> vector<8x256xf32>
    %c2 = arith.constant 2 : index
    %c0_9 = arith.constant 0 : index
    %c0_10 = arith.constant 0 : index
    %14 = vector.load %arg6[%c2, %c0_9, %c0_10] : memref<25x1x256xf32, #tpu.memory_space<vmem>>, vector<1x1x256xf32>
    %15 = vector.shape_cast %14 : vector<1x1x256xf32> to vector<1x256xf32>
    %16 = vector.broadcast %15 : vector<1x256xf32> to vector<8x256xf32>
    %17 = arith.mulf %13, %16 : vector<8x256xf32>
    %c16 = arith.constant 16 : index
    %c0_11 = arith.constant 0 : index
    %18 = vector.load %arg13[%c16, %c0_11] : memref<200x256xf32, #tpu.memory_space<vmem>>, vector<8x256xf32>
    tpu.vector_store %arg13[%c16, %c0_11], %17 {strides = array<i32>} : memref<200x256xf32, #tpu.memory_space<vmem>>, vector<8x256xf32>,
    %c29_i32 = arith.constant 29 : i32
    %19 = tpu.dynamic_rotate %0 by %c29_i32 dim 1 : vector<8x256xf32>, i32 -> vector<8x256xf32>
    %c3 = arith.constant 3 : index
    %c0_12 = arith.constant 0 : index
    %c0_13 = arith.constant 0 : index
    %20 = vector.load %arg6[%c3, %c0_12, %c0_13] : memref<25x1x256xf32, #tpu.memory_space<vmem>>, vector<1x1x256xf32>
    %21 = vector.shape_cast %20 : vector<1x1x256xf32> to vector<1x256xf32>
    %22 = vector.broadcast %21 : vector<1x256xf32> to vector<8x256xf32>
    %23 = arith.mulf %19, %22 : vector<8x256xf32>
    %c24 = arith.constant 24 : index
    %c0_14 = arith.constant 0 : index
    %24 = vector.load %arg13[%c24, %c0_14] : memref<200x256xf32, #tpu.memory_space<vmem>>, vector<8x256xf32>
    tpu.vector_store %arg13[%c24, %c0_14], %23 {strides = array<i32>} : memref<200x256xf32, #tpu.memory_space<vmem>>, vector<8x256xf32>,
    %c28_i32 = arith.constant 28 : i32
    %25 = tpu.dynamic_rotate %0 by %c28_i32 dim 1 : vector<8x256xf32>, i32 -> vector<8x256xf32>
    %c4 = arith.constant 4 : index
    %c0_15 = arith.constant 0 : index
    %c0_16 = arith.constant 0 : index
    %26 = vector.load %arg6[%c4, %c0_15, %c0_16] : memref<25x1x256xf32, #tpu.memory_space<vmem>>, vector<1x1x256xf32>
    %27 = vector.shape_cast %26 : vector<1x1x256xf32> to vector<1x256xf32>
    %28 = vector.broadcast %27 : vector<1x256xf32> to vector<8x256xf32>
    %29 = arith.mulf %25, %28 : vector<8x256xf32>
    %c32 = arith.constant 32 : index
    %c0_17 = arith.constant 0 : index
    %30 = vector.load %arg13[%c32, %c0_17] : memref<200x256xf32, #tpu.memory_space<vmem>>, vector<8x256xf32>
    tpu.vector_store %arg13[%c32, %c0_17], %29 {strides = array<i32>} : memref<200x256xf32, #tpu.memory_space<vmem>>, vector<8x256xf32>,
    %c17_i32 = arith.constant 17 : i32
    %31 = tpu.dynamic_rotate %0 by %c17_i32 dim 1 : vector<8x256xf32>, i32 -> vector<8x256xf32>
    %c5 = arith.constant 5 : index
    %c0_18 = arith.constant 0 : index
    %c0_19 = arith.constant 0 : index
    %32 = vector.load %arg6[%c5, %c0_18, %c0_19] : memref<25x1x256xf32, #tpu.memory_space<vmem>>, vector<1x1x256xf32>
    %33 = vector.shape_cast %32 : vector<1x1x256xf32> to vector<1x256xf32>
    %34 = vector.broadcast %33 : vector<1x256xf32> to vector<8x256xf32>
    %35 = arith.mulf %31, %34 : vector<8x256xf32>
    %c40 = arith.constant 40 : index
    %c0_20 = arith.constant 0 : index
    %36 = vector.load %arg13[%c40, %c0_20] : memref<200x256xf32, #tpu.memory_space<vmem>>, vector<8x256xf32>
    tpu.vector_store %arg13[%c40, %c0_20], %35 {strides = array<i32>} : memref<200x256xf32, #tpu.memory_space<vmem>>, vector<8x256xf32>,
    %c16_i32 = arith.constant 16 : i32
    %37 = tpu.dynamic_rotate %0 by %c16_i32 dim 1 : vector<8x256xf32>, i32 -> vector<8x256xf32>
    %c6 = arith.constant 6 : index
    %c0_21 = arith.constant 0 : index
    %c0_22 = arith.constant 0 : index
    %38 = vector.load %arg6[%c6, %c0_21, %c0_22] : memref<25x1x256xf32, #tpu.memory_space<vmem>>, vector<1x1x256xf32>
    %39 = vector.shape_cast %38 : vector<1x1x256xf32> to vector<1x256xf32>
    %40 = vector.broadcast %39 : vector<1x256xf32> to vector<8x256xf32>
    %41 = arith.mulf %37, %40 : vector<8x256xf32>
    %c48 = arith.constant 48 : index
    %c0_23 = arith.constant 0 : index
    %42 = vector.load %arg13[%c48, %c0_23] : memref<200x256xf32, #tpu.memory_space<vmem>>, vector<8x256xf32>
    tpu.vector_store %arg13[%c48, %c0_23], %41 {strides = array<i32>} : memref<200x256xf32, #tpu.memory_space<vmem>>, vector<8x256xf32>,
    %c15_i32 = arith.constant 15 : i32
    %43 = tpu.dynamic_rotate %0 by %c15_i32 dim 1 : vector<8x256xf32>, i32 -> vector<8x256xf32>
    %c7 = arith.constant 7 : index
    %c0_24 = arith.constant 0 : index
    %c0_25 = arith.constant 0 : index
    %44 = vector.load %arg6[%c7, %c0_24, %c0_25] : memref<25x1x256xf32, #tpu.memory_space<vmem>>, vector<1x1x256xf32>
    %45 = vector.shape_cast %44 : vector<1x1x256xf32> to vector<1x256xf32>
    %46 = vector.broadcast %45 : vector<1x256xf32> to vector<8x256xf32>
    %47 = arith.mulf %43, %46 : vector<8x256xf32>
    %c56 = arith.constant 56 : index
    %c0_26 = arith.constant 0 : index
    %48 = vector.load %arg13[%c56, %c0_26] : memref<200x256xf32, #tpu.memory_space<vmem>>, vector<8x256xf32>
    tpu.vector_store %arg13[%c56, %c0_26], %47 {strides = array<i32>} : memref<200x256xf32, #tpu.memory_space<vmem>>, vector<8x256xf32>,
    %c14_i32 = arith.constant 14 : i32
    %49 = tpu.dynamic_rotate %0 by %c14_i32 dim 1 : vector<8x256xf32>, i32 -> vector<8x256xf32>
    %c8_27 = arith.constant 8 : index
    %c0_28 = arith.constant 0 : index
    %c0_29 = arith.constant 0 : index
    %50 = vector.load %arg6[%c8_27, %c0_28, %c0_29] : memref<25x1x256xf32, #tpu.memory_space<vmem>>, vector<1x1x256xf32>
    %51 = vector.shape_cast %50 : vector<1x1x256xf32> to vector<1x256xf32>
    %52 = vector.broadcast %51 : vector<1x256xf32> to vector<8x256xf32>
    %53 = arith.mulf %49, %52 : vector<8x256xf32>
    %c64 = arith.constant 64 : index
    %c0_30 = arith.constant 0 : index
    %54 = vector.load %arg13[%c64, %c0_30] : memref<200x256xf32, #tpu.memory_space<vmem>>, vector<8x256xf32>
    tpu.vector_store %arg13[%c64, %c0_30], %53 {strides = array<i32>} : memref<200x256xf32, #tpu.memory_space<vmem>>, vector<8x256xf32>,
    %c13_i32 = arith.constant 13 : i32
    %55 = tpu.dynamic_rotate %0 by %c13_i32 dim 1 : vector<8x256xf32>, i32 -> vector<8x256xf32>
    %c9 = arith.constant 9 : index
    %c0_31 = arith.constant 0 : index
    %c0_32 = arith.constant 0 : index
    %56 = vector.load %arg6[%c9, %c0_31, %c0_32] : memref<25x1x256xf32, #tpu.memory_space<vmem>>, vector<1x1x256xf32>
    %57 = vector.shape_cast %56 : vector<1x1x256xf32> to vector<1x256xf32>
    %58 = vector.broadcast %57 : vector<1x256xf32> to vector<8x256xf32>
    %59 = arith.mulf %55, %58 : vector<8x256xf32>
    %c72 = arith.constant 72 : index
    %c0_33 = arith.constant 0 : index
    %60 = vector.load %arg13[%c72, %c0_33] : memref<200x256xf32, #tpu.memory_space<vmem>>, vector<8x256xf32>
    tpu.vector_store %arg13[%c72, %c0_33], %59 {strides = array<i32>} : memref<200x256xf32, #tpu.memory_space<vmem>>, vector<8x256xf32>,
    %c2_i32 = arith.constant 2 : i32
    %61 = tpu.dynamic_rotate %0 by %c2_i32 dim 1 : vector<8x256xf32>, i32 -> vector<8x256xf32>
    %c10 = arith.constant 10 : index
    %c0_34 = arith.constant 0 : index
    %c0_35 = arith.constant 0 : index
    %62 = vector.load %arg6[%c10, %c0_34, %c0_35] : memref<25x1x256xf32, #tpu.memory_space<vmem>>, vector<1x1x256xf32>
    %63 = vector.shape_cast %62 : vector<1x1x256xf32> to vector<1x256xf32>
    %64 = vector.broadcast %63 : vector<1x256xf32> to vector<8x256xf32>
    %65 = arith.mulf %61, %64 : vector<8x256xf32>
    %c80 = arith.constant 80 : index
    %c0_36 = arith.constant 0 : index
    %66 = vector.load %arg13[%c80, %c0_36] : memref<200x256xf32, #tpu.memory_space<vmem>>, vector<8x256xf32>
    tpu.vector_store %arg13[%c80, %c0_36], %65 {strides = array<i32>} : memref<200x256xf32, #tpu.memory_space<vmem>>, vector<8x256xf32>,
    %c1_i32 = arith.constant 1 : i32
    %67 = tpu.dynamic_rotate %0 by %c1_i32 dim 1 : vector<8x256xf32>, i32 -> vector<8x256xf32>
    %c11 = arith.constant 11 : index
    %c0_37 = arith.constant 0 : index
    %c0_38 = arith.constant 0 : index
    %68 = vector.load %arg6[%c11, %c0_37, %c0_38] : memref<25x1x256xf32, #tpu.memory_space<vmem>>, vector<1x1x256xf32>
    %69 = vector.shape_cast %68 : vector<1x1x256xf32> to vector<1x256xf32>
    %70 = vector.broadcast %69 : vector<1x256xf32> to vector<8x256xf32>
    %71 = arith.mulf %67, %70 : vector<8x256xf32>
    %c88 = arith.constant 88 : index
    %c0_39 = arith.constant 0 : index
    %72 = vector.load %arg13[%c88, %c0_39] : memref<200x256xf32, #tpu.memory_space<vmem>>, vector<8x256xf32>
    tpu.vector_store %arg13[%c88, %c0_39], %71 {strides = array<i32>} : memref<200x256xf32, #tpu.memory_space<vmem>>, vector<8x256xf32>,
    %c12 = arith.constant 12 : index
    %c0_40 = arith.constant 0 : index
    %c0_41 = arith.constant 0 : index
    %73 = vector.load %arg6[%c12, %c0_40, %c0_41] : memref<25x1x256xf32, #tpu.memory_space<vmem>>, vector<1x1x256xf32>
    %74 = vector.shape_cast %73 : vector<1x1x256xf32> to vector<1x256xf32>
    %75 = vector.broadcast %74 : vector<1x256xf32> to vector<8x256xf32>
    %76 = arith.mulf %0, %75 : vector<8x256xf32>
    %c96 = arith.constant 96 : index
    %c0_42 = arith.constant 0 : index
    %77 = vector.load %arg13[%c96, %c0_42] : memref<200x256xf32, #tpu.memory_space<vmem>>, vector<8x256xf32>
    tpu.vector_store %arg13[%c96, %c0_42], %76 {strides = array<i32>} : memref<200x256xf32, #tpu.memory_space<vmem>>, vector<8x256xf32>,
    %c255_i32 = arith.constant 255 : i32
    %78 = tpu.dynamic_rotate %0 by %c255_i32 dim 1 : vector<8x256xf32>, i32 -> vector<8x256xf32>
    %c13 = arith.constant 13 : index
    %c0_43 = arith.constant 0 : index
    %c0_44 = arith.constant 0 : index
    %79 = vector.load %arg6[%c13, %c0_43, %c0_44] : memref<25x1x256xf32, #tpu.memory_space<vmem>>, vector<1x1x256xf32>
    %80 = vector.shape_cast %79 : vector<1x1x256xf32> to vector<1x256xf32>
    %81 = vector.broadcast %80 : vector<1x256xf32> to vector<8x256xf32>
    %82 = arith.mulf %78, %81 : vector<8x256xf32>
    %c104 = arith.constant 104 : index
    %c0_45 = arith.constant 0 : index
    %83 = vector.load %arg13[%c104, %c0_45] : memref<200x256xf32, #tpu.memory_space<vmem>>, vector<8x256xf32>
    tpu.vector_store %arg13[%c104, %c0_45], %82 {strides = array<i32>} : memref<200x256xf32, #tpu.memory_space<vmem>>, vector<8x256xf32>,
    %c254_i32 = arith.constant 254 : i32
    %84 = tpu.dynamic_rotate %0 by %c254_i32 dim 1 : vector<8x256xf32>, i32 -> vector<8x256xf32>
    %c14 = arith.constant 14 : index
    %c0_46 = arith.constant 0 : index
    %c0_47 = arith.constant 0 : index
    %85 = vector.load %arg6[%c14, %c0_46, %c0_47] : memref<25x1x256xf32, #tpu.memory_space<vmem>>, vector<1x1x256xf32>
    %86 = vector.shape_cast %85 : vector<1x1x256xf32> to vector<1x256xf32>
    %87 = vector.broadcast %86 : vector<1x256xf32> to vector<8x256xf32>
    %88 = arith.mulf %84, %87 : vector<8x256xf32>
    %c112 = arith.constant 112 : index
    %c0_48 = arith.constant 0 : index
    %89 = vector.load %arg13[%c112, %c0_48] : memref<200x256xf32, #tpu.memory_space<vmem>>, vector<8x256xf32>
    tpu.vector_store %arg13[%c112, %c0_48], %88 {strides = array<i32>} : memref<200x256xf32, #tpu.memory_space<vmem>>, vector<8x256xf32>,
    %c243_i32 = arith.constant 243 : i32
    %90 = tpu.dynamic_rotate %0 by %c243_i32 dim 1 : vector<8x256xf32>, i32 -> vector<8x256xf32>
    %c15 = arith.constant 15 : index
    %c0_49 = arith.constant 0 : index
    %c0_50 = arith.constant 0 : index
    %91 = vector.load %arg6[%c15, %c0_49, %c0_50] : memref<25x1x256xf32, #tpu.memory_space<vmem>>, vector<1x1x256xf32>
    %92 = vector.shape_cast %91 : vector<1x1x256xf32> to vector<1x256xf32>
    %93 = vector.broadcast %92 : vector<1x256xf32> to vector<8x256xf32>
    %94 = arith.mulf %90, %93 : vector<8x256xf32>
    %c120 = arith.constant 120 : index
    %c0_51 = arith.constant 0 : index
    %95 = vector.load %arg13[%c120, %c0_51] : memref<200x256xf32, #tpu.memory_space<vmem>>, vector<8x256xf32>
    tpu.vector_store %arg13[%c120, %c0_51], %94 {strides = array<i32>} : memref<200x256xf32, #tpu.memory_space<vmem>>, vector<8x256xf32>,
    %c242_i32 = arith.constant 242 : i32
    %96 = tpu.dynamic_rotate %0 by %c242_i32 dim 1 : vector<8x256xf32>, i32 -> vector<8x256xf32>
    %c16_52 = arith.constant 16 : index
    %c0_53 = arith.constant 0 : index
    %c0_54 = arith.constant 0 : index
    %97 = vector.load %arg6[%c16_52, %c0_53, %c0_54] : memref<25x1x256xf32, #tpu.memory_space<vmem>>, vector<1x1x256xf32>
    %98 = vector.shape_cast %97 : vector<1x1x256xf32> to vector<1x256xf32>
    %99 = vector.broadcast %98 : vector<1x256xf32> to vector<8x256xf32>
    %100 = arith.mulf %96, %99 : vector<8x256xf32>
    %c128 = arith.constant 128 : index
    %c0_55 = arith.constant 0 : index
    %101 = vector.load %arg13[%c128, %c0_55] : memref<200x256xf32, #tpu.memory_space<vmem>>, vector<8x256xf32>
    tpu.vector_store %arg13[%c128, %c0_55], %100 {strides = array<i32>} : memref<200x256xf32, #tpu.memory_space<vmem>>, vector<8x256xf32>,
    %c241_i32 = arith.constant 241 : i32
    %102 = tpu.dynamic_rotate %0 by %c241_i32 dim 1 : vector<8x256xf32>, i32 -> vector<8x256xf32>
    %c17 = arith.constant 17 : index
    %c0_56 = arith.constant 0 : index
    %c0_57 = arith.constant 0 : index
    %103 = vector.load %arg6[%c17, %c0_56, %c0_57] : memref<25x1x256xf32, #tpu.memory_space<vmem>>, vector<1x1x256xf32>
    %104 = vector.shape_cast %103 : vector<1x1x256xf32> to vector<1x256xf32>
    %105 = vector.broadcast %104 : vector<1x256xf32> to vector<8x256xf32>
    %106 = arith.mulf %102, %105 : vector<8x256xf32>
    %c136 = arith.constant 136 : index
    %c0_58 = arith.constant 0 : index
    %107 = vector.load %arg13[%c136, %c0_58] : memref<200x256xf32, #tpu.memory_space<vmem>>, vector<8x256xf32>
    tpu.vector_store %arg13[%c136, %c0_58], %106 {strides = array<i32>} : memref<200x256xf32, #tpu.memory_space<vmem>>, vector<8x256xf32>,
    %c240_i32 = arith.constant 240 : i32
    %108 = tpu.dynamic_rotate %0 by %c240_i32 dim 1 : vector<8x256xf32>, i32 -> vector<8x256xf32>
    %c18 = arith.constant 18 : index
    %c0_59 = arith.constant 0 : index
    %c0_60 = arith.constant 0 : index
    %109 = vector.load %arg6[%c18, %c0_59, %c0_60] : memref<25x1x256xf32, #tpu.memory_space<vmem>>, vector<1x1x256xf32>
    %110 = vector.shape_cast %109 : vector<1x1x256xf32> to vector<1x256xf32>
    %111 = vector.broadcast %110 : vector<1x256xf32> to vector<8x256xf32>
    %112 = arith.mulf %108, %111 : vector<8x256xf32>
    %c144 = arith.constant 144 : index
    %c0_61 = arith.constant 0 : index
    %113 = vector.load %arg13[%c144, %c0_61] : memref<200x256xf32, #tpu.memory_space<vmem>>, vector<8x256xf32>
    tpu.vector_store %arg13[%c144, %c0_61], %112 {strides = array<i32>} : memref<200x256xf32, #tpu.memory_space<vmem>>, vector<8x256xf32>,
    %c239_i32 = arith.constant 239 : i32
    %114 = tpu.dynamic_rotate %0 by %c239_i32 dim 1 : vector<8x256xf32>, i32 -> vector<8x256xf32>
    %c19 = arith.constant 19 : index
    %c0_62 = arith.constant 0 : index
    %c0_63 = arith.constant 0 : index
    %115 = vector.load %arg6[%c19, %c0_62, %c0_63] : memref<25x1x256xf32, #tpu.memory_space<vmem>>, vector<1x1x256xf32>
    %116 = vector.shape_cast %115 : vector<1x1x256xf32> to vector<1x256xf32>
    %117 = vector.broadcast %116 : vector<1x256xf32> to vector<8x256xf32>
    %118 = arith.mulf %114, %117 : vector<8x256xf32>
    %c152 = arith.constant 152 : index
    %c0_64 = arith.constant 0 : index
    %119 = vector.load %arg13[%c152, %c0_64] : memref<200x256xf32, #tpu.memory_space<vmem>>, vector<8x256xf32>
    tpu.vector_store %arg13[%c152, %c0_64], %118 {strides = array<i32>} : memref<200x256xf32, #tpu.memory_space<vmem>>, vector<8x256xf32>,
    %c228_i32 = arith.constant 228 : i32
    %120 = tpu.dynamic_rotate %0 by %c228_i32 dim 1 : vector<8x256xf32>, i32 -> vector<8x256xf32>
    %c20 = arith.constant 20 : index
    %c0_65 = arith.constant 0 : index
    %c0_66 = arith.constant 0 : index
    %121 = vector.load %arg6[%c20, %c0_65, %c0_66] : memref<25x1x256xf32, #tpu.memory_space<vmem>>, vector<1x1x256xf32>
    %122 = vector.shape_cast %121 : vector<1x1x256xf32> to vector<1x256xf32>
    %123 = vector.broadcast %122 : vector<1x256xf32> to vector<8x256xf32>
    %124 = arith.mulf %120, %123 : vector<8x256xf32>
    %c160 = arith.constant 160 : index
    %c0_67 = arith.constant 0 : index
    %125 = vector.load %arg13[%c160, %c0_67] : memref<200x256xf32, #tpu.memory_space<vmem>>, vector<8x256xf32>
    tpu.vector_store %arg13[%c160, %c0_67], %124 {strides = array<i32>} : memref<200x256xf32, #tpu.memory_space<vmem>>, vector<8x256xf32>,
    %c227_i32 = arith.constant 227 : i32
    %126 = tpu.dynamic_rotate %0 by %c227_i32 dim 1 : vector<8x256xf32>, i32 -> vector<8x256xf32>
    %c21 = arith.constant 21 : index
    %c0_68 = arith.constant 0 : index
    %c0_69 = arith.constant 0 : index
    %127 = vector.load %arg6[%c21, %c0_68, %c0_69] : memref<25x1x256xf32, #tpu.memory_space<vmem>>, vector<1x1x256xf32>
    %128 = vector.shape_cast %127 : vector<1x1x256xf32> to vector<1x256xf32>
    %129 = vector.broadcast %128 : vector<1x256xf32> to vector<8x256xf32>
    %130 = arith.mulf %126, %129 : vector<8x256xf32>
    %c168 = arith.constant 168 : index
    %c0_70 = arith.constant 0 : index
    %131 = vector.load %arg13[%c168, %c0_70] : memref<200x256xf32, #tpu.memory_space<vmem>>, vector<8x256xf32>
    tpu.vector_store %arg13[%c168, %c0_70], %130 {strides = array<i32>} : memref<200x256xf32, #tpu.memory_space<vmem>>, vector<8x256xf32>,
    %c226_i32 = arith.constant 226 : i32
    %132 = tpu.dynamic_rotate %0 by %c226_i32 dim 1 : vector<8x256xf32>, i32 -> vector<8x256xf32>
    %c22 = arith.constant 22 : index
    %c0_71 = arith.constant 0 : index
    %c0_72 = arith.constant 0 : index
    %133 = vector.load %arg6[%c22, %c0_71, %c0_72] : memref<25x1x256xf32, #tpu.memory_space<vmem>>, vector<1x1x256xf32>
    %134 = vector.shape_cast %133 : vector<1x1x256xf32> to vector<1x256xf32>
    %135 = vector.broadcast %134 : vector<1x256xf32> to vector<8x256xf32>
    %136 = arith.mulf %132, %135 : vector<8x256xf32>
    %c176 = arith.constant 176 : index
    %c0_73 = arith.constant 0 : index
    %137 = vector.load %arg13[%c176, %c0_73] : memref<200x256xf32, #tpu.memory_space<vmem>>, vector<8x256xf32>
    tpu.vector_store %arg13[%c176, %c0_73], %136 {strides = array<i32>} : memref<200x256xf32, #tpu.memory_space<vmem>>, vector<8x256xf32>,
    %c225_i32 = arith.constant 225 : i32
    %138 = tpu.dynamic_rotate %0 by %c225_i32 dim 1 : vector<8x256xf32>, i32 -> vector<8x256xf32>
    %c23 = arith.constant 23 : index
    %c0_74 = arith.constant 0 : index
    %c0_75 = arith.constant 0 : index
    %139 = vector.load %arg6[%c23, %c0_74, %c0_75] : memref<25x1x256xf32, #tpu.memory_space<vmem>>, vector<1x1x256xf32>
    %140 = vector.shape_cast %139 : vector<1x1x256xf32> to vector<1x256xf32>
    %141 = vector.broadcast %140 : vector<1x256xf32> to vector<8x256xf32>
    %142 = arith.mulf %138, %141 : vector<8x256xf32>
    %c184 = arith.constant 184 : index
    %c0_76 = arith.constant 0 : index
    %143 = vector.load %arg13[%c184, %c0_76] : memref<200x256xf32, #tpu.memory_space<vmem>>, vector<8x256xf32>
    tpu.vector_store %arg13[%c184, %c0_76], %142 {strides = array<i32>} : memref<200x256xf32, #tpu.memory_space<vmem>>, vector<8x256xf32>,
    %c224_i32 = arith.constant 224 : i32
    %144 = tpu.dynamic_rotate %0 by %c224_i32 dim 1 : vector<8x256xf32>, i32 -> vector<8x256xf32>
    %c24_77 = arith.constant 24 : index
    %c0_78 = arith.constant 0 : index
    %c0_79 = arith.constant 0 : index
    %145 = vector.load %arg6[%c24_77, %c0_78, %c0_79] : memref<25x1x256xf32, #tpu.memory_space<vmem>>, vector<1x1x256xf32>
    %146 = vector.shape_cast %145 : vector<1x1x256xf32> to vector<1x256xf32>
    %147 = vector.broadcast %146 : vector<1x256xf32> to vector<8x256xf32>
    %148 = arith.mulf %144, %147 : vector<8x256xf32>
    %c192 = arith.constant 192 : index
    %c0_80 = arith.constant 0 : index
    %149 = vector.load %arg13[%c192, %c0_80] : memref<200x256xf32, #tpu.memory_space<vmem>>, vector<8x256xf32>
    tpu.vector_store %arg13[%c192, %c0_80], %148 {strides = array<i32>} : memref<200x256xf32, #tpu.memory_space<vmem>>, vector<8x256xf32>,
    %c0_81 = arith.constant 0 : index
    %c0_82 = arith.constant 0 : index
    %150 = vector.load %arg2[%c0_81, %c0_82] : memref<256x200xbf16, #tpu.memory_space<vmem>>, vector<256x200xbf16>
    %c0_83 = arith.constant 0 : index
    %c0_84 = arith.constant 0 : index
    %151 = vector.load %arg13[%c0_83, %c0_84] : memref<200x256xf32, #tpu.memory_space<vmem>>, vector<200x256xf32>
    %152 = arith.truncf %151 : vector<200x256xf32> to vector<200x256xbf16>
    %cst = arith.constant dense<0.000000e+00> : vector<256x256xf32>
    %153 = tpu.matmul %150, %152, %cst {dimension_numbers = #tpu.dot_dimension_numbers<[1], [0], [0], [1], [0, 0, 1, 1], [], []>} : vector<256x200xbf16>, vector<200x256xbf16>, vector<256x256xf32> -> vector<256x256xf32>
    %c0_85 = arith.constant 0 : index
    %c0_86 = arith.constant 0 : index
    %154 = vector.load %arg8[%c0_85, %c0_86] : memref<256x1xf32, #tpu.memory_space<vmem>>, vector<256x1xf32>
    %155 = vector.broadcast %154 : vector<256x1xf32> to vector<256x256xf32>
    %156 = arith.addf %153, %155 : vector<256x256xf32>
    %cst_87 = arith.constant 0.000000e+00 : f32
    %157 = vector.broadcast %cst_87 : f32 to vector<256x256xf32>
    %158 = arith.maximumf %156, %157 : vector<256x256xf32>
    %159 = arith.truncf %158 : vector<256x256xf32> to vector<256x256xbf16>
    %c0_88 = arith.constant 0 : index
    %c0_89 = arith.constant 0 : index
    %160 = vector.load %arg14[%c0_88, %c0_89] : memref<256x256xbf16, #tpu.memory_space<vmem>>, vector<256x256xbf16>
    tpu.vector_store %arg14[%c0_88, %c0_89], %159 {strides = array<i32>} : memref<256x256xbf16, #tpu.memory_space<vmem>>, vector<256x256xbf16>,
    %c0_90 = arith.constant 0 : index
    %c0_91 = arith.constant 0 : index
    %161 = vector.load %arg9[%c0_90, %c0_91] : memref<128x1xf32, #tpu.memory_space<vmem>>, vector<128x1xf32>
    %162 = vector.shape_cast %161 : vector<128x1xf32> to vector<128x1xf32>
    %163 = vector.broadcast %162 : vector<128x1xf32> to vector<128x256xf32>
    %c0_92 = arith.constant 0 : index
    %c0_93 = arith.constant 0 : index
    %164 = vector.load %arg15[%c0_92, %c0_93] : memref<128x256xf32, #tpu.memory_space<vmem>>, vector<128x256xf32>
    tpu.vector_store %arg15[%c0_92, %c0_93], %163 {strides = array<i32>} : memref<128x256xf32, #tpu.memory_space<vmem>>, vector<128x256xf32>,
    %c0_94 = arith.constant 0 : index
    %c0_95 = arith.constant 0 : index
    %c0_96 = arith.constant 0 : index
    %165 = vector.load %arg3[%c0_94, %c0_95, %c0_96] : memref<9x128x256xbf16, #tpu.memory_space<vmem>>, vector<1x128x256xbf16>
    %166 = vector.shape_cast %165 : vector<1x128x256xbf16> to vector<128x256xbf16>
    %c0_97 = arith.constant 0 : index
    %c0_98 = arith.constant 0 : index
    %167 = vector.load %arg14[%c0_97, %c0_98] : memref<256x256xbf16, #tpu.memory_space<vmem>>, vector<256x256xbf16>
    %cst_99 = arith.constant dense<0.000000e+00> : vector<128x256xf32>
    %168 = tpu.matmul %166, %167, %cst_99 {dimension_numbers = #tpu.dot_dimension_numbers<[1], [0], [0], [1], [0, 0, 1, 1], [], []>} : vector<128x256xbf16>, vector<256x256xbf16>, vector<128x256xf32> -> vector<128x256xf32>
    %c16_i32_100 = arith.constant 16 : i32
    %169 = tpu.dynamic_rotate %168 by %c16_i32_100 dim 1 : vector<128x256xf32>, i32 -> vector<128x256xf32>
    %c0_101 = arith.constant 0 : index
    %c0_102 = arith.constant 0 : index
    %170 = vector.load %arg15[%c0_101, %c0_102] : memref<128x256xf32, #tpu.memory_space<vmem>>, vector<128x256xf32>
    %c0_103 = arith.constant 0 : index
    %c0_104 = arith.constant 0 : index
    %c0_105 = arith.constant 0 : index
    %171 = vector.load %arg7[%c0_103, %c0_104, %c0_105] : memref<9x1x256xf32, #tpu.memory_space<vmem>>, vector<1x1x256xf32>
    %172 = vector.shape_cast %171 : vector<1x1x256xf32> to vector<1x256xf32>
    %173 = vector.broadcast %172 : vector<1x256xf32> to vector<128x256xf32>
    %174 = arith.mulf %169, %173 : vector<128x256xf32>
    %175 = arith.addf %170, %174 : vector<128x256xf32>
    %c0_106 = arith.constant 0 : index
    %c0_107 = arith.constant 0 : index
    %176 = vector.load %arg15[%c0_106, %c0_107] : memref<128x256xf32, #tpu.memory_space<vmem>>, vector<128x256xf32>
    tpu.vector_store %arg15[%c0_106, %c0_107], %175 {strides = array<i32>} : memref<128x256xf32, #tpu.memory_space<vmem>>, vector<128x256xf32>,
    %c1_108 = arith.constant 1 : index
    %c0_109 = arith.constant 0 : index
    %c0_110 = arith.constant 0 : index
    %177 = vector.load %arg3[%c1_108, %c0_109, %c0_110] : memref<9x128x256xbf16, #tpu.memory_space<vmem>>, vector<1x128x256xbf16>
    %178 = vector.shape_cast %177 : vector<1x128x256xbf16> to vector<128x256xbf16>
    %c0_111 = arith.constant 0 : index
    %c0_112 = arith.constant 0 : index
    %179 = vector.load %arg14[%c0_111, %c0_112] : memref<256x256xbf16, #tpu.memory_space<vmem>>, vector<256x256xbf16>
    %cst_113 = arith.constant dense<0.000000e+00> : vector<128x256xf32>
    %180 = tpu.matmul %178, %179, %cst_113 {dimension_numbers = #tpu.dot_dimension_numbers<[1], [0], [0], [1], [0, 0, 1, 1], [], []>} : vector<128x256xbf16>, vector<256x256xbf16>, vector<128x256xf32> -> vector<128x256xf32>
    %c15_i32_114 = arith.constant 15 : i32
    %181 = tpu.dynamic_rotate %180 by %c15_i32_114 dim 1 : vector<128x256xf32>, i32 -> vector<128x256xf32>
    %c0_115 = arith.constant 0 : index
    %c0_116 = arith.constant 0 : index
    %182 = vector.load %arg15[%c0_115, %c0_116] : memref<128x256xf32, #tpu.memory_space<vmem>>, vector<128x256xf32>
    %c1_117 = arith.constant 1 : index
    %c0_118 = arith.constant 0 : index
    %c0_119 = arith.constant 0 : index
    %183 = vector.load %arg7[%c1_117, %c0_118, %c0_119] : memref<9x1x256xf32, #tpu.memory_space<vmem>>, vector<1x1x256xf32>
    %184 = vector.shape_cast %183 : vector<1x1x256xf32> to vector<1x256xf32>
    %185 = vector.broadcast %184 : vector<1x256xf32> to vector<128x256xf32>
    %186 = arith.mulf %181, %185 : vector<128x256xf32>
    %187 = arith.addf %182, %186 : vector<128x256xf32>
    %c0_120 = arith.constant 0 : index
    %c0_121 = arith.constant 0 : index
    %188 = vector.load %arg15[%c0_120, %c0_121] : memref<128x256xf32, #tpu.memory_space<vmem>>, vector<128x256xf32>
    tpu.vector_store %arg15[%c0_120, %c0_121], %187 {strides = array<i32>} : memref<128x256xf32, #tpu.memory_space<vmem>>, vector<128x256xf32>,
    %c2_122 = arith.constant 2 : index
    %c0_123 = arith.constant 0 : index
    %c0_124 = arith.constant 0 : index
    %189 = vector.load %arg3[%c2_122, %c0_123, %c0_124] : memref<9x128x256xbf16, #tpu.memory_space<vmem>>, vector<1x128x256xbf16>
    %190 = vector.shape_cast %189 : vector<1x128x256xbf16> to vector<128x256xbf16>
    %c0_125 = arith.constant 0 : index
    %c0_126 = arith.constant 0 : index
    %191 = vector.load %arg14[%c0_125, %c0_126] : memref<256x256xbf16, #tpu.memory_space<vmem>>, vector<256x256xbf16>
    %cst_127 = arith.constant dense<0.000000e+00> : vector<128x256xf32>
    %192 = tpu.matmul %190, %191, %cst_127 {dimension_numbers = #tpu.dot_dimension_numbers<[1], [0], [0], [1], [0, 0, 1, 1], [], []>} : vector<128x256xbf16>, vector<256x256xbf16>, vector<128x256xf32> -> vector<128x256xf32>
    %c14_i32_128 = arith.constant 14 : i32
    %193 = tpu.dynamic_rotate %192 by %c14_i32_128 dim 1 : vector<128x256xf32>, i32 -> vector<128x256xf32>
    %c0_129 = arith.constant 0 : index
    %c0_130 = arith.constant 0 : index
    %194 = vector.load %arg15[%c0_129, %c0_130] : memref<128x256xf32, #tpu.memory_space<vmem>>, vector<128x256xf32>
    %c2_131 = arith.constant 2 : index
    %c0_132 = arith.constant 0 : index
    %c0_133 = arith.constant 0 : index
    %195 = vector.load %arg7[%c2_131, %c0_132, %c0_133] : memref<9x1x256xf32, #tpu.memory_space<vmem>>, vector<1x1x256xf32>
    %196 = vector.shape_cast %195 : vector<1x1x256xf32> to vector<1x256xf32>
    %197 = vector.broadcast %196 : vector<1x256xf32> to vector<128x256xf32>
    %198 = arith.mulf %193, %197 : vector<128x256xf32>
    %199 = arith.addf %194, %198 : vector<128x256xf32>
    %c0_134 = arith.constant 0 : index
    %c0_135 = arith.constant 0 : index
    %200 = vector.load %arg15[%c0_134, %c0_135] : memref<128x256xf32, #tpu.memory_space<vmem>>, vector<128x256xf32>
    tpu.vector_store %arg15[%c0_134, %c0_135], %199 {strides = array<i32>} : memref<128x256xf32, #tpu.memory_space<vmem>>, vector<128x256xf32>,
    %c3_136 = arith.constant 3 : index
    %c0_137 = arith.constant 0 : index
    %c0_138 = arith.constant 0 : index
    %201 = vector.load %arg3[%c3_136, %c0_137, %c0_138] : memref<9x128x256xbf16, #tpu.memory_space<vmem>>, vector<1x128x256xbf16>
    %202 = vector.shape_cast %201 : vector<1x128x256xbf16> to vector<128x256xbf16>
    %c0_139 = arith.constant 0 : index
    %c0_140 = arith.constant 0 : index
    %203 = vector.load %arg14[%c0_139, %c0_140] : memref<256x256xbf16, #tpu.memory_space<vmem>>, vector<256x256xbf16>
    %cst_141 = arith.constant dense<0.000000e+00> : vector<128x256xf32>
    %204 = tpu.matmul %202, %203, %cst_141 {dimension_numbers = #tpu.dot_dimension_numbers<[1], [0], [0], [1], [0, 0, 1, 1], [], []>} : vector<128x256xbf16>, vector<256x256xbf16>, vector<128x256xf32> -> vector<128x256xf32>
    %c1_i32_142 = arith.constant 1 : i32
    %205 = tpu.dynamic_rotate %204 by %c1_i32_142 dim 1 : vector<128x256xf32>, i32 -> vector<128x256xf32>
    %c0_143 = arith.constant 0 : index
    %c0_144 = arith.constant 0 : index
    %206 = vector.load %arg15[%c0_143, %c0_144] : memref<128x256xf32, #tpu.memory_space<vmem>>, vector<128x256xf32>
    %c3_145 = arith.constant 3 : index
    %c0_146 = arith.constant 0 : index
    %c0_147 = arith.constant 0 : index
    %207 = vector.load %arg7[%c3_145, %c0_146, %c0_147] : memref<9x1x256xf32, #tpu.memory_space<vmem>>, vector<1x1x256xf32>
    %208 = vector.shape_cast %207 : vector<1x1x256xf32> to vector<1x256xf32>
    %209 = vector.broadcast %208 : vector<1x256xf32> to vector<128x256xf32>
    %210 = arith.mulf %205, %209 : vector<128x256xf32>
    %211 = arith.addf %206, %210 : vector<128x256xf32>
    %c0_148 = arith.constant 0 : index
    %c0_149 = arith.constant 0 : index
    %212 = vector.load %arg15[%c0_148, %c0_149] : memref<128x256xf32, #tpu.memory_space<vmem>>, vector<128x256xf32>
    tpu.vector_store %arg15[%c0_148, %c0_149], %211 {strides = array<i32>} : memref<128x256xf32, #tpu.memory_space<vmem>>, vector<128x256xf32>,
    %c4_150 = arith.constant 4 : index
    %c0_151 = arith.constant 0 : index
    %c0_152 = arith.constant 0 : index
    %213 = vector.load %arg3[%c4_150, %c0_151, %c0_152] : memref<9x128x256xbf16, #tpu.memory_space<vmem>>, vector<1x128x256xbf16>
    %214 = vector.shape_cast %213 : vector<1x128x256xbf16> to vector<128x256xbf16>
    %c0_153 = arith.constant 0 : index
    %c0_154 = arith.constant 0 : index
    %215 = vector.load %arg14[%c0_153, %c0_154] : memref<256x256xbf16, #tpu.memory_space<vmem>>, vector<256x256xbf16>
    %cst_155 = arith.constant dense<0.000000e+00> : vector<128x256xf32>
    %216 = tpu.matmul %214, %215, %cst_155 {dimension_numbers = #tpu.dot_dimension_numbers<[1], [0], [0], [1], [0, 0, 1, 1], [], []>} : vector<128x256xbf16>, vector<256x256xbf16>, vector<128x256xf32> -> vector<128x256xf32>
    %c0_156 = arith.constant 0 : index
    %c0_157 = arith.constant 0 : index
    %217 = vector.load %arg15[%c0_156, %c0_157] : memref<128x256xf32, #tpu.memory_space<vmem>>, vector<128x256xf32>
    %c4_158 = arith.constant 4 : index
    %c0_159 = arith.constant 0 : index
    %c0_160 = arith.constant 0 : index
    %218 = vector.load %arg7[%c4_158, %c0_159, %c0_160] : memref<9x1x256xf32, #tpu.memory_space<vmem>>, vector<1x1x256xf32>
    %219 = vector.shape_cast %218 : vector<1x1x256xf32> to vector<1x256xf32>
    %220 = vector.broadcast %219 : vector<1x256xf32> to vector<128x256xf32>
    %221 = arith.mulf %216, %220 : vector<128x256xf32>
    %222 = arith.addf %217, %221 : vector<128x256xf32>
    %c0_161 = arith.constant 0 : index
    %c0_162 = arith.constant 0 : index
    %223 = vector.load %arg15[%c0_161, %c0_162] : memref<128x256xf32, #tpu.memory_space<vmem>>, vector<128x256xf32>
    tpu.vector_store %arg15[%c0_161, %c0_162], %222 {strides = array<i32>} : memref<128x256xf32, #tpu.memory_space<vmem>>, vector<128x256xf32>,
    %c5_163 = arith.constant 5 : index
    %c0_164 = arith.constant 0 : index
    %c0_165 = arith.constant 0 : index
    %224 = vector.load %arg3[%c5_163, %c0_164, %c0_165] : memref<9x128x256xbf16, #tpu.memory_space<vmem>>, vector<1x128x256xbf16>
    %225 = vector.shape_cast %224 : vector<1x128x256xbf16> to vector<128x256xbf16>
    %c0_166 = arith.constant 0 : index
    %c0_167 = arith.constant 0 : index
    %226 = vector.load %arg14[%c0_166, %c0_167] : memref<256x256xbf16, #tpu.memory_space<vmem>>, vector<256x256xbf16>
    %cst_168 = arith.constant dense<0.000000e+00> : vector<128x256xf32>
    %227 = tpu.matmul %225, %226, %cst_168 {dimension_numbers = #tpu.dot_dimension_numbers<[1], [0], [0], [1], [0, 0, 1, 1], [], []>} : vector<128x256xbf16>, vector<256x256xbf16>, vector<128x256xf32> -> vector<128x256xf32>
    %c255_i32_169 = arith.constant 255 : i32
    %228 = tpu.dynamic_rotate %227 by %c255_i32_169 dim 1 : vector<128x256xf32>, i32 -> vector<128x256xf32>
    %c0_170 = arith.constant 0 : index
    %c0_171 = arith.constant 0 : index
    %229 = vector.load %arg15[%c0_170, %c0_171] : memref<128x256xf32, #tpu.memory_space<vmem>>, vector<128x256xf32>
    %c5_172 = arith.constant 5 : index
    %c0_173 = arith.constant 0 : index
    %c0_174 = arith.constant 0 : index
    %230 = vector.load %arg7[%c5_172, %c0_173, %c0_174] : memref<9x1x256xf32, #tpu.memory_space<vmem>>, vector<1x1x256xf32>
    %231 = vector.shape_cast %230 : vector<1x1x256xf32> to vector<1x256xf32>
    %232 = vector.broadcast %231 : vector<1x256xf32> to vector<128x256xf32>
    %233 = arith.mulf %228, %232 : vector<128x256xf32>
    %234 = arith.addf %229, %233 : vector<128x256xf32>
    %c0_175 = arith.constant 0 : index
    %c0_176 = arith.constant 0 : index
    %235 = vector.load %arg15[%c0_175, %c0_176] : memref<128x256xf32, #tpu.memory_space<vmem>>, vector<128x256xf32>
    tpu.vector_store %arg15[%c0_175, %c0_176], %234 {strides = array<i32>} : memref<128x256xf32, #tpu.memory_space<vmem>>, vector<128x256xf32>,
    %c6_177 = arith.constant 6 : index
    %c0_178 = arith.constant 0 : index
    %c0_179 = arith.constant 0 : index
    %236 = vector.load %arg3[%c6_177, %c0_178, %c0_179] : memref<9x128x256xbf16, #tpu.memory_space<vmem>>, vector<1x128x256xbf16>
    %237 = vector.shape_cast %236 : vector<1x128x256xbf16> to vector<128x256xbf16>
    %c0_180 = arith.constant 0 : index
    %c0_181 = arith.constant 0 : index
    %238 = vector.load %arg14[%c0_180, %c0_181] : memref<256x256xbf16, #tpu.memory_space<vmem>>, vector<256x256xbf16>
    %cst_182 = arith.constant dense<0.000000e+00> : vector<128x256xf32>
    %239 = tpu.matmul %237, %238, %cst_182 {dimension_numbers = #tpu.dot_dimension_numbers<[1], [0], [0], [1], [0, 0, 1, 1], [], []>} : vector<128x256xbf16>, vector<256x256xbf16>, vector<128x256xf32> -> vector<128x256xf32>
    %c242_i32_183 = arith.constant 242 : i32
    %240 = tpu.dynamic_rotate %239 by %c242_i32_183 dim 1 : vector<128x256xf32>, i32 -> vector<128x256xf32>
    %c0_184 = arith.constant 0 : index
    %c0_185 = arith.constant 0 : index
    %241 = vector.load %arg15[%c0_184, %c0_185] : memref<128x256xf32, #tpu.memory_space<vmem>>, vector<128x256xf32>
    %c6_186 = arith.constant 6 : index
    %c0_187 = arith.constant 0 : index
    %c0_188 = arith.constant 0 : index
    %242 = vector.load %arg7[%c6_186, %c0_187, %c0_188] : memref<9x1x256xf32, #tpu.memory_space<vmem>>, vector<1x1x256xf32>
    %243 = vector.shape_cast %242 : vector<1x1x256xf32> to vector<1x256xf32>
    %244 = vector.broadcast %243 : vector<1x256xf32> to vector<128x256xf32>
    %245 = arith.mulf %240, %244 : vector<128x256xf32>
    %246 = arith.addf %241, %245 : vector<128x256xf32>
    %c0_189 = arith.constant 0 : index
    %c0_190 = arith.constant 0 : index
    %247 = vector.load %arg15[%c0_189, %c0_190] : memref<128x256xf32, #tpu.memory_space<vmem>>, vector<128x256xf32>
    tpu.vector_store %arg15[%c0_189, %c0_190], %246 {strides = array<i32>} : memref<128x256xf32, #tpu.memory_space<vmem>>, vector<128x256xf32>,
    %c7_191 = arith.constant 7 : index
    %c0_192 = arith.constant 0 : index
    %c0_193 = arith.constant 0 : index
    %248 = vector.load %arg3[%c7_191, %c0_192, %c0_193] : memref<9x128x256xbf16, #tpu.memory_space<vmem>>, vector<1x128x256xbf16>
    %249 = vector.shape_cast %248 : vector<1x128x256xbf16> to vector<128x256xbf16>
    %c0_194 = arith.constant 0 : index
    %c0_195 = arith.constant 0 : index
    %250 = vector.load %arg14[%c0_194, %c0_195] : memref<256x256xbf16, #tpu.memory_space<vmem>>, vector<256x256xbf16>
    %cst_196 = arith.constant dense<0.000000e+00> : vector<128x256xf32>
    %251 = tpu.matmul %249, %250, %cst_196 {dimension_numbers = #tpu.dot_dimension_numbers<[1], [0], [0], [1], [0, 0, 1, 1], [], []>} : vector<128x256xbf16>, vector<256x256xbf16>, vector<128x256xf32> -> vector<128x256xf32>
    %c241_i32_197 = arith.constant 241 : i32
    %252 = tpu.dynamic_rotate %251 by %c241_i32_197 dim 1 : vector<128x256xf32>, i32 -> vector<128x256xf32>
    %c0_198 = arith.constant 0 : index
    %c0_199 = arith.constant 0 : index
    %253 = vector.load %arg15[%c0_198, %c0_199] : memref<128x256xf32, #tpu.memory_space<vmem>>, vector<128x256xf32>
    %c7_200 = arith.constant 7 : index
    %c0_201 = arith.constant 0 : index
    %c0_202 = arith.constant 0 : index
    %254 = vector.load %arg7[%c7_200, %c0_201, %c0_202] : memref<9x1x256xf32, #tpu.memory_space<vmem>>, vector<1x1x256xf32>
    %255 = vector.shape_cast %254 : vector<1x1x256xf32> to vector<1x256xf32>
    %256 = vector.broadcast %255 : vector<1x256xf32> to vector<128x256xf32>
    %257 = arith.mulf %252, %256 : vector<128x256xf32>
    %258 = arith.addf %253, %257 : vector<128x256xf32>
    %c0_203 = arith.constant 0 : index
    %c0_204 = arith.constant 0 : index
    %259 = vector.load %arg15[%c0_203, %c0_204] : memref<128x256xf32, #tpu.memory_space<vmem>>, vector<128x256xf32>
    tpu.vector_store %arg15[%c0_203, %c0_204], %258 {strides = array<i32>} : memref<128x256xf32, #tpu.memory_space<vmem>>, vector<128x256xf32>,
    %c8_205 = arith.constant 8 : index
    %c0_206 = arith.constant 0 : index
    %c0_207 = arith.constant 0 : index
    %260 = vector.load %arg3[%c8_205, %c0_206, %c0_207] : memref<9x128x256xbf16, #tpu.memory_space<vmem>>, vector<1x128x256xbf16>
    %261 = vector.shape_cast %260 : vector<1x128x256xbf16> to vector<128x256xbf16>
    %c0_208 = arith.constant 0 : index
    %c0_209 = arith.constant 0 : index
    %262 = vector.load %arg14[%c0_208, %c0_209] : memref<256x256xbf16, #tpu.memory_space<vmem>>, vector<256x256xbf16>
    %cst_210 = arith.constant dense<0.000000e+00> : vector<128x256xf32>
    %263 = tpu.matmul %261, %262, %cst_210 {dimension_numbers = #tpu.dot_dimension_numbers<[1], [0], [0], [1], [0, 0, 1, 1], [], []>} : vector<128x256xbf16>, vector<256x256xbf16>, vector<128x256xf32> -> vector<128x256xf32>
    %c240_i32_211 = arith.constant 240 : i32
    %264 = tpu.dynamic_rotate %263 by %c240_i32_211 dim 1 : vector<128x256xf32>, i32 -> vector<128x256xf32>
    %c0_212 = arith.constant 0 : index
    %c0_213 = arith.constant 0 : index
    %265 = vector.load %arg15[%c0_212, %c0_213] : memref<128x256xf32, #tpu.memory_space<vmem>>, vector<128x256xf32>
    %c8_214 = arith.constant 8 : index
    %c0_215 = arith.constant 0 : index
    %c0_216 = arith.constant 0 : index
    %266 = vector.load %arg7[%c8_214, %c0_215, %c0_216] : memref<9x1x256xf32, #tpu.memory_space<vmem>>, vector<1x1x256xf32>
    %267 = vector.shape_cast %266 : vector<1x1x256xf32> to vector<1x256xf32>
    %268 = vector.broadcast %267 : vector<1x256xf32> to vector<128x256xf32>
    %269 = arith.mulf %264, %268 : vector<128x256xf32>
    %270 = arith.addf %265, %269 : vector<128x256xf32>
    %c0_217 = arith.constant 0 : index
    %c0_218 = arith.constant 0 : index
    %271 = vector.load %arg15[%c0_217, %c0_218] : memref<128x256xf32, #tpu.memory_space<vmem>>, vector<128x256xf32>
    tpu.vector_store %arg15[%c0_217, %c0_218], %270 {strides = array<i32>} : memref<128x256xf32, #tpu.memory_space<vmem>>, vector<128x256xf32>,
    %c0_219 = arith.constant 0 : index
    %c0_220 = arith.constant 0 : index
    %272 = vector.load %arg15[%c0_219, %c0_220] : memref<128x256xf32, #tpu.memory_space<vmem>>, vector<128x256xf32>
    %cst_221 = arith.constant 0.000000e+00 : f32
    %273 = vector.broadcast %cst_221 : f32 to vector<128x256xf32>
    %274 = arith.maximumf %272, %273 : vector<128x256xf32>
    %275 = arith.truncf %274 : vector<128x256xf32> to vector<128x256xbf16>
    %c0_222 = arith.constant 0 : index
    %c0_223 = arith.constant 0 : index
    %276 = vector.load %arg16[%c0_222, %c0_223] : memref<128x256xbf16, #tpu.memory_space<vmem>>, vector<128x256xbf16>
    tpu.vector_store %arg16[%c0_222, %c0_223], %275 {strides = array<i32>} : memref<128x256xbf16, #tpu.memory_space<vmem>>, vector<128x256xbf16>,
    %c0_224 = arith.constant 0 : index
    %c0_225 = arith.constant 0 : index
    %277 = vector.load %arg10[%c0_224, %c0_225] : memref<64x1xf32, #tpu.memory_space<vmem>>, vector<64x1xf32>
    %278 = vector.shape_cast %277 : vector<64x1xf32> to vector<64x1xf32>
    %279 = vector.broadcast %278 : vector<64x1xf32> to vector<64x256xf32>
    %c0_226 = arith.constant 0 : index
    %c0_227 = arith.constant 0 : index
    %280 = vector.load %arg17[%c0_226, %c0_227] : memref<64x256xf32, #tpu.memory_space<vmem>>, vector<64x256xf32>
    tpu.vector_store %arg17[%c0_226, %c0_227], %279 {strides = array<i32>} : memref<64x256xf32, #tpu.memory_space<vmem>>, vector<64x256xf32>,
    %c0_228 = arith.constant 0 : index
    %c0_229 = arith.constant 0 : index
    %c0_230 = arith.constant 0 : index
    %281 = vector.load %arg4[%c0_228, %c0_229, %c0_230] : memref<9x64x128xbf16, #tpu.memory_space<vmem>>, vector<1x64x128xbf16>
    %282 = vector.shape_cast %281 : vector<1x64x128xbf16> to vector<64x128xbf16>
    %c0_231 = arith.constant 0 : index
    %c0_232 = arith.constant 0 : index
    %283 = vector.load %arg16[%c0_231, %c0_232] : memref<128x256xbf16, #tpu.memory_space<vmem>>, vector<128x256xbf16>
    %cst_233 = arith.constant dense<0.000000e+00> : vector<64x256xf32>
    %284 = tpu.matmul %282, %283, %cst_233 {dimension_numbers = #tpu.dot_dimension_numbers<[1], [0], [0], [1], [0, 0, 1, 1], [], []>} : vector<64x128xbf16>, vector<128x256xbf16>, vector<64x256xf32> -> vector<64x256xf32>
    %c16_i32_234 = arith.constant 16 : i32
    %285 = tpu.dynamic_rotate %284 by %c16_i32_234 dim 1 : vector<64x256xf32>, i32 -> vector<64x256xf32>
    %c0_235 = arith.constant 0 : index
    %c0_236 = arith.constant 0 : index
    %286 = vector.load %arg17[%c0_235, %c0_236] : memref<64x256xf32, #tpu.memory_space<vmem>>, vector<64x256xf32>
    %c0_237 = arith.constant 0 : index
    %c0_238 = arith.constant 0 : index
    %c0_239 = arith.constant 0 : index
    %287 = vector.load %arg7[%c0_237, %c0_238, %c0_239] : memref<9x1x256xf32, #tpu.memory_space<vmem>>, vector<1x1x256xf32>
    %288 = vector.shape_cast %287 : vector<1x1x256xf32> to vector<1x256xf32>
    %289 = vector.broadcast %288 : vector<1x256xf32> to vector<64x256xf32>
    %290 = arith.mulf %285, %289 : vector<64x256xf32>
    %291 = arith.addf %286, %290 : vector<64x256xf32>
    %c0_240 = arith.constant 0 : index
    %c0_241 = arith.constant 0 : index
    %292 = vector.load %arg17[%c0_240, %c0_241] : memref<64x256xf32, #tpu.memory_space<vmem>>, vector<64x256xf32>
    tpu.vector_store %arg17[%c0_240, %c0_241], %291 {strides = array<i32>} : memref<64x256xf32, #tpu.memory_space<vmem>>, vector<64x256xf32>,
    %c1_242 = arith.constant 1 : index
    %c0_243 = arith.constant 0 : index
    %c0_244 = arith.constant 0 : index
    %293 = vector.load %arg4[%c1_242, %c0_243, %c0_244] : memref<9x64x128xbf16, #tpu.memory_space<vmem>>, vector<1x64x128xbf16>
    %294 = vector.shape_cast %293 : vector<1x64x128xbf16> to vector<64x128xbf16>
    %c0_245 = arith.constant 0 : index
    %c0_246 = arith.constant 0 : index
    %295 = vector.load %arg16[%c0_245, %c0_246] : memref<128x256xbf16, #tpu.memory_space<vmem>>, vector<128x256xbf16>
    %cst_247 = arith.constant dense<0.000000e+00> : vector<64x256xf32>
    %296 = tpu.matmul %294, %295, %cst_247 {dimension_numbers = #tpu.dot_dimension_numbers<[1], [0], [0], [1], [0, 0, 1, 1], [], []>} : vector<64x128xbf16>, vector<128x256xbf16>, vector<64x256xf32> -> vector<64x256xf32>
    %c15_i32_248 = arith.constant 15 : i32
    %297 = tpu.dynamic_rotate %296 by %c15_i32_248 dim 1 : vector<64x256xf32>, i32 -> vector<64x256xf32>
    %c0_249 = arith.constant 0 : index
    %c0_250 = arith.constant 0 : index
    %298 = vector.load %arg17[%c0_249, %c0_250] : memref<64x256xf32, #tpu.memory_space<vmem>>, vector<64x256xf32>
    %c1_251 = arith.constant 1 : index
    %c0_252 = arith.constant 0 : index
    %c0_253 = arith.constant 0 : index
    %299 = vector.load %arg7[%c1_251, %c0_252, %c0_253] : memref<9x1x256xf32, #tpu.memory_space<vmem>>, vector<1x1x256xf32>
    %300 = vector.shape_cast %299 : vector<1x1x256xf32> to vector<1x256xf32>
    %301 = vector.broadcast %300 : vector<1x256xf32> to vector<64x256xf32>
    %302 = arith.mulf %297, %301 : vector<64x256xf32>
    %303 = arith.addf %298, %302 : vector<64x256xf32>
    %c0_254 = arith.constant 0 : index
    %c0_255 = arith.constant 0 : index
    %304 = vector.load %arg17[%c0_254, %c0_255] : memref<64x256xf32, #tpu.memory_space<vmem>>, vector<64x256xf32>
    tpu.vector_store %arg17[%c0_254, %c0_255], %303 {strides = array<i32>} : memref<64x256xf32, #tpu.memory_space<vmem>>, vector<64x256xf32>,
    %c2_256 = arith.constant 2 : index
    %c0_257 = arith.constant 0 : index
    %c0_258 = arith.constant 0 : index
    %305 = vector.load %arg4[%c2_256, %c0_257, %c0_258] : memref<9x64x128xbf16, #tpu.memory_space<vmem>>, vector<1x64x128xbf16>
    %306 = vector.shape_cast %305 : vector<1x64x128xbf16> to vector<64x128xbf16>
    %c0_259 = arith.constant 0 : index
    %c0_260 = arith.constant 0 : index
    %307 = vector.load %arg16[%c0_259, %c0_260] : memref<128x256xbf16, #tpu.memory_space<vmem>>, vector<128x256xbf16>
    %cst_261 = arith.constant dense<0.000000e+00> : vector<64x256xf32>
    %308 = tpu.matmul %306, %307, %cst_261 {dimension_numbers = #tpu.dot_dimension_numbers<[1], [0], [0], [1], [0, 0, 1, 1], [], []>} : vector<64x128xbf16>, vector<128x256xbf16>, vector<64x256xf32> -> vector<64x256xf32>
    %c14_i32_262 = arith.constant 14 : i32
    %309 = tpu.dynamic_rotate %308 by %c14_i32_262 dim 1 : vector<64x256xf32>, i32 -> vector<64x256xf32>
    %c0_263 = arith.constant 0 : index
    %c0_264 = arith.constant 0 : index
    %310 = vector.load %arg17[%c0_263, %c0_264] : memref<64x256xf32, #tpu.memory_space<vmem>>, vector<64x256xf32>
    %c2_265 = arith.constant 2 : index
    %c0_266 = arith.constant 0 : index
    %c0_267 = arith.constant 0 : index
    %311 = vector.load %arg7[%c2_265, %c0_266, %c0_267] : memref<9x1x256xf32, #tpu.memory_space<vmem>>, vector<1x1x256xf32>
    %312 = vector.shape_cast %311 : vector<1x1x256xf32> to vector<1x256xf32>
    %313 = vector.broadcast %312 : vector<1x256xf32> to vector<64x256xf32>
    %314 = arith.mulf %309, %313 : vector<64x256xf32>
    %315 = arith.addf %310, %314 : vector<64x256xf32>
    %c0_268 = arith.constant 0 : index
    %c0_269 = arith.constant 0 : index
    %316 = vector.load %arg17[%c0_268, %c0_269] : memref<64x256xf32, #tpu.memory_space<vmem>>, vector<64x256xf32>
    tpu.vector_store %arg17[%c0_268, %c0_269], %315 {strides = array<i32>} : memref<64x256xf32, #tpu.memory_space<vmem>>, vector<64x256xf32>,
    %c3_270 = arith.constant 3 : index
    %c0_271 = arith.constant 0 : index
    %c0_272 = arith.constant 0 : index
    %317 = vector.load %arg4[%c3_270, %c0_271, %c0_272] : memref<9x64x128xbf16, #tpu.memory_space<vmem>>, vector<1x64x128xbf16>
    %318 = vector.shape_cast %317 : vector<1x64x128xbf16> to vector<64x128xbf16>
    %c0_273 = arith.constant 0 : index
    %c0_274 = arith.constant 0 : index
    %319 = vector.load %arg16[%c0_273, %c0_274] : memref<128x256xbf16, #tpu.memory_space<vmem>>, vector<128x256xbf16>
    %cst_275 = arith.constant dense<0.000000e+00> : vector<64x256xf32>
    %320 = tpu.matmul %318, %319, %cst_275 {dimension_numbers = #tpu.dot_dimension_numbers<[1], [0], [0], [1], [0, 0, 1, 1], [], []>} : vector<64x128xbf16>, vector<128x256xbf16>, vector<64x256xf32> -> vector<64x256xf32>
    %c1_i32_276 = arith.constant 1 : i32
    %321 = tpu.dynamic_rotate %320 by %c1_i32_276 dim 1 : vector<64x256xf32>, i32 -> vector<64x256xf32>
    %c0_277 = arith.constant 0 : index
    %c0_278 = arith.constant 0 : index
    %322 = vector.load %arg17[%c0_277, %c0_278] : memref<64x256xf32, #tpu.memory_space<vmem>>, vector<64x256xf32>
    %c3_279 = arith.constant 3 : index
    %c0_280 = arith.constant 0 : index
    %c0_281 = arith.constant 0 : index
    %323 = vector.load %arg7[%c3_279, %c0_280, %c0_281] : memref<9x1x256xf32, #tpu.memory_space<vmem>>, vector<1x1x256xf32>
    %324 = vector.shape_cast %323 : vector<1x1x256xf32> to vector<1x256xf32>
    %325 = vector.broadcast %324 : vector<1x256xf32> to vector<64x256xf32>
    %326 = arith.mulf %321, %325 : vector<64x256xf32>
    %327 = arith.addf %322, %326 : vector<64x256xf32>
    %c0_282 = arith.constant 0 : index
    %c0_283 = arith.constant 0 : index
    %328 = vector.load %arg17[%c0_282, %c0_283] : memref<64x256xf32, #tpu.memory_space<vmem>>, vector<64x256xf32>
    tpu.vector_store %arg17[%c0_282, %c0_283], %327 {strides = array<i32>} : memref<64x256xf32, #tpu.memory_space<vmem>>, vector<64x256xf32>,
    %c4_284 = arith.constant 4 : index
    %c0_285 = arith.constant 0 : index
    %c0_286 = arith.constant 0 : index
    %329 = vector.load %arg4[%c4_284, %c0_285, %c0_286] : memref<9x64x128xbf16, #tpu.memory_space<vmem>>, vector<1x64x128xbf16>
    %330 = vector.shape_cast %329 : vector<1x64x128xbf16> to vector<64x128xbf16>
    %c0_287 = arith.constant 0 : index
    %c0_288 = arith.constant 0 : index
    %331 = vector.load %arg16[%c0_287, %c0_288] : memref<128x256xbf16, #tpu.memory_space<vmem>>, vector<128x256xbf16>
    %cst_289 = arith.constant dense<0.000000e+00> : vector<64x256xf32>
    %332 = tpu.matmul %330, %331, %cst_289 {dimension_numbers = #tpu.dot_dimension_numbers<[1], [0], [0], [1], [0, 0, 1, 1], [], []>} : vector<64x128xbf16>, vector<128x256xbf16>, vector<64x256xf32> -> vector<64x256xf32>
    %c0_290 = arith.constant 0 : index
    %c0_291 = arith.constant 0 : index
    %333 = vector.load %arg17[%c0_290, %c0_291] : memref<64x256xf32, #tpu.memory_space<vmem>>, vector<64x256xf32>
    %c4_292 = arith.constant 4 : index
    %c0_293 = arith.constant 0 : index
    %c0_294 = arith.constant 0 : index
    %334 = vector.load %arg7[%c4_292, %c0_293, %c0_294] : memref<9x1x256xf32, #tpu.memory_space<vmem>>, vector<1x1x256xf32>
    %335 = vector.shape_cast %334 : vector<1x1x256xf32> to vector<1x256xf32>
    %336 = vector.broadcast %335 : vector<1x256xf32> to vector<64x256xf32>
    %337 = arith.mulf %332, %336 : vector<64x256xf32>
    %338 = arith.addf %333, %337 : vector<64x256xf32>
    %c0_295 = arith.constant 0 : index
    %c0_296 = arith.constant 0 : index
    %339 = vector.load %arg17[%c0_295, %c0_296] : memref<64x256xf32, #tpu.memory_space<vmem>>, vector<64x256xf32>
    tpu.vector_store %arg17[%c0_295, %c0_296], %338 {strides = array<i32>} : memref<64x256xf32, #tpu.memory_space<vmem>>, vector<64x256xf32>,
    %c5_297 = arith.constant 5 : index
    %c0_298 = arith.constant 0 : index
    %c0_299 = arith.constant 0 : index
    %340 = vector.load %arg4[%c5_297, %c0_298, %c0_299] : memref<9x64x128xbf16, #tpu.memory_space<vmem>>, vector<1x64x128xbf16>
    %341 = vector.shape_cast %340 : vector<1x64x128xbf16> to vector<64x128xbf16>
    %c0_300 = arith.constant 0 : index
    %c0_301 = arith.constant 0 : index
    %342 = vector.load %arg16[%c0_300, %c0_301] : memref<128x256xbf16, #tpu.memory_space<vmem>>, vector<128x256xbf16>
    %cst_302 = arith.constant dense<0.000000e+00> : vector<64x256xf32>
    %343 = tpu.matmul %341, %342, %cst_302 {dimension_numbers = #tpu.dot_dimension_numbers<[1], [0], [0], [1], [0, 0, 1, 1], [], []>} : vector<64x128xbf16>, vector<128x256xbf16>, vector<64x256xf32> -> vector<64x256xf32>
    %c255_i32_303 = arith.constant 255 : i32
    %344 = tpu.dynamic_rotate %343 by %c255_i32_303 dim 1 : vector<64x256xf32>, i32 -> vector<64x256xf32>
    %c0_304 = arith.constant 0 : index
    %c0_305 = arith.constant 0 : index
    %345 = vector.load %arg17[%c0_304, %c0_305] : memref<64x256xf32, #tpu.memory_space<vmem>>, vector<64x256xf32>
    %c5_306 = arith.constant 5 : index
    %c0_307 = arith.constant 0 : index
    %c0_308 = arith.constant 0 : index
    %346 = vector.load %arg7[%c5_306, %c0_307, %c0_308] : memref<9x1x256xf32, #tpu.memory_space<vmem>>, vector<1x1x256xf32>
    %347 = vector.shape_cast %346 : vector<1x1x256xf32> to vector<1x256xf32>
    %348 = vector.broadcast %347 : vector<1x256xf32> to vector<64x256xf32>
    %349 = arith.mulf %344, %348 : vector<64x256xf32>
    %350 = arith.addf %345, %349 : vector<64x256xf32>
    %c0_309 = arith.constant 0 : index
    %c0_310 = arith.constant 0 : index
    %351 = vector.load %arg17[%c0_309, %c0_310] : memref<64x256xf32, #tpu.memory_space<vmem>>, vector<64x256xf32>
    tpu.vector_store %arg17[%c0_309, %c0_310], %350 {strides = array<i32>} : memref<64x256xf32, #tpu.memory_space<vmem>>, vector<64x256xf32>,
    %c6_311 = arith.constant 6 : index
    %c0_312 = arith.constant 0 : index
    %c0_313 = arith.constant 0 : index
    %352 = vector.load %arg4[%c6_311, %c0_312, %c0_313] : memref<9x64x128xbf16, #tpu.memory_space<vmem>>, vector<1x64x128xbf16>
    %353 = vector.shape_cast %352 : vector<1x64x128xbf16> to vector<64x128xbf16>
    %c0_314 = arith.constant 0 : index
    %c0_315 = arith.constant 0 : index
    %354 = vector.load %arg16[%c0_314, %c0_315] : memref<128x256xbf16, #tpu.memory_space<vmem>>, vector<128x256xbf16>
    %cst_316 = arith.constant dense<0.000000e+00> : vector<64x256xf32>
    %355 = tpu.matmul %353, %354, %cst_316 {dimension_numbers = #tpu.dot_dimension_numbers<[1], [0], [0], [1], [0, 0, 1, 1], [], []>} : vector<64x128xbf16>, vector<128x256xbf16>, vector<64x256xf32> -> vector<64x256xf32>
    %c242_i32_317 = arith.constant 242 : i32
    %356 = tpu.dynamic_rotate %355 by %c242_i32_317 dim 1 : vector<64x256xf32>, i32 -> vector<64x256xf32>
    %c0_318 = arith.constant 0 : index
    %c0_319 = arith.constant 0 : index
    %357 = vector.load %arg17[%c0_318, %c0_319] : memref<64x256xf32, #tpu.memory_space<vmem>>, vector<64x256xf32>
    %c6_320 = arith.constant 6 : index
    %c0_321 = arith.constant 0 : index
    %c0_322 = arith.constant 0 : index
    %358 = vector.load %arg7[%c6_320, %c0_321, %c0_322] : memref<9x1x256xf32, #tpu.memory_space<vmem>>, vector<1x1x256xf32>
    %359 = vector.shape_cast %358 : vector<1x1x256xf32> to vector<1x256xf32>
    %360 = vector.broadcast %359 : vector<1x256xf32> to vector<64x256xf32>
    %361 = arith.mulf %356, %360 : vector<64x256xf32>
    %362 = arith.addf %357, %361 : vector<64x256xf32>
    %c0_323 = arith.constant 0 : index
    %c0_324 = arith.constant 0 : index
    %363 = vector.load %arg17[%c0_323, %c0_324] : memref<64x256xf32, #tpu.memory_space<vmem>>, vector<64x256xf32>
    tpu.vector_store %arg17[%c0_323, %c0_324], %362 {strides = array<i32>} : memref<64x256xf32, #tpu.memory_space<vmem>>, vector<64x256xf32>,
    %c7_325 = arith.constant 7 : index
    %c0_326 = arith.constant 0 : index
    %c0_327 = arith.constant 0 : index
    %364 = vector.load %arg4[%c7_325, %c0_326, %c0_327] : memref<9x64x128xbf16, #tpu.memory_space<vmem>>, vector<1x64x128xbf16>
    %365 = vector.shape_cast %364 : vector<1x64x128xbf16> to vector<64x128xbf16>
    %c0_328 = arith.constant 0 : index
    %c0_329 = arith.constant 0 : index
    %366 = vector.load %arg16[%c0_328, %c0_329] : memref<128x256xbf16, #tpu.memory_space<vmem>>, vector<128x256xbf16>
    %cst_330 = arith.constant dense<0.000000e+00> : vector<64x256xf32>
    %367 = tpu.matmul %365, %366, %cst_330 {dimension_numbers = #tpu.dot_dimension_numbers<[1], [0], [0], [1], [0, 0, 1, 1], [], []>} : vector<64x128xbf16>, vector<128x256xbf16>, vector<64x256xf32> -> vector<64x256xf32>
    %c241_i32_331 = arith.constant 241 : i32
    %368 = tpu.dynamic_rotate %367 by %c241_i32_331 dim 1 : vector<64x256xf32>, i32 -> vector<64x256xf32>
    %c0_332 = arith.constant 0 : index
    %c0_333 = arith.constant 0 : index
    %369 = vector.load %arg17[%c0_332, %c0_333] : memref<64x256xf32, #tpu.memory_space<vmem>>, vector<64x256xf32>
    %c7_334 = arith.constant 7 : index
    %c0_335 = arith.constant 0 : index
    %c0_336 = arith.constant 0 : index
    %370 = vector.load %arg7[%c7_334, %c0_335, %c0_336] : memref<9x1x256xf32, #tpu.memory_space<vmem>>, vector<1x1x256xf32>
    %371 = vector.shape_cast %370 : vector<1x1x256xf32> to vector<1x256xf32>
    %372 = vector.broadcast %371 : vector<1x256xf32> to vector<64x256xf32>
    %373 = arith.mulf %368, %372 : vector<64x256xf32>
    %374 = arith.addf %369, %373 : vector<64x256xf32>
    %c0_337 = arith.constant 0 : index
    %c0_338 = arith.constant 0 : index
    %375 = vector.load %arg17[%c0_337, %c0_338] : memref<64x256xf32, #tpu.memory_space<vmem>>, vector<64x256xf32>
    tpu.vector_store %arg17[%c0_337, %c0_338], %374 {strides = array<i32>} : memref<64x256xf32, #tpu.memory_space<vmem>>, vector<64x256xf32>,
    %c8_339 = arith.constant 8 : index
    %c0_340 = arith.constant 0 : index
    %c0_341 = arith.constant 0 : index
    %376 = vector.load %arg4[%c8_339, %c0_340, %c0_341] : memref<9x64x128xbf16, #tpu.memory_space<vmem>>, vector<1x64x128xbf16>
    %377 = vector.shape_cast %376 : vector<1x64x128xbf16> to vector<64x128xbf16>
    %c0_342 = arith.constant 0 : index
    %c0_343 = arith.constant 0 : index
    %378 = vector.load %arg16[%c0_342, %c0_343] : memref<128x256xbf16, #tpu.memory_space<vmem>>, vector<128x256xbf16>
    %cst_344 = arith.constant dense<0.000000e+00> : vector<64x256xf32>
    %379 = tpu.matmul %377, %378, %cst_344 {dimension_numbers = #tpu.dot_dimension_numbers<[1], [0], [0], [1], [0, 0, 1, 1], [], []>} : vector<64x128xbf16>, vector<128x256xbf16>, vector<64x256xf32> -> vector<64x256xf32>
    %c240_i32_345 = arith.constant 240 : i32
    %380 = tpu.dynamic_rotate %379 by %c240_i32_345 dim 1 : vector<64x256xf32>, i32 -> vector<64x256xf32>
    %c0_346 = arith.constant 0 : index
    %c0_347 = arith.constant 0 : index
    %381 = vector.load %arg17[%c0_346, %c0_347] : memref<64x256xf32, #tpu.memory_space<vmem>>, vector<64x256xf32>
    %c8_348 = arith.constant 8 : index
    %c0_349 = arith.constant 0 : index
    %c0_350 = arith.constant 0 : index
    %382 = vector.load %arg7[%c8_348, %c0_349, %c0_350] : memref<9x1x256xf32, #tpu.memory_space<vmem>>, vector<1x1x256xf32>
    %383 = vector.shape_cast %382 : vector<1x1x256xf32> to vector<1x256xf32>
    %384 = vector.broadcast %383 : vector<1x256xf32> to vector<64x256xf32>
    %385 = arith.mulf %380, %384 : vector<64x256xf32>
    %386 = arith.addf %381, %385 : vector<64x256xf32>
    %c0_351 = arith.constant 0 : index
    %c0_352 = arith.constant 0 : index
    %387 = vector.load %arg17[%c0_351, %c0_352] : memref<64x256xf32, #tpu.memory_space<vmem>>, vector<64x256xf32>
    tpu.vector_store %arg17[%c0_351, %c0_352], %386 {strides = array<i32>} : memref<64x256xf32, #tpu.memory_space<vmem>>, vector<64x256xf32>,
    %c0_353 = arith.constant 0 : index
    %c0_354 = arith.constant 0 : index
    %388 = vector.load %arg17[%c0_353, %c0_354] : memref<64x256xf32, #tpu.memory_space<vmem>>, vector<64x256xf32>
    %cst_355 = arith.constant 0.000000e+00 : f32
    %389 = vector.broadcast %cst_355 : f32 to vector<64x256xf32>
    %390 = arith.maximumf %388, %389 : vector<64x256xf32>
    %391 = arith.truncf %390 : vector<64x256xf32> to vector<64x256xbf16>
    %c0_356 = arith.constant 0 : index
    %c0_357 = arith.constant 0 : index
    %392 = vector.load %arg5[%c0_356, %c0_357] : memref<8x64xbf16, #tpu.memory_space<vmem>>, vector<8x64xbf16>
    %cst_358 = arith.constant dense<0.000000e+00> : vector<8x256xf32>
    %393 = tpu.matmul %392, %391, %cst_358 {dimension_numbers = #tpu.dot_dimension_numbers<[1], [0], [0], [1], [0, 0, 1, 1], [], []>} : vector<8x64xbf16>, vector<64x256xbf16>, vector<8x256xf32> -> vector<8x256xf32>
    %c0_359 = arith.constant 0 : index
    %c0_360 = arith.constant 0 : index
    %394 = vector.load %arg11[%c0_359, %c0_360] : memref<1x1xf32, #tpu.memory_space<vmem>>, vector<1x1xf32>
    %395 = vector.broadcast %394 : vector<1x1xf32> to vector<8x256xf32>
    %396 = arith.addf %393, %395 : vector<8x256xf32>
    %397 = tpu.iota {dimensions = array<i32: 1>} : vector<8x256xi32>
    %c225_i32_361 = arith.constant 225 : i32
    %398 = vector.broadcast %c225_i32_361 : i32 to vector<8x256xi32>
    %399 = arith.cmpi slt, %397, %398 : vector<8x256xi32>
    %cst_362 = arith.constant -1.000000e+30 : f32
    %400 = vector.broadcast %cst_362 : f32 to vector<8x256xf32>
    %401 = arith.select %399, %396, %400 : vector<8x256xi1>, vector<8x256xf32>
    %cst_363 = arith.constant dense<0xFF800000> : vector<8xf32>
    %402 = vector.multi_reduction <maximumf>, %401, %cst_363 [1] : vector<8x256xf32> to vector<8xf32>
    %403 = vector.shape_cast %402 : vector<8xf32> to vector<8x1xf32>
    %404 = vector.broadcast %403 : vector<8x1xf32> to vector<8x256xf32>
    %405 = arith.subf %401, %404 : vector<8x256xf32>
    %406 = math.exp %405 : vector<8x256xf32>
    %cst_364 = arith.constant dense<0.000000e+00> : vector<8xf32>
    %407 = vector.multi_reduction <add>, %406, %cst_364 [1] : vector<8x256xf32> to vector<8xf32>
    %408 = vector.shape_cast %407 : vector<8xf32> to vector<8x1xf32>
    %409 = vector.broadcast %403 : vector<8x1xf32> to vector<8x256xf32>
    %410 = arith.subf %401, %409 : vector<8x256xf32>
    %411 = math.log %408 : vector<8x1xf32>
    %412 = vector.broadcast %411 : vector<8x1xf32> to vector<8x256xf32>
    %413 = arith.subf %410, %412 : vector<8x256xf32>
    %c0_365 = arith.constant 0 : index
    %c0_366 = arith.constant 0 : index
    %414 = vector.load %arg12[%c0_365, %c0_366] : memref<8x256xf32, #tpu.memory_space<vmem>>, vector<8x256xf32>
    tpu.vector_store %arg12[%c0_365, %c0_366], %413 {strides = array<i32>} : memref<8x256xf32, #tpu.memory_space<vmem>>, vector<8x256xf32>,
    return
  }
  func.func @transform_0(%arg0: i32) -> (i32, i32) {
    %c0_i32 = arith.constant 0 : i32
    %c0_i32_0 = arith.constant 0 : i32
    return %arg0, %c0_i32 : i32, i32
  }
  func.func @transform_1(%arg0: i32) -> (i32, i32) {
    %c0_i32 = arith.constant 0 : i32
    %c0_i32_0 = arith.constant 0 : i32
    %c0_i32_1 = arith.constant 0 : i32
    return %c0_i32, %c0_i32_0 : i32, i32
  }
  func.func @transform_2(%arg0: i32) -> (i32, i32, i32) {
    %c0_i32 = arith.constant 0 : i32
    %c0_i32_0 = arith.constant 0 : i32
    %c0_i32_1 = arith.constant 0 : i32
    %c0_i32_2 = arith.constant 0 : i32
    return %c0_i32, %c0_i32_0, %c0_i32_1 : i32, i32, i32
  }
  func.func @transform_3(%arg0: i32) -> (i32, i32, i32) {
    %c0_i32 = arith.constant 0 : i32
    %c0_i32_0 = arith.constant 0 : i32
    %c0_i32_1 = arith.constant 0 : i32
    %c0_i32_2 = arith.constant 0 : i32
    return %c0_i32, %c0_i32_0, %c0_i32_1 : i32, i32, i32
  }
  func.func @transform_4(%arg0: i32) -> (i32, i32) {
    %c0_i32 = arith.constant 0 : i32
    %c0_i32_0 = arith.constant 0 : i32
    %c0_i32_1 = arith.constant 0 : i32
    return %c0_i32, %c0_i32_0 : i32, i32
  }
  func.func @transform_5(%arg0: i32) -> (i32, i32, i32) {
    %c0_i32 = arith.constant 0 : i32
    %c0_i32_0 = arith.constant 0 : i32
    %c0_i32_1 = arith.constant 0 : i32
    %c0_i32_2 = arith.constant 0 : i32
    return %c0_i32, %c0_i32_0, %c0_i32_1 : i32, i32, i32
  }
  func.func @transform_6(%arg0: i32) -> (i32, i32, i32) {
    %c0_i32 = arith.constant 0 : i32
    %c0_i32_0 = arith.constant 0 : i32
    %c0_i32_1 = arith.constant 0 : i32
    %c0_i32_2 = arith.constant 0 : i32
    return %c0_i32, %c0_i32_0, %c0_i32_1 : i32, i32, i32
  }
  func.func @transform_7(%arg0: i32) -> (i32, i32) {
    %c0_i32 = arith.constant 0 : i32
    %c0_i32_0 = arith.constant 0 : i32
    %c0_i32_1 = arith.constant 0 : i32
    return %c0_i32, %c0_i32_0 : i32, i32
  }
  func.func @transform_8(%arg0: i32) -> (i32, i32) {
    %c0_i32 = arith.constant 0 : i32
    %c0_i32_0 = arith.constant 0 : i32
    %c0_i32_1 = arith.constant 0 : i32
    return %c0_i32, %c0_i32_0 : i32, i32
  }
  func.func @transform_9(%arg0: i32) -> (i32, i32) {
    %c0_i32 = arith.constant 0 : i32
    %c0_i32_0 = arith.constant 0 : i32
    %c0_i32_1 = arith.constant 0 : i32
    return %c0_i32, %c0_i32_0 : i32, i32
  }
  func.func @transform_10(%arg0: i32) -> (i32, i32) {
    %c0_i32 = arith.constant 0 : i32
    %c0_i32_0 = arith.constant 0 : i32
    %c0_i32_1 = arith.constant 0 : i32
    return %c0_i32, %c0_i32_0 : i32, i32
  }
  func.func @transform_11(%arg0: i32) -> (i32, i32) {
    %c0_i32 = arith.constant 0 : i32
    %c0_i32_0 = arith.constant 0 : i32
    return %arg0, %c0_i32 : i32, i32
  }
}

</mosaic_0001>

<bundles_post_ra>
// kernel: tpu_custom_call.1
= control target key start
LH: loop header
LB: loop body
LE: loop exit
PB: predicated region body
PF: predicated region fallthrough
CT: control target
= control target key end

     0   :  { %s18026_s0 = inlined_call_operand.vmem [shape: f32[8,256], index: 0, kind: input, shape index: {}]   ;;  %s18027_s1 = inlined_call_operand.vmem [shape: bf16[256,200], index: 1, kind: input, shape index: {}]   ;;  %s18028_s2 = inlined_call_operand.hbm [shape: bf16[9,128,256], index: 2, kind: input, shape index: {}]   ;;  %s18029_s3 = inlined_call_operand.vmem [shape: bf16[9,64,128], index: 3, kind: input, shape index: {}]   ;;  %s18030_s4 = inlined_call_operand.vmem [shape: bf16[8,64], index: 4, kind: input, shape index: {}]   ;;  %s18031_s5 = inlined_call_operand.vmem [shape: f32[25,1,256], index: 5, kind: input, shape index: {}]   ;;  %s18032_s6 = inlined_call_operand.vmem [shape: f32[9,1,256], index: 6, kind: input, shape index: {}]   ;;  %s18033_s7 = inlined_call_operand.vmem [shape: f32[256,1], index: 7, kind: input, shape index: {}]   ;;  %s18034_s8 = inlined_call_operand.vmem [shape: f32[128,1], index: 8, kind: input, shape index: {}]   ;;  %s18035_s9 = inlined_call_operand.vmem [shape: f32[64,1], index: 9, kind: input, shape index: {}]   ;;  %s18036_s10 = inlined_call_operand.<no memory space> [shape: f32[1,1], index: 10, kind: input, shape index: {}]   ;;  %s18037_s11 = inlined_call_operand.hbm [shape: f32[8,256], index: 11, kind: output, shape index: {}]  }
   0x1   :  { %v16_v0 = vstv %s18036_s10 }
   0x2   :  { %17 = vst [vmem:[#allocation7] sm:$0x1] %v16_v0 }
   0x3   :  { %18 = vsyncpa [#allocation9], 0 }
   0x4   :  { %19 = vsyncpa [#allocation10], 0  ;;  %s11965_s19 = smov [#allocation8]  }
   0x5   :  { %s29_s20 = sshll.u32 %s11965_s19, 4  ;;  %s30_s20 = int_to_ptr.vmem [resolvable:$true] %s29_s20 }
   0x6   :  { %s11929_s21 = scalar_lea.vmem %s30_s20, 18432  ;;  %p11934_p1 = scmp.lt.s32.totalorder %s30_s20, %s30_s20 }
   0x7   :  { %p11930_p0 = scmp.ne.s32.totalorder %s30_s20, %s11929_s21  ;;  %p11935_p2 = scmp.lt.s32.totalorder %s11929_s21, %s11929_s21 }
   0x9   :  { %p11936_p3 = por %p11935_p2, %p11934_p1 }
   0xb   :  { %p11937_p4 = pnand %p11936_p3, %p11930_p0 }
   0xd   :  { %11940 = shalt.err (!%p11937_p4)
}
   0xe   :  { %s11966_s22 = smov 128   ;;  %s11967_s23 = smov 8  }
   0xf   :  { %35 = dma.hbm_to_vmem [thread:$0]  %s18028_s2, 18432, %s30_s20, [#allocation9], %s11966_s22, %s11966_s22, %s11967_s23  }
  0x10   :  { %11961 = dma.done.wait [#allocation9], 18432  }
  0x11   :  { %11962 = vsyncadd [#allocation9], 4294948864  ;;  %v12063_v1 = vld [vmem:[%s18026_s0] sm:$0xff]  ;;  %s11968_s27 = smov 115   ;;  %s11969_s28 = smov 126   ;;  %v12070_v2 = vld [vmem:[%s18026_s0 + $0x8] sm:$0xff]  ;;  %v62_v4 = vlaneseq }
  0x12   :  { %412 = vrot.lane.b32.xlu1 %v12063_v1, %s11968_s27  ;;  %388 = vrot.lane.b32.xlu0 %v12063_v1, %s11969_s28  ;;  %s11970_s2 = smov 127   ;;  %s11971_s12 = smov 2   ;;  %v11617_v3 = vld [vmem:[%s18027_s1 + $0x4] ss:$8 sps:$4 sm:$0xff]   ;;  %vm1096_vm0 = vcmask 588800   ;;  %v18038_v39 = vmov 0  }
  0x13   :  { %s11972_s13 = smov 1   ;;  %s11973_s0 = smov 14   ;;  %10730 = vmatprep.mubr.msk.bf16.mxu0 %vm1096_vm0, %v11617_v3  ;;  %v70_v5 = vshrl.u32 %v62_v4, 7  ;;  %v12138_v6 = vand.u32 127, %v62_v4  ;;  %v10686_v9 = vld [vmem:[%s18031_s5 + $0x1c] sm:$0x3]  ;;  %11614 = vset.pattern.permute.xlu1 %v18038_v39 }
  0x14   :  { %s11974_s14 = smov 13   ;;  %s11975_s15 = smov 16   ;;  %v10687_v10 = vld [vmem:[%s18031_s5 + $0x1e] sm:$0x3]  ;;  %v10684_v13 = vld [vmem:[%s18031_s5 + $0x18] sm:$0x3]  ;;  %11613 = vset.pattern.permute.xlu0 %v18038_v39 }
  0x15   :  { %s11976_s16 = smov 15   ;;  %s11977_s17 = smov 28   ;;  %18327 = vst [vmem:[#allocation14_spill] sm:$0xff] %v12138_v6  ;;  %v12140_v7 = vsub.s32 0, %v70_v5  ;;  %v12142_v8 = vsub.s32 1, %v70_v5  ;;  %vm416_vm1 = vcmp.lt.s32.totalorder %v12138_v6, 115 }
  0x16   :  { %414 = vrot.lane.b32.xlu1 %v12070_v2, %s11968_s27  ;;  %390 = vrot.lane.b32.xlu0 %v12070_v2, %s11969_s28  ;;  %s11978_s18 = smov 17   ;;  %s11979_s19 = smov 30   ;;  %vm392_vm2 = vcmp.lt.s32.totalorder %v12138_v6, 126  ;;  %v10685_v14 = vld [vmem:[%s18031_s5 + $0x1a] sm:$0x3]  ;;  %vm368_vm3 = vcmp.lt.s32.totalorder %v12138_v6, 127 }
  0x17   :  { %s11980_s20 = smov 29   ;;  %s11981_s21 = smov 32   ;;  %18328 = vst [vmem:[#allocation15_spill] sm:$0xff] %v12140_v7  ;;  %18329 = vst [vmem:[#allocation16_spill] sm:$0xff] %v12142_v8  ;;  %v405_v15 = vrot.slane %v10686_v9, %v12142_v8  ;;  %v429_v16 = vrot.slane %v10687_v10, %v12142_v8  ;;  %v401_v17 = vrot.slane %v10686_v9, %v12140_v7  ;;  %v10682_v44 = vld [vmem:[%s18031_s5 + $0x14] sm:$0x3] }
  0x18   :  { %s11982_s22 = smov 31   ;;  %s11983_s23 = smov 96   ;;  %v425_v18 = vrot.slane %v10687_v10, %v12140_v7  ;;  %v357_v19 = vrot.slane %v10684_v13, %v12142_v8  ;;  %v377_v22 = vrot.slane %v10685_v14, %v12140_v7  ;;  %v381_v23 = vrot.slane %v10685_v14, %v12142_v8  ;;  %v10683_v45 = vld [vmem:[%s18031_s5 + $0x16] sm:$0x3]  ;;  %v775_v54 = vld [vmem:[%s18033_s7 + $0x78] sm:$0xff]  ;;  %v772_v60 = vld [vmem:[%s18033_s7 + $0x60] sm:$0xff] }
  0x19   :  { %s11984_s24 = smov 98   ;;  %s11985_s25 = smov 97   ;;  %v353_v24 = vrot.slane %v10684_v13, %v12140_v7  ;;  %vm303_vm4 = vcmp.lt.s32.totalorder %v12138_v6, 2  ;;  %v312_v50 = vrot.slane %v10682_v44, %v12140_v7  ;;  %v316_v51 = vrot.slane %v10682_v44, %v12142_v8  ;;  %v774_v55 = vld [vmem:[%s18033_s7 + $0x70] sm:$0xff]  ;;  %v773_v63 = vld [vmem:[%s18033_s7 + $0x68] sm:$0xff] }
  0x1a   :  { %366 = vrot.lane.b32.xlu1 %v12070_v2, %s11970_s2  ;;  %364 = vrot.lane.b32.xlu0 %v12063_v1, %s11970_s2  ;;  %s11986_s10 = smov 100   ;;  %s11987_s26 = smov 99   ;;  %v361_v33 = vmul.f32 %v357_v19, %v12070_v2  ;;  %vm327_vm5 = vcmp.lt.s32.totalorder %v12138_v6, 1  ;;  %v336_v52 = vrot.slane %v10683_v45, %v12140_v7  ;;  %v340_v53 = vrot.slane %v10683_v45, %v12142_v8  ;;  %v10680_v4 = vld [vmem:[%s18031_s5 + $0x10] sm:$0x3] }
  0x1b   :  { %s11988_s27 = smov 112   ;;  %s11989_s28 = smov 111   ;;  %v360_v38 = vmul.f32 %v353_v24, %v12063_v1  ;;  %v10681_v5 = vld [vmem:[%s18031_s5 + $0x12] sm:$0x3]  ;;  %vm255_vm6 = vcmp.lt.s32.totalorder %v12138_v6, 14  ;;  %v264_v13 = vrot.slane %v10680_v4, %v12140_v7  ;;  %v268_v14 = vrot.slane %v10680_v4, %v12142_v8 }
  0x1c   :  { %vm279_vm7 = vcmp.lt.s32.totalorder %v12138_v6, 13  ;;  %vm207_vm8 = vcmp.lt.s32.totalorder %v12138_v6, 16  ;;  %vm231_vm9 = vcmp.lt.s32.totalorder %v12138_v6, 15  ;;  %vm159_vm10 = vcmp.lt.s32.totalorder %v12138_v6, 28 }
  0x1d   :  { %vm183_vm11 = vcmp.lt.s32.totalorder %v12138_v6, 17  ;;  %vm111_vm12 = vcmp.lt.s32.totalorder %v12138_v6, 30  ;;  %vm135_vm13 = vcmp.lt.s32.totalorder %v12138_v6, 29  ;;  %vm64_vm14 = vcmp.lt.s32.totalorder %v12138_v6, 32 }
  0x1e   :  { %301 = vrot.lane.b32.xlu1 %v12070_v2, %s11971_s12  ;;  %299 = vrot.lane.b32.xlu0 %v12063_v1, %s11971_s12  ;;  %s11990_s12 = smov 114   ;;  %vm87_vm15 = vcmp.lt.s32.totalorder %v12138_v6, 31 }
  0x22   :  { %325 = vrot.lane.b32.xlu1 %v12070_v2, %s11972_s13  ;;  %323 = vrot.lane.b32.xlu0 %v12063_v1, %s11972_s13 }
  0x26   :  { %253 = vrot.lane.b32.xlu1 %v12070_v2, %s11973_s0  ;;  %251 = vrot.lane.b32.xlu0 %v12063_v1, %s11973_s0 }
  0x2a   :  { %277 = vrot.lane.b32.xlu1 %v12070_v2, %s11974_s14  ;;  %275 = vrot.lane.b32.xlu0 %v12063_v1, %s11974_s14  ;;  %s11991_s14 = smov 113  }
  0x2e   :  { %205 = vrot.lane.b32.xlu1 %v12070_v2, %s11975_s15  ;;  %203 = vrot.lane.b32.xlu0 %v12063_v1, %s11975_s15 }
  0x32   :  { %229 = vrot.lane.b32.xlu1 %v12070_v2, %s11976_s16  ;;  %227 = vrot.lane.b32.xlu0 %v12063_v1, %s11976_s16 }
  0x36   :  { %157 = vrot.lane.b32.xlu1 %v12070_v2, %s11977_s17  ;;  %155 = vrot.lane.b32.xlu0 %v12063_v1, %s11977_s17 }
  0x3a   :  { %181 = vrot.lane.b32.xlu1 %v12070_v2, %s11978_s18  ;;  %179 = vrot.lane.b32.xlu0 %v12063_v1, %s11978_s18 }
  0x3e   :  { %109 = vrot.lane.b32.xlu1 %v12070_v2, %s11979_s19  ;;  %107 = vrot.lane.b32.xlu0 %v12063_v1, %s11979_s19 }
  0x42   :  { %133 = vrot.lane.b32.xlu1 %v12070_v2, %s11980_s20  ;;  %131 = vrot.lane.b32.xlu0 %v12063_v1, %s11980_s20 }
  0x46   :  { %60 = vrot.lane.b32.xlu1 %v12070_v2, %s11981_s21  ;;  %58 = vrot.lane.b32.xlu0 %v12063_v1, %s11981_s21 }
  0x4a   :  { %85 = vrot.lane.b32.xlu1 %v12070_v2, %s11982_s22  ;;  %83 = vrot.lane.b32.xlu0 %v12063_v1, %s11982_s22 }
  0x4e   :  { %630 = vrot.lane.b32.xlu1 %v12070_v2, %s11983_s23  ;;  %628 = vrot.lane.b32.xlu0 %v12063_v1, %s11983_s23 }
  0x52   :  { %582 = vrot.lane.b32.xlu1 %v12070_v2, %s11984_s24  ;;  %580 = vrot.lane.b32.xlu0 %v12063_v1, %s11984_s24 }
  0x56   :  { %606 = vrot.lane.b32.xlu1 %v12070_v2, %s11985_s25  ;;  %604 = vrot.lane.b32.xlu0 %v12063_v1, %s11985_s25 }
  0x5a   :  { %534 = vrot.lane.b32.xlu1 %v12070_v2, %s11986_s10  ;;  %532 = vrot.lane.b32.xlu0 %v12063_v1, %s11986_s10 }
  0x5e   :  { %558 = vrot.lane.b32.xlu1 %v12070_v2, %s11987_s26  ;;  %556 = vrot.lane.b32.xlu0 %v12063_v1, %s11987_s26 }
  0x62   :  { %486 = vrot.lane.b32.xlu1 %v12070_v2, %s11988_s27  ;;  %484 = vrot.lane.b32.xlu0 %v12063_v1, %s11988_s27 }
  0x66   :  { %510 = vrot.lane.b32.xlu1 %v12070_v2, %s11989_s28  ;;  %508 = vrot.lane.b32.xlu0 %v12063_v1, %s11989_s28 }
  0x6a   :  { %438 = vrot.lane.b32.xlu1 %v12070_v2, %s11990_s12  ;;  %436 = vrot.lane.b32.xlu0 %v12063_v1, %s11990_s12 }
  0x6e   :  { %462 = vrot.lane.b32.xlu1 %v12070_v2, %s11991_s14  ;;  %460 = vrot.lane.b32.xlu0 %v12063_v1, %s11991_s14 }
  0x72   :  { %869 = vperm.xlu1 %11614, %v775_v54   ;;  %864 = vperm.xlu0 %11613, %v774_v55  }
  0x76   :  { %854 = vperm.xlu1 %11614, %v772_v60   ;;  %859 = vperm.xlu0 %11613, %v773_v63  }
  0x84   :  { %v413_v11 = vpop.permute.xlu1 %412  ;;  %v389_v12 = vpop.permute.xlu0 %388 }
  0x88   :  { %v415_v20 = vpop.permute.xlu1 %414  ;;  %v391_v21 = vpop.permute.xlu0 %390 }
  0x89   :  { %v417_v25 = vsel %vm416_vm1, %v413_v11, %v415_v20  ;;  %v393_v26 = vsel %vm392_vm2, %v389_v12, %v391_v21  ;;  %v394_v27 = vsel %vm392_vm2, %v391_v21, %v389_v12  ;;  %v418_v28 = vsel %vm416_vm1, %v415_v20, %v413_v11 }
  0x8a   :  { %v409_v29 = vmul.f32 %v405_v15, %v394_v27  ;;  %v433_v30 = vmul.f32 %v429_v16, %v418_v28  ;;  %v408_v31 = vmul.f32 %v401_v17, %v393_v26  ;;  %v432_v32 = vmul.f32 %v425_v18, %v417_v25  ;;  %v770_v17 = vld [vmem:[%s18033_s7 + $0x50] sm:$0xff]  ;;  %v771_v18 = vld [vmem:[%s18033_s7 + $0x58] sm:$0xff]  ;;  %v769_v26 = vld [vmem:[%s18033_s7 + $0x48] sm:$0xff] }
  0x8b   :  { %v288_v15 = vrot.slane %v10681_v5, %v12140_v7  ;;  %v292_v16 = vrot.slane %v10681_v5, %v12142_v8  ;;  %844 = vperm.xlu1 %11614, %v770_v17   ;;  %849 = vperm.xlu0 %11613, %v771_v18   ;;  %vm632_vm1 = vcmp.lt.s32.totalorder %v12138_v6, 96  ;;  %vm1145_vm2 = vcmask 1043456  }
  0x8c   :  { %v367_v34 = vpop.permute.xlu1 %366  ;;  %v365_v35 = vpop.permute.xlu0 %364  ;;  %v749_v36 = vpack.c.bf16 %v433_v30, %v409_v29  ;;  %v748_v37 = vpack.c.bf16 %v432_v32, %v408_v31  ;;  %v10678_v31 = vld [vmem:[%s18031_s5 + $0xc] sm:$0x3]  ;;  %v10679_v32 = vld [vmem:[%s18031_s5 + $0xe] sm:$0x3] }
  0x8d   :  { %v369_v40 = vsel %vm368_vm3, %v365_v35, %v367_v34  ;;  %v370_v41 = vsel %vm368_vm3, %v367_v34, %v365_v35 }
  0x8e   :  { %v384_v42 = vmul.f32 %v377_v22, %v369_v40  ;;  %v385_v43 = vmul.f32 %v381_v23, %v370_v41  ;;  %1152 = vmatprep.subr.bf16.mxu0 %v749_v36  ;;  %v768_v23 = vld [vmem:[%s18033_s7 + $0x40] sm:$0xff]  ;;  %v240_v40 = vrot.slane %v10679_v32, %v12140_v7  ;;  %v244_v41 = vrot.slane %v10679_v32, %v12142_v8 }
  0x8f   :  { %1153 = vmatpush1.bf16.msra.mxu0 %v748_v37  ;;  %834 = vperm.xlu1 %11614, %v768_v23   ;;  %v216_v37 = vrot.slane %v10678_v31, %v12140_v7 }
  0x90   :  { %v302_v46 = vpop.permute.xlu1 %301  ;;  %v300_v47 = vpop.permute.xlu0 %299  ;;  %v747_v48 = vpack.c.bf16 %v385_v43, %v361_v33  ;;  %v746_v49 = vpack.c.bf16 %v384_v42, %v360_v38  ;;  %839 = vperm.xlu0 %11613, %v769_v26   ;;  %v220_v38 = vrot.slane %v10678_v31, %v12142_v8  ;;  %v766_v42 = vld [vmem:[%s18033_s7 + $0x30] sm:$0xff]  ;;  %v767_v43 = vld [vmem:[%s18033_s7 + $0x38] sm:$0xff] }
  0x91   :  { %v304_v56 = vsel %vm303_vm4, %v300_v47, %v302_v46  ;;  %v305_v57 = vsel %vm303_vm4, %v302_v46, %v300_v47  ;;  %vm584_vm4 = vcmp.lt.s32.totalorder %v12138_v6, 98 }
  0x92   :  { %1154 = vmatprep.subr.bf16.mxu0 %v747_v48  ;;  %v319_v0 = vmul.f32 %v312_v50, %v305_v57  ;;  %v320_v1 = vmul.f32 %v316_v51, %v304_v56  ;;  %v764_v48 = vld [vmem:[%s18033_s7 + $0x20] sm:$0xff]  ;;  %v765_v51 = vld [vmem:[%s18033_s7 + $0x28] sm:$0xff] }
  0x93   :  { %1155 = vmatpush1.bf16.msra.mxu0 %v746_v49  ;;  %824 = vperm.xlu1 %11614, %v766_v42   ;;  %v10676_v56 = vld [vmem:[%s18031_s5 + $0x8] sm:$0x3]  ;;  %v10677_v57 = vld [vmem:[%s18031_s5 + $0xa] sm:$0x3] }
  0x94   :  { %v326_v58 = vpop.permute.xlu1 %325  ;;  %v324_v59 = vpop.permute.xlu0 %323  ;;  %829 = vperm.xlu0 %11613, %v767_v43   ;;  %v172_v63 = vrot.slane %v10676_v56, %v12142_v8 }
  0x95   :  { %v328_v61 = vsel %vm327_vm5, %v324_v59, %v326_v58  ;;  %v329_v62 = vsel %vm327_vm5, %v326_v58, %v324_v59 }
  0x96   :  { %v343_v2 = vmul.f32 %v336_v52, %v329_v62  ;;  %v344_v3 = vmul.f32 %v340_v53, %v328_v61  ;;  %v168_v62 = vrot.slane %v10676_v56, %v12140_v7  ;;  %v787_v56 = vld [vmem:[%s18033_s7 + $0xd8] sm:$0xff] }
  0x97   :  { %814 = vperm.xlu1 %11614, %v764_v48  }
  0x98   :  { %v254_v9 = vpop.permute.xlu1 %253  ;;  %v252_v10 = vpop.permute.xlu0 %251  ;;  %v745_v11 = vpack.c.bf16 %v344_v3, %v320_v1  ;;  %v744_v12 = vpack.c.bf16 %v343_v2, %v319_v0  ;;  %819 = vperm.xlu0 %11613, %v765_v51   ;;  %v192_v0 = vrot.slane %v10677_v57, %v12140_v7  ;;  %v196_v1 = vrot.slane %v10677_v57, %v12142_v8  ;;  %v762_v2 = vld [vmem:[%s18033_s7 + $0x10] sm:$0xff]  ;;  %v763_v3 = vld [vmem:[%s18033_s7 + $0x18] sm:$0xff] }
  0x99   :  { %v256_v19 = vsel %vm255_vm6, %v252_v10, %v254_v9  ;;  %v257_v20 = vsel %vm255_vm6, %v254_v9, %v252_v10 }
  0x9a   :  { %1156 = vmatprep.subr.bf16.mxu0 %v745_v11  ;;  %v271_v27 = vmul.f32 %v264_v13, %v257_v20  ;;  %v272_v28 = vmul.f32 %v268_v14, %v256_v19  ;;  %v760_v11 = vld [vmem:[%s18033_s7] sm:$0xff]  ;;  %v761_v14 = vld [vmem:[%s18033_s7 + $0x8] sm:$0xff] }
  0x9b   :  { %1157 = vmatpush1.bf16.msra.mxu0 %v744_v12  ;;  %804 = vperm.xlu1 %11614, %v762_v2   ;;  %v10674_v19 = vld [vmem:[%s18031_s5 + $0x4] sm:$0x3]  ;;  %v10675_v20 = vld [vmem:[%s18031_s5 + $0x6] sm:$0x3]  ;;  %v785_v2 = vld [vmem:[%s18033_s7 + $0xc8] sm:$0xff] }
  0x9c   :  { %v278_v21 = vpop.permute.xlu1 %277  ;;  %v276_v22 = vpop.permute.xlu0 %275  ;;  %809 = vperm.xlu0 %11613, %v763_v3   ;;  %v124_v26 = vrot.slane %v10674_v19, %v12142_v8 }
  0x9d   :  { %v280_v24 = vsel %vm279_vm7, %v276_v22, %v278_v21  ;;  %v281_v25 = vsel %vm279_vm7, %v278_v21, %v276_v22  ;;  %vm608_vm7 = vcmp.lt.s32.totalorder %v12138_v6, 97 }
  0x9e   :  { %v295_v29 = vmul.f32 %v288_v15, %v281_v25  ;;  %v296_v30 = vmul.f32 %v292_v16, %v280_v24  ;;  %v120_v25 = vrot.slane %v10674_v19, %v12140_v7  ;;  %v782_v19 = vld [vmem:[%s18033_s7 + $0xb0] sm:$0xff] }
  0x9f   :  { %794 = vperm.xlu1 %11614, %v760_v11  }
  0xa0   :  { %v206_v33 = vpop.permute.xlu1 %205  ;;  %v204_v34 = vpop.permute.xlu0 %203  ;;  %v743_v35 = vpack.c.bf16 %v296_v30, %v272_v28  ;;  %v742_v36 = vpack.c.bf16 %v295_v29, %v271_v27  ;;  %799 = vperm.xlu0 %11613, %v761_v14   ;;  %v144_v27 = vrot.slane %v10675_v20, %v12140_v7  ;;  %v148_v28 = vrot.slane %v10675_v20, %v12142_v8  ;;  %v790_v29 = vld [vmem:[%s18033_s7 + $0xf0] sm:$0xff]  ;;  %v791_v30 = vld [vmem:[%s18033_s7 + $0xf8] sm:$0xff] }
  0xa1   :  { %v208_v44 = vsel %vm207_vm8, %v204_v34, %v206_v33  ;;  %v209_v45 = vsel %vm207_vm8, %v206_v33, %v204_v34  ;;  %v783_v20 = vld [vmem:[%s18033_s7 + $0xb8] sm:$0xff] }
  0xa2   :  { %1158 = vmatprep.subr.bf16.mxu0 %v743_v35  ;;  %v223_v52 = vmul.f32 %v216_v37, %v209_v45  ;;  %v224_v53 = vmul.f32 %v220_v38, %v208_v44  ;;  %v788_v35 = vld [vmem:[%s18033_s7 + $0xe0] sm:$0xff]  ;;  %v789_v38 = vld [vmem:[%s18033_s7 + $0xe8] sm:$0xff] }
  0xa3   :  { %1159 = vmatpush1.bf16.msra.mxu0 %v742_v36  ;;  %944 = vperm.xlu1 %11614, %v790_v29   ;;  %v67_v44 = vld [vmem:[%s18031_s5] sm:$0x3]  ;;  %v10673_v45 = vld [vmem:[%s18031_s5 + $0x2] sm:$0x3]  ;;  %v781_v29 = vld [vmem:[%s18033_s7 + $0xa8] sm:$0xff] }
  0xa4   :  { %v230_v46 = vpop.permute.xlu1 %229  ;;  %v228_v47 = vpop.permute.xlu0 %227  ;;  %949 = vperm.xlu0 %11613, %v791_v30   ;;  %v76_v51 = vrot.slane %v67_v44, %v12142_v8 }
  0xa5   :  { %v232_v49 = vsel %vm231_vm9, %v228_v47, %v230_v46  ;;  %v233_v50 = vsel %vm231_vm9, %v230_v46, %v228_v47 }
  0xa6   :  { %v247_v54 = vmul.f32 %v240_v40, %v233_v50  ;;  %v248_v55 = vmul.f32 %v244_v41, %v232_v49  ;;  %v72_v50 = vrot.slane %v67_v44, %v12140_v7  ;;  %v10692_v44 = vld [vmem:[%s18031_s5 + $0x28] sm:$0x3] }
  0xa7   :  { %934 = vperm.xlu1 %11614, %v788_v35  }
  0xa8   :  { %v158_v58 = vpop.permute.xlu1 %157  ;;  %v156_v59 = vpop.permute.xlu0 %155  ;;  %v741_v60 = vpack.c.bf16 %v248_v55, %v224_v53  ;;  %v740_v61 = vpack.c.bf16 %v247_v54, %v223_v52  ;;  %939 = vperm.xlu0 %11613, %v789_v38   ;;  %v96_v52 = vrot.slane %v10673_v45, %v12140_v7  ;;  %v100_v53 = vrot.slane %v10673_v45, %v12142_v8  ;;  %v10696_v54 = vld [vmem:[%s18031_s5 + $0x30] sm:$0x3] }
  0xa9   :  { %v160_v4 = vsel %vm159_vm10, %v156_v59, %v158_v58  ;;  %v161_v5 = vsel %vm159_vm10, %v158_v58, %v156_v59  ;;  %v786_v55 = vld [vmem:[%s18033_s7 + $0xd0] sm:$0xff]  ;;  %vm536_vm10 = vcmp.lt.s32.totalorder %v12138_v6, 100 }
  0xaa   :  { %1160 = vmatprep.subr.bf16.mxu0 %v741_v60  ;;  %v175_v15 = vmul.f32 %v168_v62, %v161_v5  ;;  %v176_v16 = vmul.f32 %v172_v63, %v160_v4  ;;  %v778_v45 = vld [vmem:[%s18033_s7 + $0x90] sm:$0xff] }
  0xab   :  { %1161 = vmatpush1.bf16.msra.mxu0 %v740_v61  ;;  %924 = vperm.xlu1 %11614, %v786_v55   ;;  %v784_v61 = vld [vmem:[%s18033_s7 + $0xc0] sm:$0xff]  ;;  %v549_v55 = vrot.slane %v10692_v44, %v12142_v8 }
  0xac   :  { %v182_v9 = vpop.permute.xlu1 %181  ;;  %v180_v10 = vpop.permute.xlu0 %179  ;;  %929 = vperm.xlu0 %11613, %v787_v56  }
  0xad   :  { %v184_v12 = vsel %vm183_vm11, %v180_v10, %v182_v9  ;;  %v185_v13 = vsel %vm183_vm11, %v182_v9, %v180_v10  ;;  %vm560_vm11 = vcmp.lt.s32.totalorder %v12138_v6, 99 }
  0xae   :  { %v199_v17 = vmul.f32 %v192_v0, %v185_v13  ;;  %v200_v18 = vmul.f32 %v196_v1, %v184_v12  ;;  %v645_v0 = vrot.slane %v10696_v54, %v12142_v8  ;;  %v641_v1 = vrot.slane %v10696_v54, %v12140_v7  ;;  %v777_v54 = vld [vmem:[%s18033_s7 + $0x88] sm:$0xff] }
  0xaf   :  { %914 = vperm.xlu1 %11614, %v784_v61  }
  0xb0   :  { %v110_v21 = vpop.permute.xlu1 %109  ;;  %v108_v22 = vpop.permute.xlu0 %107  ;;  %v739_v23 = vpack.c.bf16 %v200_v18, %v176_v16  ;;  %v738_v24 = vpack.c.bf16 %v199_v17, %v175_v15  ;;  %919 = vperm.xlu0 %11613, %v785_v2   ;;  %v10694_v17 = vld [vmem:[%s18031_s5 + $0x2c] sm:$0x3] }
  0xb1   :  { %v112_v31 = vsel %vm111_vm12, %v108_v22, %v110_v21  ;;  %v113_v32 = vsel %vm111_vm12, %v110_v21, %v108_v22  ;;  %v10695_v21 = vld [vmem:[%s18031_s5 + $0x2e] sm:$0x3]  ;;  %vm488_vm12 = vcmp.lt.s32.totalorder %v12138_v6, 112 }
  0xb2   :  { %1162 = vmatprep.subr.bf16.mxu0 %v739_v23  ;;  %v127_v40 = vmul.f32 %v120_v25, %v113_v32  ;;  %v128_v41 = vmul.f32 %v124_v26, %v112_v31  ;;  %v780_v26 = vld [vmem:[%s18033_s7 + $0xa0] sm:$0xff]  ;;  %v617_v31 = vrot.slane %v10695_v21, %v12140_v7  ;;  %v621_v32 = vrot.slane %v10695_v21, %v12142_v8 }
  0xb3   :  { %1163 = vmatpush1.bf16.msra.mxu0 %v738_v24  ;;  %904 = vperm.xlu1 %11614, %v782_v19  }
  0xb4   :  { %v134_v33 = vpop.permute.xlu1 %133  ;;  %v132_v34 = vpop.permute.xlu0 %131  ;;  %909 = vperm.xlu0 %11613, %v783_v20  }
  0xb5   :  { %v136_v36 = vsel %vm135_vm13, %v132_v34, %v134_v33  ;;  %v137_v37 = vsel %vm135_vm13, %v134_v33, %v132_v34  ;;  %vm512_vm13 = vcmp.lt.s32.totalorder %v12138_v6, 111 }
  0xb6   :  { %v151_v42 = vmul.f32 %v144_v27, %v137_v37  ;;  %v152_v43 = vmul.f32 %v148_v28, %v136_v36  ;;  %v593_v27 = vrot.slane %v10694_v17, %v12140_v7  ;;  %v597_v28 = vrot.slane %v10694_v17, %v12142_v8  ;;  %v1646_v17 = vld [vmem:[%s18034_s8 + $0x68] sm:$0xff] }
  0xb7   :  { %894 = vperm.xlu1 %11614, %v780_v26  }
  0xb8   :  { %v61_v46 = vpop.permute.xlu1 %60  ;;  %v59_v47 = vpop.permute.xlu0 %58  ;;  %v737_v48 = vpack.c.bf16 %v152_v43, %v128_v41  ;;  %v736_v49 = vpack.c.bf16 %v151_v42, %v127_v40  ;;  %899 = vperm.xlu0 %11613, %v781_v29  }
  0xb9   :  { %v65_v57 = vsel %vm64_vm14, %v59_v47, %v61_v46  ;;  %v66_v58 = vsel %vm64_vm14, %v61_v46, %v59_v47  ;;  %v779_v46 = vld [vmem:[%s18033_s7 + $0x98] sm:$0xff]  ;;  %v10693_v47 = vld [vmem:[%s18031_s5 + $0x2a] sm:$0x3]  ;;  %vm440_vm14 = vcmp.lt.s32.totalorder %v12138_v6, 114 }
  0xba   :  { %1164 = vmatprep.subr.bf16.mxu0 %v737_v48  ;;  %v79_v3 = vmul.f32 %v72_v50, %v66_v58  ;;  %v80_v4 = vmul.f32 %v76_v51, %v65_v57  ;;  %v569_v56 = vrot.slane %v10693_v47, %v12140_v7  ;;  %v573_v57 = vrot.slane %v10693_v47, %v12142_v8 }
  0xbb   :  { %1165 = vmatpush1.bf16.msra.mxu0 %v736_v49  ;;  %884 = vperm.xlu1 %11614, %v778_v45  }
  0xbc   :  { %v86_v59 = vpop.permute.xlu1 %85  ;;  %v84_v60 = vpop.permute.xlu0 %83  ;;  %889 = vperm.xlu0 %11613, %v779_v46  }
  0xbd   :  { %v88_v62 = vsel %vm87_vm15, %v84_v60, %v86_v59  ;;  %v89_v63 = vsel %vm87_vm15, %v86_v59, %v84_v60  ;;  %vm464_vm15 = vcmp.lt.s32.totalorder %v12138_v6, 113 }
  0xbe   :  { %v103_v5 = vmul.f32 %v96_v52, %v89_v63  ;;  %v104_v9 = vmul.f32 %v100_v53, %v88_v62  ;;  %v776_v52 = vld [vmem:[%s18033_s7 + $0x80] sm:$0xff]  ;;  %v545_v53 = vrot.slane %v10692_v44, %v12140_v7 }
  0xbf   :  { %874 = vperm.xlu1 %11614, %v776_v52  }
  0xc0   :  { %v631_v10 = vpop.permute.xlu1 %630  ;;  %v629_v11 = vpop.permute.xlu0 %628  ;;  %v735_v12 = vpack.c.bf16 %v104_v9, %v80_v4  ;;  %v734_v13 = vpack.c.bf16 %v103_v5, %v79_v3  ;;  %879 = vperm.xlu0 %11613, %v777_v54   ;;  %v10690_v4 = vld [vmem:[%s18031_s5 + $0x24] sm:$0x3]  ;;  %v1647_v5 = vld [vmem:[%s18034_s8 + $0x70] sm:$0xff]  ;;  %v1648_v9 = vld [vmem:[%s18034_s8 + $0x78] sm:$0xff] }
  0xc1   :  { %v633_v14 = vsel %vm632_vm1, %v629_v11, %v631_v10  ;;  %v634_v15 = vsel %vm632_vm1, %v631_v10, %v629_v11  ;;  %v10691_v10 = vld [vmem:[%s18031_s5 + $0x26] sm:$0x3] }
  0xc2   :  { %v649_v16 = vmul.f32 %v645_v0, %v634_v15  ;;  %1166 = vmatprep.subr.bf16.mxu0 %v735_v12  ;;  %v648_v18 = vmul.f32 %v641_v1, %v633_v14  ;;  %v1645_v15 = vld [vmem:[%s18034_s8 + $0x60] sm:$0xff]  ;;  %v521_v19 = vrot.slane %v10691_v10, %v12140_v7  ;;  %v525_v20 = vrot.slane %v10691_v10, %v12142_v8  ;;  %v11624_v10 = vld [vmem:[%s18027_s1 + $0x34] ss:$8 sps:$4 sm:$0xff]  }
  0xc3   :  { %1167 = vmatpush1.bf16.msra.mxu0 %v734_v13  ;;  %1721 = vperm.xlu1 %11614, %v1647_v5   ;;  %v11621_v5 = vld [vmem:[%s18027_s1 + $0x24] ss:$8 sps:$4 sm:$0xff]  }
  0xc4   :  { %v759_v22 = vpack.c.bf16 %v649_v16, %v649_v16  ;;  %v583_v23 = vpop.permute.xlu1 %582  ;;  %v581_v24 = vpop.permute.xlu0 %580  ;;  %v758_v25 = vpack.c.bf16 %v648_v18, %v648_v18  ;;  %1726 = vperm.xlu0 %11613, %v1648_v9   ;;  %v497_v16 = vrot.slane %v10690_v4, %v12140_v7  ;;  %v501_v18 = vrot.slane %v10690_v4, %v12142_v8  ;;  %v11620_v4 = vld [vmem:[%s18027_s1 + $0x10] ss:$8 sps:$4 sm:$0xff]   ;;  %v11623_v9 = vld [vmem:[%s18027_s1 + $0x20] ss:$8 sps:$4 sm:$0xff]  }
  0xc5   :  { %v585_v33 = vsel %vm584_vm4, %v581_v24, %v583_v23  ;;  %v586_v34 = vsel %vm584_vm4, %v583_v23, %v581_v24 }
  0xc6   :  { %10729 = vmatprep.subr.msk.bf16.mxu0 %vm1145_vm2, %v759_v22  ;;  %v1147_v30 = vsel %vm1145_vm2, %v758_v25, 0  ;;  %v600_v40 = vmul.f32 %v593_v27, %v585_v33  ;;  %v601_v41 = vmul.f32 %v597_v28, %v586_v34  ;;  %v1644_v33 = vld [vmem:[%s18034_s8 + $0x58] sm:$0xff]  ;;  %v10689_v34 = vld [vmem:[%s18031_s5 + $0x22] sm:$0x3] }
  0xc7   :  { %1175 = vmatpush2.bf16.msra.mxu0 %v1147_v30  ;;  %1711 = vperm.xlu1 %11614, %v1645_v15   ;;  %v473_v44 = vrot.slane %v10689_v34, %v12140_v7  ;;  %v477_v45 = vrot.slane %v10689_v34, %v12142_v8  ;;  %v11632_v15 = vld [vmem:[%s18027_s1 + $0x50] ss:$8 sps:$4 sm:$0xff]   ;;  %v11660_v34 = vld [vmem:[%s18027_s1 + $0xf4] ss:$8 sps:$4 sm:$0xff]  }
  0xc8   :  { %v607_v35 = vpop.permute.xlu1 %606  ;;  %v605_v36 = vpop.permute.xlu0 %604  ;;  %1716 = vperm.xlu0 %11613, %v1646_v17   ;;  %v11635_v17 = vld [vmem:[%s18027_s1 + $0x60] ss:$8 sps:$4 sm:$0xff]  }
  0xc9   :  { %v609_v37 = vsel %vm608_vm7, %v605_v36, %v607_v35  ;;  %v610_v38 = vsel %vm608_vm7, %v607_v35, %v605_v36 }
  0xca   :  { %v624_v42 = vmul.f32 %v617_v31, %v609_v37  ;;  %v625_v43 = vmul.f32 %v621_v32, %v610_v38  ;;  %v10688_v31 = vld [vmem:[%s18031_s5 + $0x20] sm:$0x3]  ;;  %v1643_v32 = vld [vmem:[%s18034_s8 + $0x50] sm:$0xff] }
  0xcb   :  { %1701 = vperm.xlu1 %11614, %v1643_v32   ;;  %v11657_v32 = vld [vmem:[%s18027_s1 + $0xe4] ss:$8 sps:$4 sm:$0xff]  }
  0xcc   :  { %v535_v48 = vpop.permute.xlu1 %534  ;;  %v533_v49 = vpop.permute.xlu0 %532  ;;  %v757_v50 = vpack.c.bf16 %v625_v43, %v601_v41  ;;  %v756_v51 = vpack.c.bf16 %v624_v42, %v600_v40  ;;  %1706 = vperm.xlu0 %11613, %v1644_v33   ;;  %v1641_v40 = vld [vmem:[%s18034_s8 + $0x40] sm:$0xff]  ;;  %v449_v41 = vrot.slane %v10688_v31, %v12140_v7  ;;  %v1642_v42 = vld [vmem:[%s18034_s8 + $0x48] sm:$0xff]  ;;  %v453_v43 = vrot.slane %v10688_v31, %v12142_v8  ;;  %v11656_v31 = vld [vmem:[%s18027_s1 + $0xd0] ss:$8 sps:$4 sm:$0xff]  }
  0xcd   :  { %v537_v58 = vsel %vm536_vm10, %v533_v49, %v535_v48  ;;  %v538_v59 = vsel %vm536_vm10, %v535_v48, %v533_v49  ;;  %v11659_v33 = vld [vmem:[%s18027_s1 + $0xe0] ss:$8 sps:$4 sm:$0xff]  }
  0xce   :  { %1176 = vmatprep.subr.bf16.mxu0 %v757_v50  ;;  %v552_v0 = vmul.f32 %v545_v53, %v537_v58  ;;  %v553_v1 = vmul.f32 %v549_v55, %v538_v59 }
  0xcf   :  { %1177 = vmatpush2.bf16.msra.mxu0 %v756_v51  ;;  %1691 = vperm.xlu1 %11614, %v1641_v40  }
  0xd0   :  { %v559_v60 = vpop.permute.xlu1 %558  ;;  %v557_v61 = vpop.permute.xlu0 %556  ;;  %1696 = vperm.xlu0 %11613, %v1642_v42  }
  0xd1   :  { %v561_v62 = vsel %vm560_vm11, %v557_v61, %v559_v60  ;;  %v562_v63 = vsel %vm560_vm11, %v559_v60, %v557_v61  ;;  %v1637_v60 = vld [vmem:[%s18034_s8 + $0x20] sm:$0xff]  ;;  %v1638_v61 = vld [vmem:[%s18034_s8 + $0x28] sm:$0xff] }
  0xd2   :  { %v576_v2 = vmul.f32 %v569_v56, %v561_v62  ;;  %v577_v3 = vmul.f32 %v573_v57, %v562_v63  ;;  %v1639_v56 = vld [vmem:[%s18034_s8 + $0x30] sm:$0xff]  ;;  %v1640_v57 = vld [vmem:[%s18034_s8 + $0x38] sm:$0xff]  ;;  %v11615_v62 = vld [vmem:[%s18027_s1] ss:$8 sps:$4 sm:$0xff]  }
  0xd3   :  { %1681 = vperm.xlu1 %11614, %v1639_v56   ;;  %v11618_v63 = vld [vmem:[%s18027_s1 + $0x14] ss:$8 sps:$4 sm:$0xff]  }
  0xd4   :  { %v487_v11 = vpop.permute.xlu1 %486  ;;  %v485_v12 = vpop.permute.xlu0 %484  ;;  %v755_v13 = vpack.c.bf16 %v577_v3, %v553_v1  ;;  %v754_v14 = vpack.c.bf16 %v576_v2, %v552_v0  ;;  %1686 = vperm.xlu0 %11613, %v1640_v57   ;;  %v1635_v0 = vld [vmem:[%s18034_s8 + $0x10] sm:$0xff]  ;;  %v1636_v1 = vld [vmem:[%s18034_s8 + $0x18] sm:$0xff]  ;;  %v1633_v2 = vld [vmem:[%s18034_s8] sm:$0xff] }
  0xd5   :  { %v489_v21 = vsel %vm488_vm12, %v485_v12, %v487_v11  ;;  %v490_v22 = vsel %vm488_vm12, %v487_v11, %v485_v12  ;;  %v1634_v3 = vld [vmem:[%s18034_s8 + $0x8] sm:$0xff]  ;;  %v11626_v11 = vld [vmem:[%s18027_s1 + $0x30] ss:$8 sps:$4 sm:$0xff]  }
  0xd6   :  { %1178 = vmatprep.subr.bf16.mxu0 %v755_v13  ;;  %v504_v27 = vmul.f32 %v497_v16, %v489_v21  ;;  %v505_v28 = vmul.f32 %v501_v18, %v490_v22  ;;  %v11627_v12 = vld [vmem:[%s18027_s1 + $0x44] ss:$8 sps:$4 sm:$0xff]   ;;  %v11629_v13 = vld [vmem:[%s18027_s1 + $0x40] ss:$8 sps:$4 sm:$0xff]   ;;  %v11636_v18 = vld [vmem:[%s18027_s1 + $0x74] ss:$8 sps:$4 sm:$0xff]  }
  0xd7   :  { %1179 = vmatpush2.bf16.msra.mxu0 %v754_v14  ;;  %1671 = vperm.xlu1 %11614, %v1637_v60   ;;  %v11630_v14 = vld [vmem:[%s18027_s1 + $0x54] ss:$8 sps:$4 sm:$0xff]   ;;  %v11633_v16 = vld [vmem:[%s18027_s1 + $0x64] ss:$8 sps:$4 sm:$0xff]   ;;  %v11641_v21 = vld [vmem:[%s18027_s1 + $0x80] ss:$8 sps:$4 sm:$0xff]  }
  0xd8   :  { %v511_v23 = vpop.permute.xlu1 %510  ;;  %v509_v24 = vpop.permute.xlu0 %508  ;;  %1676 = vperm.xlu0 %11613, %v1638_v61   ;;  %v11642_v22 = vld [vmem:[%s18027_s1 + $0x94] ss:$8 sps:$4 sm:$0xff]  }
  0xd9   :  { %v513_v25 = vsel %vm512_vm13, %v509_v24, %v511_v23  ;;  %v514_v26 = vsel %vm512_vm13, %v511_v23, %v509_v24  ;;  %v11644_v23 = vld [vmem:[%s18027_s1 + $0x90] ss:$8 sps:$4 sm:$0xff]   ;;  %v11645_v24 = vld [vmem:[%s18027_s1 + $0xa4] ss:$8 sps:$4 sm:$0xff]  }
  0xda   :  { %v528_v29 = vmul.f32 %v521_v19, %v513_v25  ;;  %v529_v30 = vmul.f32 %v525_v20, %v514_v26  ;;  %v11638_v19 = vld [vmem:[%s18027_s1 + $0x70] ss:$8 sps:$4 sm:$0xff]   ;;  %v11639_v20 = vld [vmem:[%s18027_s1 + $0x84] ss:$8 sps:$4 sm:$0xff]   ;;  %v11647_v25 = vld [vmem:[%s18027_s1 + $0xa0] ss:$8 sps:$4 sm:$0xff]  }
  0xdb   :  { %1661 = vperm.xlu1 %11614, %v1635_v0   ;;  %v11648_v26 = vld [vmem:[%s18027_s1 + $0xb4] ss:$8 sps:$4 sm:$0xff]  }
  0xdc   :  { %v439_v35 = vpop.permute.xlu1 %438  ;;  %v437_v36 = vpop.permute.xlu0 %436  ;;  %v753_v37 = vpack.c.bf16 %v529_v30, %v505_v28  ;;  %v752_v38 = vpack.c.bf16 %v528_v29, %v504_v27  ;;  %1666 = vperm.xlu0 %11613, %v1636_v1   ;;  %v11650_v27 = vld [vmem:[%s18027_s1 + $0xb0] ss:$8 sps:$4 sm:$0xff]   ;;  %v11651_v28 = vld [vmem:[%s18027_s1 + $0xc4] ss:$8 sps:$4 sm:$0xff]   ;;  %v11653_v29 = vld [vmem:[%s18027_s1 + $0xc0] ss:$8 sps:$4 sm:$0xff]  }
  0xdd   :  { %v441_v46 = vsel %vm440_vm14, %v437_v36, %v439_v35  ;;  %v442_v47 = vsel %vm440_vm14, %v439_v35, %v437_v36  ;;  %v11654_v30 = vld [vmem:[%s18027_s1 + $0xd4] ss:$8 sps:$4 sm:$0xff]   ;;  %v11662_v35 = vld [vmem:[%s18027_s1 + $0xf0] ss:$8 sps:$4 sm:$0xff]  }
  0xde   :  { %1180 = vmatprep.subr.bf16.mxu0 %v753_v37  ;;  %v456_v52 = vmul.f32 %v449_v41, %v441_v46  ;;  %v457_v53 = vmul.f32 %v453_v43, %v442_v47 }
  0xdf   :  { %1181 = vmatpush2.bf16.msra.mxu0 %v752_v38  ;;  %1651 = vperm.xlu1 %11614, %v1633_v2  }
  0xe0   :  { %v463_v48 = vpop.permute.xlu1 %462  ;;  %v461_v49 = vpop.permute.xlu0 %460  ;;  %1656 = vperm.xlu0 %11613, %v1634_v3  }
  0xe1   :  { %v465_v50 = vsel %vm464_vm15, %v461_v49, %v463_v48  ;;  %v466_v51 = vsel %vm464_vm15, %v463_v48, %v461_v49 }
  0xe2   :  { %v480_v54 = vmul.f32 %v473_v44, %v465_v50  ;;  %v481_v55 = vmul.f32 %v477_v45, %v466_v51 }
  0xe4   :  { %v751_v58 = vpack.c.bf16 %v481_v55, %v457_v53  ;;  %v750_v59 = vpack.c.bf16 %v480_v54, %v456_v52 }
  0xe6   :  { %1182 = vmatprep.subr.bf16.mxu0 %v751_v58 }
  0xe7   :  { %1183 = vmatpush2.bf16.msra.mxu0 %v750_v59 }
  0xea   :  { %1185 = vmatmul.mubr.bf16.vlgmr.msra.gmra.mxu0 %v11615_v62 }
  0xeb   :  { %10731 = vmatprep.mubr.msk.bf16.mxu0 %vm1096_vm0, %v11618_v63 }
  0xed   :  { %v12593_v36 = vpop.permute.xlu1 %869  ;;  %v12595_v37 = vpop.permute.xlu0 %864 }
  0xf1   :  { %v12597_v38 = vpop.permute.xlu1 %854  ;;  %v12599_v40 = vpop.permute.xlu0 %859 }
  0xf2   :  { %1195 = vmatmul.mubr.bf16.gmra.mxu0 %v11620_v4 }
  0xf3   :  { %10732 = vmatprep.mubr.msk.bf16.mxu0 %vm1096_vm0, %v11621_v5 }
  0xfa   :  { %1205 = vmatmul.mubr.bf16.gmra.mxu0 %v11623_v9 }
  0xfb   :  { %10733 = vmatprep.mubr.msk.bf16.mxu0 %vm1096_vm0, %v11624_v10 }
 0x102   :  { %1215 = vmatmul.mubr.bf16.gmra.mxu0 %v11626_v11 }
 0x103   :  { %10734 = vmatprep.mubr.msk.bf16.mxu0 %vm1096_vm0, %v11627_v12 }
 0x106   :  { %v12601_v41 = vpop.permute.xlu1 %844  ;;  %v12603_v42 = vpop.permute.xlu0 %849 }
 0x10a   :  { %1225 = vmatmul.mubr.bf16.gmra.mxu0 %v11629_v13  ;;  %v12605_v43 = vpop.permute.xlu1 %834 }
 0x10b   :  { %10735 = vmatprep.mubr.msk.bf16.mxu0 %vm1096_vm0, %v11630_v14  ;;  %v12607_v44 = vpop.permute.xlu0 %839 }
 0x10e   :  { %v12609_v45 = vpop.permute.xlu1 %824 }
 0x10f   :  { %v12611_v46 = vpop.permute.xlu0 %829 }
 0x112   :  { %1235 = vmatmul.mubr.bf16.gmra.mxu0 %v11632_v15  ;;  %v12613_v47 = vpop.permute.xlu1 %814 }
 0x113   :  { %10736 = vmatprep.mubr.msk.bf16.mxu0 %vm1096_vm0, %v11633_v16  ;;  %v12615_v48 = vpop.permute.xlu0 %819 }
 0x116   :  { %v12617_v49 = vpop.permute.xlu1 %804 }
 0x117   :  { %v12619_v50 = vpop.permute.xlu0 %809 }
 0x11a   :  { %1245 = vmatmul.mubr.bf16.gmra.mxu0 %v11635_v17  ;;  %v12621_v51 = vpop.permute.xlu1 %794 }
 0x11b   :  { %10737 = vmatprep.mubr.msk.bf16.mxu0 %vm1096_vm0, %v11636_v18  ;;  %v12623_v53 = vpop.permute.xlu0 %799 }
 0x11e   :  { %v12649_v14 = vpop.permute.xlu1 %944 }
 0x11f   :  { %v12653_v16 = vpop.permute.xlu0 %949 }
 0x122   :  { %1255 = vmatmul.mubr.bf16.gmra.mxu0 %v11638_v19  ;;  %v12659_v19 = vpop.permute.xlu1 %934 }
 0x123   :  { %10738 = vmatprep.mubr.msk.bf16.mxu0 %vm1096_vm0, %v11639_v20  ;;  %18332 = vst [vmem:[#allocation19_spill] sm:$0xff] %v12659_v19 }
 0x12a   :  { %1265 = vmatmul.mubr.bf16.gmra.mxu0 %v11641_v21  ;;  %v12663_v21 = vpop.permute.xlu0 %939 }
 0x12b   :  { %10739 = vmatprep.mubr.msk.bf16.mxu0 %vm1096_vm0, %v11642_v22 }
 0x132   :  { %1275 = vmatmul.mubr.bf16.gmra.mxu0 %v11644_v23 }
 0x133   :  { %10740 = vmatprep.mubr.msk.bf16.mxu0 %vm1096_vm0, %v11645_v24  ;;  %v11665_v24 = vld [vmem:[#allocation8 + $0x4] ss:$8 sps:$4 sm:$0xff]  }
 0x134   :  { %2081 = vmatprep.mubr.bf16.mxu1 %v11665_v24 }
 0x13a   :  { %1285 = vmatmul.mubr.bf16.gmra.mxu0 %v11647_v25  ;;  %v11668_v25 = vld [vmem:[#allocation8 + $0x104] ss:$8 sps:$4 sm:$0xff]  }
 0x13b   :  { %10741 = vmatprep.mubr.msk.bf16.mxu0 %vm1096_vm0, %v11648_v26  ;;  %v12669_v26 = vpop.permute.xlu1 %924 }
 0x13c   :  { %18333 = vst [vmem:[#allocation20_spill] sm:$0xff] %v12669_v26 }
 0x142   :  { %1295 = vmatmul.mubr.bf16.gmra.mxu0 %v11650_v27 }
 0x143   :  { %10742 = vmatprep.mubr.msk.bf16.mxu0 %vm1096_vm0, %v11651_v28  ;;  %v12673_v28 = vpop.permute.xlu0 %929 }
 0x144   :  { %18334 = vst [vmem:[#allocation21_spill] sm:$0xff] %v12673_v28 }
 0x14a   :  { %1305 = vmatmul.mubr.bf16.gmra.mxu0 %v11653_v29 }
 0x14b   :  { %10743 = vmatprep.mubr.msk.bf16.mxu0 %vm1096_vm0, %v11654_v30 }
 0x152   :  { %1315 = vmatmul.mubr.bf16.gmra.mxu0 %v11656_v31  ;;  %v12675_v31 = vpop.permute.xlu1 %914 }
 0x153   :  { %10744 = vmatprep.mubr.msk.bf16.mxu0 %vm1096_vm0, %v11657_v32  ;;  %18335 = vst [vmem:[#allocation22_spill] sm:$0xff] %v12675_v31 }
 0x15a   :  { %1325 = vmatmul.mubr.bf16.gmra.mxu0 %v11659_v33  ;;  %v12677_v33 = vpop.permute.xlu0 %919 }
 0x15b   :  { %10745 = vmatprep.mubr.msk.bf16.mxu0 %vm1096_vm0, %v11660_v34  ;;  %18336 = vst [vmem:[#allocation23_spill] sm:$0xff] %v12677_v33  ;;  %vm10590_vm0 = vcmask 523264  }
 0x162   :  { %1335 = vmatmul.mubr.bf16.gmra.mxu0 %v11662_v35 }
 0x163   :  { %3358 = vmatprep.mubr.bf16.mxu0 %v11668_v25 }
 0x1aa   :  { %v1186_v52 = vpop.f32.mrf.mxu0 }
 0x1ab   :  { %v1187_v55 = vadd.f32 %v1186_v52, %v12621_v51  ;;  %v12679_v52 = vpop.permute.xlu1 %904 }
 0x1ac   :  { %v12625_v54 = vpop.f32.mrf.mxu0  ;;  %18337 = vst [vmem:[#allocation24_spill] sm:$0xff] %v12679_v52 }
 0x1ad   :  { %v1345_v59 = vmax.f32 %v1187_v55, 0.0 }
 0x1ae   :  { %v1190_v56 = vpop.f32.mrf.mxu0 }
 0x1af   :  { %v1191_v57 = vadd.f32 %v1190_v56, %v12623_v53  ;;  %v12681_v56 = vpop.permute.xlu0 %909 }
 0x1b0   :  { %v12629_v58 = vpop.f32.mrf.mxu0  ;;  %18338 = vst [vmem:[#allocation25_spill] sm:$0xff] %v12681_v56 }
 0x1b1   :  { %v1347_v60 = vmax.f32 %v1191_v57, 0.0 }
 0x1b2   :  { %v1196_v61 = vpop.f32.mrf.mxu0 }
 0x1b3   :  { %v12631_v62 = vpack.c.bf16 %v1347_v60, %v1345_v59  ;;  %v1197_v0 = vadd.f32 %v1196_v61, %v12617_v49  ;;  %v12683_v60 = vpop.permute.xlu1 %894 }
 0x1b4   :  { %v12633_v63 = vpop.f32.mrf.mxu0  ;;  %18339 = vst [vmem:[#allocation26_spill] sm:$0xff] %v12683_v60 }
 0x1b5   :  { %18330 = vst [vmem:[#allocation17_spill] sm:$0xff] %v12631_v62  ;;  %v1349_v4 = vmax.f32 %v1197_v0, 0.0  ;;  %v12685_v0 = vpop.permute.xlu0 %899 }
 0x1b6   :  { %v1200_v1 = vpop.f32.mrf.mxu0  ;;  %18340 = vst [vmem:[#allocation27_spill] sm:$0xff] %v12685_v0 }
 0x1b7   :  { %v1201_v2 = vadd.f32 %v1200_v1, %v12619_v50 }
 0x1b8   :  { %v12637_v3 = vpop.f32.mrf.mxu0 }
 0x1b9   :  { %v1351_v5 = vmax.f32 %v1201_v2, 0.0  ;;  %v12692_v6 = vpop.permute.xlu0 %889 }
 0x1ba   :  { %v12639_v9 = vpop.f32.mrf.mxu0 }
 0x1bb   :  { %v12641_v10 = vpack.c.bf16 %v1351_v5, %v1349_v4  ;;  %v12687_v4 = vpop.permute.xlu1 %884 }
 0x1bc   :  { %v12643_v11 = vpop.f32.mrf.mxu0 }
 0x1bd   :  { %18331 = vst [vmem:[#allocation18_spill] sm:$0xff] %v12641_v10 }
 0x1be   :  { %v12645_v12 = vpop.f32.mrf.mxu0 }
 0x1bf   :  { %v12699_v28 = vpop.permute.xlu1 %874 }
 0x1c0   :  { %v12647_v13 = vpop.f32.mrf.mxu0 }
 0x1c2   :  { %v12651_v15 = vpop.f32.mrf.mxu0 }
 0x1c4   :  { %v12655_v17 = vpop.f32.mrf.mxu0 }
 0x1c6   :  { %v12657_v18 = vpop.f32.mrf.mxu0 }
 0x1c8   :  { %v12661_v20 = vpop.f32.mrf.mxu0 }
 0x1ca   :  { %v12665_v22 = vpop.f32.mrf.mxu0 }
 0x1cc   :  { %v12667_v23 = vpop.f32.mrf.mxu0 }
 0x1ce   :  { %v12671_v27 = vpop.f32.mrf.mxu0 }
 0x1d0   :  { %v1232_v29 = vpop.f32.mrf.mxu0 }
 0x1d2   :  { %v1236_v30 = vpop.f32.mrf.mxu0 }
 0x1d4   :  { %v1238_v32 = vpop.f32.mrf.mxu0 }
 0x1d6   :  { %v1240_v34 = vpop.f32.mrf.mxu0 }
 0x1d8   :  { %v1242_v35 = vpop.f32.mrf.mxu0 }
 0x1d9   :  { %v1243_v33 = vadd.f32 %v1242_v35, %v12603_v42 }
 0x1da   :  { %v1246_v55 = vpop.f32.mrf.mxu0 }
 0x1dc   :  { %v1248_v57 = vpop.f32.mrf.mxu0 }
 0x1dd   :  { %v1249_v60 = vadd.f32 %v1248_v57, %v12597_v38  ;;  %v1239_v57 = vadd.f32 %v1238_v32, %v12601_v41 }
 0x1de   :  { %v1250_v59 = vpop.f32.mrf.mxu0 }
 0x1df   :  { %v1251_v52 = vadd.f32 %v1250_v59, %v12599_v40 }
 0x1e0   :  { %v1252_v61 = vpop.f32.mrf.mxu0 }
 0x1e1   :  { %v1253_v24 = vadd.f32 %v1252_v61, %v12599_v40  ;;  %v1241_v40 = vadd.f32 %v1240_v34, %v12603_v42  ;;  %v1371_v35 = vmax.f32 %v1251_v52, 0.0  ;;  %v1229_v42 = vadd.f32 %v12667_v23, %v12605_v43 }
 0x1e2   :  { %v1256_v1 = vpop.f32.mrf.mxu0 }
 0x1e3   :  { %v1257_v8 = vadd.f32 %v1256_v1, %v12595_v37  ;;  %v1372_v61 = vmax.f32 %v1253_v24, 0.0  ;;  %v1370_v1 = vmax.f32 %v1249_v60, 0.0 }
 0x1e4   :  { %v1258_v2 = vpop.f32.mrf.mxu0 }
 0x1e5   :  { %v1259_v25 = vadd.f32 %v1258_v2, %v12595_v37  ;;  %v1373_v19 = vmax.f32 %v1257_v8, 0.0  ;;  %v1368_v8 = vmax.f32 %v1243_v33, 0.0 }
 0x1e6   :  { %v1260_v5 = vpop.f32.mrf.mxu0 }
 0x1e7   :  { %v1261_v39 = vadd.f32 %v1260_v5, %v12593_v36  ;;  %v1374_v26 = vmax.f32 %v1259_v25, 0.0  ;;  %v1247_v5 = vadd.f32 %v1246_v55, %v12597_v38  ;;  %v1233_v38 = vadd.f32 %v1232_v29, %v12607_v44 }
 0x1e8   :  { %v1262_v7 = vpop.f32.mrf.mxu0  ;;  %v12714_v55 = vpack.c.bf16 %v1372_v61, %v1370_v1  ;;  %v1227_v61 = vadd.f32 %v12665_v22, %v12605_v43  ;;  %v1221_v43 = vadd.f32 %v12657_v18, %v12611_v46 }
 0x1e9   :  { %v1263_v0 = vadd.f32 %v1262_v7, %v12593_v36  ;;  %v1375_v56 = vmax.f32 %v1261_v39, 0.0  ;;  %v12708_v36 = vpop.permute.xlu0 %879  ;;  %v1364_v24 = vmax.f32 %v1233_v38, 0.0 }
 0x1ea   :  { %v1266_v31 = vpop.f32.mrf.mxu0  ;;  %v1361_v38 = vmax.f32 %v1227_v61, 0.0 }
 0x1eb   :  { %v1376_v2 = vmax.f32 %v1263_v0, 0.0  ;;  %v1267_v39 = vadd.f32 %v1266_v31, %v12699_v28  ;;  %v12711_v59 = vpack.c.bf16 %v1375_v56, %v1373_v19  ;;  %v1369_v31 = vmax.f32 %v1247_v5, 0.0 }
 0x1ec   :  { %v12702_v37 = vpop.f32.mrf.mxu0  ;;  %v1366_v19 = vmax.f32 %v1239_v57, 0.0  ;;  %v1223_v56 = vadd.f32 %v12661_v20, %v12611_v46  ;;  %v1209_v46 = vadd.f32 %v12643_v11, %v12613_v47 }
 0x1ed   :  { %v12705_v7 = vpack.c.bf16 %v1376_v2, %v1374_v26  ;;  %v1237_v26 = vadd.f32 %v1236_v30, %v12601_v41  ;;  %v1377_v29 = vmax.f32 %v1267_v39, 0.0  ;;  %v1231_v41 = vadd.f32 %v12671_v27, %v12607_v44 }
 0x1ee   :  { %v1270_v0 = vpop.f32.mrf.mxu0  ;;  %v1367_v30 = vmax.f32 %v1241_v40, 0.0  ;;  %v12730_v34 = vpack.c.bf16 %v1371_v35, %v1369_v31  ;;  %v12734_v25 = vpack.c.bf16 %v1368_v8, %v1366_v19  ;;  %v1219_v44 = vadd.f32 %v12655_v17, %v12609_v45 }
 0x1ef   :  { %v1271_v32 = vadd.f32 %v1270_v0, %v12708_v36  ;;  %2049 = vmatprep.subr.bf16.mxu1 %v12705_v7  ;;  %3326 = vmatprep.subr.bf16.mxu0 %v12705_v7  ;;  %v1365_v2 = vmax.f32 %v1237_v26, 0.0  ;;  %v1362_v27 = vmax.f32 %v1229_v42, 0.0  ;;  %v1363_v22 = vmax.f32 %v1231_v41, 0.0 }
 0x1f0   :  { %v12720_v60 = vpop.f32.mrf.mxu0  ;;  %2050 = vmatpush1.bf16.msra.mxu1 %v12711_v59  ;;  %3327 = vmatpush1.bf16.msra.mxu0 %v12711_v59  ;;  %v1213_v39 = vadd.f32 %v12647_v13, %v12615_v48  ;;  %v1360_v40 = vmax.f32 %v1223_v56, 0.0  ;;  %v1217_v0 = vadd.f32 %v12651_v15, %v12609_v45  ;;  %v1358_v18 = vmax.f32 %v1219_v44, 0.0 }
 0x1f1   :  { %v1379_v33 = vmax.f32 %v1271_v32, 0.0  ;;  %2051 = vmatprep.subr.bf16.mxu1 %v12714_v55  ;;  %3328 = vmatprep.subr.bf16.mxu0 %v12714_v55  ;;  %v12751_v57 = vpack.c.bf16 %v1367_v30, %v1365_v2  ;;  %v12755_v35 = vpack.c.bf16 %v1364_v24, %v1362_v27  ;;  %v1211_v45 = vadd.f32 %v12645_v12, %v12615_v48 }
 0x1f2   :  { %v1276_v52 = vpop.f32.mrf.mxu0  ;;  %v1359_v15 = vmax.f32 %v1221_v43, 0.0  ;;  %v12770_v26 = vpack.c.bf16 %v1363_v22, %v1361_v38  ;;  %v1203_v42 = vadd.f32 %v12637_v3, %v12619_v50  ;;  %v1356_v19 = vmax.f32 %v1213_v39, 0.0 }
 0x1f3   :  { %v12736_v23 = vpack.c.bf16 %v1379_v33, %v1377_v29  ;;  %v1277_v20 = vadd.f32 %v1276_v52, %v12687_v4  ;;  %v12776_v11 = vpack.c.bf16 %v1360_v40, %v1358_v18  ;;  %v1207_v33 = vadd.f32 %v12639_v9, %v12613_v47 }
 0x1f4   :  { %v12740_v5 = vpop.f32.mrf.mxu0  ;;  %2052 = vmatpush1.bf16.msra.mxu1 %v12730_v34  ;;  %3329 = vmatpush1.bf16.msra.mxu0 %v12730_v34  ;;  %v1357_v41 = vmax.f32 %v1217_v0, 0.0  ;;  %v1199_v48 = vadd.f32 %v12633_v63, %v12617_v49  ;;  %v1354_v12 = vmax.f32 %v1209_v46, 0.0  ;;  %v1355_v50 = vmax.f32 %v1211_v45, 0.0 }
 0x1f5   :  { %2053 = vmatprep.subr.bf16.mxu1 %v12734_v25  ;;  %3330 = vmatprep.subr.bf16.mxu0 %v12734_v25  ;;  %v1381_v13 = vmax.f32 %v1277_v20, 0.0  ;;  %v1193_v47 = vadd.f32 %v12629_v58, %v12623_v53  ;;  %v1352_v9 = vmax.f32 %v1203_v42, 0.0  ;;  %v1353_v24 = vmax.f32 %v1207_v33, 0.0 }
 0x1f6   :  { %v1280_v1 = vpop.f32.mrf.mxu0  ;;  %v12790_v3 = vpack.c.bf16 %v1359_v15, %v1357_v41  ;;  %v12796_v56 = vpack.c.bf16 %v1356_v19, %v1354_v12  ;;  %v1189_v49 = vadd.f32 %v12625_v54, %v12621_v51  ;;  %v1350_v63 = vmax.f32 %v1199_v48, 0.0 }
 0x1f7   :  { %v1281_v17 = vadd.f32 %v1280_v1, %v12692_v6  ;;  %v12806_v2 = vpack.c.bf16 %v1355_v50, %v1353_v24  ;;  %v1348_v58 = vmax.f32 %v1193_v47, 0.0  ;;  %v18344_v47 = vld [vmem:[#allocation19_spill] sm:$0xff] }
 0x1f8   :  { %v12760_v8 = vpop.f32.mrf.mxu0  ;;  %2054 = vmatpush1.bf16.msra.mxu1 %v12751_v57  ;;  %3331 = vmatpush1.bf16.msra.mxu0 %v12751_v57  ;;  %v12810_v44 = vpack.c.bf16 %v1352_v9, %v1350_v63  ;;  %v1346_v20 = vmax.f32 %v1189_v49, 0.0 }
 0x1f9   :  { %v1383_v32 = vmax.f32 %v1281_v17, 0.0  ;;  %2055 = vmatprep.subr.bf16.mxu1 %v12755_v35  ;;  %3332 = vmatprep.subr.bf16.mxu0 %v12755_v35  ;;  %18341 = vst [vmem:[#allocation28_spill] sm:$0xff] %v12806_v2 }
 0x1fa   :  { %v12772_v31 = vpop.f32.mrf.mxu0  ;;  %18342 = vst [vmem:[#allocation29_spill] sm:$0xff] %v12810_v44  ;;  %v12820_v54 = vpack.c.bf16 %v1348_v58, %v1346_v20  ;;  %v18345_v58 = vld [vmem:[#allocation21_spill] sm:$0xff] }
 0x1fb   :  { %v12778_v29 = vpack.c.bf16 %v1383_v32, %v1381_v13 }
 0x1fc   :  { %v12782_v30 = vpop.f32.mrf.mxu0  ;;  %2056 = vmatpush1.bf16.msra.mxu1 %v12770_v26  ;;  %3333 = vmatpush1.bf16.msra.mxu0 %v12770_v26  ;;  %18343 = vst [vmem:[#allocation30_spill] sm:$0xff] %v12820_v54 }
 0x1fd   :  { %2057 = vmatprep.subr.bf16.mxu1 %v12776_v11  ;;  %3334 = vmatprep.subr.bf16.mxu0 %v12776_v11 }
 0x1fe   :  { %v12792_v52 = vpop.f32.mrf.mxu0 }
 0x200   :  { %v12798_v61 = vpop.f32.mrf.mxu0  ;;  %2058 = vmatpush1.bf16.msra.mxu1 %v12790_v3  ;;  %3335 = vmatpush1.bf16.msra.mxu0 %v12790_v3 }
 0x201   :  { %2059 = vmatprep.subr.bf16.mxu1 %v12796_v56  ;;  %3336 = vmatprep.subr.bf16.mxu0 %v12796_v56 }
 0x202   :  { %v12808_v53 = vpop.f32.mrf.mxu0 }
 0x204   :  { %v12812_v27 = vpop.f32.mrf.mxu0  ;;  %2060 = vmatpush1.bf16.msra.mxu1 %v12806_v2  ;;  %3337 = vmatpush1.bf16.msra.mxu0 %v12806_v2 }
 0x205   :  { %2061 = vmatprep.subr.bf16.mxu1 %v12810_v44  ;;  %3338 = vmatprep.subr.bf16.mxu0 %v12810_v44  ;;  %v18346_v44 = vld [vmem:[#allocation20_spill] sm:$0xff] }
 0x206   :  { %v12818_v51 = vpop.f32.mrf.mxu0 }
 0x208   :  { %v1302_v43 = vpop.f32.mrf.mxu0  ;;  %2062 = vmatpush1.bf16.msra.mxu1 %v12641_v10  ;;  %3339 = vmatpush1.bf16.msra.mxu0 %v12641_v10 }
 0x209   :  { %2063 = vmatprep.subr.bf16.mxu1 %v12820_v54  ;;  %3340 = vmatprep.subr.bf16.mxu0 %v12820_v54 }
 0x20a   :  { %v1306_v22 = vpop.f32.mrf.mxu0 }
 0x20c   :  { %v1308_v1 = vpop.f32.mrf.mxu0  ;;  %2064 = vmatpush1.bf16.msra.mxu1 %v12631_v62  ;;  %3341 = vmatpush1.bf16.msra.mxu0 %v12631_v62 }
 0x20e   :  { %v1310_v39 = vpop.f32.mrf.mxu0 }
 0x210   :  { %v1312_v40 = vpop.f32.mrf.mxu0 }
 0x212   :  { %v1316_v17 = vpop.f32.mrf.mxu0 }
 0x214   :  { %v1318_v0 = vpop.f32.mrf.mxu0 }
 0x216   :  { %v1320_v38 = vpop.f32.mrf.mxu0 }
 0x218   :  { %v1322_v46 = vpop.f32.mrf.mxu0 }
 0x219   :  { %v1323_v20 = vadd.f32 %v1322_v46, %v18345_v58 }
 0x21a   :  { %v1326_v18 = vpop.f32.mrf.mxu0 }
 0x21c   :  { %v1328_v13 = vpop.f32.mrf.mxu0 }
 0x21d   :  { %v1329_v9 = vadd.f32 %v1328_v13, %v18344_v47  ;;  %v1321_v13 = vadd.f32 %v1320_v38, %v18345_v58 }
 0x21e   :  { %v1330_v32 = vpop.f32.mrf.mxu0 }
 0x21f   :  { %v1331_v49 = vadd.f32 %v1330_v32, %v12663_v21  ;;  %v1402_v2 = vmax.f32 %v1329_v9, 0.0 }
 0x220   :  { %v1332_v45 = vpop.f32.mrf.mxu0 }
 0x221   :  { %v1333_v33 = vadd.f32 %v1332_v45, %v12663_v21  ;;  %v1327_v45 = vadd.f32 %v1326_v18, %v18344_v47  ;;  %v18347_v21 = vld [vmem:[#allocation23_spill] sm:$0xff]  ;;  %v1317_v18 = vadd.f32 %v1316_v17, %v18346_v44 }
 0x222   :  { %v1336_v15 = vpop.f32.mrf.mxu0  ;;  %v1313_v32 = vadd.f32 %v1312_v40, %v18347_v21 }
 0x223   :  { %v1337_v12 = vadd.f32 %v1336_v15, %v12649_v14  ;;  %v1404_v62 = vmax.f32 %v1333_v33, 0.0  ;;  %v1403_v15 = vmax.f32 %v1331_v49, 0.0  ;;  %v18349_v33 = vld [vmem:[#allocation25_spill] sm:$0xff] }
 0x224   :  { %v1338_v42 = vpop.f32.mrf.mxu0 }
 0x225   :  { %v1339_v41 = vadd.f32 %v1338_v42, %v12649_v14  ;;  %v1405_v42 = vmax.f32 %v1337_v12, 0.0  ;;  %v12844_v46 = vpack.c.bf16 %v1404_v62, %v1402_v2  ;;  %v1311_v62 = vadd.f32 %v1310_v39, %v18347_v21 }
 0x226   :  { %v1340_v19 = vpop.f32.mrf.mxu0  ;;  %v1399_v2 = vmax.f32 %v1321_v13, 0.0 }
 0x227   :  { %v1341_v48 = vadd.f32 %v1340_v19, %v12653_v16  ;;  %v1406_v54 = vmax.f32 %v1339_v41, 0.0  ;;  %v1319_v19 = vadd.f32 %v1318_v0, %v18346_v44  ;;  %v1401_v0 = vmax.f32 %v1327_v45, 0.0  ;;  %v18352_v45 = vld [vmem:[#allocation26_spill] sm:$0xff] }
 0x228   :  { %v1342_v50 = vpop.f32.mrf.mxu0  ;;  %v1303_v41 = vadd.f32 %v1302_v43, %v18349_v33  ;;  %v1396_v44 = vmax.f32 %v1313_v32, 0.0  ;;  %v1301_v43 = vadd.f32 %v12818_v51, %v18349_v33  ;;  %v1395_v39 = vmax.f32 %v1311_v62, 0.0  ;;  %v11666_v62 = vld [vmem:[#allocation8 + $0x100] ss:$8 sps:$4 sm:$0xff]   ;;  %v11671_v33 = vld [vmem:[#allocation8 + $0x114] ss:$8 sps:$4 sm:$0xff]  }
 0x229   :  { %v1343_v24 = vadd.f32 %v1342_v50, %v12653_v16  ;;  %v1407_v63 = vmax.f32 %v1341_v48, 0.0  ;;  %v1400_v48 = vmax.f32 %v1323_v20, 0.0  ;;  %v1398_v38 = vmax.f32 %v1319_v19, 0.0 }
 0x22a   :  { %v12855_v40 = vpack.c.bf16 %v1403_v15, %v1401_v0  ;;  %v1397_v50 = vmax.f32 %v1317_v18, 0.0  ;;  %v1289_v51 = vadd.f32 %v12782_v30, %v18352_v45  ;;  %v1391_v19 = vmax.f32 %v1301_v43, 0.0  ;;  %v11683_v43 = vld [vmem:[#allocation8 + $0x134] ss:$8 sps:$4 sm:$0xff]  }
 0x22b   :  { %v1408_v10 = vmax.f32 %v1343_v24, 0.0  ;;  %v12841_v16 = vpack.c.bf16 %v1407_v63, %v1405_v42  ;;  %v12858_v17 = vpack.c.bf16 %v1400_v48, %v1398_v38  ;;  %v1392_v63 = vmax.f32 %v1303_v41, 0.0  ;;  %v11673_v41 = vld [vmem:[#allocation8 + $0x10] ss:$8 sps:$4 sm:$0xff]  }
 0x22c   :  { %v12869_v24 = vpack.c.bf16 %v1399_v2, %v1397_v50  ;;  %v1287_v30 = vadd.f32 %v12772_v31, %v18352_v45  ;;  %v1386_v48 = vmax.f32 %v1289_v51, 0.0  ;;  %v1273_v18 = vadd.f32 %v12720_v60, %v12708_v36  ;;  %v11669_v2 = vld [vmem:[#allocation8 + $0x14] ss:$8 sps:$4 sm:$0xff]   ;;  %v11677_v50 = vld [vmem:[#allocation8 + $0x124] ss:$8 sps:$4 sm:$0xff]  }
 0x22d   :  { %v12838_v14 = vpack.c.bf16 %v1408_v10, %v1406_v54  ;;  %v18348_v10 = vld [vmem:[#allocation22_spill] sm:$0xff] }
 0x22e   :  { %v1309_v54 = vadd.f32 %v1308_v1, %v18348_v10  ;;  %v1307_v12 = vadd.f32 %v1306_v22, %v18348_v10  ;;  %v18350_v1 = vld [vmem:[#allocation24_spill] sm:$0xff]  ;;  %v18351_v22 = vld [vmem:[#allocation27_spill] sm:$0xff]  ;;  %v1385_v10 = vmax.f32 %v1287_v30, 0.0  ;;  %v1380_v38 = vmax.f32 %v1273_v18, 0.0  ;;  %v18355_v45 = vld [vmem:[#allocation18_spill] sm:$0xff] }
 0x22f   :  { %2065 = vmatprep.subr.bf16.mxu1 %v12838_v14  ;;  %3342 = vmatprep.subr.bf16.mxu0 %v12838_v14  ;;  %v1299_v47 = vadd.f32 %v12812_v27, %v18350_v1  ;;  %v1293_v49 = vadd.f32 %v12798_v61, %v18351_v22  ;;  %v1297_v27 = vadd.f32 %v12808_v53, %v18350_v1  ;;  %v11679_v1 = vld [vmem:[#allocation8 + $0x20] ss:$8 sps:$4 sm:$0xff]   ;;  %v18356_v51 = vld [vmem:[#allocation30_spill] sm:$0xff] }
 0x230   :  { %2066 = vmatpush2.bf16.msra.mxu1 %v12841_v16  ;;  %3343 = vmatpush2.bf16.msra.mxu0 %v12841_v16  ;;  %v1394_v9 = vmax.f32 %v1309_v54, 0.0  ;;  %v1393_v20 = vmax.f32 %v1307_v12, 0.0  ;;  %v1291_v61 = vadd.f32 %v12792_v52, %v18351_v22  ;;  %v1283_v53 = vadd.f32 %v12760_v8, %v12692_v6  ;;  %v11675_v12 = vld [vmem:[#allocation8 + $0x24] ss:$8 sps:$4 sm:$0xff]   ;;  %v11686_v22 = vld [vmem:[#allocation8 + $0x130] ss:$8 sps:$4 sm:$0xff]  }
 0x231   :  { %2067 = vmatprep.subr.bf16.mxu1 %v12844_v46  ;;  %3344 = vmatprep.subr.bf16.mxu0 %v12844_v46  ;;  %v1390_v42 = vmax.f32 %v1299_v47, 0.0  ;;  %v1388_v15 = vmax.f32 %v1293_v49, 0.0  ;;  %v1389_v32 = vmax.f32 %v1297_v27, 0.0  ;;  %v1279_v52 = vadd.f32 %v12740_v5, %v12687_v4  ;;  %v11680_v47 = vld [vmem:[#allocation8 + $0x120] ss:$8 sps:$4 sm:$0xff]  }
 0x232   :  { %v12873_v58 = vpack.c.bf16 %v1396_v44, %v1394_v9  ;;  %v12885_v13 = vpack.c.bf16 %v1395_v39, %v1393_v20  ;;  %v1387_v6 = vmax.f32 %v1291_v61, 0.0  ;;  %v1384_v31 = vmax.f32 %v1283_v53, 0.0  ;;  %v11674_v44 = vld [vmem:[#allocation8 + $0x110] ss:$8 sps:$4 sm:$0xff]   ;;  %v11681_v9 = vld [vmem:[#allocation8 + $0x34] ss:$8 sps:$4 sm:$0xff]  }
 0x233   :  { %v12889_v21 = vpack.c.bf16 %v1392_v63, %v1390_v42  ;;  %v12899_v8 = vpack.c.bf16 %v1391_v19, %v1389_v32  ;;  %v12903_v0 = vpack.c.bf16 %v1388_v15, %v1386_v48  ;;  %v1269_v4 = vadd.f32 %v12702_v37, %v12699_v28  ;;  %v11663_v37 = vld [vmem:[#allocation8] ss:$8 sps:$4 sm:$0xff]   ;;  %v11685_v39 = vld [vmem:[#allocation8 + $0x30] ss:$8 sps:$4 sm:$0xff]   ;;  %v11687_v27 = vld [vmem:[#allocation8 + $0x44] ss:$8 sps:$4 sm:$0xff]  }
 0x234   :  { %2068 = vmatpush2.bf16.msra.mxu1 %v12855_v40  ;;  %3345 = vmatpush2.bf16.msra.mxu0 %v12855_v40  ;;  %v1382_v5 = vmax.f32 %v1279_v52, 0.0  ;;  %v12911_v54 = vpack.c.bf16 %v1387_v6, %v1385_v10  ;;  %v18353_v49 = vld [vmem:[#allocation28_spill] sm:$0xff]  ;;  %v18354_v63 = vld [vmem:[#allocation29_spill] sm:$0xff]  ;;  %v11693_v53 = vld [vmem:[#allocation8 + $0x54] ss:$8 sps:$4 sm:$0xff]  }
 0x235   :  { %2069 = vmatprep.subr.bf16.mxu1 %v12858_v17  ;;  %3346 = vmatprep.subr.bf16.mxu0 %v12858_v17  ;;  %v1378_v60 = vmax.f32 %v1269_v4, 0.0  ;;  %v11689_v20 = vld [vmem:[#allocation8 + $0x144] ss:$8 sps:$4 sm:$0xff]   ;;  %v11691_v42 = vld [vmem:[#allocation8 + $0x40] ss:$8 sps:$4 sm:$0xff]  }
 0x236   :  { %v12913_v36 = vpack.c.bf16 %v1384_v31, %v1382_v5  ;;  %v11692_v61 = vld [vmem:[#allocation8 + $0x140] ss:$8 sps:$4 sm:$0xff]   ;;  %v11695_v15 = vld [vmem:[#allocation8 + $0x154] ss:$8 sps:$4 sm:$0xff]   ;;  %v11697_v30 = vld [vmem:[#allocation8 + $0x50] ss:$8 sps:$4 sm:$0xff]  }
 0x237   :  { %v12919_v28 = vpack.c.bf16 %v1380_v38, %v1378_v60  ;;  %v18357_v19 = vld [vmem:[#allocation17_spill] sm:$0xff]  ;;  %v11698_v32 = vld [vmem:[#allocation8 + $0x150] ss:$8 sps:$4 sm:$0xff]   ;;  %v11705_v31 = vld [vmem:[#allocation8 + $0x74] ss:$8 sps:$4 sm:$0xff]  }
 0x238   :  { %2070 = vmatpush2.bf16.msra.mxu1 %v12869_v24  ;;  %3347 = vmatpush2.bf16.msra.mxu0 %v12869_v24  ;;  %v11699_v52 = vld [vmem:[#allocation8 + $0x64] ss:$8 sps:$4 sm:$0xff]   ;;  %v11703_v6 = vld [vmem:[#allocation8 + $0x60] ss:$8 sps:$4 sm:$0xff]   ;;  %v11707_v10 = vld [vmem:[#allocation8 + $0x174] ss:$8 sps:$4 sm:$0xff]  }
 0x239   :  { %2071 = vmatprep.subr.bf16.mxu1 %v12873_v58  ;;  %3348 = vmatprep.subr.bf16.mxu0 %v12873_v58  ;;  %v11701_v48 = vld [vmem:[#allocation8 + $0x164] ss:$8 sps:$4 sm:$0xff]   ;;  %v11704_v18 = vld [vmem:[#allocation8 + $0x160] ss:$8 sps:$4 sm:$0xff]   ;;  %v11709_v4 = vld [vmem:[#allocation8 + $0x70] ss:$8 sps:$4 sm:$0xff]  }
 0x23a   :  { %v11710_v5 = vld [vmem:[#allocation8 + $0x170] ss:$8 sps:$4 sm:$0xff]   ;;  %v11713_v38 = vld [vmem:[#allocation8 + $0x84] ss:$8 sps:$4 sm:$0xff]  }
 0x23b   :  { %v11716_v60 = vld [vmem:[#allocation8 + $0x204] ss:$8 sps:$4 sm:$0xff]  }
 0x23c   :  { %2072 = vmatpush2.bf16.msra.mxu1 %v12885_v13  ;;  %3349 = vmatpush2.bf16.msra.mxu0 %v12885_v13 }
 0x23d   :  { %2073 = vmatprep.subr.bf16.mxu1 %v12889_v21  ;;  %3350 = vmatprep.subr.bf16.mxu0 %v12889_v21 }
 0x240   :  { %2074 = vmatpush2.bf16.msra.mxu1 %v12899_v8  ;;  %3351 = vmatpush2.bf16.msra.mxu0 %v12899_v8 }
 0x241   :  { %2075 = vmatprep.subr.bf16.mxu1 %v12903_v0  ;;  %3352 = vmatprep.subr.bf16.mxu0 %v12903_v0 }
 0x244   :  { %2076 = vmatpush2.bf16.msra.mxu1 %v12911_v54  ;;  %3353 = vmatpush2.bf16.msra.mxu0 %v12911_v54 }
 0x245   :  { %2077 = vmatprep.subr.bf16.mxu1 %v12913_v36  ;;  %3354 = vmatprep.subr.bf16.mxu0 %v12913_v36 }
 0x248   :  { %2078 = vmatpush2.bf16.msra.mxu1 %v12778_v29  ;;  %3355 = vmatpush2.bf16.msra.mxu0 %v12778_v29 }
 0x249   :  { %2079 = vmatprep.subr.bf16.mxu1 %v12919_v28  ;;  %3356 = vmatprep.subr.bf16.mxu0 %v12919_v28 }
 0x24c   :  { %2080 = vmatpush2.bf16.msra.mxu1 %v12736_v23  ;;  %3357 = vmatpush2.bf16.msra.mxu0 %v12736_v23 }
 0x24d   :  { %2687 = vmatprep.subr.bf16.mxu1 %v12705_v7  ;;  %4604 = vmatprep.subr.bf16.mxu0 %v12705_v7 }
 0x24f   :  { %2082 = vmatmul.mubr.bf16.vlgmr.msra.gmra.mxu1 %v11663_v37  ;;  %3359 = vmatmul.mubr.bf16.vlgmr.msra.gmra.mxu0 %v11666_v62  ;;  %v11711_v37 = vld [vmem:[#allocation8 + $0x80] ss:$8 sps:$4 sm:$0xff]  }
 0x250   :  { %2688 = vmatpush1.bf16.msra.mxu1 %v12711_v59  ;;  %4605 = vmatpush1.bf16.msra.mxu0 %v12711_v59  ;;  %v11714_v62 = vld [vmem:[#allocation8 + $0x200] ss:$8 sps:$4 sm:$0xff]  }
 0x251   :  { %2689 = vmatprep.subr.bf16.mxu1 %v12714_v55  ;;  %4606 = vmatprep.subr.bf16.mxu0 %v12714_v55 }
 0x252   :  { %2091 = vmatprep.mubr.bf16.mxu1 %v11669_v2  ;;  %3368 = vmatprep.mubr.bf16.mxu0 %v11671_v33  ;;  %v11717_v2 = vld [vmem:[#allocation8 + $0x94] ss:$8 sps:$4 sm:$0xff]  }
 0x253   :  { %v11719_v33 = vld [vmem:[#allocation8 + $0x214] ss:$8 sps:$4 sm:$0xff]  }
 0x254   :  { %2690 = vmatpush1.bf16.msra.mxu1 %v12730_v34  ;;  %4607 = vmatpush1.bf16.msra.mxu0 %v12730_v34 }
 0x255   :  { %2691 = vmatprep.subr.bf16.mxu1 %v12734_v25  ;;  %4608 = vmatprep.subr.bf16.mxu0 %v12734_v25 }
 0x257   :  { %2092 = vmatmul.mubr.bf16.gmra.mxu1 %v11673_v41  ;;  %3369 = vmatmul.mubr.bf16.gmra.mxu0 %v11674_v44  ;;  %v11721_v41 = vld [vmem:[#allocation8 + $0x90] ss:$8 sps:$4 sm:$0xff]  }
 0x258   :  { %2692 = vmatpush1.bf16.msra.mxu1 %v12751_v57  ;;  %4609 = vmatpush1.bf16.msra.mxu0 %v12751_v57  ;;  %v11722_v44 = vld [vmem:[#allocation8 + $0x210] ss:$8 sps:$4 sm:$0xff]  }
 0x259   :  { %2693 = vmatprep.subr.bf16.mxu1 %v12755_v35  ;;  %4610 = vmatprep.subr.bf16.mxu0 %v12755_v35 }
 0x25a   :  { %2101 = vmatprep.mubr.bf16.mxu1 %v11675_v12  ;;  %3378 = vmatprep.mubr.bf16.mxu0 %v11677_v50  ;;  %v11723_v12 = vld [vmem:[#allocation8 + $0xa4] ss:$8 sps:$4 sm:$0xff]  }
 0x25b   :  { %v11725_v50 = vld [vmem:[#allocation8 + $0x224] ss:$8 sps:$4 sm:$0xff]  }
 0x25c   :  { %2694 = vmatpush1.bf16.msra.mxu1 %v12770_v26  ;;  %4611 = vmatpush1.bf16.msra.mxu0 %v12770_v26 }
 0x25d   :  { %2695 = vmatprep.subr.bf16.mxu1 %v12776_v11  ;;  %4612 = vmatprep.subr.bf16.mxu0 %v12776_v11 }
 0x25f   :  { %2102 = vmatmul.mubr.bf16.gmra.mxu1 %v11679_v1  ;;  %3379 = vmatmul.mubr.bf16.gmra.mxu0 %v11680_v47  ;;  %v11727_v1 = vld [vmem:[#allocation8 + $0xa0] ss:$8 sps:$4 sm:$0xff]  }
 0x260   :  { %2696 = vmatpush1.bf16.msra.mxu1 %v12790_v3  ;;  %4613 = vmatpush1.bf16.msra.mxu0 %v12790_v3  ;;  %v11728_v47 = vld [vmem:[#allocation8 + $0x220] ss:$8 sps:$4 sm:$0xff]  }
 0x261   :  { %2697 = vmatprep.subr.bf16.mxu1 %v12796_v56  ;;  %4614 = vmatprep.subr.bf16.mxu0 %v12796_v56 }
 0x262   :  { %2111 = vmatprep.mubr.bf16.mxu1 %v11681_v9  ;;  %3388 = vmatprep.mubr.bf16.mxu0 %v11683_v43  ;;  %v11729_v9 = vld [vmem:[#allocation8 + $0xb4] ss:$8 sps:$4 sm:$0xff]  }
 0x263   :  { %v11731_v43 = vld [vmem:[#allocation8 + $0x234] ss:$8 sps:$4 sm:$0xff]  }
 0x264   :  { %2698 = vmatpush1.bf16.msra.mxu1 %v18353_v49  ;;  %4615 = vmatpush1.bf16.msra.mxu0 %v18353_v49 }
 0x265   :  { %2699 = vmatprep.subr.bf16.mxu1 %v18354_v63  ;;  %4616 = vmatprep.subr.bf16.mxu0 %v18354_v63 }
 0x267   :  { %2112 = vmatmul.mubr.bf16.gmra.mxu1 %v11685_v39  ;;  %3389 = vmatmul.mubr.bf16.gmra.mxu0 %v11686_v22  ;;  %v11733_v39 = vld [vmem:[#allocation8 + $0xb0] ss:$8 sps:$4 sm:$0xff]  }
 0x268   :  { %2700 = vmatpush1.bf16.msra.mxu1 %v18355_v45  ;;  %4617 = vmatpush1.bf16.msra.mxu0 %v18355_v45  ;;  %v11734_v22 = vld [vmem:[#allocation8 + $0x230] ss:$8 sps:$4 sm:$0xff]  }
 0x269   :  { %2701 = vmatprep.subr.bf16.mxu1 %v18356_v51  ;;  %4618 = vmatprep.subr.bf16.mxu0 %v18356_v51 }
 0x26a   :  { %2121 = vmatprep.mubr.bf16.mxu1 %v11687_v27  ;;  %3398 = vmatprep.mubr.bf16.mxu0 %v11689_v20  ;;  %v11735_v27 = vld [vmem:[#allocation8 + $0xc4] ss:$8 sps:$4 sm:$0xff]  }
 0x26b   :  { %v11739_v20 = vld [vmem:[#allocation8 + $0x244] ss:$8 sps:$4 sm:$0xff]  }
 0x26c   :  { %2702 = vmatpush1.bf16.msra.mxu1 %v18357_v19  ;;  %4619 = vmatpush1.bf16.msra.mxu0 %v18357_v19 }
 0x26d   :  { %2703 = vmatprep.subr.bf16.mxu1 %v12838_v14  ;;  %4620 = vmatprep.subr.bf16.mxu0 %v12838_v14 }
 0x26f   :  { %2122 = vmatmul.mubr.bf16.gmra.mxu1 %v11691_v42  ;;  %3399 = vmatmul.mubr.bf16.gmra.mxu0 %v11692_v61  ;;  %v11737_v42 = vld [vmem:[#allocation8 + $0x240] ss:$8 sps:$4 sm:$0xff]  }
 0x270   :  { %2704 = vmatpush2.bf16.msra.mxu1 %v12841_v16  ;;  %4621 = vmatpush2.bf16.msra.mxu0 %v12841_v16  ;;  %v11740_v61 = vld [vmem:[#allocation8 + $0xc0] ss:$8 sps:$4 sm:$0xff]  }
 0x271   :  { %2705 = vmatprep.subr.bf16.mxu1 %v12844_v46  ;;  %4622 = vmatprep.subr.bf16.mxu0 %v12844_v46 }
 0x272   :  { %2131 = vmatprep.mubr.bf16.mxu1 %v11693_v53  ;;  %3408 = vmatprep.mubr.bf16.mxu0 %v11695_v15  ;;  %v11741_v53 = vld [vmem:[#allocation8 + $0xd4] ss:$8 sps:$4 sm:$0xff]  }
 0x273   :  { %v11745_v15 = vld [vmem:[#allocation8 + $0x254] ss:$8 sps:$4 sm:$0xff]  }
 0x274   :  { %2706 = vmatpush2.bf16.msra.mxu1 %v12855_v40  ;;  %4623 = vmatpush2.bf16.msra.mxu0 %v12855_v40 }
 0x275   :  { %2707 = vmatprep.subr.bf16.mxu1 %v12858_v17  ;;  %4624 = vmatprep.subr.bf16.mxu0 %v12858_v17 }
 0x277   :  { %2132 = vmatmul.mubr.bf16.gmra.mxu1 %v11697_v30  ;;  %3409 = vmatmul.mubr.bf16.gmra.mxu0 %v11698_v32  ;;  %v11743_v30 = vld [vmem:[#allocation8 + $0x250] ss:$8 sps:$4 sm:$0xff]  }
 0x278   :  { %2708 = vmatpush2.bf16.msra.mxu1 %v12869_v24  ;;  %4625 = vmatpush2.bf16.msra.mxu0 %v12869_v24  ;;  %v11746_v32 = vld [vmem:[#allocation8 + $0xd0] ss:$8 sps:$4 sm:$0xff]  }
 0x279   :  { %2709 = vmatprep.subr.bf16.mxu1 %v12873_v58  ;;  %4626 = vmatprep.subr.bf16.mxu0 %v12873_v58 }
 0x27a   :  { %2141 = vmatprep.mubr.bf16.mxu1 %v11699_v52  ;;  %3418 = vmatprep.mubr.bf16.mxu0 %v11701_v48  ;;  %v11747_v52 = vld [vmem:[#allocation8 + $0xe4] ss:$8 sps:$4 sm:$0xff]  }
 0x27b   :  { %v11751_v48 = vld [vmem:[#allocation8 + $0x264] ss:$8 sps:$4 sm:$0xff]  }
 0x27c   :  { %2710 = vmatpush2.bf16.msra.mxu1 %v12885_v13  ;;  %4627 = vmatpush2.bf16.msra.mxu0 %v12885_v13 }
 0x27d   :  { %2711 = vmatprep.subr.bf16.mxu1 %v12889_v21  ;;  %4628 = vmatprep.subr.bf16.mxu0 %v12889_v21 }
 0x27f   :  { %2142 = vmatmul.mubr.bf16.gmra.mxu1 %v11703_v6  ;;  %3419 = vmatmul.mubr.bf16.gmra.mxu0 %v11704_v18  ;;  %v11749_v6 = vld [vmem:[#allocation8 + $0x260] ss:$8 sps:$4 sm:$0xff]  }
 0x280   :  { %2712 = vmatpush2.bf16.msra.mxu1 %v12899_v8  ;;  %4629 = vmatpush2.bf16.msra.mxu0 %v12899_v8  ;;  %v11752_v18 = vld [vmem:[#allocation8 + $0xe0] ss:$8 sps:$4 sm:$0xff]  }
 0x281   :  { %2713 = vmatprep.subr.bf16.mxu1 %v12903_v0  ;;  %4630 = vmatprep.subr.bf16.mxu0 %v12903_v0 }
 0x282   :  { %2151 = vmatprep.mubr.bf16.mxu1 %v11705_v31  ;;  %3428 = vmatprep.mubr.bf16.mxu0 %v11707_v10  ;;  %v11753_v31 = vld [vmem:[#allocation8 + $0xf4] ss:$8 sps:$4 sm:$0xff]  }
 0x283   :  { %v11757_v10 = vld [vmem:[#allocation8 + $0x274] ss:$8 sps:$4 sm:$0xff]  }
 0x284   :  { %2714 = vmatpush2.bf16.msra.mxu1 %v12911_v54  ;;  %4631 = vmatpush2.bf16.msra.mxu0 %v12911_v54 }
 0x285   :  { %2715 = vmatprep.subr.bf16.mxu1 %v12913_v36  ;;  %4632 = vmatprep.subr.bf16.mxu0 %v12913_v36 }
 0x287   :  { %2152 = vmatmul.mubr.bf16.gmra.mxu1 %v11709_v4  ;;  %3429 = vmatmul.mubr.bf16.gmra.mxu0 %v11710_v5  ;;  %v11755_v4 = vld [vmem:[#allocation8 + $0x270] ss:$8 sps:$4 sm:$0xff]  }
 0x288   :  { %2716 = vmatpush2.bf16.msra.mxu1 %v12778_v29  ;;  %4633 = vmatpush2.bf16.msra.mxu0 %v12778_v29  ;;  %v11758_v5 = vld [vmem:[#allocation8 + $0xf0] ss:$8 sps:$4 sm:$0xff]  }
 0x289   :  { %2717 = vmatprep.subr.bf16.mxu1 %v12919_v28  ;;  %4634 = vmatprep.subr.bf16.mxu0 %v12919_v28 }
 0x28a   :  { %2719 = vmatprep.mubr.bf16.mxu1 %v11713_v38  ;;  %4636 = vmatprep.mubr.bf16.mxu0 %v11716_v60  ;;  %v11761_v38 = vld [vmem:[#allocation8 + $0x184] ss:$8 sps:$4 sm:$0xff]  }
 0x28b   :  { %v11764_v60 = vld [vmem:[#allocation8 + $0x304] ss:$8 sps:$4 sm:$0xff]  }
 0x28c   :  { %2718 = vmatpush2.bf16.msra.mxu1 %v12736_v23  ;;  %4635 = vmatpush2.bf16.msra.mxu0 %v12736_v23 }
 0x28d   :  { %3965 = vmatprep.subr.bf16.mxu1 %v12705_v7  ;;  %5786 = vmatprep.subr.bf16.mxu0 %v12705_v7 }
 0x28f   :  { %2720 = vmatmul.mubr.bf16.vlgmr.msra.gmra.mxu1 %v11711_v37  ;;  %4637 = vmatmul.mubr.bf16.vlgmr.msra.gmra.mxu0 %v11714_v62  ;;  %v11759_v37 = vld [vmem:[#allocation8 + $0x180] ss:$8 sps:$4 sm:$0xff]  }
 0x290   :  { %3966 = vmatpush1.bf16.msra.mxu1 %v12711_v59  ;;  %5787 = vmatpush1.bf16.msra.mxu0 %v12711_v59  ;;  %v11762_v62 = vld [vmem:[#allocation8 + $0x300] ss:$8 sps:$4 sm:$0xff]  }
 0x291   :  { %3967 = vmatprep.subr.bf16.mxu1 %v12714_v55  ;;  %5788 = vmatprep.subr.bf16.mxu0 %v12714_v55 }
 0x292   :  { %2729 = vmatprep.mubr.bf16.mxu1 %v11717_v2  ;;  %4646 = vmatprep.mubr.bf16.mxu0 %v11719_v33  ;;  %v11765_v2 = vld [vmem:[#allocation8 + $0x194] ss:$8 sps:$4 sm:$0xff]  }
 0x293   :  { %v11791_v33 = vld [vmem:[#allocation8 + $0x314] ss:$8 sps:$4 sm:$0xff]  }
 0x294   :  { %3968 = vmatpush1.bf16.msra.mxu1 %v12730_v34  ;;  %5789 = vmatpush1.bf16.msra.mxu0 %v12730_v34 }
 0x295   :  { %3969 = vmatprep.subr.bf16.mxu1 %v12734_v25  ;;  %5790 = vmatprep.subr.bf16.mxu0 %v12734_v25 }
 0x297   :  { %2730 = vmatmul.mubr.bf16.gmra.mxu1 %v11721_v41  ;;  %4647 = vmatmul.mubr.bf16.gmra.mxu0 %v11722_v44  ;;  %v11767_v41 = vld [vmem:[#allocation8 + $0x190] ss:$8 sps:$4 sm:$0xff]  }
 0x298   :  { %3970 = vmatpush1.bf16.msra.mxu1 %v12751_v57  ;;  %5791 = vmatpush1.bf16.msra.mxu0 %v12751_v57  ;;  %v11789_v44 = vld [vmem:[#allocation8 + $0x310] ss:$8 sps:$4 sm:$0xff]  }
 0x299   :  { %3971 = vmatprep.subr.bf16.mxu1 %v12755_v35  ;;  %5792 = vmatprep.subr.bf16.mxu0 %v12755_v35 }
 0x29a   :  { %2739 = vmatprep.mubr.bf16.mxu1 %v11723_v12  ;;  %4656 = vmatprep.mubr.bf16.mxu0 %v11725_v50  ;;  %v11768_v12 = vld [vmem:[#allocation8 + $0x1a4] ss:$8 sps:$4 sm:$0xff]  }
 0x29b   :  { %v11794_v50 = vld [vmem:[#allocation8 + $0x324] ss:$8 sps:$4 sm:$0xff]  }
 0x29c   :  { %3972 = vmatpush1.bf16.msra.mxu1 %v12770_v26  ;;  %5793 = vmatpush1.bf16.msra.mxu0 %v12770_v26 }
 0x29d   :  { %3973 = vmatprep.subr.bf16.mxu1 %v12776_v11  ;;  %5794 = vmatprep.subr.bf16.mxu0 %v12776_v11 }
 0x29f   :  { %2740 = vmatmul.mubr.bf16.gmra.mxu1 %v11727_v1  ;;  %4657 = vmatmul.mubr.bf16.gmra.mxu0 %v11728_v47  ;;  %v11770_v1 = vld [vmem:[#allocation8 + $0x1a0] ss:$8 sps:$4 sm:$0xff]  }
 0x2a0   :  { %3974 = vmatpush1.bf16.msra.mxu1 %v12790_v3  ;;  %5795 = vmatpush1.bf16.msra.mxu0 %v12790_v3  ;;  %v11792_v47 = vld [vmem:[#allocation8 + $0x320] ss:$8 sps:$4 sm:$0xff]  }
 0x2a1   :  { %3975 = vmatprep.subr.bf16.mxu1 %v12796_v56  ;;  %5796 = vmatprep.subr.bf16.mxu0 %v12796_v56 }
 0x2a2   :  { %2749 = vmatprep.mubr.bf16.mxu1 %v11729_v9  ;;  %4666 = vmatprep.mubr.bf16.mxu0 %v11731_v43  ;;  %v11771_v9 = vld [vmem:[#allocation8 + $0x1b4] ss:$8 sps:$4 sm:$0xff]  }
 0x2a3   :  { %v11797_v43 = vld [vmem:[#allocation8 + $0x334] ss:$8 sps:$4 sm:$0xff]  }
 0x2a4   :  { %3976 = vmatpush1.bf16.msra.mxu1 %v18353_v49  ;;  %5797 = vmatpush1.bf16.msra.mxu0 %v18353_v49 }
 0x2a5   :  { %3977 = vmatprep.subr.bf16.mxu1 %v18354_v63  ;;  %5798 = vmatprep.subr.bf16.mxu0 %v18354_v63 }
 0x2a7   :  { %2750 = vmatmul.mubr.bf16.gmra.mxu1 %v11733_v39  ;;  %4667 = vmatmul.mubr.bf16.gmra.mxu0 %v11734_v22  ;;  %v11773_v39 = vld [vmem:[#allocation8 + $0x1b0] ss:$8 sps:$4 sm:$0xff]  }
 0x2a8   :  { %3978 = vmatpush1.bf16.msra.mxu1 %v18355_v45  ;;  %5799 = vmatpush1.bf16.msra.mxu0 %v18355_v45  ;;  %v11795_v22 = vld [vmem:[#allocation8 + $0x330] ss:$8 sps:$4 sm:$0xff]  }
 0x2a9   :  { %3979 = vmatprep.subr.bf16.mxu1 %v18356_v51  ;;  %5800 = vmatprep.subr.bf16.mxu0 %v18356_v51 }
 0x2aa   :  { %2759 = vmatprep.mubr.bf16.mxu1 %v11735_v27  ;;  %4676 = vmatprep.mubr.bf16.mxu0 %v11739_v20  ;;  %v11774_v27 = vld [vmem:[#allocation8 + $0x1c4] ss:$8 sps:$4 sm:$0xff]  }
 0x2ab   :  { %v11800_v20 = vld [vmem:[#allocation8 + $0x344] ss:$8 sps:$4 sm:$0xff]  }
 0x2ac   :  { %3980 = vmatpush1.bf16.msra.mxu1 %v18357_v19  ;;  %5801 = vmatpush1.bf16.msra.mxu0 %v18357_v19 }
 0x2ad   :  { %3981 = vmatprep.subr.bf16.mxu1 %v12838_v14  ;;  %5802 = vmatprep.subr.bf16.mxu0 %v12838_v14 }
 0x2af   :  { %2760 = vmatmul.mubr.bf16.gmra.mxu1 %v11740_v61  ;;  %4677 = vmatmul.mubr.bf16.gmra.mxu0 %v11737_v42  ;;  %v11776_v42 = vld [vmem:[#allocation8 + $0x1c0] ss:$8 sps:$4 sm:$0xff]  }
 0x2b0   :  { %3982 = vmatpush2.bf16.msra.mxu1 %v12841_v16  ;;  %5803 = vmatpush2.bf16.msra.mxu0 %v12841_v16  ;;  %v11798_v61 = vld [vmem:[#allocation8 + $0x340] ss:$8 sps:$4 sm:$0xff]  }
 0x2b1   :  { %3983 = vmatprep.subr.bf16.mxu1 %v12844_v46  ;;  %5804 = vmatprep.subr.bf16.mxu0 %v12844_v46 }
 0x2b2   :  { %2769 = vmatprep.mubr.bf16.mxu1 %v11741_v53  ;;  %4686 = vmatprep.mubr.bf16.mxu0 %v11745_v15  ;;  %v11777_v53 = vld [vmem:[#allocation8 + $0x1d4] ss:$8 sps:$4 sm:$0xff]  }
 0x2b3   :  { %v11803_v15 = vld [vmem:[#allocation8 + $0x354] ss:$8 sps:$4 sm:$0xff]  }
 0x2b4   :  { %3984 = vmatpush2.bf16.msra.mxu1 %v12855_v40  ;;  %5805 = vmatpush2.bf16.msra.mxu0 %v12855_v40 }
 0x2b5   :  { %3985 = vmatprep.subr.bf16.mxu1 %v12858_v17  ;;  %5806 = vmatprep.subr.bf16.mxu0 %v12858_v17 }
 0x2b7   :  { %2770 = vmatmul.mubr.bf16.gmra.mxu1 %v11746_v32  ;;  %4687 = vmatmul.mubr.bf16.gmra.mxu0 %v11743_v30  ;;  %v11779_v30 = vld [vmem:[#allocation8 + $0x1d0] ss:$8 sps:$4 sm:$0xff]  }
 0x2b8   :  { %3986 = vmatpush2.bf16.msra.mxu1 %v12869_v24  ;;  %5807 = vmatpush2.bf16.msra.mxu0 %v12869_v24  ;;  %v11801_v32 = vld [vmem:[#allocation8 + $0x350] ss:$8 sps:$4 sm:$0xff]  }
 0x2b9   :  { %3987 = vmatprep.subr.bf16.mxu1 %v12873_v58  ;;  %5808 = vmatprep.subr.bf16.mxu0 %v12873_v58 }
 0x2ba   :  { %2779 = vmatprep.mubr.bf16.mxu1 %v11747_v52  ;;  %4696 = vmatprep.mubr.bf16.mxu0 %v11751_v48  ;;  %v11780_v52 = vld [vmem:[#allocation8 + $0x1e4] ss:$8 sps:$4 sm:$0xff]  }
 0x2bb   :  { %v11806_v48 = vld [vmem:[#allocation8 + $0x364] ss:$8 sps:$4 sm:$0xff]  }
 0x2bc   :  { %3988 = vmatpush2.bf16.msra.mxu1 %v12885_v13  ;;  %5809 = vmatpush2.bf16.msra.mxu0 %v12885_v13 }
 0x2bd   :  { %3989 = vmatprep.subr.bf16.mxu1 %v12889_v21  ;;  %5810 = vmatprep.subr.bf16.mxu0 %v12889_v21 }
 0x2bf   :  { %2780 = vmatmul.mubr.bf16.gmra.mxu1 %v11752_v18  ;;  %4697 = vmatmul.mubr.bf16.gmra.mxu0 %v11749_v6  ;;  %v11782_v6 = vld [vmem:[#allocation8 + $0x1e0] ss:$8 sps:$4 sm:$0xff]  }
 0x2c0   :  { %3990 = vmatpush2.bf16.msra.mxu1 %v12899_v8  ;;  %5811 = vmatpush2.bf16.msra.mxu0 %v12899_v8  ;;  %v11804_v18 = vld [vmem:[#allocation8 + $0x360] ss:$8 sps:$4 sm:$0xff]  }
 0x2c1   :  { %3991 = vmatprep.subr.bf16.mxu1 %v12903_v0  ;;  %5812 = vmatprep.subr.bf16.mxu0 %v12903_v0 }
 0x2c2   :  { %2789 = vmatprep.mubr.bf16.mxu1 %v11753_v31  ;;  %4706 = vmatprep.mubr.bf16.mxu0 %v11757_v10  ;;  %v11783_v31 = vld [vmem:[#allocation8 + $0x1f4] ss:$8 sps:$4 sm:$0xff]  }
 0x2c3   :  { %v11809_v10 = vld [vmem:[#allocation8 + $0x374] ss:$8 sps:$4 sm:$0xff]  }
 0x2c4   :  { %3992 = vmatpush2.bf16.msra.mxu1 %v12911_v54  ;;  %5813 = vmatpush2.bf16.msra.mxu0 %v12911_v54 }
 0x2c5   :  { %3993 = vmatprep.subr.bf16.mxu1 %v12913_v36  ;;  %5814 = vmatprep.subr.bf16.mxu0 %v12913_v36 }
 0x2c7   :  { %2790 = vmatmul.mubr.bf16.gmra.mxu1 %v11758_v5  ;;  %4707 = vmatmul.mubr.bf16.gmra.mxu0 %v11755_v4  ;;  %v11785_v4 = vld [vmem:[#allocation8 + $0x1f0] ss:$8 sps:$4 sm:$0xff]  }
 0x2c8   :  { %3994 = vmatpush2.bf16.msra.mxu1 %v12778_v29  ;;  %5815 = vmatpush2.bf16.msra.mxu0 %v12778_v29  ;;  %v11807_v5 = vld [vmem:[#allocation8 + $0x370] ss:$8 sps:$4 sm:$0xff]  }
 0x2c9   :  { %3995 = vmatprep.subr.bf16.mxu1 %v12919_v28  ;;  %5816 = vmatprep.subr.bf16.mxu0 %v12919_v28 }
 0x2ca   :  { %3997 = vmatprep.mubr.bf16.mxu1 %v11761_v38  ;;  %5818 = vmatprep.mubr.bf16.mxu0 %v11764_v60  ;;  %v11788_v38 = vld [vmem:[#allocation8 + $0x284] ss:$8 sps:$4 sm:$0xff]  }
 0x2cb   :  { %v11812_v60 = vld [vmem:[#allocation8 + $0x404] ss:$8 sps:$4 sm:$0xff]  }
 0x2cc   :  { %3996 = vmatpush2.bf16.msra.mxu1 %v12736_v23  ;;  %5817 = vmatpush2.bf16.msra.mxu0 %v12736_v23 }
 0x2cd   :  { %5147 = vmatprep.subr.bf16.mxu1 %v12705_v7  ;;  %7064 = vmatprep.subr.bf16.mxu0 %v12705_v7 }
 0x2cf   :  { %3998 = vmatmul.mubr.bf16.vlgmr.msra.gmra.mxu1 %v11759_v37  ;;  %5819 = vmatmul.mubr.bf16.vlgmr.msra.gmra.mxu0 %v11762_v62  ;;  %v11786_v37 = vld [vmem:[#allocation8 + $0x280] ss:$8 sps:$4 sm:$0xff]  }
 0x2d0   :  { %5148 = vmatpush1.bf16.msra.mxu1 %v12711_v59  ;;  %7065 = vmatpush1.bf16.msra.mxu0 %v12711_v59  ;;  %v11810_v62 = vld [vmem:[#allocation8 + $0x400] ss:$8 sps:$4 sm:$0xff]  }
 0x2d1   :  { %5149 = vmatprep.subr.bf16.mxu1 %v12714_v55  ;;  %7066 = vmatprep.subr.bf16.mxu0 %v12714_v55 }
 0x2d2   :  { %4007 = vmatprep.mubr.bf16.mxu1 %v11765_v2  ;;  %5828 = vmatprep.mubr.bf16.mxu0 %v11791_v33  ;;  %v11813_v2 = vld [vmem:[#allocation8 + $0x294] ss:$8 sps:$4 sm:$0xff]  }
 0x2d3   :  { %v11818_v33 = vld [vmem:[#allocation8 + $0x414] ss:$8 sps:$4 sm:$0xff]  }
 0x2d4   :  { %5150 = vmatpush1.bf16.msra.mxu1 %v12730_v34  ;;  %7067 = vmatpush1.bf16.msra.mxu0 %v12730_v34 }
 0x2d5   :  { %5151 = vmatprep.subr.bf16.mxu1 %v12734_v25  ;;  %7068 = vmatprep.subr.bf16.mxu0 %v12734_v25 }
 0x2d7   :  { %4008 = vmatmul.mubr.bf16.gmra.mxu1 %v11767_v41  ;;  %5829 = vmatmul.mubr.bf16.gmra.mxu0 %v11789_v44 }
 0x2d8   :  { %5152 = vmatpush1.bf16.msra.mxu1 %v12751_v57  ;;  %7069 = vmatpush1.bf16.msra.mxu0 %v12751_v57 }
 0x2d9   :  { %5153 = vmatprep.subr.bf16.mxu1 %v12755_v35  ;;  %7070 = vmatprep.subr.bf16.mxu0 %v12755_v35 }
 0x2da   :  { %4017 = vmatprep.mubr.bf16.mxu1 %v11768_v12  ;;  %5838 = vmatprep.mubr.bf16.mxu0 %v11794_v50 }
 0x2dc   :  { %5154 = vmatpush1.bf16.msra.mxu1 %v12770_v26  ;;  %7071 = vmatpush1.bf16.msra.mxu0 %v12770_v26 }
 0x2dd   :  { %5155 = vmatprep.subr.bf16.mxu1 %v12776_v11  ;;  %7072 = vmatprep.subr.bf16.mxu0 %v12776_v11 }
 0x2df   :  { %4018 = vmatmul.mubr.bf16.gmra.mxu1 %v11770_v1  ;;  %5839 = vmatmul.mubr.bf16.gmra.mxu0 %v11792_v47 }
 0x2e0   :  { %5156 = vmatpush1.bf16.msra.mxu1 %v12790_v3  ;;  %7073 = vmatpush1.bf16.msra.mxu0 %v12790_v3 }
 0x2e1   :  { %5157 = vmatprep.subr.bf16.mxu1 %v12796_v56  ;;  %7074 = vmatprep.subr.bf16.mxu0 %v12796_v56 }
 0x2e2   :  { %4027 = vmatprep.mubr.bf16.mxu1 %v11771_v9  ;;  %5848 = vmatprep.mubr.bf16.mxu0 %v11797_v43  ;;  %v11815_v9 = vld [vmem:[#allocation8 + $0x290] ss:$8 sps:$4 sm:$0xff]  }
 0x2e4   :  { %5158 = vmatpush1.bf16.msra.mxu1 %v18353_v49  ;;  %7075 = vmatpush1.bf16.msra.mxu0 %v18353_v49 }
 0x2e5   :  { %5159 = vmatprep.subr.bf16.mxu1 %v18354_v63  ;;  %7076 = vmatprep.subr.bf16.mxu0 %v18354_v63 }
 0x2e7   :  { %4028 = vmatmul.mubr.bf16.gmra.mxu1 %v11773_v39  ;;  %5849 = vmatmul.mubr.bf16.gmra.mxu0 %v11795_v22  ;;  %v11819_v39 = vld [vmem:[#allocation8 + $0x2a4] ss:$8 sps:$4 sm:$0xff]  }
 0x2e8   :  { %5160 = vmatpush1.bf16.msra.mxu1 %v18355_v45  ;;  %7077 = vmatpush1.bf16.msra.mxu0 %v18355_v45  ;;  %v11824_v22 = vld [vmem:[#allocation8 + $0x424] ss:$8 sps:$4 sm:$0xff]  }
 0x2e9   :  { %5161 = vmatprep.subr.bf16.mxu1 %v18356_v51  ;;  %7078 = vmatprep.subr.bf16.mxu0 %v18356_v51 }
 0x2ea   :  { %4037 = vmatprep.mubr.bf16.mxu1 %v11774_v27  ;;  %5858 = vmatprep.mubr.bf16.mxu0 %v11800_v20 }
 0x2ec   :  { %5162 = vmatpush1.bf16.msra.mxu1 %v18357_v19  ;;  %7079 = vmatpush1.bf16.msra.mxu0 %v18357_v19 }
 0x2ed   :  { %5163 = vmatprep.subr.bf16.mxu1 %v12838_v14  ;;  %7080 = vmatprep.subr.bf16.mxu0 %v12838_v14 }
 0x2ef   :  { %4038 = vmatmul.mubr.bf16.gmra.mxu1 %v11776_v42  ;;  %5859 = vmatmul.mubr.bf16.gmra.mxu0 %v11798_v61  ;;  %v11821_v61 = vld [vmem:[#allocation8 + $0x2a0] ss:$8 sps:$4 sm:$0xff]  }
 0x2f0   :  { %5164 = vmatpush2.bf16.msra.mxu1 %v12841_v16  ;;  %7081 = vmatpush2.bf16.msra.mxu0 %v12841_v16 }
 0x2f1   :  { %5165 = vmatprep.subr.bf16.mxu1 %v12844_v46  ;;  %7082 = vmatprep.subr.bf16.mxu0 %v12844_v46 }
 0x2f2   :  { %4047 = vmatprep.mubr.bf16.mxu1 %v11777_v53  ;;  %5868 = vmatprep.mubr.bf16.mxu0 %v11803_v15  ;;  %v11822_v53 = vld [vmem:[#allocation8 + $0x420] ss:$8 sps:$4 sm:$0xff]  }
 0x2f4   :  { %5166 = vmatpush2.bf16.msra.mxu1 %v12855_v40  ;;  %7083 = vmatpush2.bf16.msra.mxu0 %v12855_v40 }
 0x2f5   :  { %5167 = vmatprep.subr.bf16.mxu1 %v12858_v17  ;;  %7084 = vmatprep.subr.bf16.mxu0 %v12858_v17 }
 0x2f7   :  { %4048 = vmatmul.mubr.bf16.gmra.mxu1 %v11779_v30  ;;  %5869 = vmatmul.mubr.bf16.gmra.mxu0 %v11801_v32  ;;  %v11825_v32 = vld [vmem:[#allocation8 + $0x2b4] ss:$8 sps:$4 sm:$0xff]  }
 0x2f8   :  { %5168 = vmatpush2.bf16.msra.mxu1 %v12869_v24  ;;  %7085 = vmatpush2.bf16.msra.mxu0 %v12869_v24 }
 0x2f9   :  { %5169 = vmatprep.subr.bf16.mxu1 %v12873_v58  ;;  %7086 = vmatprep.subr.bf16.mxu0 %v12873_v58 }
 0x2fa   :  { %4057 = vmatprep.mubr.bf16.mxu1 %v11780_v52  ;;  %5878 = vmatprep.mubr.bf16.mxu0 %v11806_v48 }
 0x2fc   :  { %5170 = vmatpush2.bf16.msra.mxu1 %v12885_v13  ;;  %7087 = vmatpush2.bf16.msra.mxu0 %v12885_v13 }
 0x2fd   :  { %5171 = vmatprep.subr.bf16.mxu1 %v12889_v21  ;;  %7088 = vmatprep.subr.bf16.mxu0 %v12889_v21 }
 0x2ff   :  { %4058 = vmatmul.mubr.bf16.gmra.mxu1 %v11782_v6  ;;  %5879 = vmatmul.mubr.bf16.gmra.mxu0 %v11804_v18  ;;  %v11827_v6 = vld [vmem:[#allocation8 + $0x2b0] ss:$8 sps:$4 sm:$0xff]   ;;  %v11830_v18 = vld [vmem:[#allocation8 + $0x434] ss:$8 sps:$4 sm:$0xff]  }
 0x300   :  { %5172 = vmatpush2.bf16.msra.mxu1 %v12899_v8  ;;  %7089 = vmatpush2.bf16.msra.mxu0 %v12899_v8 }
 0x301   :  { %5173 = vmatprep.subr.bf16.mxu1 %v12903_v0  ;;  %7090 = vmatprep.subr.bf16.mxu0 %v12903_v0 }
 0x302   :  { %4067 = vmatprep.mubr.bf16.mxu1 %v11783_v31  ;;  %5888 = vmatprep.mubr.bf16.mxu0 %v11809_v10  ;;  %v11828_v31 = vld [vmem:[#allocation8 + $0x430] ss:$8 sps:$4 sm:$0xff]  }
 0x304   :  { %5174 = vmatpush2.bf16.msra.mxu1 %v12911_v54  ;;  %7091 = vmatpush2.bf16.msra.mxu0 %v12911_v54 }
 0x305   :  { %5175 = vmatprep.subr.bf16.mxu1 %v12913_v36  ;;  %7092 = vmatprep.subr.bf16.mxu0 %v12913_v36 }
 0x307   :  { %4068 = vmatmul.mubr.bf16.gmra.mxu1 %v11785_v4  ;;  %5889 = vmatmul.mubr.bf16.gmra.mxu0 %v11807_v5 }
 0x308   :  { %5176 = vmatpush2.bf16.msra.mxu1 %v12778_v29  ;;  %7093 = vmatpush2.bf16.msra.mxu0 %v12778_v29 }
 0x309   :  { %5177 = vmatprep.subr.bf16.mxu1 %v12919_v28  ;;  %7094 = vmatprep.subr.bf16.mxu0 %v12919_v28 }
 0x30a   :  { %5179 = vmatprep.mubr.bf16.mxu1 %v11788_v38  ;;  %7096 = vmatprep.mubr.bf16.mxu0 %v11812_v60 }
 0x30c   :  { %5178 = vmatpush2.bf16.msra.mxu1 %v12736_v23  ;;  %7095 = vmatpush2.bf16.msra.mxu0 %v12736_v23 }
 0x30d   :  { %6425 = vmatprep.subr.bf16.mxu1 %v12705_v7  ;;  %v11816_v7 = vld [vmem:[#allocation8 + $0x410] ss:$8 sps:$4 sm:$0xff]  }
 0x30f   :  { %v2083_v41 = vpop.f32.mrf.mxu1  ;;  %v3360_v44 = vpop.f32.mrf.mxu0  ;;  %5180 = vmatmul.mubr.bf16.vlgmr.msra.gmra.mxu1 %v11786_v37  ;;  %7097 = vmatmul.mubr.bf16.vlgmr.msra.gmra.mxu0 %v11810_v62  ;;  %v11833_v62 = vld [vmem:[#allocation8 + $0x2c4] ss:$8 sps:$4 sm:$0xff]  }
 0x310   :  { %6426 = vmatpush1.bf16.msra.mxu1 %v12711_v59  ;;  %2162 = vrot.lane.b32.xlu1 %v2083_v41, %s11975_s15 }
 0x311   :  { %v2085_v12 = vpop.f32.mrf.mxu1  ;;  %v3362_v50 = vpop.f32.mrf.mxu0  ;;  %6427 = vmatprep.subr.bf16.mxu1 %v12714_v55  ;;  %5189 = vmatprep.mubr.bf16.mxu1 %v11813_v2 }
 0x312   :  { %7106 = vmatprep.mubr.bf16.mxu0 %v11818_v33 }
 0x313   :  { %v2087_v1 = vpop.f32.mrf.mxu1  ;;  %v3364_v47 = vpop.f32.mrf.mxu0 }
 0x314   :  { %6428 = vmatpush1.bf16.msra.mxu1 %v12730_v34  ;;  %3439 = vrot.lane.b32.xlu1 %v3360_v44, %s11973_s0  ;;  %v11836_v44 = vld [vmem:[#allocation8 + $0x444] ss:$8 sps:$4 sm:$0xff]  }
 0x315   :  { %2164 = vrot.lane.b32.xlu0 %v2087_v1, %s11975_s15  ;;  %v2089_v43 = vpop.f32.mrf.mxu1  ;;  %v3366_v59 = vpop.f32.mrf.mxu0  ;;  %6429 = vmatprep.subr.bf16.mxu1 %v12734_v25 }
 0x317   :  { %v2093_v27 = vpop.f32.mrf.mxu1  ;;  %v3370_v55 = vpop.f32.mrf.mxu0  ;;  %5190 = vmatmul.mubr.bf16.gmra.mxu1 %v11815_v9  ;;  %7107 = vmatmul.mubr.bf16.gmra.mxu0 %v11816_v7 }
 0x318   :  { %6430 = vmatpush1.bf16.msra.mxu1 %v12751_v57  ;;  %2194 = vrot.lane.b32.xlu1 %v2085_v12, %s11975_s15 }
 0x319   :  { %3441 = vrot.lane.b32.xlu0 %v3364_v47, %s11973_s0  ;;  %6431 = vmatprep.subr.bf16.mxu1 %v12755_v35  ;;  %v2095_v34 = vpop.f32.mrf.mxu1  ;;  %v3372_v20 = vpop.f32.mrf.mxu0 }
 0x31a   :  { %5199 = vmatprep.mubr.bf16.mxu1 %v11819_v39  ;;  %7116 = vmatprep.mubr.bf16.mxu0 %v11824_v22 }
 0x31b   :  { %v2097_v42 = vpop.f32.mrf.mxu1  ;;  %v3374_v25 = vpop.f32.mrf.mxu0 }
 0x31c   :  { %6432 = vmatpush1.bf16.msra.mxu1 %v12770_v26  ;;  %3471 = vrot.lane.b32.xlu1 %v3362_v50, %s11973_s0 }
 0x31d   :  { %2196 = vrot.lane.b32.xlu0 %v2089_v43, %s11975_s15  ;;  %6433 = vmatprep.subr.bf16.mxu1 %v12776_v11  ;;  %v2099_v57 = vpop.f32.mrf.mxu1  ;;  %v3376_v15 = vpop.f32.mrf.mxu0 }
 0x31f   :  { %v2103_v30 = vpop.f32.mrf.mxu1  ;;  %v3380_v35 = vpop.f32.mrf.mxu0  ;;  %5200 = vmatmul.mubr.bf16.gmra.mxu1 %v11821_v61  ;;  %7117 = vmatmul.mubr.bf16.gmra.mxu0 %v11822_v53 }
 0x320   :  { %6434 = vmatpush1.bf16.msra.mxu1 %v12790_v3  ;;  %2166 = vrot.lane.b32.xlu1 %v2093_v27, %s11975_s15 }
 0x321   :  { %3473 = vrot.lane.b32.xlu0 %v3366_v59, %s11973_s0  ;;  %6435 = vmatprep.subr.bf16.mxu1 %v12796_v56  ;;  %v2105_v26 = vpop.f32.mrf.mxu1  ;;  %v13139_v52 = vpop.f32.mrf.mxu0  ;;  %v11839_v59 = vld [vmem:[#allocation8 + $0x2d4] ss:$8 sps:$4 sm:$0xff]  }
 0x322   :  { %5209 = vmatprep.mubr.bf16.mxu1 %v11825_v32  ;;  %7126 = vmatprep.mubr.bf16.mxu0 %v11830_v18 }
 0x323   :  { %v2107_v11 = vpop.f32.mrf.mxu1  ;;  %v3384_v48 = vpop.f32.mrf.mxu0 }
 0x324   :  { %6436 = vmatpush1.bf16.msra.mxu1 %v18353_v49  ;;  %3443 = vrot.lane.b32.xlu1 %v3370_v55, %s11973_s0  ;;  %v11842_v55 = vld [vmem:[#allocation8 + $0x454] ss:$8 sps:$4 sm:$0xff]  }
 0x325   :  { %2168 = vrot.lane.b32.xlu0 %v2097_v42, %s11975_s15  ;;  %6437 = vmatprep.subr.bf16.mxu1 %v18354_v63  ;;  %v2109_v3 = vpop.f32.mrf.mxu1  ;;  %v13145_v10 = vpop.f32.mrf.mxu0 }
 0x327   :  { %v2113_v56 = vpop.f32.mrf.mxu1  ;;  %v13147_v4 = vpop.f32.mrf.mxu0  ;;  %5210 = vmatmul.mubr.bf16.gmra.mxu1 %v11827_v6  ;;  %7127 = vmatmul.mubr.bf16.gmra.mxu0 %v11828_v31 }
 0x328   :  { %6438 = vmatpush1.bf16.msra.mxu1 %v18355_v45  ;;  %2198 = vrot.lane.b32.xlu1 %v2095_v34, %s11975_s15 }
 0x329   :  { %3445 = vrot.lane.b32.xlu0 %v3374_v25, %s11973_s0  ;;  %6439 = vmatprep.subr.bf16.mxu1 %v18356_v51  ;;  %v13153_v49 = vpop.f32.mrf.mxu1  ;;  %v13155_v63 = vpop.f32.mrf.mxu0 }
 0x32a   :  { %5219 = vmatprep.mubr.bf16.mxu1 %v11833_v62  ;;  %7136 = vmatprep.mubr.bf16.mxu0 %v11836_v44  ;;  %v11849_v62 = vld [vmem:[#allocation8 + $0x2f0] ss:$8 sps:$4 sm:$0xff]  }
 0x32b   :  { %v13157_v5 = vpop.f32.mrf.mxu1  ;;  %v13159_v38 = vpop.f32.mrf.mxu0  ;;  %v11852_v44 = vld [vmem:[#allocation8 + $0x470] ss:$8 sps:$4 sm:$0xff]  }
 0x32c   :  { %6440 = vmatpush1.bf16.msra.mxu1 %v18357_v19  ;;  %3475 = vrot.lane.b32.xlu1 %v3372_v20, %s11973_s0  ;;  %v11831_v19 = vld [vmem:[#allocation8 + $0x2c0] ss:$8 sps:$4 sm:$0xff]  }
 0x32d   :  { %2200 = vrot.lane.b32.xlu0 %v2099_v57, %s11975_s15  ;;  %6441 = vmatprep.subr.bf16.mxu1 %v12838_v14  ;;  %v13165_v45 = vpop.f32.mrf.mxu1  ;;  %v13167_v60 = vpop.f32.mrf.mxu0 }
 0x32f   :  { %v13169_v51 = vpop.f32.mrf.mxu1  ;;  %v13171_v37 = vpop.f32.mrf.mxu0  ;;  %5220 = vmatmul.mubr.bf16.gmra.mxu1 %v11831_v19 }
 0x330   :  { %6442 = vmatpush2.bf16.msra.mxu1 %v12841_v16  ;;  %2170 = vrot.lane.b32.xlu1 %v2103_v30, %s11975_s15  ;;  %v11834_v16 = vld [vmem:[#allocation8 + $0x440] ss:$8 sps:$4 sm:$0xff]  }
 0x331   :  { %3477 = vrot.lane.b32.xlu0 %v3376_v15, %s11973_s0  ;;  %6443 = vmatprep.subr.bf16.mxu1 %v12844_v46  ;;  %v13177_v2 = vpop.f32.mrf.mxu1  ;;  %v13179_v14 = vpop.f32.mrf.mxu0  ;;  %v11845_v15 = vld [vmem:[#allocation8 + $0x2e4] ss:$8 sps:$4 sm:$0xff]   ;;  %v11843_v30 = vld [vmem:[#allocation8 + $0x2e0] ss:$8 sps:$4 sm:$0xff]  }
 0x332   :  { %7137 = vmatmul.mubr.bf16.gmra.mxu0 %v11834_v16  ;;  %5229 = vmatprep.mubr.bf16.mxu1 %v11839_v59  ;;  %v11855_v59 = vld [vmem:[#allocation8 + $0x380] ss:$8 sps:$4 sm:$0xff]  }
 0x333   :  { %v13181_v33 = vpop.f32.mrf.mxu1  ;;  %v13183_v41 = vpop.f32.mrf.mxu0  ;;  %7146 = vmatprep.mubr.bf16.mxu0 %v11842_v55  ;;  %v18365_v55 = vmov 0  }
 0x334   :  { %6444 = vmatpush2.bf16.msra.mxu1 %v12855_v40  ;;  %3447 = vrot.lane.b32.xlu1 %v3380_v35, %s11973_s0 }
 0x335   :  { %2172 = vrot.lane.b32.xlu0 %v2107_v11, %s11975_s15  ;;  %6445 = vmatprep.subr.bf16.mxu1 %v12858_v17  ;;  %v13189_v46 = vpop.f32.mrf.mxu1  ;;  %v13191_v12 = vpop.f32.mrf.mxu0 }
 0x336   :  { %v13288_v11 = vpop.permute.xlu1 %1721 }
 0x337   :  { %v13193_v50 = vpop.f32.mrf.mxu1  ;;  %v13195_v1 = vpop.f32.mrf.mxu0  ;;  %18358 = vst [vmem:[#allocation19_spill] sm:$0xff] %v13288_v11 }
 0x338   :  { %6446 = vmatpush2.bf16.msra.mxu1 %v12869_v24  ;;  %2202 = vrot.lane.b32.xlu1 %v2105_v26, %s11975_s15 }
 0x339   :  { %3449 = vrot.lane.b32.xlu0 %v3384_v48, %s11973_s0  ;;  %6447 = vmatprep.subr.bf16.mxu1 %v12873_v58  ;;  %v13201_v40 = vpop.f32.mrf.mxu1  ;;  %v13203_v17 = vpop.f32.mrf.mxu0  ;;  %v11846_v48 = vld [vmem:[#allocation8 + $0x460] ss:$8 sps:$4 sm:$0xff]  }
 0x33b   :  { %v13205_v47 = vpop.f32.mrf.mxu1  ;;  %v13207_v9 = vpop.f32.mrf.mxu0 }
 0x33c   :  { %6448 = vmatpush2.bf16.msra.mxu1 %v12885_v13  ;;  %3479 = vrot.lane.b32.xlu1 %v13139_v52, %s11973_s0  ;;  %v11837_v13 = vld [vmem:[#allocation8 + $0x2d0] ss:$8 sps:$4 sm:$0xff]   ;;  %v11848_v52 = vld [vmem:[#allocation8 + $0x464] ss:$8 sps:$4 sm:$0xff]  }
 0x33d   :  { %2204 = vrot.lane.b32.xlu0 %v2109_v3, %s11975_s15  ;;  %6449 = vmatprep.subr.bf16.mxu1 %v12889_v21  ;;  %v13214_v24 = vpop.f32.mrf.mxu1  ;;  %v13216_v58 = vpop.f32.mrf.mxu0 }
 0x33e   :  { %5230 = vmatmul.mubr.bf16.gmra.mxu1 %v11837_v13  ;;  %v11857_v13 = vld [vmem:[#allocation8 + $0x384] ss:$8 sps:$4 sm:$0xff]  }
 0x33f   :  { %v13218_v7 = vpop.f32.mrf.mxu1  ;;  %v13220_v43 = vpop.f32.mrf.mxu0  ;;  %5239 = vmatprep.mubr.bf16.mxu1 %v11845_v15 }
 0x340   :  { %6450 = vmatpush2.bf16.msra.mxu1 %v12899_v8  ;;  %2174 = vrot.lane.b32.xlu1 %v2113_v56, %s11975_s15  ;;  %v11840_v8 = vld [vmem:[#allocation8 + $0x450] ss:$8 sps:$4 sm:$0xff]  }
 0x341   :  { %3481 = vrot.lane.b32.xlu0 %v13145_v10, %s11973_s0  ;;  %6451 = vmatprep.subr.bf16.mxu1 %v12903_v0  ;;  %v13227_v21 = vpop.f32.mrf.mxu1  ;;  %v13229_v39 = vpop.f32.mrf.mxu0 }
 0x342   :  { %7147 = vmatmul.mubr.bf16.gmra.mxu0 %v11840_v8  ;;  %v13302_v10 = vpop.permute.xlu0 %1726 }
 0x343   :  { %v13231_v22 = vpop.f32.mrf.mxu1  ;;  %v13233_v27 = vpop.f32.mrf.mxu0  ;;  %7156 = vmatprep.mubr.bf16.mxu0 %v11848_v52  ;;  %18359 = vst [vmem:[#allocation21_spill] sm:$0xff] %v13302_v10  ;;  %v11863_v10 = vld [vmem:[#allocation8 + $0x3a4] ss:$8 sps:$4 sm:$0xff]  }
 0x344   :  { %6452 = vmatpush2.bf16.msra.mxu1 %v12911_v54  ;;  %3451 = vrot.lane.b32.xlu1 %v13147_v4, %s11973_s0 }
 0x345   :  { %2176 = vrot.lane.b32.xlu0 %v13157_v5, %s11975_s15  ;;  %6453 = vmatprep.subr.bf16.mxu1 %v12913_v36  ;;  %v13241_v0 = vpop.f32.mrf.mxu1  ;;  %v13243_v34 = vpop.f32.mrf.mxu0 }
 0x346   :  { %5240 = vmatmul.mubr.bf16.gmra.mxu1 %v11843_v30 }
 0x347   :  { %v13245_v20 = vpop.f32.mrf.mxu1  ;;  %v13247_v42 = vpop.f32.mrf.mxu0 }
 0x348   :  { %6454 = vmatpush2.bf16.msra.mxu1 %v12778_v29  ;;  %2206 = vrot.lane.b32.xlu1 %v13153_v49, %s11975_s15  ;;  %v13312_v49 = vpop.permute.xlu1 %1711 }
 0x349   :  { %3453 = vrot.lane.b32.xlu0 %v13159_v38, %s11973_s0  ;;  %6455 = vmatprep.subr.bf16.mxu1 %v12919_v28  ;;  %v13255_v54 = vpop.f32.mrf.mxu1  ;;  %v13257_v36 = vpop.f32.mrf.mxu0  ;;  %18360 = vst [vmem:[#allocation20_spill] sm:$0xff] %v13312_v49 }
 0x34a   :  { %7157 = vmatmul.mubr.bf16.gmra.mxu0 %v11846_v48  ;;  %v11860_v48 = vld [vmem:[#allocation8 + $0x394] ss:$8 sps:$4 sm:$0xff]  }
 0x34b   :  { %v13259_v25 = vpop.f32.mrf.mxu1  ;;  %v13261_v61 = vpop.f32.mrf.mxu0 }
 0x34c   :  { %6456 = vmatpush2.bf16.msra.mxu1 %v12736_v23  ;;  %3483 = vrot.lane.b32.xlu1 %v13155_v63, %s11973_s0 }
 0x34d   :  { %2208 = vrot.lane.b32.xlu0 %v13165_v45, %s11975_s15  ;;  %v13268_v29 = vpop.f32.mrf.mxu1  ;;  %v13270_v53 = vpop.f32.mrf.mxu0 }
 0x34e   :  { %v13324_v45 = vpop.permute.xlu0 %1716 }
 0x34f   :  { %v13272_v28 = vpop.f32.mrf.mxu1  ;;  %v13274_v57 = vpop.f32.mrf.mxu0  ;;  %18361 = vst [vmem:[#allocation23_spill] sm:$0xff] %v13324_v45 }
 0x350   :  { %2178 = vrot.lane.b32.xlu1 %v13169_v51, %s11975_s15  ;;  %v11851_v51 = vld [vmem:[#allocation8 + $0x2f4] ss:$8 sps:$4 sm:$0xff]  }
 0x351   :  { %3485 = vrot.lane.b32.xlu0 %v13167_v60, %s11973_s0  ;;  %v13280_v23 = vpop.f32.mrf.mxu1  ;;  %v13282_v35 = vpop.f32.mrf.mxu0  ;;  %5249 = vmatprep.mubr.bf16.mxu1 %v11851_v51 }
 0x352   :  { %5250 = vmatmul.mubr.bf16.gmra.mxu1 %v11849_v62  ;;  %v11858_v62 = vld [vmem:[#allocation8 + $0x390] ss:$8 sps:$4 sm:$0xff]  }
 0x353   :  { %v13284_v32 = vpop.f32.mrf.mxu1  ;;  %v13286_v26 = vpop.f32.mrf.mxu0  ;;  %6457 = vmatprep.mubr.bf16.mxu1 %v11857_v13 }
 0x354   :  { %3455 = vrot.lane.b32.xlu1 %v13171_v37, %s11973_s0  ;;  %v13328_v37 = vpop.permute.xlu1 %1701 }
 0x355   :  { %2180 = vrot.lane.b32.xlu0 %v13181_v33, %s11975_s15  ;;  %v13294_v6 = vpop.f32.mrf.mxu1  ;;  %v13296_v18 = vpop.f32.mrf.mxu0  ;;  %18362 = vst [vmem:[#allocation22_spill] sm:$0xff] %v13328_v37  ;;  %v11854_v33 = vld [vmem:[#allocation8 + $0x474] ss:$8 sps:$4 sm:$0xff]  }
 0x356   :  { %7166 = vmatprep.mubr.bf16.mxu0 %v11854_v33 }
 0x357   :  { %v13298_v31 = vpop.f32.mrf.mxu1  ;;  %v13300_v3 = vpop.f32.mrf.mxu0  ;;  %7167 = vmatmul.mubr.bf16.gmra.mxu0 %v11852_v44 }
 0x358   :  { %2210 = vrot.lane.b32.xlu1 %v13177_v2, %s11975_s15  ;;  %8466 = vmatprep.mubr.bf16.mxu0 %v18365_v55 }
 0x359   :  { %3457 = vrot.lane.b32.xlu0 %v13183_v41, %s11973_s0  ;;  %v13308_v56 = vpop.f32.mrf.mxu1  ;;  %v13310_v4 = vpop.f32.mrf.mxu0 }
 0x35a   :  { %v13340_v41 = vpop.permute.xlu0 %1706  ;;  %6458 = vmatmul.mubr.bf16.vlgmr.msra.gmra.mxu1 %v11855_v59 }
 0x35b   :  { %v13314_v63 = vpop.f32.mrf.mxu1  ;;  %v13322_v38 = vpop.f32.mrf.mxu0  ;;  %18363 = vst [vmem:[#allocation25_spill] sm:$0xff] %v13340_v41  ;;  %6467 = vmatprep.mubr.bf16.mxu1 %v11860_v48  ;;  %v11861_v48 = vld [vmem:[#allocation8 + $0x3a0] ss:$8 sps:$4 sm:$0xff]  }
 0x35c   :  { %3487 = vrot.lane.b32.xlu1 %v13179_v14, %s11973_s0 }
 0x35d   :  { %2212 = vrot.lane.b32.xlu0 %v13189_v46, %s11975_s15  ;;  %v13320_v5 = vpop.f32.mrf.mxu1  ;;  %v13336_v2 = vpop.f32.mrf.mxu0 }
 0x35e   :  { %v13363_v8 = vpop.permute.xlu0 %1696 }
 0x35f   :  { %v13326_v60 = vpop.f32.mrf.mxu1  ;;  %v13346_v16 = vpop.f32.mrf.mxu0  ;;  %18366 = vst [vmem:[#allocation27_spill] sm:$0xff] %v13363_v8 }
 0x360   :  { %2182 = vrot.lane.b32.xlu1 %v13193_v50, %s11975_s15 }
 0x361   :  { %3489 = vrot.lane.b32.xlu0 %v13191_v12, %s11973_s0  ;;  %v13334_v19 = vpop.f32.mrf.mxu1  ;;  %v13350_v12 = vpop.permute.xlu1 %1691 }
 0x362   :  { %18364 = vst [vmem:[#allocation24_spill] sm:$0xff] %v13350_v12  ;;  %v13379_v51 = vpop.permute.xlu0 %1686  ;;  %6468 = vmatmul.mubr.bf16.gmra.mxu1 %v11858_v62 }
 0x363   :  { %v13338_v14 = vpop.f32.mrf.mxu1  ;;  %18368 = vst [vmem:[#allocation28_spill] sm:$0xff] %v13379_v51  ;;  %6477 = vmatprep.mubr.bf16.mxu1 %v11863_v10  ;;  %v11866_v10 = vld [vmem:[#allocation8 + $0x3b4] ss:$8 sps:$4 sm:$0xff]  }
 0x364   :  { %3459 = vrot.lane.b32.xlu1 %v13195_v1, %s11973_s0  ;;  %v13359_v1 = vpop.f32.mrf.mxu0 }
 0x365   :  { %2184 = vrot.lane.b32.xlu0 %v13205_v47, %s11975_s15  ;;  %v13348_v46 = vpop.f32.mrf.mxu1  ;;  %v13367_v30 = vpop.permute.xlu1 %1681 }
 0x366   :  { %18367 = vst [vmem:[#allocation26_spill] sm:$0xff] %v13367_v30 }
 0x367   :  { %v13352_v50 = vpop.f32.mrf.mxu1 }
 0x368   :  { %2214 = vrot.lane.b32.xlu1 %v13201_v40, %s11975_s15  ;;  %v13373_v40 = vpop.f32.mrf.mxu0 }
 0x369   :  { %3461 = vrot.lane.b32.xlu0 %v13207_v9, %s11973_s0  ;;  %v13361_v47 = vpop.f32.mrf.mxu1 }
 0x36a   :  { %6478 = vmatmul.mubr.bf16.gmra.mxu1 %v11861_v48  ;;  %v11864_v48 = vld [vmem:[#allocation8 + $0x3b0] ss:$8 sps:$4 sm:$0xff]  }
 0x36b   :  { %v13365_v15 = vpop.f32.mrf.mxu1  ;;  %6487 = vmatprep.mubr.bf16.mxu1 %v11866_v10 }
 0x36c   :  { %3491 = vrot.lane.b32.xlu1 %v13203_v17, %s11973_s0  ;;  %v13385_v17 = vpop.f32.mrf.mxu0 }
 0x36d   :  { %2216 = vrot.lane.b32.xlu0 %v13214_v24, %s11975_s15  ;;  %v13375_v9 = vpop.f32.mrf.mxu1  ;;  %v13389_v24 = vpop.permute.xlu1 %1671 }
 0x36e   :  { %18369 = vst [vmem:[#allocation29_spill] sm:$0xff] %v13389_v24 }
 0x36f   :  { %v13377_v52 = vpop.f32.mrf.mxu1 }
 0x370   :  { %2186 = vrot.lane.b32.xlu1 %v13218_v7, %s11975_s15  ;;  %v13397_v7 = vpop.f32.mrf.mxu0 }
 0x371   :  { %3493 = vrot.lane.b32.xlu0 %v13216_v58, %s11973_s0  ;;  %v13387_v33 = vpop.f32.mrf.mxu1  ;;  %v13401_v58 = vpop.permute.xlu0 %1676 }
 0x372   :  { %18370 = vst [vmem:[#allocation18_spill] sm:$0xff] %v13401_v58  ;;  %v13405_v11 = vpop.permute.xlu1 %1661  ;;  %6488 = vmatmul.mubr.bf16.gmra.mxu1 %v11864_v48  ;;  %v11869_v48 = vld [vmem:[#allocation8 + $0x3c4] ss:$8 sps:$4 sm:$0xff]   ;;  %v11867_v58 = vld [vmem:[#allocation8 + $0x3c0] ss:$8 sps:$4 sm:$0xff]  }
 0x373   :  { %v13391_v44 = vpop.f32.mrf.mxu1  ;;  %18371 = vst [vmem:[#allocation30_spill] sm:$0xff] %v13405_v11  ;;  %6497 = vmatprep.mubr.bf16.mxu1 %v11869_v48 }
 0x374   :  { %3463 = vrot.lane.b32.xlu1 %v13220_v43, %s11973_s0  ;;  %v13411_v43 = vpop.f32.mrf.mxu0 }
 0x375   :  { %2188 = vrot.lane.b32.xlu0 %v13231_v22, %s11975_s15  ;;  %v13399_v59 = vpop.f32.mrf.mxu1  ;;  %v13417_v45 = vpop.permute.xlu0 %1666 }
 0x376   :  { %18372 = vst [vmem:[#allocation17_spill] sm:$0xff] %v13417_v45 }
 0x377   :  { %v13403_v13 = vpop.f32.mrf.mxu1 }
 0x378   :  { %2218 = vrot.lane.b32.xlu1 %v13227_v21, %s11975_s15  ;;  %v13423_v21 = vpop.f32.mrf.mxu0 }
 0x379   :  { %3465 = vrot.lane.b32.xlu0 %v13233_v27, %s11973_s0  ;;  %v13413_v22 = vpop.f32.mrf.mxu1  ;;  %v13427_v27 = vpop.permute.xlu1 %1651 }
 0x37a   :  { %18373 = vst [vmem:[#allocation31_spill] sm:$0xff] %v13427_v27  ;;  %v13441_v8 = vpop.permute.xlu0 %1656  ;;  %6498 = vmatmul.mubr.bf16.gmra.mxu1 %v11867_v58  ;;  %v11872_v58 = vld [vmem:[#allocation8 + $0x3d4] ss:$8 sps:$4 sm:$0xff]  }
 0x37b   :  { %v13415_v62 = vpop.f32.mrf.mxu1  ;;  %18374 = vst [vmem:[#allocation32_spill] sm:$0xff] %v13441_v8  ;;  %6507 = vmatprep.mubr.bf16.mxu1 %v11872_v58  ;;  %v11875_v58 = vld [vmem:[#allocation8 + $0x3e4] ss:$8 sps:$4 sm:$0xff]  }
 0x37c   :  { %3495 = vrot.lane.b32.xlu1 %v13229_v39, %s11973_s0  ;;  %v13435_v39 = vpop.f32.mrf.mxu0 }
 0x37d   :  { %2220 = vrot.lane.b32.xlu0 %v13241_v0, %s11975_s15  ;;  %v13425_v49 = vpop.f32.mrf.mxu1 }
 0x37f   :  { %v13429_v41 = vpop.f32.mrf.mxu1 }
 0x380   :  { %2190 = vrot.lane.b32.xlu1 %v13245_v20, %s11975_s15  ;;  %v13449_v20 = vpop.f32.mrf.mxu0 }
 0x381   :  { %3497 = vrot.lane.b32.xlu0 %v13243_v34, %s11973_s0  ;;  %v13437_v37 = vpop.f32.mrf.mxu1 }
 0x382   :  { %v13439_v0 = vpop.permute.xlu1 %2162 }
 0x383   :  { %v13443_v12 = vpop.f32.mrf.mxu1 }
 0x384   :  { %3467 = vrot.lane.b32.xlu1 %v13247_v42, %s11973_s0  ;;  %v13463_v42 = vpop.f32.mrf.mxu0 }
 0x385   :  { %2192 = vrot.lane.b32.xlu0 %v13259_v25, %s11975_s15  ;;  %v13451_v34 = vpop.f32.mrf.mxu1 }
 0x386   :  { %v13453_v51 = vpop.permute.xlu1 %3439 }
 0x387   :  { %18375 = vst [vmem:[#allocation33_spill] sm:$0xff] %v13453_v51  ;;  %v13455_v10 = vpop.permute.xlu0 %2164  ;;  %v13457_v30 = vpop.f32.mrf.mxu1 }
 0x388   :  { %18376 = vst [vmem:[#allocation34_spill] sm:$0xff] %v13455_v10  ;;  %2222 = vrot.lane.b32.xlu1 %v13255_v54, %s11975_s15  ;;  %v13477_v54 = vpop.f32.mrf.mxu0 }
 0x389   :  { %3469 = vrot.lane.b32.xlu0 %v13261_v61, %s11973_s0  ;;  %v13465_v25 = vpop.f32.mrf.mxu1 }
 0x38a   :  { %v13467_v24 = vpop.permute.xlu1 %2194 }
 0x38b   :  { %v13469_v45 = vpop.permute.xlu0 %3441  ;;  %v13471_v11 = vpop.f32.mrf.mxu1 }
 0x38c   :  { %18377 = vst [vmem:[#allocation35_spill] sm:$0xff] %v13469_v45  ;;  %3499 = vrot.lane.b32.xlu1 %v13257_v36, %s11973_s0  ;;  %v11870_v45 = vld [vmem:[#allocation8 + $0x3d0] ss:$8 sps:$4 sm:$0xff]   ;;  %v13491_v36 = vpop.f32.mrf.mxu0 }
 0x38d   :  { %2224 = vrot.lane.b32.xlu0 %v13268_v29, %s11975_s15  ;;  %v13479_v61 = vpop.f32.mrf.mxu1  ;;  %6508 = vmatmul.mubr.bf16.gmra.mxu1 %v11870_v45 }
 0x38e   :  { %v13481_v8 = vpop.permute.xlu1 %3471  ;;  %6517 = vmatprep.mubr.bf16.mxu1 %v11875_v58  ;;  %v11878_v58 = vld [vmem:[#allocation8 + $0x3f4] ss:$8 sps:$4 sm:$0xff]  }
 0x38f   :  { %18378 = vst [vmem:[#allocation36_spill] sm:$0xff] %v13481_v8  ;;  %v13483_v48 = vpop.permute.xlu0 %2196  ;;  %v13485_v51 = vpop.f32.mrf.mxu1 }
 0x390   :  { %18379 = vst [vmem:[#allocation37_spill] sm:$0xff] %v13483_v48  ;;  %2800 = vrot.lane.b32.xlu1 %v13272_v28, %s11976_s16  ;;  %v13505_v28 = vpop.f32.mrf.mxu0 }
 0x391   :  { %3501 = vrot.lane.b32.xlu0 %v13270_v53, %s11973_s0  ;;  %v13493_v29 = vpop.f32.mrf.mxu1 }
 0x392   :  { %v13495_v27 = vpop.permute.xlu1 %2166 }
 0x393   :  { %18380 = vst [vmem:[#allocation38_spill] sm:$0xff] %v13495_v27  ;;  %v13497_v8 = vpop.permute.xlu0 %3473  ;;  %v13501_v10 = vpop.f32.mrf.mxu1 }
 0x394   :  { %18381 = vst [vmem:[#allocation39_spill] sm:$0xff] %v13497_v8  ;;  %2832 = vrot.lane.b32.xlu1 %v13280_v23, %s11976_s16  ;;  %v11873_v8 = vld [vmem:[#allocation8 + $0x3e0] ss:$8 sps:$4 sm:$0xff]   ;;  %v13517_v23 = vpop.f32.mrf.mxu0 }
 0x395   :  { %2802 = vrot.lane.b32.xlu0 %v13284_v32, %s11976_s16  ;;  %v13513_v45 = vpop.f32.mrf.mxu1  ;;  %6518 = vmatmul.mubr.bf16.gmra.mxu1 %v11873_v8 }
 0x396   :  { %v13507_v53 = vpop.permute.xlu1 %3443  ;;  %6527 = vmatprep.mubr.bf16.mxu1 %v11878_v58 }
 0x397   :  { %18382 = vst [vmem:[#allocation40_spill] sm:$0xff] %v13507_v53  ;;  %v13509_v48 = vpop.permute.xlu0 %2168  ;;  %v13525_v53 = vpop.f32.mrf.mxu1 }
 0x398   :  { %18383 = vst [vmem:[#allocation41_spill] sm:$0xff] %v13509_v48  ;;  %2804 = vrot.lane.b32.xlu1 %v13298_v31, %s11976_s16  ;;  %v13529_v31 = vpop.f32.mrf.mxu0 }
 0x399   :  { %2834 = vrot.lane.b32.xlu0 %v13294_v6, %s11976_s16  ;;  %v13537_v8 = vpop.f32.mrf.mxu1 }
 0x39a   :  { %v13519_v32 = vpop.permute.xlu1 %2198 }
 0x39b   :  { %18384 = vst [vmem:[#allocation42_spill] sm:$0xff] %v13519_v32  ;;  %v13521_v27 = vpop.permute.xlu0 %3445 }
 0x39c   :  { %18385 = vst [vmem:[#allocation43_spill] sm:$0xff] %v13521_v27  ;;  %2836 = vrot.lane.b32.xlu1 %v13308_v56, %s11976_s16  ;;  %v11876_v27 = vld [vmem:[#allocation8 + $0x3f0] ss:$8 sps:$4 sm:$0xff]   ;;  %v13541_v56 = vpop.f32.mrf.mxu0 }
 0x39d   :  { %2806 = vrot.lane.b32.xlu0 %v13314_v63, %s11976_s16  ;;  %6528 = vmatmul.mubr.bf16.gmra.mxu1 %v11876_v27 }
 0x39e   :  { %v13531_v48 = vpop.permute.xlu1 %3475  ;;  %7814 = vmatprep.mubr.bf16.mxu1 %v18365_v55 }
 0x39f   :  { %18386 = vst [vmem:[#allocation44_spill] sm:$0xff] %v13531_v48  ;;  %v13533_v6 = vpop.permute.xlu0 %2200  ;;  %v13554_v48 = vpop.f32.mrf.mxu0 }
 0x3a0   :  { %18387 = vst [vmem:[#allocation45_spill] sm:$0xff] %v13533_v6  ;;  %2808 = vrot.lane.b32.xlu1 %v13326_v60, %s11976_s16  ;;  %v13550_v60 = vpop.f32.mrf.mxu1 }
 0x3a1   :  { %2838 = vrot.lane.b32.xlu0 %v13320_v5, %s11976_s16 }
 0x3a2   :  { %v13543_v63 = vpop.permute.xlu1 %2170  ;;  %v13562_v27 = vpop.f32.mrf.mxu1 }
 0x3a3   :  { %18388 = vst [vmem:[#allocation46_spill] sm:$0xff] %v13543_v63  ;;  %v13545_v32 = vpop.permute.xlu0 %3477 }
 0x3a4   :  { %18389 = vst [vmem:[#allocation47_spill] sm:$0xff] %v13545_v32  ;;  %2840 = vrot.lane.b32.xlu1 %v13334_v19, %s11976_s16  ;;  %v13566_v19 = vpop.f32.mrf.mxu0  ;;  %v13570_v32 = vpop.f32.mrf.mxu1 }
 0x3a5   :  { %2810 = vrot.lane.b32.xlu0 %v13338_v14, %s11976_s16 }
 0x3a6   :  { %v13556_v5 = vpop.permute.xlu1 %3447 }
 0x3a7   :  { %18390 = vst [vmem:[#allocation48_spill] sm:$0xff] %v13556_v5  ;;  %v13558_v58 = vpop.permute.xlu0 %2172 }
 0x3a8   :  { %18391 = vst [vmem:[#allocation49_spill] sm:$0xff] %v13558_v58  ;;  %2812 = vrot.lane.b32.xlu1 %v13352_v50, %s11976_s16  ;;  %v13578_v50 = vpop.f32.mrf.mxu0  ;;  %v13582_v58 = vpop.f32.mrf.mxu1 }
 0x3a9   :  { %2842 = vrot.lane.b32.xlu0 %v13348_v46, %s11976_s16 }
 0x3aa   :  { %v13568_v55 = vpop.permute.xlu1 %2202  ;;  %v13594_v63 = vpop.f32.mrf.mxu1 }
 0x3ab   :  { %18392 = vst [vmem:[#allocation50_spill] sm:$0xff] %v13568_v55  ;;  %v13572_v14 = vpop.permute.xlu0 %3449 }
 0x3ac   :  { %18393 = vst [vmem:[#allocation51_spill] sm:$0xff] %v13572_v14  ;;  %2844 = vrot.lane.b32.xlu1 %v13361_v47, %s11976_s16  ;;  %v13590_v14 = vpop.f32.mrf.mxu0 }
 0x3ad   :  { %2814 = vrot.lane.b32.xlu0 %v13365_v15, %s11976_s16 }
 0x3ae   :  { %v13580_v5 = vpop.permute.xlu1 %3479 }
 0x3af   :  { %18394 = vst [vmem:[#allocation52_spill] sm:$0xff] %v13580_v5  ;;  %v13584_v46 = vpop.permute.xlu0 %2204  ;;  %v13602_v5 = vpop.f32.mrf.mxu0 }
 0x3b0   :  { %18395 = vst [vmem:[#allocation53_spill] sm:$0xff] %v13584_v46  ;;  %2816 = vrot.lane.b32.xlu1 %v13377_v52, %s11976_s16  ;;  %v13606_v46 = vpop.f32.mrf.mxu1 }
 0x3b1   :  { %2846 = vrot.lane.b32.xlu0 %v13375_v9, %s11976_s16 }
 0x3b2   :  { %v13592_v47 = vpop.permute.xlu1 %2174 }
 0x3b3   :  { %18396 = vst [vmem:[#allocation54_spill] sm:$0xff] %v13592_v47  ;;  %v13596_v15 = vpop.permute.xlu0 %3481  ;;  %v13612_v47 = vpop.f32.mrf.mxu1 }
 0x3b4   :  { %18397 = vst [vmem:[#allocation55_spill] sm:$0xff] %v13596_v15  ;;  %2848 = vrot.lane.b32.xlu1 %v13387_v33, %s11976_s16  ;;  %v13616_v33 = vpop.f32.mrf.mxu0 }
 0x3b5   :  { %2818 = vrot.lane.b32.xlu0 %v13391_v44, %s11976_s16 }
 0x3b6   :  { %v13604_v52 = vpop.permute.xlu1 %3451 }
 0x3b7   :  { %18398 = vst [vmem:[#allocation56_spill] sm:$0xff] %v13604_v52  ;;  %v13608_v9 = vpop.permute.xlu0 %2176  ;;  %v13624_v52 = vpop.f32.mrf.mxu1 }
 0x3b8   :  { %18399 = vst [vmem:[#allocation57_spill] sm:$0xff] %v13608_v9  ;;  %2820 = vrot.lane.b32.xlu1 %v13403_v13, %s11976_s16  ;;  %v13628_v13 = vpop.f32.mrf.mxu0 }
 0x3b9   :  { %2850 = vrot.lane.b32.xlu0 %v13399_v59, %s11976_s16  ;;  %18402 = vst [vmem:[#allocation60_spill] sm:$0xff] %v13628_v13  ;;  %v13636_v59 = vpop.f32.mrf.mxu1 }
 0x3ba   :  { %v13618_v15 = vpop.permute.xlu1 %2206 }
 0x3bb   :  { %18400 = vst [vmem:[#allocation58_spill] sm:$0xff] %v13618_v15  ;;  %v13620_v44 = vpop.permute.xlu0 %3453 }
 0x3bc   :  { %18401 = vst [vmem:[#allocation59_spill] sm:$0xff] %v13620_v44  ;;  %2852 = vrot.lane.b32.xlu1 %v13413_v22, %s11976_s16  ;;  %v13640_v22 = vpop.f32.mrf.mxu0 }
 0x3bd   :  { %2822 = vrot.lane.b32.xlu0 %v13415_v62, %s11976_s16  ;;  %18405 = vst [vmem:[#allocation63_spill] sm:$0xff] %v13640_v22  ;;  %v13648_v62 = vpop.f32.mrf.mxu1 }
 0x3be   :  { %v13630_v9 = vpop.permute.xlu1 %3483 }
 0x3bf   :  { %18403 = vst [vmem:[#allocation61_spill] sm:$0xff] %v13630_v9  ;;  %v13632_v55 = vpop.permute.xlu0 %2208 }
 0x3c0   :  { %18404 = vst [vmem:[#allocation62_spill] sm:$0xff] %v13632_v55  ;;  %2824 = vrot.lane.b32.xlu1 %v13429_v41, %s11976_s16  ;;  %v13652_v41 = vpop.f32.mrf.mxu0  ;;  %v13656_v55 = vpop.f32.mrf.mxu1 }
 0x3c1   :  { %2854 = vrot.lane.b32.xlu0 %v13425_v49, %s11976_s16  ;;  %18408 = vst [vmem:[#allocation66_spill] sm:$0xff] %v13652_v41 }
 0x3c2   :  { %v13642_v44 = vpop.permute.xlu1 %2178 }
 0x3c3   :  { %18406 = vst [vmem:[#allocation64_spill] sm:$0xff] %v13642_v44  ;;  %v13644_v15 = vpop.permute.xlu0 %3485  ;;  %v13668_v44 = vpop.f32.mrf.mxu1 }
 0x3c4   :  { %18407 = vst [vmem:[#allocation65_spill] sm:$0xff] %v13644_v15  ;;  %2856 = vrot.lane.b32.xlu1 %v13437_v37, %s11976_s16  ;;  %v13664_v37 = vpop.f32.mrf.mxu0 }
 0x3c5   :  { %2826 = vrot.lane.b32.xlu0 %v13443_v12, %s11976_s16  ;;  %18411 = vst [vmem:[#allocation69_spill] sm:$0xff] %v13664_v37 }
 0x3c6   :  { %v13654_v9 = vpop.permute.xlu1 %3455  ;;  %v13676_v41 = vpop.f32.mrf.mxu0 }
 0x3c7   :  { %18409 = vst [vmem:[#allocation67_spill] sm:$0xff] %v13654_v9  ;;  %v13658_v49 = vpop.permute.xlu0 %2180  ;;  %18414 = vst [vmem:[#allocation72_spill] sm:$0xff] %v13676_v41  ;;  %v13680_v9 = vpop.f32.mrf.mxu1 }
 0x3c8   :  { %18410 = vst [vmem:[#allocation68_spill] sm:$0xff] %v13658_v49  ;;  %2828 = vrot.lane.b32.xlu1 %v13457_v30, %s11976_s16  ;;  %v13688_v37 = vpop.f32.mrf.mxu0 }
 0x3c9   :  { %2858 = vrot.lane.b32.xlu0 %v13451_v34, %s11976_s16  ;;  %18417 = vst [vmem:[#allocation75_spill] sm:$0xff] %v13688_v37 }
 0x3ca   :  { %v13666_v15 = vpop.permute.xlu1 %2210 }
 0x3cb   :  { %18412 = vst [vmem:[#allocation70_spill] sm:$0xff] %v13666_v15  ;;  %v13670_v12 = vpop.permute.xlu0 %3457 }
 0x3cc   :  { %18413 = vst [vmem:[#allocation71_spill] sm:$0xff] %v13670_v12  ;;  %2860 = vrot.lane.b32.xlu1 %v13465_v25, %s11976_s16  ;;  %v13692_v12 = vpop.f32.mrf.mxu1 }
 0x3cd   :  { %2830 = vrot.lane.b32.xlu0 %v13471_v11, %s11976_s16 }
 0x3ce   :  { %v13678_v30 = vpop.permute.xlu1 %3487  ;;  %v13698_v41 = vpop.f32.mrf.mxu1 }
 0x3cf   :  { %18415 = vst [vmem:[#allocation73_spill] sm:$0xff] %v13678_v30  ;;  %v13682_v34 = vpop.permute.xlu0 %2212 }
 0x3d0   :  { %18416 = vst [vmem:[#allocation74_spill] sm:$0xff] %v13682_v34  ;;  %4078 = vrot.lane.b32.xlu1 %v13485_v51, %s11972_s13  ;;  %v5830_v51 = vpop.f32.mrf.mxu0  ;;  %v13708_v37 = vpop.f32.mrf.mxu1 }
 0x3d1   :  { %2862 = vrot.lane.b32.xlu0 %v13479_v61, %s11976_s16 }
 0x3d2   :  { %v13690_v25 = vpop.permute.xlu1 %2182 }
 0x3d3   :  { %18418 = vst [vmem:[#allocation76_spill] sm:$0xff] %v13690_v25  ;;  %v13694_v11 = vpop.permute.xlu0 %3489  ;;  %v5832_v25 = vpop.f32.mrf.mxu0 }
 0x3d4   :  { %18419 = vst [vmem:[#allocation77_spill] sm:$0xff] %v13694_v11  ;;  %4110 = vrot.lane.b32.xlu1 %v13493_v29, %s11972_s13 }
 0x3d5   :  { %4080 = vrot.lane.b32.xlu0 %v13501_v10, %s11972_s13  ;;  %v13717_v10 = vpop.f32.mrf.mxu1 }
 0x3d6   :  { %v13702_v30 = vpop.permute.xlu1 %3459 }
 0x3d7   :  { %18420 = vst [vmem:[#allocation78_spill] sm:$0xff] %v13702_v30  ;;  %v13704_v61 = vpop.permute.xlu0 %2184  ;;  %v5834_v30 = vpop.f32.mrf.mxu0 }
 0x3d8   :  { %18421 = vst [vmem:[#allocation79_spill] sm:$0xff] %v13704_v61  ;;  %4082 = vrot.lane.b32.xlu1 %v13525_v53, %s11972_s13 }
 0x3d9   :  { %4112 = vrot.lane.b32.xlu0 %v13513_v45, %s11972_s13  ;;  %v13727_v45 = vpop.f32.mrf.mxu1 }
 0x3da   :  { %v13712_v29 = vpop.permute.xlu1 %2214 }
 0x3db   :  { %18422 = vst [vmem:[#allocation80_spill] sm:$0xff] %v13712_v29  ;;  %v13714_v11 = vpop.permute.xlu0 %3461  ;;  %v5836_v29 = vpop.f32.mrf.mxu0 }
 0x3dc   :  { %18423 = vst [vmem:[#allocation81_spill] sm:$0xff] %v13714_v11  ;;  %5903 = vrot.lane.b32.xlu1 %v5830_v51, %s11990_s12  ;;  %v13732_v51 = vpop.f32.mrf.mxu1 }
 0x3dd   :  { %4084 = vrot.lane.b32.xlu0 %v13550_v60, %s11972_s13  ;;  %v5840_v34 = vpop.f32.mrf.mxu0 }
 0x3de   :  { %v13721_v61 = vpop.permute.xlu1 %3491 }
 0x3df   :  { %18424 = vst [vmem:[#allocation82_spill] sm:$0xff] %v13721_v61  ;;  %v13723_v53 = vpop.permute.xlu0 %2216 }
 0x3e0   :  { %18425 = vst [vmem:[#allocation83_spill] sm:$0xff] %v13723_v53  ;;  %4114 = vrot.lane.b32.xlu1 %v13537_v8, %s11972_s13  ;;  %v13741_v8 = vpop.f32.mrf.mxu1  ;;  %v5842_v53 = vpop.f32.mrf.mxu0 }
 0x3e1   :  { %5905 = vrot.lane.b32.xlu0 %v5834_v30, %s11990_s12 }
 0x3e2   :  { %v13730_v11 = vpop.permute.xlu1 %2186 }
 0x3e3   :  { %18426 = vst [vmem:[#allocation84_spill] sm:$0xff] %v13730_v11  ;;  %v13734_v49 = vpop.permute.xlu0 %3493 }
 0x3e4   :  { %18427 = vst [vmem:[#allocation85_spill] sm:$0xff] %v13734_v49  ;;  %5935 = vrot.lane.b32.xlu1 %v5832_v25, %s11990_s12  ;;  %v13750_v49 = vpop.f32.mrf.mxu1  ;;  %v5844_v25 = vpop.f32.mrf.mxu0 }
 0x3e5   :  { %4116 = vrot.lane.b32.xlu0 %v13562_v27, %s11972_s13 }
 0x3e6   :  { %v13739_v60 = vpop.permute.xlu1 %3463 }
 0x3e7   :  { %18428 = vst [vmem:[#allocation86_spill] sm:$0xff] %v13739_v60  ;;  %v13743_v61 = vpop.permute.xlu0 %2188  ;;  %v13759_v60 = vpop.f32.mrf.mxu1 }
 0x3e8   :  { %18429 = vst [vmem:[#allocation87_spill] sm:$0xff] %v13743_v61  ;;  %4086 = vrot.lane.b32.xlu1 %v13570_v32, %s11972_s13  ;;  %v5846_v61 = vpop.f32.mrf.mxu0 }
 0x3e9   :  { %5937 = vrot.lane.b32.xlu0 %v5836_v29, %s11990_s12  ;;  %v13765_v29 = vpop.f32.mrf.mxu1 }
 0x3ea   :  { %v13748_v30 = vpop.permute.xlu1 %2218 }
 0x3eb   :  { %18430 = vst [vmem:[#allocation88_spill] sm:$0xff] %v13748_v30  ;;  %v13752_v11 = vpop.permute.xlu0 %3465 }
 0x3ec   :  { %18431 = vst [vmem:[#allocation89_spill] sm:$0xff] %v13752_v11  ;;  %5907 = vrot.lane.b32.xlu1 %v5840_v34, %s11990_s12  ;;  %v5850_v11 = vpop.f32.mrf.mxu0 }
 0x3ed   :  { %4088 = vrot.lane.b32.xlu0 %v13594_v63, %s11972_s13  ;;  %v13773_v63 = vpop.f32.mrf.mxu1 }
 0x3ee   :  { %v13757_v27 = vpop.permute.xlu1 %3495 }
 0x3ef   :  { %18432 = vst [vmem:[#allocation90_spill] sm:$0xff] %v13757_v27  ;;  %v13761_v32 = vpop.permute.xlu0 %2220  ;;  %v5852_v27 = vpop.f32.mrf.mxu0 }
 0x3f0   :  { %18433 = vst [vmem:[#allocation91_spill] sm:$0xff] %v13761_v32  ;;  %4118 = vrot.lane.b32.xlu1 %v13582_v58, %s11972_s13 }
 0x3f1   :  { %5909 = vrot.lane.b32.xlu0 %v5844_v25, %s11990_s12  ;;  %v13783_v25 = vpop.f32.mrf.mxu1 }
 0x3f2   :  { %v13768_v30 = vpop.permute.xlu1 %2190 }
 0x3f3   :  { %18434 = vst [vmem:[#allocation92_spill] sm:$0xff] %v13768_v30  ;;  %v13770_v34 = vpop.permute.xlu0 %3497 }
 0x3f4   :  { %18435 = vst [vmem:[#allocation93_spill] sm:$0xff] %v13770_v34  ;;  %5939 = vrot.lane.b32.xlu1 %v5842_v53, %s11990_s12  ;;  %v5854_v34 = vpop.f32.mrf.mxu0 }
 0x3f5   :  { %4120 = vrot.lane.b32.xlu0 %v13606_v46, %s11972_s13  ;;  %v13791_v46 = vpop.f32.mrf.mxu1 }
 0x3f6   :  { %v13777_v32 = vpop.permute.xlu1 %3467  ;;  %v5856_v15 = vpop.f32.mrf.mxu0 }
 0x3f7   :  { %18436 = vst [vmem:[#allocation94_spill] sm:$0xff] %v13777_v32  ;;  %v13779_v58 = vpop.permute.xlu0 %2192 }
 0x3f8   :  { %18437 = vst [vmem:[#allocation95_spill] sm:$0xff] %v13779_v58  ;;  %4090 = vrot.lane.b32.xlu1 %v13612_v47, %s11972_s13  ;;  %v13797_v47 = vpop.f32.mrf.mxu1 }
 0x3f9   :  { %5941 = vrot.lane.b32.xlu0 %v5846_v61, %s11990_s12  ;;  %v5860_v61 = vpop.f32.mrf.mxu0 }
 0x3fa   :  { %v13786_v30 = vpop.permute.xlu1 %2222 }
 0x3fb   :  { %18438 = vst [vmem:[#allocation96_spill] sm:$0xff] %v13786_v30  ;;  %v13788_v53 = vpop.permute.xlu0 %3469  ;;  %v5862_v22 = vpop.f32.mrf.mxu0 }
 0x3fc   :  { %18439 = vst [vmem:[#allocation97_spill] sm:$0xff] %v13788_v53  ;;  %5911 = vrot.lane.b32.xlu1 %v5850_v11, %s11990_s12  ;;  %v13806_v11 = vpop.f32.mrf.mxu1 }
 0x3fd   :  { %4092 = vrot.lane.b32.xlu0 %v13636_v59, %s11972_s13 }
 0x3fe   :  { %v13795_v58 = vpop.permute.xlu1 %3499 }
 0x3ff   :  { %18440 = vst [vmem:[#allocation98_spill] sm:$0xff] %v13795_v58  ;;  %v13799_v32 = vpop.permute.xlu0 %2224 }
 0x400   :  { %18441 = vst [vmem:[#allocation99_spill] sm:$0xff] %v13799_v32  ;;  %4122 = vrot.lane.b32.xlu1 %v13624_v52, %s11972_s13  ;;  %v13815_v32 = vpop.f32.mrf.mxu1  ;;  %v5864_v52 = vpop.f32.mrf.mxu0 }
 0x401   :  { %5913 = vrot.lane.b32.xlu0 %v5854_v34, %s11990_s12 }
 0x402   :  { %v13804_v53 = vpop.permute.xlu1 %2800 }
 0x403   :  { %18442 = vst [vmem:[#allocation100_spill] sm:$0xff] %v13804_v53  ;;  %v13808_v30 = vpop.permute.xlu0 %3501  ;;  %v5866_v53 = vpop.f32.mrf.mxu0 }
 0x404   :  { %18443 = vst [vmem:[#allocation101_spill] sm:$0xff] %v13808_v30  ;;  %5943 = vrot.lane.b32.xlu1 %v5852_v27, %s11990_s12  ;;  %v13824_v30 = vpop.f32.mrf.mxu1 }
 0x405   :  { %4124 = vrot.lane.b32.xlu0 %v13648_v62, %s11972_s13  ;;  %v5870_v62 = vpop.f32.mrf.mxu0 }
 0x406   :  { %v13813_v59 = vpop.permute.xlu1 %2832 }
 0x407   :  { %18444 = vst [vmem:[#allocation102_spill] sm:$0xff] %v13813_v59  ;;  %v13817_v58 = vpop.permute.xlu0 %2802  ;;  %v13833_v59 = vpop.f32.mrf.mxu1 }
 0x408   :  { %18445 = vst [vmem:[#allocation103_spill] sm:$0xff] %v13817_v58  ;;  %4094 = vrot.lane.b32.xlu1 %v13656_v55, %s11972_s13 }
 0x409   :  { %5945 = vrot.lane.b32.xlu0 %v5856_v15, %s11990_s12  ;;  %v5872_v15 = vpop.f32.mrf.mxu0 }
 0x40a   :  { %v13822_v34 = vpop.permute.xlu1 %2804 }
 0x40b   :  { %18446 = vst [vmem:[#allocation104_spill] sm:$0xff] %v13822_v34  ;;  %v13826_v27 = vpop.permute.xlu0 %2834 }
 0x40c   :  { %18447 = vst [vmem:[#allocation105_spill] sm:$0xff] %v13826_v27  ;;  %5915 = vrot.lane.b32.xlu1 %v5860_v61, %s11990_s12  ;;  %v13842_v27 = vpop.f32.mrf.mxu1 }
 0x40d   :  { %4096 = vrot.lane.b32.xlu0 %v13680_v9, %s11972_s13  ;;  %v5874_v9 = vpop.f32.mrf.mxu0 }
 0x40e   :  { %v13831_v58 = vpop.permute.xlu1 %2836 }
 0x40f   :  { %18448 = vst [vmem:[#allocation106_spill] sm:$0xff] %v13831_v58  ;;  %v13835_v55 = vpop.permute.xlu0 %2806 }
 0x410   :  { %18449 = vst [vmem:[#allocation107_spill] sm:$0xff] %v13835_v55  ;;  %4126 = vrot.lane.b32.xlu1 %v13668_v44, %s11972_s13  ;;  %v13851_v55 = vpop.f32.mrf.mxu1 }
 0x411   :  { %5917 = vrot.lane.b32.xlu0 %v5864_v52, %s11990_s12  ;;  %v5876_v52 = vpop.f32.mrf.mxu0 }
 0x412   :  { %v13840_v34 = vpop.permute.xlu1 %2808 }
 0x413   :  { %18450 = vst [vmem:[#allocation108_spill] sm:$0xff] %v13840_v34  ;;  %v13844_v61 = vpop.permute.xlu0 %2838 }
 0x414   :  { %18451 = vst [vmem:[#allocation109_spill] sm:$0xff] %v13844_v61  ;;  %5947 = vrot.lane.b32.xlu1 %v5862_v22, %s11990_s12  ;;  %v13860_v61 = vpop.f32.mrf.mxu1 }
 0x415   :  { %4128 = vrot.lane.b32.xlu0 %v13692_v12, %s11972_s13  ;;  %v5880_v12 = vpop.f32.mrf.mxu0 }
 0x416   :  { %v13849_v58 = vpop.permute.xlu1 %2840 }
 0x417   :  { %18452 = vst [vmem:[#allocation110_spill] sm:$0xff] %v13849_v58  ;;  %v13853_v44 = vpop.permute.xlu0 %2810 }
 0x418   :  { %18453 = vst [vmem:[#allocation111_spill] sm:$0xff] %v13853_v44  ;;  %4098 = vrot.lane.b32.xlu1 %v13698_v41, %s11972_s13  ;;  %v13869_v44 = vpop.f32.mrf.mxu1 }
 0x419   :  { %5949 = vrot.lane.b32.xlu0 %v5866_v53, %s11990_s12  ;;  %v5882_v53 = vpop.f32.mrf.mxu0 }
 0x41a   :  { %v13858_v34 = vpop.permute.xlu1 %2812 }
 0x41b   :  { %18454 = vst [vmem:[#allocation112_spill] sm:$0xff] %v13858_v34  ;;  %v13862_v22 = vpop.permute.xlu0 %2842  ;;  %v5884_v6 = vpop.f32.mrf.mxu0 }
 0x41c   :  { %18455 = vst [vmem:[#allocation113_spill] sm:$0xff] %v13862_v22  ;;  %5919 = vrot.lane.b32.xlu1 %v5870_v62, %s11990_s12  ;;  %v13878_v22 = vpop.f32.mrf.mxu1 }
 0x41d   :  { %4100 = vrot.lane.b32.xlu0 %v13717_v10, %s11972_s13 }
 0x41e   :  { %v13867_v58 = vpop.permute.xlu1 %2844 }
 0x41f   :  { %18456 = vst [vmem:[#allocation114_spill] sm:$0xff] %v13867_v58  ;;  %v13871_v41 = vpop.permute.xlu0 %2814 }
 0x420   :  { %18457 = vst [vmem:[#allocation115_spill] sm:$0xff] %v13871_v41  ;;  %4130 = vrot.lane.b32.xlu1 %v13708_v37, %s11972_s13  ;;  %v13887_v41 = vpop.f32.mrf.mxu1  ;;  %v5886_v37 = vpop.f32.mrf.mxu0 }
 0x421   :  { %5921 = vrot.lane.b32.xlu0 %v5874_v9, %s11990_s12 }
 0x422   :  { %v13876_v34 = vpop.permute.xlu1 %2816  ;;  %v5890_v9 = vpop.f32.mrf.mxu0 }
 0x423   :  { %18458 = vst [vmem:[#allocation116_spill] sm:$0xff] %v13876_v34  ;;  %v13880_v62 = vpop.permute.xlu0 %2846 }
 0x424   :  { %18459 = vst [vmem:[#allocation117_spill] sm:$0xff] %v13880_v62  ;;  %5951 = vrot.lane.b32.xlu1 %v5872_v15, %s11990_s12  ;;  %v13896_v62 = vpop.f32.mrf.mxu1 }
 0x425   :  { %4132 = vrot.lane.b32.xlu0 %v13727_v45, %s11972_s13 }
 0x426   :  { %v13885_v10 = vpop.permute.xlu1 %2848  ;;  %v13901_v45 = vpop.f32.mrf.mxu1 }
 0x427   :  { %18460 = vst [vmem:[#allocation118_spill] sm:$0xff] %v13885_v10  ;;  %v13889_v58 = vpop.permute.xlu0 %2818  ;;  %v5892_v10 = vpop.f32.mrf.mxu0 }
 0x428   :  { %18461 = vst [vmem:[#allocation119_spill] sm:$0xff] %v13889_v58  ;;  %4102 = vrot.lane.b32.xlu1 %v13732_v51, %s11972_s13 }
 0x429   :  { %5953 = vrot.lane.b32.xlu0 %v5876_v52, %s11990_s12  ;;  %v13911_v52 = vpop.f32.mrf.mxu1 }
 0x42a   :  { %v13894_v34 = vpop.permute.xlu1 %2820 }
 0x42b   :  { %18462 = vst [vmem:[#allocation120_spill] sm:$0xff] %v13894_v34  ;;  %v13898_v15 = vpop.permute.xlu0 %2850 }
 0x42c   :  { %18463 = vst [vmem:[#allocation121_spill] sm:$0xff] %v13898_v15  ;;  %5923 = vrot.lane.b32.xlu1 %v5880_v12, %s11990_s12  ;;  %v5894_v12 = vpop.f32.mrf.mxu0 }
 0x42d   :  { %4104 = vrot.lane.b32.xlu0 %v13750_v49, %s11972_s13  ;;  %v13919_v49 = vpop.f32.mrf.mxu1 }
 0x42e   :  { %v13905_v58 = vpop.permute.xlu1 %2852 }
 0x42f   :  { %18464 = vst [vmem:[#allocation122_spill] sm:$0xff] %v13905_v58  ;;  %v13907_v51 = vpop.permute.xlu0 %2822  ;;  %v5896_v58 = vpop.f32.mrf.mxu0 }
 0x430   :  { %18465 = vst [vmem:[#allocation123_spill] sm:$0xff] %v13907_v51  ;;  %4134 = vrot.lane.b32.xlu1 %v13741_v8, %s11972_s13 }
 0x431   :  { %5925 = vrot.lane.b32.xlu0 %v5884_v6, %s11990_s12  ;;  %v13929_v6 = vpop.f32.mrf.mxu0 }
 0x432   :  { %v13914_v34 = vpop.permute.xlu1 %2824  ;;  %18470 = vst [vmem:[#allocation128_spill] sm:$0xff] %v13929_v6 }
 0x433   :  { %18466 = vst [vmem:[#allocation124_spill] sm:$0xff] %v13914_v34  ;;  %v13916_v15 = vpop.permute.xlu0 %2854  ;;  %v13931_v34 = vpop.f32.mrf.mxu1 }
 0x434   :  { %18467 = vst [vmem:[#allocation125_spill] sm:$0xff] %v13916_v15  ;;  %5955 = vrot.lane.b32.xlu1 %v5882_v53, %s11990_s12 }
 0x435   :  { %4136 = vrot.lane.b32.xlu0 %v13759_v60, %s11972_s13  ;;  %v13936_v15 = vpop.f32.mrf.mxu1  ;;  %v13941_v60 = vpop.f32.mrf.mxu0 }
 0x436   :  { %v13923_v51 = vpop.permute.xlu1 %2856  ;;  %18473 = vst [vmem:[#allocation131_spill] sm:$0xff] %v13941_v60 }
 0x437   :  { %18468 = vst [vmem:[#allocation126_spill] sm:$0xff] %v13923_v51  ;;  %v13925_v8 = vpop.permute.xlu0 %2826  ;;  %v13947_v6 = vpop.f32.mrf.mxu1 }
 0x438   :  { %18469 = vst [vmem:[#allocation127_spill] sm:$0xff] %v13925_v8  ;;  %4106 = vrot.lane.b32.xlu1 %v13765_v29, %s11972_s13 }
 0x439   :  { %5957 = vrot.lane.b32.xlu0 %v5886_v37, %s11990_s12  ;;  %v13953_v37 = vpop.f32.mrf.mxu0 }
 0x43a   :  { %v13934_v53 = vpop.permute.xlu1 %2828  ;;  %18476 = vst [vmem:[#allocation134_spill] sm:$0xff] %v13953_v37 }
 0x43b   :  { %18471 = vst [vmem:[#allocation129_spill] sm:$0xff] %v13934_v53  ;;  %v13938_v13 = vpop.permute.xlu0 %2858 }
 0x43c   :  { %18472 = vst [vmem:[#allocation130_spill] sm:$0xff] %v13938_v13  ;;  %5927 = vrot.lane.b32.xlu1 %v5890_v9, %s11990_s12  ;;  %v13958_v9 = vpop.f32.mrf.mxu1 }
 0x43d   :  { %4108 = vrot.lane.b32.xlu0 %v13783_v25, %s11972_s13  ;;  %v13963_v25 = vpop.f32.mrf.mxu0 }
 0x43e   :  { %v13945_v29 = vpop.permute.xlu1 %2860  ;;  %18479 = vst [vmem:[#allocation137_spill] sm:$0xff] %v13963_v25 }
 0x43f   :  { %18474 = vst [vmem:[#allocation132_spill] sm:$0xff] %v13945_v29  ;;  %v13949_v8 = vpop.permute.xlu0 %2830 }
 0x440   :  { %18475 = vst [vmem:[#allocation133_spill] sm:$0xff] %v13949_v8  ;;  %4138 = vrot.lane.b32.xlu1 %v13773_v63, %s11972_s13  ;;  %v13969_v63 = vpop.f32.mrf.mxu1 }
 0x441   :  { %5929 = vrot.lane.b32.xlu0 %v5894_v12, %s11990_s12  ;;  %v13975_v12 = vpop.f32.mrf.mxu0 }
 0x442   :  { %v13956_v53 = vpop.permute.xlu1 %4078  ;;  %18482 = vst [vmem:[#allocation140_spill] sm:$0xff] %v13975_v12 }
 0x443   :  { %18477 = vst [vmem:[#allocation135_spill] sm:$0xff] %v13956_v53  ;;  %v13960_v60 = vpop.permute.xlu0 %2862  ;;  %v13977_v53 = vpop.f32.mrf.mxu1 }
 0x444   :  { %18478 = vst [vmem:[#allocation136_spill] sm:$0xff] %v13960_v60  ;;  %5959 = vrot.lane.b32.xlu1 %v5892_v10, %s11990_s12 }
 0x445   :  { %4140 = vrot.lane.b32.xlu0 %v13791_v46, %s11972_s13  ;;  %v13986_v46 = vpop.f32.mrf.mxu0 }
 0x446   :  { %v13967_v8 = vpop.permute.xlu1 %4110  ;;  %18485 = vst [vmem:[#allocation143_spill] sm:$0xff] %v13986_v46 }
 0x447   :  { %18480 = vst [vmem:[#allocation138_spill] sm:$0xff] %v13967_v8  ;;  %v13971_v37 = vpop.permute.xlu0 %4080  ;;  %v13988_v8 = vpop.f32.mrf.mxu1 }
 0x448   :  { %18481 = vst [vmem:[#allocation139_spill] sm:$0xff] %v13971_v37  ;;  %5260 = vrot.lane.b32.xlu1 %v13797_v47, %s11970_s2 }
 0x449   :  { %5961 = vrot.lane.b32.xlu0 %v5896_v58, %s11990_s12  ;;  %v13998_v58 = vpop.f32.mrf.mxu0 }
 0x44a   :  { %v13980_v10 = vpop.permute.xlu1 %4082  ;;  %18488 = vst [vmem:[#allocation146_spill] sm:$0xff] %v13998_v58 }
 0x44b   :  { %18483 = vst [vmem:[#allocation141_spill] sm:$0xff] %v13980_v10  ;;  %v13982_v25 = vpop.permute.xlu0 %4112  ;;  %v14000_v10 = vpop.f32.mrf.mxu1 }
 0x44c   :  { %18484 = vst [vmem:[#allocation142_spill] sm:$0xff] %v13982_v25  ;;  %5292 = vrot.lane.b32.xlu1 %v13806_v11, %s11970_s2  ;;  %v14008_v25 = vpop.f32.mrf.mxu0 }
 0x44d   :  { %5262 = vrot.lane.b32.xlu0 %v13815_v32, %s11970_s2  ;;  %18491 = vst [vmem:[#allocation149_spill] sm:$0xff] %v14008_v25  ;;  %v14012_v32 = vpop.f32.mrf.mxu1 }
 0x44e   :  { %v13992_v47 = vpop.permute.xlu1 %5903 }
 0x44f   :  { %18486 = vst [vmem:[#allocation144_spill] sm:$0xff] %v13992_v47  ;;  %v13994_v12 = vpop.permute.xlu0 %4084  ;;  %v14018_v47 = vpop.f32.mrf.mxu1 }
 0x450   :  { %18487 = vst [vmem:[#allocation145_spill] sm:$0xff] %v13994_v12  ;;  %5264 = vrot.lane.b32.xlu1 %v13833_v59, %s11970_s2 }
 0x451   :  { %5294 = vrot.lane.b32.xlu0 %v13824_v30, %s11970_s2  ;;  %v7118_v30 = vpop.f32.mrf.mxu0 }
 0x452   :  { %v14004_v11 = vpop.permute.xlu1 %4114 }
 0x453   :  { %18489 = vst [vmem:[#allocation147_spill] sm:$0xff] %v14004_v11  ;;  %v14006_v46 = vpop.permute.xlu0 %5905 }
 0x454   :  { %18490 = vst [vmem:[#allocation148_spill] sm:$0xff] %v14006_v46  ;;  %5296 = vrot.lane.b32.xlu1 %v13842_v27, %s11970_s2  ;;  %v14028_v27 = vpop.f32.mrf.mxu1 }
 0x455   :  { %5266 = vrot.lane.b32.xlu0 %v13851_v55, %s11970_s2  ;;  %v7120_v55 = vpop.f32.mrf.mxu0 }
 0x456   :  { %v14016_v59 = vpop.permute.xlu1 %5935 }
 0x457   :  { %18492 = vst [vmem:[#allocation150_spill] sm:$0xff] %v14016_v59  ;;  %v14020_v58 = vpop.permute.xlu0 %4116  ;;  %v7122_v12 = vpop.f32.mrf.mxu0 }
 0x458   :  { %18493 = vst [vmem:[#allocation151_spill] sm:$0xff] %v14020_v58  ;;  %5268 = vrot.lane.b32.xlu1 %v13869_v44, %s11970_s2  ;;  %v14037_v58 = vpop.f32.mrf.mxu1 }
 0x459   :  { %5298 = vrot.lane.b32.xlu0 %v13860_v61, %s11970_s2 }
 0x45a   :  { %v14026_v46 = vpop.permute.xlu1 %4086 }
 0x45b   :  { %18494 = vst [vmem:[#allocation152_spill] sm:$0xff] %v14026_v46  ;;  %v14030_v25 = vpop.permute.xlu0 %5937 }
 0x45c   :  { %18495 = vst [vmem:[#allocation153_spill] sm:$0xff] %v14030_v25  ;;  %7185 = vrot.lane.b32.xlu1 %v7118_v30, %s11988_s27  ;;  %v14046_v25 = vpop.f32.mrf.mxu1 }
 0x45d   :  { %5270 = vrot.lane.b32.xlu0 %v13887_v41, %s11970_s2 }
 0x45e   :  { %v14035_v59 = vpop.permute.xlu1 %5907  ;;  %v14051_v41 = vpop.f32.mrf.mxu1 }
 0x45f   :  { %18496 = vst [vmem:[#allocation154_spill] sm:$0xff] %v14035_v59  ;;  %v14039_v44 = vpop.permute.xlu0 %4088  ;;  %v7124_v59 = vpop.f32.mrf.mxu0 }
 0x460   :  { %18497 = vst [vmem:[#allocation155_spill] sm:$0xff] %v14039_v44  ;;  %5300 = vrot.lane.b32.xlu1 %v13878_v22, %s11970_s2 }
 0x461   :  { %7187 = vrot.lane.b32.xlu0 %v7122_v12, %s11988_s27  ;;  %v7128_v22 = vpop.f32.mrf.mxu0  ;;  %v14061_v12 = vpop.f32.mrf.mxu1 }
 0x462   :  { %v14044_v61 = vpop.permute.xlu1 %4118 }
 0x463   :  { %18498 = vst [vmem:[#allocation156_spill] sm:$0xff] %v14044_v61  ;;  %v14048_v30 = vpop.permute.xlu0 %5909  ;;  %v7130_v61 = vpop.f32.mrf.mxu0 }
 0x464   :  { %18499 = vst [vmem:[#allocation157_spill] sm:$0xff] %v14048_v30  ;;  %7217 = vrot.lane.b32.xlu1 %v7120_v55, %s11988_s27 }
 0x465   :  { %5302 = vrot.lane.b32.xlu0 %v13896_v62, %s11970_s2  ;;  %v14069_v62 = vpop.f32.mrf.mxu1 }
 0x466   :  { %v14055_v44 = vpop.permute.xlu1 %5939 }
 0x467   :  { %18500 = vst [vmem:[#allocation158_spill] sm:$0xff] %v14055_v44  ;;  %v14057_v46 = vpop.permute.xlu0 %4120 }
 0x468   :  { %18501 = vst [vmem:[#allocation159_spill] sm:$0xff] %v14057_v46  ;;  %5272 = vrot.lane.b32.xlu1 %v13901_v45, %s11970_s2  ;;  %v7132_v45 = vpop.f32.mrf.mxu0 }
 0x469   :  { %7219 = vrot.lane.b32.xlu0 %v7124_v59, %s11988_s27  ;;  %v14079_v59 = vpop.f32.mrf.mxu1 }
 0x46a   :  { %v14064_v30 = vpop.permute.xlu1 %4090 }
 0x46b   :  { %18502 = vst [vmem:[#allocation160_spill] sm:$0xff] %v14064_v30  ;;  %v14066_v55 = vpop.permute.xlu0 %5941  ;;  %v14087_v30 = vpop.f32.mrf.mxu1 }
 0x46c   :  { %18503 = vst [vmem:[#allocation161_spill] sm:$0xff] %v14066_v55  ;;  %7189 = vrot.lane.b32.xlu1 %v7128_v22, %s11988_s27  ;;  %18508 = vst [vmem:[#allocation166_spill] sm:$0xff] %v14087_v30 }
 0x46d   :  { %5274 = vrot.lane.b32.xlu0 %v13919_v49, %s11970_s2  ;;  %v7134_v49 = vpop.f32.mrf.mxu0 }
 0x46e   :  { %v14073_v44 = vpop.permute.xlu1 %5911 }
 0x46f   :  { %18504 = vst [vmem:[#allocation162_spill] sm:$0xff] %v14073_v44  ;;  %v14075_v46 = vpop.permute.xlu0 %4092 }
 0x470   :  { %18505 = vst [vmem:[#allocation163_spill] sm:$0xff] %v14075_v46  ;;  %5304 = vrot.lane.b32.xlu1 %v13911_v52, %s11970_s2  ;;  %v7138_v52 = vpop.f32.mrf.mxu0 }
 0x471   :  { %7191 = vrot.lane.b32.xlu0 %v7132_v45, %s11988_s27  ;;  %v14097_v45 = vpop.f32.mrf.mxu1 }
 0x472   :  { %v14082_v55 = vpop.permute.xlu1 %4122  ;;  %18511 = vst [vmem:[#allocation169_spill] sm:$0xff] %v14097_v45 }
 0x473   :  { %18506 = vst [vmem:[#allocation164_spill] sm:$0xff] %v14082_v55  ;;  %v14084_v22 = vpop.permute.xlu0 %5913  ;;  %v7140_v55 = vpop.f32.mrf.mxu0 }
 0x474   :  { %18507 = vst [vmem:[#allocation165_spill] sm:$0xff] %v14084_v22  ;;  %7221 = vrot.lane.b32.xlu1 %v7130_v61, %s11988_s27 }
 0x475   :  { %5306 = vrot.lane.b32.xlu0 %v13931_v34, %s11970_s2  ;;  %v14105_v34 = vpop.f32.mrf.mxu1 }
 0x476   :  { %v14091_v44 = vpop.permute.xlu1 %5943  ;;  %18514 = vst [vmem:[#allocation172_spill] sm:$0xff] %v14105_v34 }
 0x477   :  { %18509 = vst [vmem:[#allocation167_spill] sm:$0xff] %v14091_v44  ;;  %v14093_v46 = vpop.permute.xlu0 %4124 }
 0x478   :  { %18510 = vst [vmem:[#allocation168_spill] sm:$0xff] %v14093_v46  ;;  %5276 = vrot.lane.b32.xlu1 %v13936_v15, %s11970_s2  ;;  %v7142_v15 = vpop.f32.mrf.mxu0 }
 0x479   :  { %7223 = vrot.lane.b32.xlu0 %v7134_v49, %s11988_s27  ;;  %v14115_v49 = vpop.f32.mrf.mxu1 }
 0x47a   :  { %v14100_v22 = vpop.permute.xlu1 %4094  ;;  %18517 = vst [vmem:[#allocation175_spill] sm:$0xff] %v14115_v49 }
 0x47b   :  { %18512 = vst [vmem:[#allocation170_spill] sm:$0xff] %v14100_v22  ;;  %v14102_v61 = vpop.permute.xlu0 %5945  ;;  %v14123_v22 = vpop.f32.mrf.mxu1 }
 0x47c   :  { %18513 = vst [vmem:[#allocation171_spill] sm:$0xff] %v14102_v61  ;;  %7193 = vrot.lane.b32.xlu1 %v7138_v52, %s11988_s27 }
 0x47d   :  { %5278 = vrot.lane.b32.xlu0 %v13958_v9, %s11970_s2  ;;  %v7144_v9 = vpop.f32.mrf.mxu0 }
 0x47e   :  { %v14109_v44 = vpop.permute.xlu1 %5915 }
 0x47f   :  { %18515 = vst [vmem:[#allocation173_spill] sm:$0xff] %v14109_v44  ;;  %v14111_v46 = vpop.permute.xlu0 %4096 }
 0x480   :  { %18516 = vst [vmem:[#allocation174_spill] sm:$0xff] %v14111_v46  ;;  %5308 = vrot.lane.b32.xlu1 %v13947_v6, %s11970_s2  ;;  %v7148_v6 = vpop.f32.mrf.mxu0 }
 0x481   :  { %7195 = vrot.lane.b32.xlu0 %v7142_v15, %s11988_s27  ;;  %v14133_v15 = vpop.f32.mrf.mxu1 }
 0x482   :  { %v14118_v61 = vpop.permute.xlu1 %4126 }
 0x483   :  { %18518 = vst [vmem:[#allocation176_spill] sm:$0xff] %v14118_v61  ;;  %v14120_v52 = vpop.permute.xlu0 %5917  ;;  %v7150_v61 = vpop.f32.mrf.mxu0 }
 0x484   :  { %18519 = vst [vmem:[#allocation177_spill] sm:$0xff] %v14120_v52  ;;  %7225 = vrot.lane.b32.xlu1 %v7140_v55, %s11988_s27 }
 0x485   :  { %5310 = vrot.lane.b32.xlu0 %v13969_v63, %s11970_s2  ;;  %v14141_v63 = vpop.f32.mrf.mxu1 }
 0x486   :  { %v14127_v44 = vpop.permute.xlu1 %5947 }
 0x487   :  { %18520 = vst [vmem:[#allocation178_spill] sm:$0xff] %v14127_v44  ;;  %v14129_v46 = vpop.permute.xlu0 %4128 }
 0x488   :  { %18521 = vst [vmem:[#allocation179_spill] sm:$0xff] %v14129_v46  ;;  %5280 = vrot.lane.b32.xlu1 %v13977_v53, %s11970_s2  ;;  %v7152_v53 = vpop.f32.mrf.mxu0 }
 0x489   :  { %7227 = vrot.lane.b32.xlu0 %v7144_v9, %s11988_s27  ;;  %v14151_v9 = vpop.f32.mrf.mxu1 }
 0x48a   :  { %v14136_v52 = vpop.permute.xlu1 %4098 }
 0x48b   :  { %18522 = vst [vmem:[#allocation180_spill] sm:$0xff] %v14136_v52  ;;  %v14138_v55 = vpop.permute.xlu0 %5949  ;;  %v14159_v52 = vpop.f32.mrf.mxu1 }
 0x48c   :  { %18523 = vst [vmem:[#allocation181_spill] sm:$0xff] %v14138_v55  ;;  %7197 = vrot.lane.b32.xlu1 %v7148_v6, %s11988_s27 }
 0x48d   :  { %5282 = vrot.lane.b32.xlu0 %v14000_v10, %s11970_s2  ;;  %v7154_v10 = vpop.f32.mrf.mxu0 }
 0x48e   :  { %v14145_v44 = vpop.permute.xlu1 %5919 }
 0x48f   :  { %18524 = vst [vmem:[#allocation182_spill] sm:$0xff] %v14145_v44  ;;  %v14147_v46 = vpop.permute.xlu0 %4100 }
 0x490   :  { %18525 = vst [vmem:[#allocation183_spill] sm:$0xff] %v14147_v46  ;;  %5312 = vrot.lane.b32.xlu1 %v13988_v8, %s11970_s2  ;;  %v7158_v8 = vpop.f32.mrf.mxu0 }
 0x491   :  { %7199 = vrot.lane.b32.xlu0 %v7152_v53, %s11988_s27  ;;  %v14169_v53 = vpop.f32.mrf.mxu1 }
 0x492   :  { %v14154_v55 = vpop.permute.xlu1 %4130 }
 0x493   :  { %18526 = vst [vmem:[#allocation184_spill] sm:$0xff] %v14154_v55  ;;  %v14156_v6 = vpop.permute.xlu0 %5921  ;;  %v7160_v55 = vpop.f32.mrf.mxu0 }
 0x494   :  { %18527 = vst [vmem:[#allocation185_spill] sm:$0xff] %v14156_v6  ;;  %7229 = vrot.lane.b32.xlu1 %v7150_v61, %s11988_s27 }
 0x495   :  { %5314 = vrot.lane.b32.xlu0 %v14012_v32, %s11970_s2  ;;  %v14177_v32 = vpop.f32.mrf.mxu1 }
 0x496   :  { %v14163_v44 = vpop.permute.xlu1 %5951 }
 0x497   :  { %18528 = vst [vmem:[#allocation186_spill] sm:$0xff] %v14163_v44  ;;  %v14165_v46 = vpop.permute.xlu0 %4132 }
 0x498   :  { %18529 = vst [vmem:[#allocation187_spill] sm:$0xff] %v14165_v46  ;;  %5284 = vrot.lane.b32.xlu1 %v14018_v47, %s11970_s2  ;;  %v11021_v47 = vld [vmem:[%s18032_s6 + $0x8] sm:$0x3] }
 0x499   :  { %7231 = vrot.lane.b32.xlu0 %v7154_v10, %s11988_s27  ;;  %v7162_v10 = vpop.f32.mrf.mxu0 }
 0x49a   :  { %v14172_v6 = vpop.permute.xlu1 %4102 }
 0x49b   :  { %18530 = vst [vmem:[#allocation188_spill] sm:$0xff] %v14172_v6  ;;  %v14174_v61 = vpop.permute.xlu0 %5953  ;;  %v18536_v6 = vld [vmem:[#allocation16_spill] sm:$0xff] }
 0x49c   :  { %18531 = vst [vmem:[#allocation189_spill] sm:$0xff] %v14174_v61  ;;  %7201 = vrot.lane.b32.xlu1 %v7158_v8, %s11988_s27  ;;  %v14190_v61 = vpop.f32.mrf.mxu1  ;;  %v14202_v49 = vrot.slane %v11021_v47, %v18536_v6 }
 0x49d   :  { %5286 = vrot.lane.b32.xlu0 %v14037_v58, %s11970_s2  ;;  %v2290_v58 = vld [vmem:[%s18032_s6] sm:$0x3] }
 0x49e   :  { %v14181_v44 = vpop.permute.xlu1 %5923  ;;  %v14218_v45 = vrot.slane %v2290_v58, %v18536_v6 }
 0x49f   :  { %18532 = vst [vmem:[#allocation190_spill] sm:$0xff] %v14181_v44  ;;  %v14183_v46 = vpop.permute.xlu0 %4104  ;;  %v18535_v44 = vld [vmem:[#allocation15_spill] sm:$0xff] }
 0x4a0   :  { %18533 = vst [vmem:[#allocation191_spill] sm:$0xff] %v14183_v46  ;;  %5316 = vrot.lane.b32.xlu1 %v14028_v27, %s11970_s2  ;;  %v14199_v46 = vrot.slane %v11021_v47, %v18535_v44  ;;  %v10923_v27 = vld [vmem:[%s18032_s6 + $0x4] sm:$0x3]  ;;  %v7164_v47 = vpop.f32.mrf.mxu0 }
 0x4a1   :  { %7203 = vrot.lane.b32.xlu0 %v7162_v10, %s11988_s27  ;;  %v14210_v10 = vpop.f32.mrf.mxu1  ;;  %v14230_v11 = vrot.slane %v10923_v27, %v18536_v6 }
 0x4a2   :  { %v14193_v8 = vpop.permute.xlu1 %4134 }
 0x4a3   :  { %18534 = vst [vmem:[#allocation192_spill] sm:$0xff] %v14193_v8  ;;  %v14204_v34 = vpop.permute.xlu0 %5925  ;;  %v14215_v8 = vrot.slane %v2290_v58, %v18535_v44  ;;  %v14240_v58 = vmul.f32 %v14199_v46, %v13286_v26  ;;  %v14260_v26 = vmul.f32 %v14199_v46, %v13322_v38  ;;  %v14281_v38 = vmul.f32 %v14202_v49, %v13385_v17 }
 0x4a4   :  { %18537 = vst [vmem:[#allocation193_spill] sm:$0xff] %v14204_v34  ;;  %7233 = vrot.lane.b32.xlu1 %v7160_v55, %s11988_s27  ;;  %v14224_v34 = vmul.f32 %v14199_v46, %v13274_v57  ;;  %v14227_v55 = vrot.slane %v10923_v27, %v18535_v44  ;;  %v14244_v57 = vmul.f32 %v14202_v49, %v13296_v18 }
 0x4a5   :  { %5318 = vrot.lane.b32.xlu0 %v14046_v25, %s11970_s2  ;;  %v14234_v25 = vmul.f32 %v14202_v49, %v13282_v35  ;;  %18542 = vst [vmem:[#allocation198_spill] sm:$0xff] %v14240_v58  ;;  %v14252_v27 = vmul.f32 %v14202_v49, %v13310_v4  ;;  %v7168_v35 = vpop.f32.mrf.mxu0  ;;  %18546 = vst [vmem:[#allocation202_spill] sm:$0xff] %v14260_v26  ;;  %v14264_v18 = vmul.f32 %v14202_v49, %v13336_v2  ;;  %v18613_v26 = vld [vmem:[#allocation57_spill] sm:$0xff] }
 0x4a6   :  { %v14220_v30 = vpop.permute.xlu1 %5955  ;;  %18539 = vst [vmem:[#allocation195_spill] sm:$0xff] %v14224_v34  ;;  %18543 = vst [vmem:[#allocation199_spill] sm:$0xff] %v14244_v57  ;;  %v14272_v4 = vmul.f32 %v14202_v49, %v13359_v1  ;;  %v14285_v2 = vmul.f32 %v14199_v46, %v13397_v7  ;;  %v14303_v17 = vmul.f32 %v14202_v49, %v13435_v39 }
 0x4a7   :  { %18538 = vst [vmem:[#allocation194_spill] sm:$0xff] %v14220_v30  ;;  %18540 = vst [vmem:[#allocation196_spill] sm:$0xff] %v14234_v25  ;;  %v14236_v37 = vpop.permute.xlu0 %4136  ;;  %v14248_v30 = vmul.f32 %v14199_v46, %v13300_v3  ;;  %v14268_v3 = vmul.f32 %v14199_v46, %v13346_v16  ;;  %v14289_v16 = vmul.f32 %v14202_v49, %v13411_v43 }
 0x4a8   :  { %18541 = vst [vmem:[#allocation197_spill] sm:$0xff] %v14236_v37  ;;  %18545 = vst [vmem:[#allocation201_spill] sm:$0xff] %v14252_v27  ;;  %5288 = vrot.lane.b32.xlu1 %v14051_v41, %s11970_s2  ;;  %v14256_v37 = vpop.f32.mrf.mxu1  ;;  %v14277_v41 = vmul.f32 %v14199_v46, %v13373_v40  ;;  %v2242_v40 = vsel %vm207_vm8, %v13467_v24, %v13439_v0  ;;  %v14307_v7 = vmul.f32 %v14199_v46, %v13449_v20  ;;  %v7170_v20 = vpop.f32.mrf.mxu0 }
 0x4a9   :  { %18544 = vst [vmem:[#allocation200_spill] sm:$0xff] %v14248_v30  ;;  %18547 = vst [vmem:[#allocation203_spill] sm:$0xff] %v14264_v18  ;;  %7235 = vrot.lane.b32.xlu0 %v7164_v47, %s11988_s27  ;;  %v18555_v47 = vld [vmem:[#allocation14_spill] sm:$0xff]  ;;  %v14325_v39 = vmul.f32 %v14202_v49, %v13491_v36  ;;  %v10874_v36 = vld [vmem:[%s18032_s6 + $0x2] sm:$0x3] }
 0x4aa   :  { %18548 = vst [vmem:[#allocation204_spill] sm:$0xff] %v14268_v3  ;;  %18549 = vst [vmem:[#allocation205_spill] sm:$0xff] %v14272_v4  ;;  %v14291_v1 = vpop.permute.xlu1 %4106 }
 0x4ab   :  { %18550 = vst [vmem:[#allocation206_spill] sm:$0xff] %v14277_v41  ;;  %18551 = vst [vmem:[#allocation207_spill] sm:$0xff] %v14281_v38  ;;  %v14299_v41 = vmul.f32 %v14199_v46, %v13423_v21  ;;  %v14309_v43 = vpop.permute.xlu0 %5957  ;;  %v14321_v21 = vmul.f32 %v14199_v46, %v13477_v54  ;;  %v14344_v54 = vmul.f32 %v14202_v49, %v13541_v56  ;;  %v18604_v38 = vld [vmem:[#allocation17_spill] sm:$0xff] }
 0x4ac   :  { %18552 = vst [vmem:[#allocation208_spill] sm:$0xff] %v14285_v2  ;;  %18553 = vst [vmem:[#allocation209_spill] sm:$0xff] %v14289_v16  ;;  %v14317_v16 = vmul.f32 %v14202_v49, %v13463_v42  ;;  %7205 = vrot.lane.b32.xlu1 %v7168_v35, %s11988_s27  ;;  %v14340_v42 = vmul.f32 %v14199_v46, %v13529_v31  ;;  %v18567_v35 = vld [vmem:[#allocation37_spill] sm:$0xff]  ;;  %v14362_v56 = vmul.f32 %v14199_v46, %v13554_v48 }
 0x4ad   :  { %18554 = vst [vmem:[#allocation210_spill] sm:$0xff] %v14291_v1  ;;  %18556 = vst [vmem:[#allocation14_spill] sm:$0xff] %v14299_v41  ;;  %v2226_v1 = vsel %vm207_vm8, %v13439_v0, %v13467_v24  ;;  %v14332_v24 = vmul.f32 %v14199_v46, %v13505_v28  ;;  %v14336_v0 = vmul.f32 %v14202_v49, %v13517_v23  ;;  %5290 = vrot.lane.b32.xlu0 %v14069_v62, %s11970_s2  ;;  %v18568_v23 = vld [vmem:[#allocation34_spill] sm:$0xff] }
 0x4ae   :  { %18557 = vst [vmem:[#allocation211_spill] sm:$0xff] %v14303_v17  ;;  %18558 = vst [vmem:[#allocation212_spill] sm:$0xff] %v14307_v7  ;;  %v2302_v28 = vmul.f32 %v14215_v8, %v2242_v40  ;;  %v2243_v31 = vsel %vm207_vm8, %v18567_v35, %v18568_v23  ;;  %v2303_v62 = vmul.f32 %v14218_v45, %v2226_v1 }
 0x4af   :  { %18559 = vst [vmem:[#allocation213_spill] sm:$0xff] %v14309_v43  ;;  %18560 = vst [vmem:[#allocation214_spill] sm:$0xff] %v14317_v16  ;;  %v14328_v43 = vpop.f32.mrf.mxu1  ;;  %v14369_v40 = vmul.f32 %v14202_v49, %v13566_v19  ;;  %v14383_v48 = vmul.f32 %v14199_v46, %v13602_v5  ;;  %v14387_v1 = vmul.f32 %v14202_v49, %v13616_v33 }
 0x4b0   :  { %18561 = vst [vmem:[#allocation215_spill] sm:$0xff] %v14321_v21  ;;  %18562 = vst [vmem:[#allocation216_spill] sm:$0xff] %v14325_v39  ;;  %v14390_v19 = vrot.slane %v10874_v36, %v18535_v44  ;;  %5320 = vrot.lane.b32.xlu1 %v14061_v12, %s11970_s2 }
 0x4b1   :  { %18563 = vst [vmem:[#allocation217_spill] sm:$0xff] %v14332_v24  ;;  %18564 = vst [vmem:[#allocation218_spill] sm:$0xff] %v14336_v0  ;;  %v2227_v0 = vsel %vm207_vm8, %v18568_v23, %v18567_v35  ;;  %v14377_v24 = vmul.f32 %v14202_v49, %v13590_v14  ;;  %v14379_v35 = vpop.permute.xlu0 %4108  ;;  %v7172_v23 = vpop.f32.mrf.mxu0 }
 0x4b2   :  { %18565 = vst [vmem:[#allocation219_spill] sm:$0xff] %v14340_v42  ;;  %18566 = vst [vmem:[#allocation220_spill] sm:$0xff] %v14344_v54  ;;  %v14364_v54 = vpop.permute.xlu1 %5927  ;;  %v14373_v42 = vmul.f32 %v14199_v46, %v13578_v50  ;;  %v14393_v50 = vrot.slane %v10874_v36, %v18536_v6  ;;  %v14397_v14 = vpop.f32.mrf.mxu1  ;;  %v2305_v5 = vmul.f32 %v14218_v45, %v2227_v0  ;;  %7207 = vrot.lane.b32.xlu0 %v7172_v23, %s11988_s27  ;;  %v18586_v23 = vld [vmem:[#allocation41_spill] sm:$0xff] }
 0x4b3   :  { %18569 = vst [vmem:[#allocation37_spill] sm:$0xff] %v14362_v56  ;;  %18570 = vst [vmem:[#allocation34_spill] sm:$0xff] %v14364_v54  ;;  %v18581_v56 = vld [vmem:[#allocation33_spill] sm:$0xff]  ;;  %v18582_v54 = vld [vmem:[#allocation60_spill] sm:$0xff]  ;;  %v7174_v2 = vpop.f32.mrf.mxu0 }
 0x4b4   :  { %18571 = vst [vmem:[#allocation221_spill] sm:$0xff] %v14369_v40  ;;  %18572 = vst [vmem:[#allocation222_spill] sm:$0xff] %v14373_v42  ;;  %v18578_v42 = vld [vmem:[#allocation38_spill] sm:$0xff]  ;;  %v18580_v40 = vld [vmem:[#allocation36_spill] sm:$0xff]  ;;  %7237 = vrot.lane.b32.xlu1 %v7170_v20, %s11988_s27 }
 0x4b5   :  { %18573 = vst [vmem:[#allocation223_spill] sm:$0xff] %v14377_v24  ;;  %18574 = vst [vmem:[#allocation224_spill] sm:$0xff] %v14379_v35  ;;  %v2304_v24 = vmul.f32 %v14215_v8, %v2243_v31  ;;  %v3503_v0 = vsel %vm255_vm6, %v18581_v56, %v18580_v40  ;;  %v3519_v31 = vsel %vm255_vm6, %v18580_v40, %v18581_v56  ;;  %v18587_v56 = vld [vmem:[#allocation63_spill] sm:$0xff] }
 0x4b6   :  { %18575 = vst [vmem:[#allocation225_spill] sm:$0xff] %v14383_v48  ;;  %18576 = vst [vmem:[#allocation226_spill] sm:$0xff] %v14387_v1  ;;  %v18577_v48 = vld [vmem:[#allocation42_spill] sm:$0xff]  ;;  %v18579_v1 = vld [vmem:[#allocation31_spill] sm:$0xff]  ;;  %v14423_v35 = vmul.f32 %v14199_v46, %v18582_v54  ;;  %v14440_v40 = vmul.f32 %v14202_v49, %v18587_v56  ;;  %v14442_v46 = vpop.permute.xlu0 %5929  ;;  %v14455_v49 = vpop.f32.mrf.mxu1  ;;  %v14461_v56 = vmul.f32 %v14230_v11, %v3503_v0  ;;  %5322 = vrot.lane.b32.xlu0 %v14079_v59, %s11970_s2 }
 0x4b7   :  { %v2228_v33 = vsel %vm207_vm8, %v18578_v42, %v18577_v48  ;;  %v2244_v36 = vsel %vm207_vm8, %v18577_v48, %v18578_v42  ;;  %v14411_v12 = vadd.f32 %v2302_v28, %v18579_v1  ;;  %v14425_v42 = vpop.permute.xlu1 %4138  ;;  %v14428_v48 = vadd.f32 %v2303_v62, %v18579_v1  ;;  %v18585_v28 = vld [vmem:[#allocation45_spill] sm:$0xff]  ;;  %18589 = vst [vmem:[#allocation36_spill] sm:$0xff] %v14442_v46  ;;  %v18590_v54 = vld [vmem:[#allocation39_spill] sm:$0xff] }
 0x4b8   :  { %18583 = vst [vmem:[#allocation42_spill] sm:$0xff] %v14423_v35  ;;  %18584 = vst [vmem:[#allocation38_spill] sm:$0xff] %v14425_v42  ;;  %v2229_v39 = vsel %vm207_vm8, %v18586_v23, %v18585_v28  ;;  %v2245_v21 = vsel %vm207_vm8, %v18585_v28, %v18586_v23  ;;  %v18591_v35 = vld [vmem:[#allocation35_spill] sm:$0xff]  ;;  %v2306_v42 = vmul.f32 %v14215_v8, %v2244_v36  ;;  %v18594_v36 = vld [vmem:[#allocation46_spill] sm:$0xff]  ;;  %6542 = vrot.lane.b32.xlu1 %v14123_v22, %s11991_s14 }
 0x4b9   :  { %18588 = vst [vmem:[#allocation31_spill] sm:$0xff] %v14440_v40  ;;  %v3504_v62 = vsel %vm255_vm6, %v18591_v35, %v18590_v54  ;;  %v3520_v1 = vsel %vm255_vm6, %v18590_v54, %v18591_v35  ;;  %v2307_v28 = vmul.f32 %v14218_v45, %v2228_v33  ;;  %v14458_v23 = vmul.f32 %v14227_v55, %v3519_v31  ;;  %v18592_v40 = vld [vmem:[#allocation32_spill] sm:$0xff]  ;;  %v18593_v33 = vld [vmem:[#allocation50_spill] sm:$0xff] }
 0x4ba   :  { %v14464_v46 = vadd.f32 %v2304_v24, %v18592_v40  ;;  %v14467_v16 = vadd.f32 %v2305_v5, %v18592_v40  ;;  %v2308_v35 = vmul.f32 %v14215_v8, %v2245_v21  ;;  %v2309_v20 = vmul.f32 %v14218_v45, %v2229_v39  ;;  %v18596_v21 = vld [vmem:[#allocation44_spill] sm:$0xff]  ;;  %v14497_v7 = vpop.permute.xlu0 %4140  ;;  %7239 = vrot.lane.b32.xlu0 %v7174_v2, %s11988_s27  ;;  %v18607_v2 = vld [vmem:[#allocation54_spill] sm:$0xff] }
 0x4bb   :  { %v2230_v31 = vsel %vm207_vm8, %v18594_v36, %v18593_v33  ;;  %v2246_v24 = vsel %vm207_vm8, %v18593_v33, %v18594_v36  ;;  %v14481_v0 = vpop.permute.xlu1 %5959  ;;  %v14484_v5 = vmul.f32 %v14227_v55, %v3520_v1  ;;  %v14487_v59 = vmul.f32 %v14230_v11, %v3504_v62  ;;  %v18597_v39 = vld [vmem:[#allocation40_spill] sm:$0xff]  ;;  %18598 = vst [vmem:[#allocation60_spill] sm:$0xff] %v14497_v7  ;;  %v18599_v33 = vld [vmem:[#allocation30_spill] sm:$0xff]  ;;  %v18600_v62 = vld [vmem:[#allocation53_spill] sm:$0xff] }
 0x4bc   :  { %18595 = vst [vmem:[#allocation33_spill] sm:$0xff] %v14481_v0  ;;  %v3505_v40 = vsel %vm255_vm6, %v18597_v39, %v18596_v21  ;;  %v3521_v54 = vsel %vm255_vm6, %v18596_v21, %v18597_v39  ;;  %v14500_v36 = vadd.f32 %v2306_v42, %v18599_v33  ;;  %v14503_v1 = vadd.f32 %v2307_v28, %v18599_v33  ;;  %v18601_v0 = vld [vmem:[#allocation49_spill] sm:$0xff]  ;;  %v14515_v21 = vpop.f32.mrf.mxu1  ;;  %v18602_v42 = vld [vmem:[#allocation47_spill] sm:$0xff] }
 0x4bd   :  { %v2231_v17 = vsel %vm207_vm8, %v18601_v0, %v18600_v62  ;;  %v2247_v41 = vsel %vm207_vm8, %v18600_v62, %v18601_v0  ;;  %v18603_v39 = vld [vmem:[#allocation43_spill] sm:$0xff]  ;;  %v2310_v7 = vmul.f32 %v14215_v8, %v2246_v24  ;;  %v2311_v0 = vmul.f32 %v14218_v45, %v2230_v31  ;;  %6574 = vrot.lane.b32.xlu1 %v14133_v15, %s11991_s14 }
 0x4be   :  { %v3506_v28 = vsel %vm255_vm6, %v18603_v39, %v18602_v42  ;;  %v3522_v33 = vsel %vm255_vm6, %v18602_v42, %v18603_v39  ;;  %v14529_v22 = vmul.f32 %v14227_v55, %v3521_v54  ;;  %v14532_v62 = vmul.f32 %v14230_v11, %v3505_v40  ;;  %v18606_v42 = vld [vmem:[#allocation58_spill] sm:$0xff]  ;;  %v14552_v40 = vpop.permute.xlu0 %5961  ;;  %6544 = vrot.lane.b32.xlu0 %v14141_v63, %s11991_s14  ;;  %v18614_v15 = vld [vmem:[#allocation55_spill] sm:$0xff] }
 0x4bf   :  { %v14535_v4 = vadd.f32 %v2308_v35, %v18604_v38  ;;  %v14538_v3 = vadd.f32 %v2309_v20, %v18604_v38  ;;  %v14540_v18 = vpop.permute.xlu1 %5260  ;;  %v2312_v24 = vmul.f32 %v14215_v8, %v2247_v41  ;;  %v2313_v31 = vmul.f32 %v14218_v45, %v2231_v17  ;;  %18608 = vst [vmem:[#allocation41_spill] sm:$0xff] %v14552_v40  ;;  %v18609_v41 = vld [vmem:[#allocation52_spill] sm:$0xff]  ;;  %v18612_v40 = vld [vmem:[#allocation62_spill] sm:$0xff] }
 0x4c0   :  { %18605 = vst [vmem:[#allocation45_spill] sm:$0xff] %v14540_v18  ;;  %v2232_v54 = vsel %vm207_vm8, %v18607_v2, %v18606_v42  ;;  %v2248_v35 = vsel %vm207_vm8, %v18606_v42, %v18607_v2  ;;  %v14555_v38 = vmul.f32 %v14227_v55, %v3522_v33  ;;  %v14558_v20 = vmul.f32 %v14230_v11, %v3506_v28  ;;  %v18610_v17 = vld [vmem:[#allocation48_spill] sm:$0xff]  ;;  %v14570_v42 = vpop.f32.mrf.mxu1  ;;  %v18611_v33 = vld [vmem:[#allocation29_spill] sm:$0xff] }
 0x4c1   :  { %v3507_v39 = vsel %vm255_vm6, %v18610_v17, %v18609_v41  ;;  %v3523_v18 = vsel %vm255_vm6, %v18609_v41, %v18610_v17  ;;  %v14573_v2 = vadd.f32 %v2310_v7, %v18611_v33  ;;  %v14576_v28 = vadd.f32 %v2311_v0, %v18611_v33  ;;  %v18615_v17 = vld [vmem:[#allocation51_spill] sm:$0xff]  ;;  %6546 = vrot.lane.b32.xlu1 %v14159_v52, %s11991_s14  ;;  %v18625_v52 = vld [vmem:[#allocation26_spill] sm:$0xff] }
 0x4c2   :  { %v2233_v27 = vsel %vm207_vm8, %v18613_v26, %v18612_v40  ;;  %v2249_v41 = vsel %vm207_vm8, %v18612_v40, %v18613_v26  ;;  %v3508_v7 = vsel %vm255_vm6, %v18615_v17, %v18614_v15  ;;  %v3524_v0 = vsel %vm255_vm6, %v18614_v15, %v18615_v17  ;;  %v18617_v40 = vld [vmem:[#allocation18_spill] sm:$0xff]  ;;  %v14612_v34 = vpop.permute.xlu0 %5262  ;;  %v18619_v15 = vld [vmem:[#allocation61_spill] sm:$0xff]  ;;  %6576 = vrot.lane.b32.xlu0 %v14151_v9, %s11991_s14 }
 0x4c3   :  { %v2314_v33 = vmul.f32 %v14215_v8, %v2248_v35  ;;  %v2315_v30 = vmul.f32 %v14218_v45, %v2232_v54  ;;  %v14598_v57 = vpop.permute.xlu1 %5292  ;;  %v14601_v26 = vmul.f32 %v14227_v55, %v3523_v18  ;;  %v14604_v63 = vmul.f32 %v14230_v11, %v3507_v39  ;;  %18618 = vst [vmem:[#allocation39_spill] sm:$0xff] %v14612_v34  ;;  %v18620_v35 = vld [vmem:[#allocation56_spill] sm:$0xff]  ;;  %v18623_v34 = vld [vmem:[#allocation70_spill] sm:$0xff] }
 0x4c4   :  { %18616 = vst [vmem:[#allocation63_spill] sm:$0xff] %v14598_v57  ;;  %v14607_v58 = vadd.f32 %v2312_v24, %v18617_v40  ;;  %v14610_v25 = vadd.f32 %v2313_v31, %v18617_v40  ;;  %v3509_v54 = vsel %vm255_vm6, %v18620_v35, %v18619_v15  ;;  %v3525_v18 = vsel %vm255_vm6, %v18619_v15, %v18620_v35  ;;  %v14626_v31 = vpop.f32.mrf.mxu1  ;;  %v18624_v57 = vld [vmem:[#allocation64_spill] sm:$0xff] }
 0x4c5   :  { %v2316_v39 = vmul.f32 %v14215_v8, %v2249_v41  ;;  %v2317_v24 = vmul.f32 %v14218_v45, %v2233_v27  ;;  %v14629_v17 = vmul.f32 %v14227_v55, %v3524_v0  ;;  %v14632_v40 = vmul.f32 %v14230_v11, %v3508_v7  ;;  %v18626_v7 = vld [vmem:[#allocation74_spill] sm:$0xff]  ;;  %v18627_v35 = vld [vmem:[#allocation68_spill] sm:$0xff]  ;;  %6578 = vrot.lane.b32.xlu1 %v14169_v53, %s11991_s14 }
 0x4c6   :  { %v2234_v15 = vsel %vm207_vm8, %v18624_v57, %v18623_v34  ;;  %v2250_v27 = vsel %vm207_vm8, %v18623_v34, %v18624_v57  ;;  %v14645_v41 = vadd.f32 %v2314_v33, %v18625_v52  ;;  %v14648_v0 = vadd.f32 %v2315_v30, %v18625_v52  ;;  %v18631_v30 = vld [vmem:[#allocation65_spill] sm:$0xff]  ;;  %v18632_v33 = vld [vmem:[#allocation59_spill] sm:$0xff]  ;;  %v14674_v51 = vpop.permute.xlu0 %5294  ;;  %6548 = vrot.lane.b32.xlu0 %v14177_v32, %s11991_s14 }
 0x4c7   :  { %18621 = vst [vmem:[#allocation35_spill] sm:$0xff] %v14629_v17  ;;  %18622 = vst [vmem:[#allocation32_spill] sm:$0xff] %v14632_v40  ;;  %v2235_v60 = vsel %vm207_vm8, %v18627_v35, %v18626_v7  ;;  %v2251_v29 = vsel %vm207_vm8, %v18626_v7, %v18627_v35  ;;  %v14658_v34 = vpop.permute.xlu1 %5264  ;;  %v14661_v9 = vmul.f32 %v14227_v55, %v3525_v18  ;;  %v18634_v7 = vld [vmem:[#allocation28_spill] sm:$0xff]  ;;  %v18645_v32 = vld [vmem:[#allocation71_spill] sm:$0xff] }
 0x4c8   :  { %18628 = vst [vmem:[#allocation50_spill] sm:$0xff] %v14658_v34  ;;  %v14664_v57 = vmul.f32 %v14230_v11, %v3509_v54  ;;  %v3510_v52 = vsel %vm255_vm6, %v18632_v33, %v18631_v30  ;;  %v3526_v13 = vsel %vm255_vm6, %v18631_v30, %v18632_v33  ;;  %18633 = vst [vmem:[#allocation40_spill] sm:$0xff] %v14674_v51  ;;  %v14689_v30 = vpop.f32.mrf.mxu1  ;;  %v18637_v51 = vld [vmem:[#allocation80_spill] sm:$0xff] }
 0x4c9   :  { %18629 = vst [vmem:[#allocation46_spill] sm:$0xff] %v14661_v9  ;;  %v14677_v35 = vadd.f32 %v2316_v39, %v18634_v7  ;;  %v14680_v18 = vadd.f32 %v2317_v24, %v18634_v7  ;;  %v2318_v54 = vmul.f32 %v14215_v8, %v2250_v27  ;;  %v2319_v34 = vmul.f32 %v14218_v45, %v2234_v15  ;;  %v18638_v24 = vld [vmem:[#allocation76_spill] sm:$0xff]  ;;  %v18642_v7 = vld [vmem:[#allocation67_spill] sm:$0xff] }
 0x4ca   :  { %18630 = vst [vmem:[#allocation44_spill] sm:$0xff] %v14664_v57  ;;  %v10972_v57 = vld [vmem:[%s18032_s6 + $0x6] sm:$0x3]  ;;  %v2320_v33 = vmul.f32 %v14215_v8, %v2251_v29  ;;  %v2321_v39 = vmul.f32 %v14218_v45, %v2235_v60  ;;  %v2236_v27 = vsel %vm207_vm8, %v18638_v24, %v18637_v51  ;;  %v2252_v15 = vsel %vm207_vm8, %v18637_v51, %v18638_v24  ;;  %v18641_v60 = vld [vmem:[#allocation73_spill] sm:$0xff]  ;;  %v14733_v40 = vpop.permute.xlu0 %5266 }
 0x4cb   :  { %18635 = vst [vmem:[#allocation30_spill] sm:$0xff] %v14677_v35  ;;  %18636 = vst [vmem:[#allocation53_spill] sm:$0xff] %v14680_v18  ;;  %v14704_v53 = vmul.f32 %v14227_v55, %v3526_v13  ;;  %v14707_v29 = vmul.f32 %v14230_v11, %v3510_v52  ;;  %v3511_v9 = vsel %vm255_vm6, %v18642_v7, %v18641_v60  ;;  %v14717_v51 = vpop.permute.xlu1 %5296  ;;  %v18644_v24 = vld [vmem:[#allocation77_spill] sm:$0xff]  ;;  %6550 = vrot.lane.b32.xlu1 %v14210_v10, %s11991_s14 }
 0x4cc   :  { %v3527_v18 = vsel %vm255_vm6, %v18641_v60, %v18642_v7  ;;  %18643 = vst [vmem:[#allocation43_spill] sm:$0xff] %v14717_v51  ;;  %v3512_v13 = vsel %vm255_vm6, %v18645_v32, %v18644_v24  ;;  %v3528_v52 = vsel %vm255_vm6, %v18644_v24, %v18645_v32  ;;  %18648 = vst [vmem:[#allocation54_spill] sm:$0xff] %v14733_v40  ;;  %v18649_v60 = vld [vmem:[#allocation24_spill] sm:$0xff]  ;;  %v11119_v24 = vld [vmem:[%s18032_s6 + $0xc] sm:$0x3]  ;;  %6580 = vrot.lane.b32.xlu0 %v14190_v61, %s11991_s14 }
 0x4cd   :  { %18639 = vst [vmem:[#allocation49_spill] sm:$0xff] %v14704_v53  ;;  %18640 = vst [vmem:[#allocation47_spill] sm:$0xff] %v14707_v29  ;;  %v14728_v29 = vrot.slane %v10972_v57, %v18535_v44  ;;  %v14731_v53 = vrot.slane %v10972_v57, %v18536_v6  ;;  %v14736_v7 = vadd.f32 %v2318_v54, %v18649_v60  ;;  %v14748_v57 = vpop.f32.mrf.mxu1  ;;  %v18656_v40 = vld [vmem:[#allocation79_spill] sm:$0xff]  ;;  %v18659_v61 = vld [vmem:[#allocation84_spill] sm:$0xff] }
 0x4ce   :  { %v14739_v51 = vadd.f32 %v2319_v34, %v18649_v60  ;;  %v2322_v17 = vmul.f32 %v14215_v8, %v2252_v15  ;;  %v2323_v35 = vmul.f32 %v14218_v45, %v2236_v27  ;;  %v14751_v32 = vmul.f32 %v14227_v55, %v3527_v18  ;;  %v18652_v34 = vld [vmem:[#allocation27_spill] sm:$0xff] }
 0x4cf   :  { %18646 = vst [vmem:[#allocation17_spill] sm:$0xff] %v14728_v29  ;;  %18647 = vst [vmem:[#allocation58_spill] sm:$0xff] %v14731_v53  ;;  %v14754_v54 = vmul.f32 %v14230_v11, %v3511_v9  ;;  %v14757_v60 = vadd.f32 %v2320_v33, %v18652_v34  ;;  %v14760_v27 = vadd.f32 %v2321_v39, %v18652_v34  ;;  %v18655_v18 = vld [vmem:[#allocation83_spill] sm:$0xff]  ;;  %v14778_v39 = vpop.permute.xlu1 %5268  ;;  %v18658_v34 = vld [vmem:[#allocation88_spill] sm:$0xff]  ;;  %6582 = vrot.lane.b32.xlu1 %v14256_v37, %s11991_s14 }
 0x4d0   :  { %18650 = vst [vmem:[#allocation52_spill] sm:$0xff] %v14751_v32  ;;  %v14765_v15 = vmul.f32 %v14227_v55, %v3528_v52  ;;  %v14768_v10 = vmul.f32 %v14230_v11, %v3512_v13  ;;  %v2237_v9 = vsel %vm207_vm8, %v18656_v40, %v18655_v18  ;;  %v2253_v33 = vsel %vm207_vm8, %v18655_v18, %v18656_v40  ;;  %v18663_v40 = vld [vmem:[#allocation22_spill] sm:$0xff]  ;;  %v18669_v37 = vld [vmem:[#allocation85_spill] sm:$0xff] }
 0x4d1   :  { %18651 = vst [vmem:[#allocation48_spill] sm:$0xff] %v14754_v54  ;;  %18657 = vst [vmem:[#allocation57_spill] sm:$0xff] %v14778_v39  ;;  %v2238_v52 = vsel %vm207_vm8, %v18659_v61, %v18658_v34  ;;  %v2254_v13 = vsel %vm207_vm8, %v18658_v34, %v18659_v61  ;;  %v14789_v53 = vrot.slane %v11119_v24, %v18535_v44  ;;  %v18666_v54 = vld [vmem:[#allocation78_spill] sm:$0xff]  ;;  %v18667_v61 = vld [vmem:[#allocation91_spill] sm:$0xff]  ;;  %6552 = vrot.lane.b32.xlu0 %v14328_v43, %s11991_s14 }
 0x4d2   :  { %18653 = vst [vmem:[#allocation29_spill] sm:$0xff] %v14765_v15  ;;  %18654 = vst [vmem:[#allocation62_spill] sm:$0xff] %v14768_v10  ;;  %v14792_v29 = vrot.slane %v11119_v24, %v18536_v6  ;;  %v14794_v10 = vpop.permute.xlu0 %5298  ;;  %v14797_v18 = vadd.f32 %v2322_v17, %v18663_v40  ;;  %v14800_v39 = vadd.f32 %v2323_v35, %v18663_v40  ;;  %v18665_v15 = vld [vmem:[#allocation82_spill] sm:$0xff]  ;;  %v14812_v24 = vpop.f32.mrf.mxu1  ;;  %v18668_v40 = vld [vmem:[#allocation87_spill] sm:$0xff] }
 0x4d3   :  { %18660 = vst [vmem:[#allocation55_spill] sm:$0xff] %v14789_v53  ;;  %18662 = vst [vmem:[#allocation18_spill] sm:$0xff] %v14794_v10  ;;  %v3513_v32 = vsel %vm255_vm6, %v18666_v54, %v18665_v15  ;;  %v3529_v34 = vsel %vm255_vm6, %v18665_v15, %v18666_v54  ;;  %v2324_v17 = vmul.f32 %v14215_v8, %v2253_v33  ;;  %v18670_v54 = vld [vmem:[#allocation81_spill] sm:$0xff]  ;;  %v14836_v6 = vpop.permute.xlu1 %7185  ;;  %v18675_v44 = vld [vmem:[#allocation86_spill] sm:$0xff]  ;;  %6554 = vrot.lane.b32.xlu1 %v14455_v49, %s11991_s14 }
 0x4d4   :  { %18661 = vst [vmem:[#allocation51_spill] sm:$0xff] %v14792_v29  ;;  %18664 = vst [vmem:[#allocation61_spill] sm:$0xff] %v14800_v39  ;;  %v2325_v35 = vmul.f32 %v14218_v45, %v2237_v9  ;;  %v2239_v10 = vsel %vm207_vm8, %v18668_v40, %v18667_v61  ;;  %v2255_v29 = vsel %vm207_vm8, %v18667_v61, %v18668_v40  ;;  %v18674_v40 = vld [vmem:[#allocation90_spill] sm:$0xff] }
 0x4d5   :  { %v3514_v15 = vsel %vm255_vm6, %v18670_v54, %v18669_v37  ;;  %v3530_v9 = vsel %vm255_vm6, %v18669_v37, %v18670_v54  ;;  %v2326_v33 = vmul.f32 %v14215_v8, %v2254_v13  ;;  %v2327_v53 = vmul.f32 %v14218_v45, %v2238_v52  ;;  %18671 = vst [vmem:[#allocation56_spill] sm:$0xff] %v14836_v6  ;;  %v18677_v54 = vld [vmem:[#allocation96_spill] sm:$0xff] }
 0x4d6   :  { %v14839_v61 = vmul.f32 %v14227_v55, %v3529_v34  ;;  %v14842_v43 = vmul.f32 %v14230_v11, %v3513_v32  ;;  %v3515_v39 = vsel %vm255_vm6, %v18675_v44, %v18674_v40  ;;  %v3531_v13 = vsel %vm255_vm6, %v18674_v40, %v18675_v44  ;;  %v14852_v37 = vpop.permute.xlu0 %5270  ;;  %v18678_v6 = vld [vmem:[#allocation92_spill] sm:$0xff]  ;;  %v14866_v44 = vpop.f32.mrf.mxu1  ;;  %v18679_v40 = vld [vmem:[#allocation25_spill] sm:$0xff]  ;;  %6584 = vrot.lane.b32.xlu0 %v14397_v14, %s11991_s14 }
 0x4d7   :  { %18676 = vst [vmem:[#allocation26_spill] sm:$0xff] %v14852_v37  ;;  %v2328_v52 = vmul.f32 %v14215_v8, %v2255_v29  ;;  %v2329_v34 = vmul.f32 %v14218_v45, %v2239_v10  ;;  %v2240_v32 = vsel %vm207_vm8, %v18678_v6, %v18677_v54  ;;  %v14869_v37 = vadd.f32 %v2324_v17, %v18679_v40 }
 0x4d8   :  { %18672 = vst [vmem:[#allocation70_spill] sm:$0xff] %v14839_v61  ;;  %18673 = vst [vmem:[#allocation64_spill] sm:$0xff] %v14842_v43  ;;  %v2256_v43 = vsel %vm207_vm8, %v18677_v54, %v18678_v6  ;;  %v14872_v29 = vadd.f32 %v2325_v35, %v18679_v40  ;;  %v14875_v10 = vmul.f32 %v14227_v55, %v3530_v9  ;;  %v18684_v6 = vld [vmem:[#allocation20_spill] sm:$0xff]  ;;  %v18688_v35 = vld [vmem:[#allocation89_spill] sm:$0xff]  ;;  %6586 = vrot.lane.b32.xlu1 %v14515_v21, %s11991_s14 }
 0x4d9   :  { %18680 = vst [vmem:[#allocation74_spill] sm:$0xff] %v14869_v37  ;;  %v14878_v61 = vmul.f32 %v14230_v11, %v3514_v15  ;;  %v14883_v54 = vadd.f32 %v2326_v33, %v18684_v6  ;;  %v14886_v49 = vadd.f32 %v2327_v53, %v18684_v6  ;;  %v14889_v17 = vmul.f32 %v14227_v55, %v3531_v13  ;;  %v18689_v40 = vld [vmem:[#allocation93_spill] sm:$0xff]  ;;  %v18693_v53 = vld [vmem:[#allocation102_spill] sm:$0xff] }
 0x4da   :  { %18681 = vst [vmem:[#allocation68_spill] sm:$0xff] %v14872_v29  ;;  %18682 = vst [vmem:[#allocation65_spill] sm:$0xff] %v14875_v10  ;;  %v3532_v9 = vsel %vm255_vm6, %v18689_v40, %v18688_v35  ;;  %v14895_v10 = vpop.permute.xlu1 %5300  ;;  %v14898_v15 = vmul.f32 %v14230_v11, %v3515_v39  ;;  %v2330_v14 = vmul.f32 %v14215_v8, %v2256_v43  ;;  %v14906_v6 = vpop.permute.xlu0 %7187  ;;  %6556 = vrot.lane.b32.xlu0 %v14570_v42, %s11991_s14 }
 0x4db   :  { %18683 = vst [vmem:[#allocation59_spill] sm:$0xff] %v14878_v61  ;;  %18685 = vst [vmem:[#allocation28_spill] sm:$0xff] %v14883_v54  ;;  %v2331_v33 = vmul.f32 %v14218_v45, %v2240_v32  ;;  %v18692_v61 = vld [vmem:[#allocation100_spill] sm:$0xff]  ;;  %v3516_v39 = vsel %vm255_vm6, %v18688_v35, %v18689_v40  ;;  %v6519_v32 = vpop.f32.mrf.mxu1  ;;  %v18703_v40 = vld [vmem:[#allocation99_spill] sm:$0xff] }
 0x4dc   :  { %18686 = vst [vmem:[#allocation80_spill] sm:$0xff] %v14886_v49  ;;  %18687 = vst [vmem:[#allocation76_spill] sm:$0xff] %v14889_v17  ;;  %v2880_v13 = vsel %vm231_vm9, %v18693_v53, %v18692_v61  ;;  %v18695_v17 = vld [vmem:[#allocation23_spill] sm:$0xff]  ;;  %v2864_v43 = vsel %vm231_vm9, %v18692_v61, %v18693_v53  ;;  %v14957_v42 = vmul.f32 %v14230_v11, %v3516_v39  ;;  %6558 = vrot.lane.b32.xlu1 %v14689_v30, %s11991_s14 }
 0x4dd   :  { %18690 = vst [vmem:[#allocation73_spill] sm:$0xff] %v14895_v10  ;;  %18691 = vst [vmem:[#allocation67_spill] sm:$0xff] %v14898_v15  ;;  %v14909_v49 = vadd.f32 %v2328_v52, %v18695_v17  ;;  %v14912_v54 = vadd.f32 %v2329_v34, %v18695_v17  ;;  %v14925_v52 = vmul.f32 %v14227_v55, %v3532_v9  ;;  %v18700_v34 = vld [vmem:[#allocation94_spill] sm:$0xff]  ;;  %v18701_v10 = vld [vmem:[#allocation105_spill] sm:$0xff] }
 0x4de   :  { %18694 = vst [vmem:[#allocation77_spill] sm:$0xff] %v14906_v6  ;;  %v18699_v6 = vld [vmem:[#allocation98_spill] sm:$0xff]  ;;  %v18702_v15 = vld [vmem:[#allocation103_spill] sm:$0xff]  ;;  %v14966_v29 = vpop.permute.xlu0 %5302  ;;  %6588 = vrot.lane.b32.xlu0 %v14626_v31, %s11991_s14 }
 0x4df   :  { %18696 = vst [vmem:[#allocation71_spill] sm:$0xff] %v14909_v49  ;;  %18697 = vst [vmem:[#allocation24_spill] sm:$0xff] %v14912_v54  ;;  %v3517_v17 = vsel %vm255_vm6, %v18700_v34, %v18699_v6  ;;  %v2865_v35 = vsel %vm231_vm9, %v18702_v15, %v18701_v10  ;;  %v2881_v61 = vsel %vm231_vm9, %v18701_v10, %v18702_v15  ;;  %v18704_v9 = vld [vmem:[#allocation95_spill] sm:$0xff]  ;;  %v14954_v15 = vpop.permute.xlu1 %7217 }
 0x4e0   :  { %18698 = vst [vmem:[#allocation27_spill] sm:$0xff] %v14925_v52  ;;  %v3533_v21 = vsel %vm255_vm6, %v18699_v6, %v18700_v34  ;;  %v2241_v53 = vsel %vm207_vm8, %v18704_v9, %v18703_v40  ;;  %v2257_v52 = vsel %vm207_vm8, %v18703_v40, %v18704_v9  ;;  %v2941_v10 = vmul.f32 %v14390_v19, %v2880_v13  ;;  %v18706_v54 = vld [vmem:[#allocation19_spill] sm:$0xff]  ;;  %v18708_v13 = vld [vmem:[#allocation106_spill] sm:$0xff]  ;;  %v18709_v9 = vld [vmem:[#allocation104_spill] sm:$0xff] }
 0x4e1   :  { %18705 = vst [vmem:[#allocation83_spill] sm:$0xff] %v14954_v15  ;;  %v14960_v49 = vadd.f32 %v2330_v14, %v18706_v54  ;;  %v14963_v6 = vadd.f32 %v2331_v33, %v18706_v54  ;;  %v2942_v34 = vmul.f32 %v14393_v50, %v2864_v43  ;;  %18707 = vst [vmem:[#allocation79_spill] sm:$0xff] %v14966_v29  ;;  %v14980_v54 = vpop.f32.mrf.mxu1  ;;  %v18712_v15 = vld [vmem:[#allocation101_spill] sm:$0xff]  ;;  %6590 = vrot.lane.b32.xlu1 %v14748_v57, %s11991_s14 }
 0x4e2   :  { %v2943_v37 = vmul.f32 %v14390_v19, %v2881_v61  ;;  %v2944_v40 = vmul.f32 %v14393_v50, %v2865_v35  ;;  %v2866_v39 = vsel %vm231_vm9, %v18709_v9, %v18708_v13  ;;  %v2882_v14 = vsel %vm231_vm9, %v18708_v13, %v18709_v9  ;;  %v18713_v13 = vld [vmem:[#allocation97_spill] sm:$0xff]  ;;  %v18714_v9 = vld [vmem:[#allocation107_spill] sm:$0xff]  ;;  %6560 = vrot.lane.b32.xlu0 %v14812_v24, %s11991_s14 }
 0x4e3   :  { %v14983_v33 = vmul.f32 %v14227_v55, %v3533_v21  ;;  %v14986_v43 = vmul.f32 %v14230_v11, %v3517_v17  ;;  %v2332_v35 = vmul.f32 %v14215_v8, %v2257_v52  ;;  %v2333_v61 = vmul.f32 %v14218_v45, %v2241_v53  ;;  %v18715_v29 = vld [vmem:[#allocation109_spill] sm:$0xff]  ;;  %v15005_v8 = vpop.permute.xlu1 %5272 }
 0x4e4   :  { %v3518_v30 = vsel %vm255_vm6, %v18713_v13, %v18712_v15  ;;  %v3534_v21 = vsel %vm255_vm6, %v18712_v15, %v18713_v13  ;;  %v2973_v17 = vadd.f32 %v2941_v10, %v14411_v12  ;;  %v2883_v45 = vsel %vm231_vm9, %v18715_v29, %v18714_v9  ;;  %18716 = vst [vmem:[#allocation22_spill] sm:$0xff] %v15005_v8  ;;  %v18718_v15 = vld [vmem:[#allocation110_spill] sm:$0xff]  ;;  %v15017_v10 = vpop.permute.xlu0 %7219  ;;  %v18721_v57 = vld [vmem:[#allocation113_spill] sm:$0xff] }
 0x4e5   :  { %18710 = vst [vmem:[#allocation88_spill] sm:$0xff] %v14983_v33  ;;  %18711 = vst [vmem:[#allocation84_spill] sm:$0xff] %v14986_v43  ;;  %v2945_v31 = vmul.f32 %v14390_v19, %v2882_v14  ;;  %v2946_v52 = vmul.f32 %v14393_v50, %v2866_v39  ;;  %v2867_v53 = vsel %vm231_vm9, %v18714_v9, %v18715_v29  ;;  %v18717_v43 = vld [vmem:[#allocation108_spill] sm:$0xff]  ;;  %v6523_v29 = vpop.f32.mrf.mxu1  ;;  %v18720_v9 = vld [vmem:[#allocation21_spill] sm:$0xff]  ;;  %6562 = vrot.lane.b32.xlu1 %v6519_v32, %s11991_s14 }
 0x4e6   :  { %v2884_v12 = vsel %vm231_vm9, %v18718_v15, %v18717_v43  ;;  %18719 = vst [vmem:[#allocation82_spill] sm:$0xff] %v15017_v10  ;;  %v2974_v13 = vadd.f32 %v2942_v34, %v14428_v48  ;;  %v2975_v8 = vadd.f32 %v2943_v37, %v14464_v46  ;;  %v2976_v14 = vadd.f32 %v2944_v40, %v14467_v16  ;;  %v18722_v34 = vld [vmem:[#allocation111_spill] sm:$0xff] }
 0x4e7   :  { %v2868_v39 = vsel %vm231_vm9, %v18717_v43, %v18718_v15  ;;  %v15029_v33 = vadd.f32 %v2332_v35, %v18720_v9  ;;  %v15032_v10 = vadd.f32 %v2333_v61, %v18720_v9  ;;  %v15035_v48 = vmul.f32 %v14227_v55, %v3534_v21  ;;  %v15050_v43 = vpop.permute.xlu1 %7189  ;;  %6592 = vrot.lane.b32.xlu0 %v14866_v44, %s11991_s14 }
 0x4e8   :  { %v2947_v16 = vmul.f32 %v14390_v19, %v2883_v45  ;;  %v2948_v46 = vmul.f32 %v14393_v50, %v2867_v53  ;;  %v2949_v37 = vmul.f32 %v14390_v19, %v2884_v12  ;;  %v2869_v40 = vsel %vm231_vm9, %v18722_v34, %v18721_v57  ;;  %18723 = vst [vmem:[#allocation78_spill] sm:$0xff] %v15050_v43  ;;  %v15058_v45 = vpop.permute.xlu0 %5274 }
 0x4e9   :  { %v2885_v55 = vsel %vm231_vm9, %v18721_v57, %v18722_v34  ;;  %v15053_v35 = vmul.f32 %v14230_v11, %v3518_v30  ;;  %v2977_v24 = vadd.f32 %v2945_v31, %v14500_v36  ;;  %v2978_v61 = vadd.f32 %v2946_v52, %v14503_v1  ;;  %v6525_v30 = vpop.f32.mrf.mxu1  ;;  %v18724_v31 = vld [vmem:[#allocation114_spill] sm:$0xff]  ;;  %v18725_v52 = vld [vmem:[#allocation112_spill] sm:$0xff]  ;;  %6594 = vrot.lane.b32.xlu1 %v14980_v54, %s11991_s14 }
 0x4ea   :  { %v2950_v21 = vmul.f32 %v14393_v50, %v2868_v39  ;;  %v15061_v53 = vadd.f32 %v14458_v23, %v2973_v17  ;;  %v15064_v15 = vadd.f32 %v14461_v56, %v2974_v13  ;;  %v15067_v12 = vadd.f32 %v14484_v5, %v2975_v8  ;;  %v18726_v17 = vld [vmem:[#allocation115_spill] sm:$0xff]  ;;  %v18727_v8 = vld [vmem:[#allocation117_spill] sm:$0xff] }
 0x4eb   :  { %v15070_v11 = vadd.f32 %v14487_v59, %v2976_v14  ;;  %v2951_v36 = vmul.f32 %v14390_v19, %v2885_v55  ;;  %v2952_v1 = vmul.f32 %v14393_v50, %v2869_v40  ;;  %v2870_v23 = vsel %vm231_vm9, %v18725_v52, %v18724_v31  ;;  %v15092_v14 = vpop.permute.xlu1 %5304  ;;  %v6529_v57 = vpop.f32.mrf.mxu1  ;;  %v18731_v55 = vld [vmem:[#allocation119_spill] sm:$0xff]  ;;  %6564 = vrot.lane.b32.xlu0 %v6523_v29, %s11991_s14 }
 0x4ec   :  { %v2886_v56 = vsel %vm231_vm9, %v18724_v31, %v18725_v52  ;;  %v2979_v5 = vadd.f32 %v2947_v16, %v14535_v4  ;;  %v2980_v59 = vadd.f32 %v2948_v46, %v14538_v3  ;;  %v2981_v32 = vadd.f32 %v2949_v37, %v14573_v2  ;;  %v15105_v2 = vpop.permute.xlu0 %7191  ;;  %v18729_v46 = vld [vmem:[#allocation118_spill] sm:$0xff]  ;;  %v18730_v37 = vld [vmem:[#allocation116_spill] sm:$0xff] }
 0x4ed   :  { %v2887_v13 = vsel %vm231_vm9, %v18727_v8, %v18726_v17  ;;  %v2982_v39 = vadd.f32 %v2950_v21, %v14576_v28  ;;  %v2871_v44 = vsel %vm231_vm9, %v18726_v17, %v18727_v8  ;;  %v15100_v4 = vadd.f32 %v14529_v22, %v2977_v24  ;;  %18728 = vst [vmem:[#allocation91_spill] sm:$0xff] %v15105_v2  ;;  %v18732_v24 = vld [vmem:[#allocation121_spill] sm:$0xff]  ;;  %v18734_v52 = vld [vmem:[#allocation120_spill] sm:$0xff]  ;;  %v18736_v17 = vld [vmem:[#allocation30_spill] sm:$0xff] }
 0x4ee   :  { %v15103_v3 = vadd.f32 %v14532_v62, %v2978_v61  ;;  %v2953_v9 = vmul.f32 %v14390_v19, %v2886_v56  ;;  %v2954_v16 = vmul.f32 %v14393_v50, %v2870_v23  ;;  %v2872_v28 = vsel %vm231_vm9, %v18730_v37, %v18729_v46  ;;  %6566 = vrot.lane.b32.xlu1 %v6529_v57, %s11991_s14  ;;  %v18742_v57 = vld [vmem:[#allocation53_spill] sm:$0xff]  ;;  %v18776_v2 = vld [vmem:[#allocation139_spill] sm:$0xff] }
 0x4ef   :  { %v2888_v22 = vsel %vm231_vm9, %v18729_v46, %v18730_v37  ;;  %v2983_v62 = vadd.f32 %v2951_v36, %v14607_v58  ;;  %v2984_v34 = vadd.f32 %v2952_v1, %v14610_v25  ;;  %v2955_v40 = vmul.f32 %v14390_v19, %v2887_v13  ;;  %v15137_v25 = vpop.permute.xlu1 %7221  ;;  %6596 = vrot.lane.b32.xlu0 %v6525_v30, %s11991_s14 }
 0x4f0   :  { %v2889_v61 = vsel %vm231_vm9, %v18732_v24, %v18731_v55  ;;  %v2956_v21 = vmul.f32 %v14393_v50, %v2871_v44  ;;  %v15129_v31 = vadd.f32 %v14555_v38, %v2979_v5  ;;  %v15132_v54 = vadd.f32 %v14558_v20, %v2980_v59  ;;  %18733 = vst [vmem:[#allocation87_spill] sm:$0xff] %v15137_v25  ;;  %v18735_v38 = vld [vmem:[#allocation122_spill] sm:$0xff]  ;;  %v15149_v23 = vpop.permute.xlu0 %5306  ;;  %v18737_v44 = vld [vmem:[#allocation35_spill] sm:$0xff] }
 0x4f1   :  { %v15135_v58 = vadd.f32 %v14601_v26, %v2981_v32  ;;  %v2957_v36 = vmul.f32 %v14390_v19, %v2888_v22  ;;  %v2958_v1 = vmul.f32 %v14393_v50, %v2872_v28  ;;  %v2873_v29 = vsel %vm231_vm9, %v18731_v55, %v18732_v24  ;;  %v6531_v32 = vpop.f32.mrf.mxu1  ;;  %v18744_v55 = vld [vmem:[#allocation126_spill] sm:$0xff] }
 0x4f2   :  { %v2890_v20 = vsel %vm231_vm9, %v18735_v38, %v18734_v52  ;;  %v2985_v26 = vadd.f32 %v2953_v9, %v14645_v41  ;;  %v2986_v56 = vadd.f32 %v2954_v16, %v14648_v0  ;;  %v2959_v5 = vmul.f32 %v14390_v19, %v2889_v61  ;;  %v18738_v41 = vld [vmem:[#allocation32_spill] sm:$0xff]  ;;  %v18739_v9 = vld [vmem:[#allocation125_spill] sm:$0xff]  ;;  %v18740_v16 = vld [vmem:[#allocation123_spill] sm:$0xff]  ;;  %6598 = vrot.lane.b32.xlu1 %v6531_v32, %s11991_s14 }
 0x4f3   :  { %v15155_v59 = vadd.f32 %v14604_v63, %v2982_v39  ;;  %v2987_v8 = vadd.f32 %v2955_v40, %v18736_v17  ;;  %v2874_v13 = vsel %vm231_vm9, %v18734_v52, %v18735_v38  ;;  %v15164_v46 = vadd.f32 %v18737_v44, %v2983_v62  ;;  %v15180_v22 = vpop.permute.xlu1 %5276  ;;  %v18743_v40 = vld [vmem:[#allocation124_spill] sm:$0xff]  ;;  %v18746_v38 = vld [vmem:[#allocation46_spill] sm:$0xff] }
 0x4f4   :  { %v15167_v0 = vadd.f32 %v18738_v41, %v2984_v34  ;;  %v2960_v63 = vmul.f32 %v14393_v50, %v2873_v29  ;;  %v2961_v39 = vmul.f32 %v14390_v19, %v2890_v20  ;;  %v2875_v37 = vsel %vm231_vm9, %v18740_v16, %v18739_v9  ;;  %18741 = vst [vmem:[#allocation85_spill] sm:$0xff] %v15180_v22  ;;  %v15189_v61 = vpop.permute.xlu0 %7223  ;;  %v18747_v17 = vld [vmem:[#allocation44_spill] sm:$0xff]  ;;  %v18750_v44 = vld [vmem:[#allocation130_spill] sm:$0xff] }
 0x4f5   :  { %v2891_v28 = vsel %vm231_vm9, %v18739_v9, %v18740_v16  ;;  %v2988_v62 = vadd.f32 %v2956_v21, %v18742_v57  ;;  %v2989_v30 = vadd.f32 %v2957_v36, %v14736_v7  ;;  %v2990_v34 = vadd.f32 %v2958_v1, %v14739_v51  ;;  %18745 = vst [vmem:[#allocation81_spill] sm:$0xff] %v15189_v61  ;;  %v6533_v7 = vpop.f32.mrf.mxu1  ;;  %v18748_v1 = vld [vmem:[#allocation49_spill] sm:$0xff]  ;;  %v18752_v16 = vld [vmem:[#allocation47_spill] sm:$0xff]  ;;  %v18777_v61 = vld [vmem:[#allocation142_spill] sm:$0xff] }
 0x4f6   :  { %v2892_v24 = vsel %vm231_vm9, %v18744_v55, %v18743_v40  ;;  %v2991_v29 = vadd.f32 %v2959_v5, %v14757_v60  ;;  %v2962_v52 = vmul.f32 %v14393_v50, %v2874_v13  ;;  %v15194_v20 = vadd.f32 %v18746_v38, %v2985_v26  ;;  %6568 = vrot.lane.b32.xlu0 %v6533_v7, %s11991_s14  ;;  %v18749_v13 = vld [vmem:[#allocation127_spill] sm:$0xff]  ;;  %v18756_v57 = vld [vmem:[#allocation61_spill] sm:$0xff]  ;;  %v18758_v38 = vld [vmem:[#allocation132_spill] sm:$0xff] }
 0x4f7   :  { %v15197_v21 = vadd.f32 %v18747_v17, %v2986_v56  ;;  %v2963_v51 = vmul.f32 %v14390_v19, %v2891_v28  ;;  %v2964_v36 = vmul.f32 %v14393_v50, %v2875_v37  ;;  %v2876_v60 = vsel %vm231_vm9, %v18743_v40, %v18744_v55  ;;  %v15217_v9 = vpop.permute.xlu1 %7193  ;;  %v18759_v7 = vld [vmem:[#allocation29_spill] sm:$0xff] }
 0x4f8   :  { %v15207_v5 = vadd.f32 %v18748_v1, %v2987_v8  ;;  %v2992_v26 = vadd.f32 %v2960_v63, %v14760_v27  ;;  %v2993_v56 = vadd.f32 %v2961_v39, %v14797_v18  ;;  %v2965_v32 = vmul.f32 %v14390_v19, %v2892_v24  ;;  %18751 = vst [vmem:[#allocation90_spill] sm:$0xff] %v15217_v9  ;;  %v18753_v27 = vld [vmem:[#allocation52_spill] sm:$0xff]  ;;  %v15232_v28 = vpop.permute.xlu0 %5278  ;;  %v18757_v24 = vld [vmem:[#allocation129_spill] sm:$0xff]  ;;  %v6535_v1 = vpop.f32.mrf.mxu1 }
 0x4f9   :  { %v2893_v41 = vsel %vm231_vm9, %v18750_v44, %v18749_v13  ;;  %v2877_v8 = vsel %vm231_vm9, %v18749_v13, %v18750_v44  ;;  %v15224_v37 = vadd.f32 %v18752_v16, %v2988_v62  ;;  %v15227_v63 = vadd.f32 %v18753_v27, %v2989_v30  ;;  %v18754_v18 = vld [vmem:[#allocation48_spill] sm:$0xff]  ;;  %18755 = vst [vmem:[#allocation86_spill] sm:$0xff] %v15232_v28  ;;  %v18760_v30 = vld [vmem:[#allocation66_spill] sm:$0xff] }
 0x4fa   :  { %v15230_v39 = vadd.f32 %v18754_v18, %v2990_v34  ;;  %v2994_v40 = vadd.f32 %v2962_v52, %v18756_v57  ;;  %v2966_v55 = vmul.f32 %v14393_v50, %v2876_v60  ;;  %v2894_v17 = vsel %vm231_vm9, %v18758_v38, %v18757_v24  ;;  %5899 = vrot.lane.b32.xlu1 %v18760_v30, %s11990_s12  ;;  %v18761_v34 = vld [vmem:[#allocation74_spill] sm:$0xff]  ;;  %v18762_v44 = vld [vmem:[#allocation68_spill] sm:$0xff] }
 0x4fb   :  { %v15241_v62 = vadd.f32 %v18759_v7, %v2991_v29  ;;  %v2995_v13 = vadd.f32 %v2963_v51, %v18761_v34  ;;  %v2996_v16 = vadd.f32 %v2964_v36, %v18762_v44  ;;  %v2967_v52 = vmul.f32 %v14390_v19, %v2893_v41  ;;  %6600 = vrot.lane.b32.xlu0 %v6535_v1, %s11991_s14  ;;  %v18763_v27 = vld [vmem:[#allocation28_spill] sm:$0xff]  ;;  %v18764_v57 = vld [vmem:[#allocation62_spill] sm:$0xff]  ;;  %v15261_v36 = vpop.permute.xlu1 %5308  ;;  %v18768_v44 = vld [vmem:[#allocation133_spill] sm:$0xff] }
 0x4fc   :  { %v2878_v60 = vsel %vm231_vm9, %v18757_v24, %v18758_v38  ;;  %v2997_v29 = vadd.f32 %v2965_v32, %v18763_v27  ;;  %v2968_v18 = vmul.f32 %v14393_v50, %v2877_v8  ;;  %v15256_v7 = vadd.f32 %v18764_v57, %v2992_v26  ;;  %v18765_v30 = vld [vmem:[#allocation70_spill] sm:$0xff]  ;;  %18766 = vst [vmem:[#allocation96_spill] sm:$0xff] %v15261_v36  ;;  %v18767_v34 = vld [vmem:[#allocation136_spill] sm:$0xff]  ;;  %v18769_v8 = vld [vmem:[#allocation135_spill] sm:$0xff]  ;;  %v15276_v38 = vpop.permute.xlu0 %7195 }
 0x4fd   :  { %v15259_v51 = vadd.f32 %v18765_v30, %v2993_v56  ;;  %v2969_v41 = vmul.f32 %v14390_v19, %v2894_v17  ;;  %v2879_v24 = vsel %vm231_vm9, %v18768_v44, %v18767_v34  ;;  %v2895_v32 = vsel %vm231_vm9, %v18767_v34, %v18768_v44  ;;  %v18770_v26 = vld [vmem:[#allocation138_spill] sm:$0xff]  ;;  %18771 = vst [vmem:[#allocation92_spill] sm:$0xff] %v15276_v38  ;;  %v18772_v1 = vld [vmem:[#allocation80_spill] sm:$0xff]  ;;  %v18774_v34 = vld [vmem:[#allocation69_spill] sm:$0xff] }
 0x4fe   :  { %v4158_v56 = vsel %vm327_vm5, %v18770_v26, %v18769_v8  ;;  %v2998_v27 = vadd.f32 %v2966_v55, %v18772_v1  ;;  %v2970_v17 = vmul.f32 %v14393_v50, %v2878_v60  ;;  %v4142_v57 = vsel %vm327_vm5, %v18769_v8, %v18770_v26  ;;  %v18773_v30 = vld [vmem:[#allocation64_spill] sm:$0xff]  ;;  %5931 = vrot.lane.b32.xlu1 %v18774_v34, %s11990_s12  ;;  %v18775_v44 = vld [vmem:[#allocation71_spill] sm:$0xff]  ;;  %v18778_v1 = vld [vmem:[#allocation65_spill] sm:$0xff] }
 0x4ff   :  { %v15285_v9 = vadd.f32 %v18773_v30, %v2994_v40  ;;  %v2999_v28 = vadd.f32 %v2967_v52, %v18775_v44  ;;  %v4159_v55 = vsel %vm327_vm5, %v18777_v61, %v18776_v2  ;;  %v15295_v60 = vadd.f32 %v18778_v1, %v2995_v13  ;;  %v18779_v38 = vld [vmem:[#allocation59_spill] sm:$0xff]  ;;  %v11070_v40 = vld [vmem:[%s18032_s6 + $0xa] sm:$0x3]  ;;  %v18780_v8 = vld [vmem:[#allocation72_spill] sm:$0xff] }
 0x500   :  { %v15298_v22 = vadd.f32 %v18779_v38, %v2996_v16  ;;  %5901 = vrot.lane.b32.xlu0 %v18780_v8, %s11990_s12  ;;  %v2971_v52 = vmul.f32 %v14390_v19, %v2895_v32  ;;  %v2972_v26 = vmul.f32 %v14393_v50, %v2879_v24  ;;  %v18781_v30 = vld [vmem:[#allocation17_spill] sm:$0xff]  ;;  %v4143_v13 = vsel %vm327_vm5, %v18776_v2, %v18777_v61  ;;  %v15312_v16 = vpop.permute.xlu1 %7225  ;;  %v18783_v38 = vld [vmem:[#allocation24_spill] sm:$0xff]  ;;  %v18784_v36 = vld [vmem:[#allocation58_spill] sm:$0xff]  ;;  %v15320_v19 = vpop.permute.xlu0 %5310 }
 0x501   :  { %v4219_v34 = vmul.f32 %v18781_v30, %v4158_v56  ;;  %18782 = vst [vmem:[#allocation25_spill] sm:$0xff] %v15312_v16  ;;  %v3000_v44 = vadd.f32 %v2968_v18, %v18783_v38  ;;  %v3001_v1 = vadd.f32 %v2969_v41, %v14960_v49  ;;  %v4220_v43 = vmul.f32 %v18784_v36, %v4142_v57  ;;  %v18785_v8 = vld [vmem:[#allocation76_spill] sm:$0xff]  ;;  %v18787_v32 = vld [vmem:[#allocation67_spill] sm:$0xff]  ;;  %v18790_v41 = vld [vmem:[#allocation141_spill] sm:$0xff] }
 0x502   :  { %v15318_v25 = vadd.f32 %v18785_v8, %v2997_v29  ;;  %18786 = vst [vmem:[#allocation20_spill] sm:$0xff] %v15320_v19  ;;  %v3002_v50 = vadd.f32 %v2970_v17, %v14963_v6  ;;  %v4221_v24 = vmul.f32 %v18781_v30, %v4159_v55  ;;  %v15325_v56 = vadd.f32 %v18787_v32, %v2998_v27  ;;  %v18788_v2 = vld [vmem:[#allocation15_spill] sm:$0xff]  ;;  %v18789_v18 = vld [vmem:[#allocation140_spill] sm:$0xff] }
 0x503   :  { %v15328_v61 = vrot.slane %v11070_v40, %v18788_v2  ;;  %7181 = vrot.lane.b32.xlu1 %v18789_v18, %s11988_s27  ;;  %v4222_v49 = vmul.f32 %v18784_v36, %v4143_v13  ;;  %v18791_v29 = vld [vmem:[#allocation147_spill] sm:$0xff]  ;;  %v18793_v17 = vld [vmem:[#allocation16_spill] sm:$0xff]  ;;  %v3003_v8 = vadd.f32 %v2971_v52, %v15029_v33  ;;  %v3004_v32 = vadd.f32 %v2972_v26, %v15032_v10 }
 0x504   :  { %v4160_v57 = vsel %vm327_vm5, %v18791_v29, %v18790_v41  ;;  %v18792_v38 = vld [vmem:[#allocation27_spill] sm:$0xff]  ;;  %v15341_v55 = vrot.slane %v11070_v40, %v18793_v17  ;;  %v4251_v13 = vadd.f32 %v4219_v34, %v15061_v53  ;;  %v4144_v18 = vsel %vm327_vm5, %v18790_v41, %v18791_v29  ;;  %v15352_v16 = vpop.permute.xlu1 %5280  ;;  %v18796_v40 = vld [vmem:[#allocation145_spill] sm:$0xff]  ;;  %v18798_v10 = vld [vmem:[#allocation88_spill] sm:$0xff]  ;;  %v15365_v53 = vpop.permute.xlu0 %7227 }
 0x505   :  { %v15338_v6 = vadd.f32 %v18792_v38, %v2999_v28  ;;  %v18794_v27 = vld [vmem:[#allocation75_spill] sm:$0xff]  ;;  %18795 = vst [vmem:[#allocation89_spill] sm:$0xff] %v15352_v16  ;;  %v4252_v28 = vadd.f32 %v4220_v43, %v15064_v15  ;;  %v15360_v33 = vadd.f32 %v14957_v42, %v3000_v44  ;;  %v15363_v52 = vadd.f32 %v18798_v10, %v3001_v1  ;;  %v18800_v15 = vld [vmem:[#allocation84_spill] sm:$0xff]  ;;  %v18812_v16 = vld [vmem:[#allocation166_spill] sm:$0xff] }
 0x506   :  { %5933 = vrot.lane.b32.xlu0 %v18794_v27, %s11990_s12  ;;  %v18797_v38 = vld [vmem:[#allocation151_spill] sm:$0xff]  ;;  %18799 = vst [vmem:[#allocation93_spill] sm:$0xff] %v15365_v53  ;;  %v4253_v26 = vadd.f32 %v4221_v24, %v15067_v12  ;;  %v4223_v34 = vmul.f32 %v18781_v30, %v4160_v57  ;;  %v15374_v41 = vadd.f32 %v18800_v15, %v3002_v50  ;;  %v18802_v29 = vld [vmem:[#allocation156_spill] sm:$0xff]  ;;  %v18804_v50 = vld [vmem:[#allocation146_spill] sm:$0xff] }
 0x507   :  { %v4161_v27 = vsel %vm327_vm5, %v18797_v38, %v18796_v40  ;;  %v4145_v43 = vsel %vm327_vm5, %v18796_v40, %v18797_v38  ;;  %v18801_v42 = vld [vmem:[#allocation143_spill] sm:$0xff]  ;;  %v4254_v44 = vadd.f32 %v4222_v49, %v15070_v11  ;;  %v4224_v1 = vmul.f32 %v18784_v36, %v4144_v18  ;;  %v18803_v10 = vld [vmem:[#allocation152_spill] sm:$0xff]  ;;  %v11217_v38 = vld [vmem:[%s18032_s6 + $0x10] sm:$0x3] }
 0x508   :  { %7213 = vrot.lane.b32.xlu1 %v18801_v42, %s11988_s27  ;;  %v4146_v12 = vsel %vm327_vm5, %v18803_v10, %v18802_v29  ;;  %v4162_v24 = vsel %vm327_vm5, %v18802_v29, %v18803_v10  ;;  %v4225_v57 = vmul.f32 %v18781_v30, %v4161_v27  ;;  %v15392_v40 = vadd.f32 %v15035_v48, %v3003_v8  ;;  %v18805_v49 = vld [vmem:[#allocation195_spill] sm:$0xff]  ;;  %v15403_v15 = vpop.permute.xlu1 %7197  ;;  %v18807_v42 = vld [vmem:[#allocation150_spill] sm:$0xff]  ;;  %v18808_v29 = vld [vmem:[#allocation144_spill] sm:$0xff] }
 0x509   :  { %v15395_v11 = vadd.f32 %v15053_v35, %v3004_v32  ;;  %v15398_v18 = vadd.f32 %v18805_v49, %v4251_v13  ;;  %18806 = vst [vmem:[#allocation100_spill] sm:$0xff] %v15403_v15  ;;  %v5965_v27 = vsel %vm440_vm14, %v18808_v29, %v18807_v42  ;;  %v5981_v48 = vsel %vm440_vm14, %v18807_v42, %v18808_v29  ;;  %v18809_v8 = vld [vmem:[#allocation196_spill] sm:$0xff]  ;;  %v15417_v13 = vpop.permute.xlu0 %5282  ;;  %v18811_v15 = vld [vmem:[#allocation198_spill] sm:$0xff] }
 0x50a   :  { %7183 = vrot.lane.b32.xlu0 %v18804_v50, %s11988_s27  ;;  %v4226_v35 = vmul.f32 %v18784_v36, %v4145_v43  ;;  %v15415_v32 = vadd.f32 %v18809_v8, %v4252_v28  ;;  %18810 = vst [vmem:[#allocation102_spill] sm:$0xff] %v15417_v13  ;;  %v4255_v10 = vadd.f32 %v4223_v34, %v15100_v4  ;;  %v18813_v43 = vld [vmem:[#allocation199_spill] sm:$0xff]  ;;  %v18817_v34 = vld [vmem:[#allocation149_spill] sm:$0xff]  ;;  %v18828_v13 = vld [vmem:[#allocation164_spill] sm:$0xff] }
 0x50b   :  { %v4227_v50 = vmul.f32 %v18781_v30, %v4162_v24  ;;  %v4228_v49 = vmul.f32 %v18784_v36, %v4146_v12  ;;  %v15423_v53 = vadd.f32 %v18811_v15, %v4253_v26  ;;  %v4256_v42 = vadd.f32 %v4224_v1, %v15103_v3  ;;  %v18818_v12 = vld [vmem:[#allocation55_spill] sm:$0xff]  ;;  %v18829_v19 = vld [vmem:[#allocation200_spill] sm:$0xff] }
 0x50c   :  { %6538 = vrot.lane.b32.xlu1 %v18812_v16, %s11991_s14  ;;  %v15429_v29 = vadd.f32 %v18813_v43, %v4254_v44  ;;  %v15432_v28 = vrot.slane %v11217_v38, %v18788_v2  ;;  %v15435_v4 = vrot.slane %v11217_v38, %v18793_v17  ;;  %v15440_v26 = vmul.f32 %v18818_v12, %v5965_v27  ;;  %v18819_v24 = vld [vmem:[#allocation51_spill] sm:$0xff]  ;;  %v15450_v8 = vpop.permute.xlu1 %5312  ;;  %v18824_v43 = vld [vmem:[#allocation153_spill] sm:$0xff] }
 0x50d   :  { %v15443_v15 = vmul.f32 %v18819_v24, %v5981_v48  ;;  %v4257_v3 = vadd.f32 %v4225_v57, %v15129_v31  ;;  %v18821_v16 = vld [vmem:[#allocation155_spill] sm:$0xff]  ;;  %18823 = vst [vmem:[#allocation103_spill] sm:$0xff] %v15450_v8  ;;  %v4258_v38 = vadd.f32 %v4226_v35, %v15132_v54  ;;  %v15465_v57 = vpop.permute.xlu0 %7199  ;;  %v4260_v54 = vadd.f32 %v4228_v49, %v15155_v59  ;;  %v18827_v35 = vld [vmem:[#allocation160_spill] sm:$0xff] }
 0x50e   :  { %18814 = vst [vmem:[#allocation23_spill] sm:$0xff] %v15429_v29  ;;  %18815 = vst [vmem:[#allocation98_spill] sm:$0xff] %v15432_v28  ;;  %7215 = vrot.lane.b32.xlu0 %v18817_v34, %s11988_s27  ;;  %v18822_v44 = vld [vmem:[#allocation159_spill] sm:$0xff]  ;;  %v18825_v29 = vld [vmem:[#allocation148_spill] sm:$0xff]  ;;  %v4259_v34 = vadd.f32 %v4227_v50, %v15135_v58  ;;  %v4164_v8 = vsel %vm327_vm5, %v18828_v13, %v18827_v35 }
 0x50f   :  { %18816 = vst [vmem:[#allocation94_spill] sm:$0xff] %v15435_v4  ;;  %18820 = vst [vmem:[#allocation105_spill] sm:$0xff] %v15443_v15  ;;  %v4163_v1 = vsel %vm327_vm5, %v18822_v44, %v18821_v16  ;;  %v5966_v27 = vsel %vm440_vm14, %v18825_v29, %v18824_v43  ;;  %v5982_v48 = vsel %vm440_vm14, %v18824_v43, %v18825_v29  ;;  %v18830_v29 = vld [vmem:[#allocation169_spill] sm:$0xff]  ;;  %v18831_v43 = vld [vmem:[#allocation158_spill] sm:$0xff] }
 0x510   :  { %v4147_v31 = vsel %vm327_vm5, %v18821_v16, %v18822_v44  ;;  %18826 = vst [vmem:[#allocation99_spill] sm:$0xff] %v15465_v57  ;;  %v15474_v4 = vadd.f32 %v18829_v19, %v4255_v10  ;;  %6570 = vrot.lane.b32.xlu1 %v18830_v29, %s11991_s14  ;;  %v18832_v28 = vld [vmem:[#allocation154_spill] sm:$0xff]  ;;  %v4229_v59 = vmul.f32 %v18781_v30, %v4163_v1  ;;  %v18833_v10 = vld [vmem:[#allocation172_spill] sm:$0xff]  ;;  %v18836_v29 = vld [vmem:[#allocation201_spill] sm:$0xff]  ;;  %v15503_v1 = vpop.permute.xlu1 %7229 }
 0x511   :  { %v5967_v16 = vsel %vm440_vm14, %v18832_v28, %v18831_v43  ;;  %v5983_v58 = vsel %vm440_vm14, %v18831_v43, %v18832_v28  ;;  %v4148_v19 = vsel %vm327_vm5, %v18827_v35, %v18828_v13  ;;  %v15494_v50 = vmul.f32 %v18818_v12, %v5966_v27  ;;  %18837 = vst [vmem:[#allocation106_spill] sm:$0xff] %v15503_v1  ;;  %v18838_v43 = vld [vmem:[#allocation161_spill] sm:$0xff]  ;;  %v18845_v1 = vld [vmem:[#allocation163_spill] sm:$0xff]  ;;  %v18846_v15 = vld [vmem:[#allocation168_spill] sm:$0xff] }
 0x512   :  { %6540 = vrot.lane.b32.xlu0 %v18833_v10, %s11991_s14  ;;  %v15497_v49 = vmul.f32 %v18819_v24, %v5982_v48  ;;  %v4230_v44 = vmul.f32 %v18784_v36, %v4147_v31  ;;  %v15501_v28 = vadd.f32 %v18836_v29, %v4256_v42  ;;  %v18839_v57 = vld [vmem:[#allocation157_spill] sm:$0xff]  ;;  %v4231_v35 = vmul.f32 %v18781_v30, %v4164_v8  ;;  %v18840_v10 = vld [vmem:[#allocation202_spill] sm:$0xff] }
 0x513   :  { %18834 = vst [vmem:[#allocation95_spill] sm:$0xff] %v15494_v50  ;;  %v5968_v13 = vsel %vm440_vm14, %v18839_v57, %v18838_v43  ;;  %v15511_v27 = vadd.f32 %v18840_v10, %v4257_v3  ;;  %v18841_v50 = vld [vmem:[#allocation203_spill] sm:$0xff]  ;;  %v15519_v42 = vmul.f32 %v18818_v12, %v5967_v16  ;;  %v15522_v31 = vmul.f32 %v18819_v24, %v5983_v58  ;;  %v18847_v3 = vld [vmem:[#allocation128_spill] sm:$0xff]  ;;  %v18849_v10 = vld [vmem:[#allocation205_spill] sm:$0xff] }
 0x514   :  { %18835 = vst [vmem:[#allocation19_spill] sm:$0xff] %v15497_v49  ;;  %v15514_v48 = vadd.f32 %v18841_v50, %v4258_v38  ;;  %v15516_v49 = vpop.permute.xlu0 %5314  ;;  %v4232_v29 = vmul.f32 %v18784_v36, %v4148_v19  ;;  %v4165_v8 = vsel %vm327_vm5, %v18846_v15, %v18845_v1  ;;  %7177 = vrot.lane.b32.xlu1 %v18847_v3, %s11988_s27  ;;  %v18848_v50 = vld [vmem:[#allocation204_spill] sm:$0xff] }
 0x515   :  { %18842 = vst [vmem:[#allocation104_spill] sm:$0xff] %v15516_v49  ;;  %18843 = vst [vmem:[#allocation101_spill] sm:$0xff] %v15519_v42  ;;  %v4261_v38 = vadd.f32 %v4229_v59, %v15164_v46  ;;  %v4149_v16 = vsel %vm327_vm5, %v18845_v1, %v18846_v15  ;;  %v15537_v58 = vadd.f32 %v18848_v50, %v4259_v34  ;;  %v18850_v49 = vld [vmem:[#allocation175_spill] sm:$0xff]  ;;  %v18852_v15 = vld [vmem:[#allocation170_spill] sm:$0xff] }
 0x516   :  { %18844 = vst [vmem:[#allocation97_spill] sm:$0xff] %v15522_v31  ;;  %v15540_v19 = vadd.f32 %v18849_v10, %v4260_v54  ;;  %6572 = vrot.lane.b32.xlu0 %v18850_v49, %s11991_s14  ;;  %v4262_v31 = vadd.f32 %v4230_v44, %v15167_v0  ;;  %v5984_v46 = vsel %vm440_vm14, %v18838_v43, %v18839_v57  ;;  %v18853_v1 = vld [vmem:[#allocation176_spill] sm:$0xff]  ;;  %v15556_v54 = vpop.permute.xlu1 %5284  ;;  %v18855_v49 = vld [vmem:[#allocation167_spill] sm:$0xff]  ;;  %v18856_v50 = vld [vmem:[#allocation162_spill] sm:$0xff] }
 0x517   :  { %v15550_v59 = vmul.f32 %v18818_v12, %v5968_v13  ;;  %v4166_v34 = vsel %vm327_vm5, %v18853_v1, %v18852_v15  ;;  %18854 = vst [vmem:[#allocation109_spill] sm:$0xff] %v15556_v54  ;;  %v4263_v3 = vadd.f32 %v4231_v35, %v15194_v20  ;;  %v5969_v0 = vsel %vm440_vm14, %v18856_v50, %v18855_v49  ;;  %v18858_v10 = vld [vmem:[#allocation174_spill] sm:$0xff]  ;;  %v18859_v54 = vld [vmem:[#allocation179_spill] sm:$0xff] }
 0x518   :  { %v4233_v44 = vmul.f32 %v18781_v30, %v4165_v8  ;;  %v4150_v57 = vsel %vm327_vm5, %v18852_v15, %v18853_v1  ;;  %v15568_v43 = vpop.permute.xlu0 %7231  ;;  %v4264_v13 = vadd.f32 %v4232_v29, %v15197_v21  ;;  %v5985_v20 = vsel %vm440_vm14, %v18855_v49, %v18856_v50  ;;  %v18862_v1 = vld [vmem:[#allocation171_spill] sm:$0xff]  ;;  %v18863_v21 = vld [vmem:[#allocation165_spill] sm:$0xff]  ;;  %v18864_v50 = vld [vmem:[#allocation206_spill] sm:$0xff] }
 0x519   :  { %18851 = vst [vmem:[#allocation107_spill] sm:$0xff] %v15550_v59  ;;  %18857 = vst [vmem:[#allocation108_spill] sm:$0xff] %v15568_v43  ;;  %v4234_v35 = vmul.f32 %v18784_v36, %v4149_v16  ;;  %v4167_v8 = vsel %vm327_vm5, %v18859_v54, %v18858_v10  ;;  %v18860_v59 = vld [vmem:[#allocation131_spill] sm:$0xff]  ;;  %v15583_v15 = vmul.f32 %v18819_v24, %v5984_v46  ;;  %v18866_v43 = vld [vmem:[#allocation134_spill] sm:$0xff] }
 0x51a   :  { %7209 = vrot.lane.b32.xlu1 %v18860_v59, %s11988_s27  ;;  %v5970_v29 = vsel %vm440_vm14, %v18863_v21, %v18862_v1  ;;  %v4235_v49 = vmul.f32 %v18781_v30, %v4166_v34  ;;  %v15591_v16 = vadd.f32 %v18864_v50, %v4261_v38  ;;  %7179 = vrot.lane.b32.xlu0 %v18866_v43, %s11988_s27  ;;  %v7596_v59 = vld [vmem:[%s18035_s9 + $0x30] sm:$0xff]  ;;  %v18868_v42 = vld [vmem:[#allocation207_spill] sm:$0xff]  ;;  %v15609_v50 = vpop.permute.xlu1 %7201 }
 0x51b   :  { %18861 = vst [vmem:[#allocation110_spill] sm:$0xff] %v15583_v15  ;;  %v15599_v46 = vmul.f32 %v18818_v12, %v5969_v0  ;;  %v5986_v15 = vsel %vm440_vm14, %v18862_v1, %v18863_v21  ;;  %v4236_v34 = vmul.f32 %v18784_v36, %v4150_v57  ;;  %v15607_v38 = vadd.f32 %v18868_v42, %v4262_v31  ;;  %v18872_v31 = vld [vmem:[#allocation208_spill] sm:$0xff] }
 0x51c   :  { %18865 = vst [vmem:[#allocation21_spill] sm:$0xff] %v15591_v16  ;;  %18869 = vst [vmem:[#allocation111_spill] sm:$0xff] %v15609_v50  ;;  %v15612_v43 = vmul.f32 %v18819_v24, %v5985_v20  ;;  %v4265_v16 = vadd.f32 %v4233_v44, %v15207_v5  ;;  %v4151_v0 = vsel %vm327_vm5, %v18858_v10, %v18859_v54  ;;  %v15620_v1 = vpop.permute.xlu0 %5286  ;;  %v18873_v20 = vld [vmem:[#allocation209_spill] sm:$0xff]  ;;  %v18875_v44 = vld [vmem:[#allocation184_spill] sm:$0xff] }
 0x51d   :  { %18867 = vst [vmem:[#allocation113_spill] sm:$0xff] %v15599_v46  ;;  %v4237_v46 = vmul.f32 %v18781_v30, %v4167_v8  ;;  %18870 = vst [vmem:[#allocation114_spill] sm:$0xff] %v15620_v1  ;;  %v4266_v57 = vadd.f32 %v4234_v35, %v15224_v37  ;;  %v15624_v42 = vmul.f32 %v18818_v12, %v5970_v29  ;;  %v18876_v10 = vld [vmem:[#allocation180_spill] sm:$0xff]  ;;  %v18877_v35 = vld [vmem:[#allocation137_spill] sm:$0xff] }
 0x51e   :  { %v15627_v21 = vadd.f32 %v18872_v31, %v4263_v3  ;;  %v15630_v50 = vadd.f32 %v18873_v20, %v4264_v13  ;;  %7630 = vperm.xlu1 %11614, %v7596_v59   ;;  %v15633_v5 = vmul.f32 %v18819_v24, %v5986_v15  ;;  %v4267_v54 = vadd.f32 %v4235_v49, %v15227_v63  ;;  %v7594_v13 = vld [vmem:[%s18035_s9 + $0x20] sm:$0xff]  ;;  %v18878_v63 = vld [vmem:[#allocation178_spill] sm:$0xff]  ;;  %v18879_v15 = vld [vmem:[#allocation173_spill] sm:$0xff]  ;;  %v15659_v31 = vpop.permute.xlu1 %5316 }
 0x51f   :  { %18871 = vst [vmem:[#allocation112_spill] sm:$0xff] %v15624_v42  ;;  %v4152_v37 = vsel %vm327_vm5, %v18876_v10, %v18875_v44  ;;  %v4168_v3 = vsel %vm327_vm5, %v18875_v44, %v18876_v10  ;;  %7211 = vrot.lane.b32.xlu0 %v18877_v35, %s11988_s27  ;;  %v4268_v8 = vadd.f32 %v4236_v34, %v15230_v39  ;;  %18880 = vst [vmem:[#allocation117_spill] sm:$0xff] %v15659_v31  ;;  %v7597_v20 = vld [vmem:[%s18035_s9 + $0x38] sm:$0xff]  ;;  %v18881_v34 = vld [vmem:[#allocation181_spill] sm:$0xff] }
 0x520   :  { %18874 = vst [vmem:[#allocation115_spill] sm:$0xff] %v15633_v5  ;;  %v5971_v29 = vsel %vm440_vm14, %v18879_v15, %v18878_v63  ;;  %v5987_v49 = vsel %vm440_vm14, %v18878_v63, %v18879_v15  ;;  %v4238_v59 = vmul.f32 %v18784_v36, %v4151_v0  ;;  %v4269_v39 = vadd.f32 %v4237_v46, %v15241_v62  ;;  %v18882_v44 = vld [vmem:[#allocation177_spill] sm:$0xff]  ;;  %v18883_v63 = vld [vmem:[#allocation14_spill] sm:$0xff]  ;;  %v15676_v15 = vpop.permute.xlu0 %7203  ;;  %v18885_v62 = vld [vmem:[#allocation187_spill] sm:$0xff] }
 0x521   :  { %v5972_v10 = vsel %vm440_vm14, %v18882_v44, %v18881_v34  ;;  %v5988_v35 = vsel %vm440_vm14, %v18881_v34, %v18882_v44  ;;  %v15674_v0 = vadd.f32 %v18883_v63, %v4265_v16  ;;  %18884 = vst [vmem:[#allocation118_spill] sm:$0xff] %v15676_v15  ;;  %v4239_v1 = vmul.f32 %v18781_v30, %v4168_v3  ;;  %v18886_v46 = vld [vmem:[#allocation183_spill] sm:$0xff]  ;;  %v7592_v15 = vld [vmem:[%s18035_s9 + $0x10] sm:$0xff] }
 0x522   :  { %v4240_v31 = vmul.f32 %v18784_v36, %v4152_v37  ;;  %v4153_v5 = vsel %vm327_vm5, %v18886_v46, %v18885_v62  ;;  %v4169_v42 = vsel %vm327_vm5, %v18885_v62, %v18886_v46  ;;  %7620 = vperm.xlu1 %11614, %v7594_v13   ;;  %v15689_v16 = vmul.f32 %v18818_v12, %v5971_v29  ;;  %v18889_v3 = vld [vmem:[#allocation211_spill] sm:$0xff]  ;;  %v18890_v37 = vld [vmem:[#allocation212_spill] sm:$0xff] }
 0x523   :  { %v15692_v34 = vmul.f32 %v18819_v24, %v5987_v49  ;;  %v15695_v44 = vadd.f32 %v18889_v3, %v4266_v57  ;;  %v15698_v63 = vadd.f32 %v18890_v37, %v4267_v54  ;;  %7635 = vperm.xlu0 %11613, %v7597_v20   ;;  %v4270_v62 = vadd.f32 %v4238_v59, %v15256_v7  ;;  %v18892_v29 = vld [vmem:[#allocation188_spill] sm:$0xff]  ;;  %v18894_v57 = vld [vmem:[#allocation214_spill] sm:$0xff]  ;;  %v15714_v54 = vpop.permute.xlu1 %7233 }
 0x524   :  { %18887 = vst [vmem:[#allocation116_spill] sm:$0xff] %v15689_v16  ;;  %v15705_v13 = vmul.f32 %v18818_v12, %v5972_v10  ;;  %v18893_v46 = vld [vmem:[#allocation192_spill] sm:$0xff]  ;;  %v15712_v3 = vadd.f32 %v18894_v57, %v4268_v8  ;;  %18895 = vst [vmem:[#allocation120_spill] sm:$0xff] %v15714_v54  ;;  %v15720_v37 = vmul.f32 %v18819_v24, %v5988_v35  ;;  %v18897_v7 = vld [vmem:[#allocation186_spill] sm:$0xff]  ;;  %v15728_v8 = vpop.permute.xlu0 %5318 }
 0x525   :  { %18888 = vst [vmem:[#allocation119_spill] sm:$0xff] %v15692_v34  ;;  %v4170_v49 = vsel %vm327_vm5, %v18893_v46, %v18892_v29  ;;  %v7595_v20 = vld [vmem:[%s18035_s9 + $0x28] sm:$0xff]  ;;  %v18898_v59 = vld [vmem:[#allocation182_spill] sm:$0xff]  ;;  %v4242_v34 = vmul.f32 %v18784_v36, %v4153_v5  ;;  %18899 = vst [vmem:[#allocation30_spill] sm:$0xff] %v15728_v8  ;;  %v4271_v57 = vadd.f32 %v4239_v1, %v15259_v51 }
 0x526   :  { %18891 = vst [vmem:[#allocation121_spill] sm:$0xff] %v15705_v13  ;;  %18896 = vst [vmem:[#allocation122_spill] sm:$0xff] %v15720_v37  ;;  %v5973_v10 = vsel %vm440_vm14, %v18898_v59, %v18897_v7  ;;  %v4241_v13 = vmul.f32 %v18781_v30, %v4169_v42  ;;  %v4272_v54 = vadd.f32 %v4240_v31, %v15285_v9  ;;  %v18900_v37 = vld [vmem:[#allocation215_spill] sm:$0xff]  ;;  %7610 = vperm.xlu1 %11614, %v7592_v15   ;;  %v18902_v8 = vld [vmem:[#allocation197_spill] sm:$0xff] }
 0x527   :  { %v4154_v35 = vsel %vm327_vm5, %v18892_v29, %v18893_v46  ;;  %v15737_v16 = vadd.f32 %v18900_v37, %v4269_v39  ;;  %v5989_v42 = vsel %vm440_vm14, %v18897_v7, %v18898_v59  ;;  %v4243_v5 = vmul.f32 %v18781_v30, %v4170_v49  ;;  %v18903_v51 = vld [vmem:[#allocation191_spill] sm:$0xff]  ;;  %7625 = vperm.xlu0 %11613, %v7595_v20   ;;  %v18905_v15 = vld [vmem:[#allocation189_spill] sm:$0xff]  ;;  %v18907_v37 = vld [vmem:[#allocation216_spill] sm:$0xff]  ;;  %v15769_v20 = vpop.permute.xlu1 %5288 }
 0x528   :  { %v4155_v9 = vsel %vm327_vm5, %v18903_v51, %v18902_v8  ;;  %v4171_v1 = vsel %vm327_vm5, %v18902_v8, %v18903_v51  ;;  %v7590_v31 = vld [vmem:[%s18035_s9] sm:$0xff]  ;;  %v15756_v39 = vmul.f32 %v18818_v12, %v5973_v10  ;;  %v18906_v29 = vld [vmem:[#allocation185_spill] sm:$0xff]  ;;  %v15767_v7 = vadd.f32 %v18907_v37, %v4270_v62  ;;  %18909 = vst [vmem:[#allocation123_spill] sm:$0xff] %v15769_v20  ;;  %v7593_v59 = vld [vmem:[%s18035_s9 + $0x18] sm:$0xff] }
 0x529   :  { %18901 = vst [vmem:[#allocation35_spill] sm:$0xff] %v15737_v16  ;;  %v5974_v46 = vsel %vm440_vm14, %v18906_v29, %v18905_v15  ;;  %v5990_v49 = vsel %vm440_vm14, %v18905_v15, %v18906_v29  ;;  %v4273_v10 = vadd.f32 %v4241_v13, %v15295_v60  ;;  %v4274_v8 = vadd.f32 %v4242_v34, %v15298_v22  ;;  %v18911_v16 = vld [vmem:[#allocation38_spill] sm:$0xff]  ;;  %v15781_v29 = vpop.permute.xlu0 %7235 }
 0x52a   :  { %18904 = vst [vmem:[#allocation32_spill] sm:$0xff] %v15756_v39  ;;  %18908 = vst [vmem:[#allocation125_spill] sm:$0xff] %v15767_v7  ;;  %v4244_v51 = vmul.f32 %v18784_v36, %v4154_v35  ;;  %v18910_v39 = vld [vmem:[#allocation210_spill] sm:$0xff]  ;;  %v15784_v62 = vmul.f32 %v18819_v24, %v5989_v42  ;;  %v4245_v37 = vmul.f32 %v18781_v30, %v4171_v1  ;;  %v18913_v7 = vld [vmem:[#allocation217_spill] sm:$0xff]  ;;  %7600 = vperm.xlu1 %11614, %v7590_v31  }
 0x52b   :  { %v4172_v15 = vsel %vm327_vm5, %v18911_v16, %v18910_v39  ;;  %18912 = vst [vmem:[#allocation53_spill] sm:$0xff] %v15781_v29  ;;  %v4246_v20 = vmul.f32 %v18784_v36, %v4155_v9  ;;  %v15789_v60 = vadd.f32 %v18913_v7, %v4271_v57  ;;  %v15792_v22 = vmul.f32 %v18818_v12, %v5974_v46  ;;  %v18916_v35 = vld [vmem:[#allocation218_spill] sm:$0xff]  ;;  %v18921_v7 = vld [vmem:[#allocation60_spill] sm:$0xff] }
 0x52c   :  { %v15795_v34 = vmul.f32 %v18819_v24, %v5990_v49  ;;  %v4275_v13 = vadd.f32 %v4243_v5, %v15318_v25  ;;  %v15799_v29 = vadd.f32 %v18916_v35, %v4272_v54  ;;  %7615 = vperm.xlu0 %11613, %v7593_v59   ;;  %v18917_v42 = vld [vmem:[#allocation194_spill] sm:$0xff]  ;;  %v4156_v31 = vsel %vm327_vm5, %v18910_v39, %v18911_v16  ;;  %v15814_v54 = vpop.permute.xlu1 %7205  ;;  %v7591_v5 = vld [vmem:[%s18035_s9 + $0x8] sm:$0xff]  ;;  %v18922_v35 = vld [vmem:[#allocation219_spill] sm:$0xff] }
 0x52d   :  { %18914 = vst [vmem:[#allocation124_spill] sm:$0xff] %v15792_v22  ;;  %v18918_v1 = vld [vmem:[#allocation190_spill] sm:$0xff]  ;;  %v4247_v25 = vmul.f32 %v18781_v30, %v4172_v15  ;;  %18919 = vst [vmem:[#allocation46_spill] sm:$0xff] %v15814_v54  ;;  %v4276_v46 = vadd.f32 %v4244_v51, %v15325_v56  ;;  %v18920_v49 = vld [vmem:[#allocation224_spill] sm:$0xff]  ;;  %v15830_v39 = vpop.permute.xlu0 %5290  ;;  %v4277_v15 = vadd.f32 %v4245_v37, %v15338_v6 }
 0x52e   :  { %18915 = vst [vmem:[#allocation126_spill] sm:$0xff] %v15795_v34  ;;  %v5975_v9 = vsel %vm440_vm14, %v18918_v1, %v18917_v42  ;;  %v5991_v57 = vsel %vm440_vm14, %v18917_v42, %v18918_v1  ;;  %v4173_v59 = vsel %vm327_vm5, %v18921_v7, %v18920_v49  ;;  %v15825_v42 = vadd.f32 %v18922_v35, %v4273_v10  ;;  %v18923_v1 = vld [vmem:[#allocation220_spill] sm:$0xff]  ;;  %v18925_v34 = vld [vmem:[#allocation213_spill] sm:$0xff] }
 0x52f   :  { %v15828_v16 = vadd.f32 %v18923_v1, %v4274_v8  ;;  %18924 = vst [vmem:[#allocation44_spill] sm:$0xff] %v15830_v39  ;;  %v4278_v54 = vadd.f32 %v4246_v20, %v15360_v33  ;;  %v18926_v22 = vld [vmem:[#allocation193_spill] sm:$0xff]  ;;  %v4157_v10 = vsel %vm327_vm5, %v18920_v49, %v18921_v7  ;;  %v15843_v51 = vmul.f32 %v18818_v12, %v5975_v9  ;;  %v18929_v9 = vld [vmem:[#allocation34_spill] sm:$0xff] }
 0x530   :  { %v5976_v56 = vsel %vm440_vm14, %v18926_v22, %v18925_v34  ;;  %v15846_v8 = vmul.f32 %v18819_v24, %v5991_v57  ;;  %v5992_v6 = vsel %vm440_vm14, %v18925_v34, %v18926_v22  ;;  %v4248_v33 = vmul.f32 %v18784_v36, %v4156_v31  ;;  %7605 = vperm.xlu0 %11613, %v7591_v5   ;;  %v11168_v20 = vld [vmem:[%s18032_s6 + $0xe] sm:$0x3]  ;;  %v15865_v22 = vpop.permute.xlu1 %5320 }
 0x531   :  { %v4279_v37 = vadd.f32 %v4247_v25, %v15363_v52  ;;  %v18928_v49 = vld [vmem:[#allocation33_spill] sm:$0xff]  ;;  %v4249_v7 = vmul.f32 %v18781_v30, %v4173_v59  ;;  %v15868_v34 = vmul.f32 %v18818_v12, %v5976_v56  ;;  %v4250_v31 = vmul.f32 %v18784_v36, %v4157_v10  ;;  %v18936_v56 = vld [vmem:[#allocation223_spill] sm:$0xff] }
 0x532   :  { %18927 = vst [vmem:[#allocation49_spill] sm:$0xff] %v15846_v8  ;;  %v5977_v57 = vsel %vm440_vm14, %v18929_v9, %v18928_v49  ;;  %v18930_v35 = vld [vmem:[#allocation37_spill] sm:$0xff]  ;;  %v5993_v52 = vsel %vm440_vm14, %v18928_v49, %v18929_v9  ;;  %v15878_v8 = vpop.permute.xlu0 %7207  ;;  %v15881_v30 = vmul.f32 %v18819_v24, %v5992_v6  ;;  %v4280_v49 = vadd.f32 %v4248_v33, %v15374_v41 }
 0x533   :  { %v15863_v1 = vadd.f32 %v18930_v35, %v4275_v13  ;;  %18931 = vst [vmem:[#allocation127_spill] sm:$0xff] %v15868_v34  ;;  %v18932_v25 = vld [vmem:[#allocation221_spill] sm:$0xff]  ;;  %18933 = vst [vmem:[#allocation130_spill] sm:$0xff] %v15878_v8  ;;  %v18935_v13 = vld [vmem:[#allocation222_spill] sm:$0xff]  ;;  %v15887_v35 = vadd.f32 %v18936_v56, %v4278_v54  ;;  %v15890_v34 = vrot.slane %v11168_v20, %v18788_v2 }
 0x534   :  { %v15876_v5 = vadd.f32 %v18932_v25, %v4276_v46  ;;  %18934 = vst [vmem:[#allocation47_spill] sm:$0xff] %v15881_v30  ;;  %v15884_v59 = vadd.f32 %v18935_v13, %v4277_v15  ;;  %v15894_v36 = vmul.f32 %v18818_v12, %v5977_v57  ;;  %v18938_v46 = vld [vmem:[#allocation63_spill] sm:$0xff]  ;;  %v18939_v10 = vld [vmem:[#allocation45_spill] sm:$0xff]  ;;  %v15901_v9 = vrot.slane %v11168_v20, %v18793_v17  ;;  %v15914_v25 = vpop.permute.xlu1 %7237  ;;  %v18946_v20 = vld [vmem:[#allocation36_spill] sm:$0xff] }
 0x535   :  { %v5324_v6 = vsel %vm368_vm3, %v18939_v10, %v18938_v46  ;;  %v15904_v15 = vmul.f32 %v18819_v24, %v5993_v52  ;;  %v4281_v54 = vadd.f32 %v4249_v7, %v15392_v40  ;;  %v5340_v41 = vsel %vm368_vm3, %v18938_v46, %v18939_v10  ;;  %v18942_v33 = vld [vmem:[#allocation225_spill] sm:$0xff]  ;;  %18944 = vst [vmem:[#allocation132_spill] sm:$0xff] %v15914_v25  ;;  %v18947_v17 = vld [vmem:[#allocation43_spill] sm:$0xff]  ;;  %v18948_v2 = vld [vmem:[#allocation50_spill] sm:$0xff] }
 0x536   :  { %18937 = vst [vmem:[#allocation52_spill] sm:$0xff] %v15894_v36  ;;  %18940 = vst [vmem:[#allocation48_spill] sm:$0xff] %v15901_v9  ;;  %v15912_v57 = vadd.f32 %v18942_v33, %v4279_v37  ;;  %v4282_v13 = vadd.f32 %v4250_v31, %v15395_v11  ;;  %v18945_v56 = vld [vmem:[#allocation41_spill] sm:$0xff]  ;;  %v5326_v40 = vsel %vm368_vm3, %v18948_v2, %v18947_v17  ;;  %v15929_v7 = vpop.permute.xlu0 %5322  ;;  %v18950_v46 = vld [vmem:[#allocation18_spill] sm:$0xff] }
 0x537   :  { %18941 = vst [vmem:[#allocation61_spill] sm:$0xff] %v15904_v15  ;;  %v5978_v52 = vsel %vm440_vm14, %v18946_v20, %v18945_v56  ;;  %v5342_v37 = vsel %vm368_vm3, %v18947_v17, %v18948_v2  ;;  %18949 = vst [vmem:[#allocation29_spill] sm:$0xff] %v15929_v7  ;;  %v5994_v11 = vsel %vm440_vm14, %v18945_v56, %v18946_v20  ;;  %v18951_v10 = vld [vmem:[#allocation54_spill] sm:$0xff]  ;;  %v18952_v17 = vld [vmem:[#allocation40_spill] sm:$0xff] }
 0x538   :  { %18943 = vst [vmem:[#allocation129_spill] sm:$0xff] %v15912_v57  ;;  %v5401_v31 = vmul.f32 %v15328_v61, %v5324_v6  ;;  %v5327_v33 = vsel %vm368_vm3, %v18951_v10, %v18950_v46  ;;  %v5343_v9 = vsel %vm368_vm3, %v18950_v46, %v18951_v10  ;;  %v5402_v2 = vmul.f32 %v15341_v55, %v5340_v41  ;;  %v18953_v8 = vld [vmem:[#allocation39_spill] sm:$0xff]  ;;  %v18954_v56 = vld [vmem:[#allocation73_spill] sm:$0xff]  ;;  %v18956_v30 = vld [vmem:[#allocation226_spill] sm:$0xff]  ;;  %v15966_v57 = vpop.permute.xlu1 %6542 }
 0x539   :  { %v5325_v15 = vsel %vm368_vm3, %v18953_v8, %v18952_v17  ;;  %v18955_v20 = vld [vmem:[#allocation57_spill] sm:$0xff]  ;;  %v5341_v41 = vsel %vm368_vm3, %v18952_v17, %v18953_v8  ;;  %v5405_v46 = vmul.f32 %v15328_v61, %v5326_v40  ;;  %v5406_v10 = vmul.f32 %v15341_v55, %v5342_v37 }
 0x53a   :  { %v5328_v6 = vsel %vm368_vm3, %v18955_v20, %v18954_v56  ;;  %v5344_v36 = vsel %vm368_vm3, %v18954_v56, %v18955_v20  ;;  %v15964_v25 = vadd.f32 %v18956_v30, %v4280_v49  ;;  %v15969_v39 = vmul.f32 %v18818_v12, %v5978_v52  ;;  %v15976_v8 = vpop.permute.xlu0 %7239  ;;  %v18957_v49 = vld [vmem:[#allocation42_spill] sm:$0xff] }
 0x53b   :  { %v15972_v7 = vmul.f32 %v18819_v24, %v5994_v11  ;;  %v5407_v56 = vmul.f32 %v15328_v61, %v5327_v33  ;;  %v5408_v20 = vmul.f32 %v15341_v55, %v5343_v9  ;;  %v5403_v40 = vmul.f32 %v15328_v61, %v5325_v15  ;;  %v18961_v9 = vld [vmem:[#allocation31_spill] sm:$0xff]  ;;  %v18963_v12 = vld [vmem:[#allocation26_spill] sm:$0xff] }
 0x53c   :  { %v5409_v37 = vmul.f32 %v15328_v61, %v5328_v6  ;;  %v5410_v30 = vmul.f32 %v15341_v55, %v5344_v36  ;;  %v15982_v17 = vadd.f32 %v18957_v49, %v4281_v54  ;;  %v15985_v52 = vadd.f32 %v5401_v31, %v15398_v18  ;;  %v18962_v36 = vld [vmem:[#allocation79_spill] sm:$0xff] }
 0x53d   :  { %v15988_v11 = vadd.f32 %v5402_v2, %v15415_v32  ;;  %v15991_v33 = vmul.f32 %v15341_v55, %v5341_v41  ;;  %v15994_v24 = vadd.f32 %v18961_v9, %v4282_v13  ;;  %v5437_v15 = vadd.f32 %v5405_v46, %v15474_v4  ;;  %v16006_v32 = vpop.permute.xlu1 %6574  ;;  %v18964_v4 = vld [vmem:[#allocation22_spill] sm:$0xff] }
 0x53e   :  { %18958 = vst [vmem:[#allocation66_spill] sm:$0xff] %v15985_v52  ;;  %v5438_v6 = vadd.f32 %v5406_v10, %v15501_v28  ;;  %v5329_v54 = vsel %vm368_vm3, %v18963_v12, %v18962_v36  ;;  %v5345_v18 = vsel %vm368_vm3, %v18962_v36, %v18963_v12  ;;  %v5439_v31 = vadd.f32 %v5407_v56, %v15511_v27  ;;  %v16018_v41 = vpop.permute.xlu0 %6544  ;;  %v18968_v10 = vld [vmem:[#allocation56_spill] sm:$0xff]  ;;  %v18973_v36 = vld [vmem:[#allocation82_spill] sm:$0xff] }
 0x53f   :  { %18959 = vst [vmem:[#allocation74_spill] sm:$0xff] %v15988_v11  ;;  %18960 = vst [vmem:[#allocation68_spill] sm:$0xff] %v15991_v33  ;;  %v5440_v13 = vadd.f32 %v5408_v20, %v15514_v48  ;;  %v5330_v28 = vsel %vm368_vm3, %v18964_v4, %v15092_v14  ;;  %v5346_v2 = vsel %vm368_vm3, %v15092_v14, %v18964_v4  ;;  %v18967_v48 = vld [vmem:[#allocation83_spill] sm:$0xff]  ;;  %v18984_v11 = vld [vmem:[#allocation97_spill] sm:$0xff] }
 0x540   :  { %18965 = vst [vmem:[#allocation28_spill] sm:$0xff] %v16018_v41  ;;  %v16021_v12 = vadd.f32 %v5403_v40, %v15423_v53  ;;  %v5441_v46 = vadd.f32 %v5409_v37, %v15537_v58  ;;  %v5442_v27 = vadd.f32 %v5410_v30, %v15540_v19  ;;  %v7245_v56 = vsel %vm488_vm12, %v18968_v10, %v18967_v48  ;;  %v18970_v37 = vld [vmem:[#allocation105_spill] sm:$0xff]  ;;  %v19019_v41 = vld [vmem:[#allocation102_spill] sm:$0xff] }
 0x541   :  { %v5411_v20 = vmul.f32 %v15328_v61, %v5329_v54  ;;  %v5412_v49 = vmul.f32 %v15341_v55, %v5345_v18  ;;  %v5331_v14 = vsel %vm368_vm3, %v15058_v45, %v15149_v23  ;;  %v5347_v53 = vsel %vm368_vm3, %v15149_v23, %v15058_v45  ;;  %v16047_v9 = vpop.permute.xlu1 %6546  ;;  %v18974_v54 = vld [vmem:[#allocation77_spill] sm:$0xff]  ;;  %v18975_v23 = vld [vmem:[#allocation95_spill] sm:$0xff] }
 0x542   :  { %18966 = vst [vmem:[#allocation62_spill] sm:$0xff] %v16021_v12  ;;  %v5413_v58 = vmul.f32 %v15328_v61, %v5330_v28  ;;  %v5414_v19 = vmul.f32 %v15341_v55, %v5346_v2  ;;  %v16042_v40 = vadd.f32 %v15440_v26, %v5437_v15  ;;  %v16045_v30 = vadd.f32 %v18970_v37, %v5438_v6  ;;  %v18977_v26 = vld [vmem:[#allocation19_spill] sm:$0xff]  ;;  %v16063_v6 = vpop.permute.xlu0 %6576  ;;  %v18981_v2 = vld [vmem:[#allocation98_spill] sm:$0xff] }
 0x543   :  { %18972 = vst [vmem:[#allocation133_spill] sm:$0xff] %v16047_v9  ;;  %v7246_v18 = vsel %vm488_vm12, %v18974_v54, %v18973_v36  ;;  %v7262_v45 = vsel %vm488_vm12, %v18973_v36, %v18974_v54  ;;  %v16058_v4 = vadd.f32 %v18975_v23, %v5439_v31  ;;  %v16061_v15 = vadd.f32 %v18977_v26, %v5440_v13  ;;  %v18982_v54 = vld [vmem:[#allocation21_spill] sm:$0xff] }
 0x544   :  { %18969 = vst [vmem:[#allocation70_spill] sm:$0xff] %v16042_v40  ;;  %18971 = vst [vmem:[#allocation136_spill] sm:$0xff] %v16045_v30  ;;  %v16069_v28 = vsel %vm488_vm12, %v18967_v48, %v18968_v10  ;;  %v7326_v37 = vmul.f32 %v18981_v2, %v7245_v56  ;;  %v5415_v12 = vmul.f32 %v15328_v61, %v5331_v14  ;;  %v18983_v13 = vld [vmem:[#allocation101_spill] sm:$0xff] }
 0x545   :  { %18976 = vst [vmem:[#allocation135_spill] sm:$0xff] %v16058_v4  ;;  %18978 = vst [vmem:[#allocation138_spill] sm:$0xff] %v16061_v15  ;;  %v5416_v36 = vmul.f32 %v15341_v55, %v5347_v53  ;;  %v5443_v31 = vadd.f32 %v5411_v20, %v18982_v54  ;;  %v5444_v23 = vadd.f32 %v5412_v49, %v15607_v38  ;;  %v18986_v15 = vld [vmem:[#allocation94_spill] sm:$0xff]  ;;  %v16086_v14 = vpop.permute.xlu1 %6578  ;;  %v18989_v53 = vld [vmem:[#allocation87_spill] sm:$0xff] }
 0x546   :  { %18979 = vst [vmem:[#allocation80_spill] sm:$0xff] %v16063_v6  ;;  %18980 = vst [vmem:[#allocation64_spill] sm:$0xff] %v16069_v28  ;;  %v6080_v26 = vadd.f32 %v18983_v13, %v5441_v46  ;;  %v16078_v52 = vadd.f32 %v18984_v11, %v5442_v27  ;;  %v7328_v33 = vmul.f32 %v18981_v2, %v7246_v18  ;;  %v18990_v20 = vld [vmem:[#allocation78_spill] sm:$0xff]  ;;  %v18991_v46 = vld [vmem:[#allocation96_spill] sm:$0xff] }
 0x547   :  { %v16082_v48 = vmul.f32 %v18986_v15, %v7262_v45  ;;  %v5445_v10 = vadd.f32 %v5413_v58, %v15627_v21  ;;  %v5446_v56 = vadd.f32 %v5414_v19, %v15630_v50  ;;  %18988 = vst [vmem:[#allocation139_spill] sm:$0xff] %v16086_v14  ;;  %v7247_v38 = vsel %vm488_vm12, %v18990_v20, %v18989_v53  ;;  %v18992_v49 = vld [vmem:[#allocation85_spill] sm:$0xff]  ;;  %v16104_v21 = vpop.permute.xlu0 %6548  ;;  %v18994_v45 = vld [vmem:[#allocation91_spill] sm:$0xff] }
 0x548   :  { %18985 = vst [vmem:[#allocation69_spill] sm:$0xff] %v16078_v52  ;;  %v5332_v11 = vsel %vm368_vm3, %v18992_v49, %v18991_v46  ;;  %v5348_v27 = vsel %vm368_vm3, %v18991_v46, %v18992_v49  ;;  %v6606_v50 = vsel %vm464_vm15, %v16047_v9, %v16086_v14  ;;  %v5447_v58 = vadd.f32 %v5415_v12, %v15674_v0  ;;  %v18993_v18 = vld [vmem:[#allocation81_spill] sm:$0xff]  ;;  %v18996_v12 = vld [vmem:[#allocation107_spill] sm:$0xff]  ;;  %v19000_v52 = vld [vmem:[#allocation20_spill] sm:$0xff] }
 0x549   :  { %18987 = vst [vmem:[#allocation71_spill] sm:$0xff] %v16082_v48  ;;  %v5448_v19 = vadd.f32 %v5416_v36, %v15695_v44  ;;  %v7248_v54 = vsel %vm488_vm12, %v18994_v45, %v18993_v18  ;;  %v6687_v13 = vmul.f32 %v15890_v34, %v6606_v50  ;;  %v16117_v46 = vsel %vm488_vm12, %v18989_v53, %v18990_v20  ;;  %v18997_v36 = vld [vmem:[#allocation110_spill] sm:$0xff]  ;;  %v16130_v28 = vpop.permute.xlu1 %6550  ;;  %v18999_v53 = vld [vmem:[#allocation113_spill] sm:$0xff] }
 0x54a   :  { %18995 = vst [vmem:[#allocation142_spill] sm:$0xff] %v16117_v46  ;;  %v7264_v0 = vsel %vm488_vm12, %v18993_v18, %v18994_v45  ;;  %v6082_v44 = vadd.f32 %v18996_v12, %v5443_v31  ;;  %v16125_v49 = vadd.f32 %v18997_v36, %v5444_v23  ;;  %v7330_v30 = vmul.f32 %v18981_v2, %v7247_v38  ;;  %v19001_v18 = vld [vmem:[#allocation86_spill] sm:$0xff]  ;;  %v19005_v12 = vld [vmem:[#allocation115_spill] sm:$0xff]  ;;  %v19010_v40 = vld [vmem:[#allocation89_spill] sm:$0xff] }
 0x54b   :  { %v5417_v50 = vmul.f32 %v15328_v61, %v5332_v11  ;;  %v5418_v48 = vmul.f32 %v15341_v55, %v5348_v27  ;;  %v6084_v20 = vadd.f32 %v18999_v53, %v5445_v10  ;;  %v16134_v4 = vmul.f32 %v18981_v2, %v7248_v54  ;;  %v16140_v45 = vpop.permute.xlu0 %6580  ;;  %v19004_v27 = vld [vmem:[#allocation112_spill] sm:$0xff]  ;;  %v19007_v53 = vld [vmem:[#allocation25_spill] sm:$0xff] }
 0x54c   :  { %18998 = vst [vmem:[#allocation65_spill] sm:$0xff] %v16125_v49  ;;  %v5333_v31 = vsel %vm368_vm3, %v19001_v18, %v19000_v52  ;;  %v6719_v23 = vadd.f32 %v6687_v13, %v6080_v26  ;;  %v16143_v38 = vadd.f32 %v15612_v43, %v5446_v56  ;;  %v16146_v11 = vmul.f32 %v18986_v15, %v7264_v0  ;;  %v19008_v26 = vld [vmem:[#allocation90_spill] sm:$0xff] }
 0x54d   :  { %v6607_v10 = vsel %vm464_vm15, %v16104_v21, %v16140_v45  ;;  %v6086_v54 = vadd.f32 %v19004_v27, %v5447_v58  ;;  %v16154_v36 = vadd.f32 %v19005_v12, %v5448_v19  ;;  %v7249_v13 = vsel %vm488_vm12, %v19008_v26, %v19007_v53  ;;  %v19009_v12 = vld [vmem:[#allocation103_spill] sm:$0xff]  ;;  %v16176_v49 = vpop.permute.xlu1 %6582 }
 0x54e   :  { %19002 = vst [vmem:[#allocation59_spill] sm:$0xff] %v16143_v38  ;;  %19003 = vst [vmem:[#allocation72_spill] sm:$0xff] %v16146_v11  ;;  %v7265_v43 = vsel %vm488_vm12, %v19007_v53, %v19008_v26  ;;  %v5349_v56 = vsel %vm368_vm3, %v19000_v52, %v19001_v18  ;;  %v6689_v58 = vmul.f32 %v15890_v34, %v6607_v10 }
 0x54f   :  { %19006 = vst [vmem:[#allocation17_spill] sm:$0xff] %v16154_v36  ;;  %v5449_v19 = vadd.f32 %v5417_v50, %v15698_v63  ;;  %v5450_v0 = vadd.f32 %v5418_v48, %v15712_v3  ;;  %v5419_v27 = vmul.f32 %v15328_v61, %v5333_v31  ;;  %v5334_v11 = vsel %vm368_vm3, %v19010_v40, %v19009_v12  ;;  %v16186_v3 = vpop.permute.xlu0 %6552  ;;  %v19018_v36 = vld [vmem:[#allocation104_spill] sm:$0xff] }
 0x550   :  { %v5350_v52 = vsel %vm368_vm3, %v19009_v12, %v19010_v40  ;;  %v7358_v18 = vadd.f32 %v7326_v37, %v6719_v23  ;;  %v6721_v10 = vadd.f32 %v6689_v58, %v6082_v44  ;;  %v6608_v63 = vsel %vm464_vm15, %v16130_v28, %v16176_v49  ;;  %v19012_v40 = vld [vmem:[#allocation93_spill] sm:$0xff]  ;;  %v19013_v37 = vld [vmem:[#allocation92_spill] sm:$0xff]  ;;  %v19014_v58 = vld [vmem:[#allocation35_spill] sm:$0xff] }
 0x551   :  { %v16189_v48 = vmul.f32 %v18981_v2, %v7249_v13  ;;  %v16192_v50 = vmul.f32 %v18986_v15, %v7265_v43  ;;  %v5420_v31 = vmul.f32 %v15341_v55, %v5349_v56  ;;  %v6691_v53 = vmul.f32 %v15890_v34, %v6608_v63  ;;  %v16207_v56 = vpop.permute.xlu1 %6554  ;;  %v19015_v63 = vld [vmem:[#allocation116_spill] sm:$0xff] }
 0x552   :  { %v7250_v44 = vsel %vm488_vm12, %v19013_v37, %v19012_v40  ;;  %v7266_v23 = vsel %vm488_vm12, %v19012_v40, %v19013_v37  ;;  %v5421_v26 = vmul.f32 %v15328_v61, %v5334_v11  ;;  %v7360_v13 = vadd.f32 %v7328_v33, %v6721_v10 }
 0x553   :  { %19011 = vst [vmem:[#allocation24_spill] sm:$0xff] %v16192_v50  ;;  %v5451_v43 = vadd.f32 %v5419_v27, %v19014_v58  ;;  %v5422_v12 = vmul.f32 %v15341_v55, %v5350_v52  ;;  %v6088_v46 = vadd.f32 %v19015_v63, %v5449_v19  ;;  %v19016_v50 = vld [vmem:[#allocation119_spill] sm:$0xff]  ;;  %v5335_v6 = vsel %vm368_vm3, %v19019_v41, %v19018_v36  ;;  %v16217_v33 = vpop.permute.xlu0 %6584  ;;  %v19020_v27 = vld [vmem:[#allocation125_spill] sm:$0xff] }
 0x554   :  { %v16211_v38 = vadd.f32 %v19016_v50, %v5450_v0  ;;  %v7454_v40 = vmax.f32 %v7358_v18, 0.0  ;;  %v7456_v37 = vmax.f32 %v7360_v13, 0.0  ;;  %v6723_v11 = vadd.f32 %v6691_v53, %v6084_v20  ;;  %v19023_v53 = vld [vmem:[#allocation106_spill] sm:$0xff] }
 0x555   :  { %v5452_v10 = vadd.f32 %v5420_v31, %v19020_v27  ;;  %v7336_v52 = vmul.f32 %v18981_v2, %v7250_v44  ;;  %v16222_v58 = vmul.f32 %v18986_v15, %v7266_v23  ;;  %v6609_v19 = vsel %vm464_vm15, %v16186_v3, %v16217_v33  ;;  %v19024_v44 = vld [vmem:[#allocation100_spill] sm:$0xff]  ;;  %v16246_v13 = vpop.permute.xlu1 %6586 }
 0x556   :  { %19017 = vst [vmem:[#allocation58_spill] sm:$0xff] %v16211_v38  ;;  %v5453_v0 = vadd.f32 %v5421_v26, %v15789_v60  ;;  %v5351_v20 = vsel %vm368_vm3, %v19018_v36, %v19019_v41  ;;  %v16233_v18 = vpack.c.bf16 %v7456_v37, %v7454_v40  ;;  %v6693_v50 = vmul.f32 %v15890_v34, %v6609_v19  ;;  %v19025_v41 = vld [vmem:[#allocation117_spill] sm:$0xff] }
 0x557   :  { %19021 = vst [vmem:[#allocation76_spill] sm:$0xff] %v16222_v58  ;;  %v5454_v31 = vadd.f32 %v5422_v12, %v15799_v29  ;;  %v7251_v23 = vsel %vm488_vm12, %v19024_v44, %v19023_v53  ;;  %v7267_v60 = vsel %vm488_vm12, %v19023_v53, %v19024_v44  ;;  %v5423_v26 = vmul.f32 %v15328_v61, %v5335_v6  ;;  %v19026_v36 = vld [vmem:[#allocation109_spill] sm:$0xff]  ;;  %v16256_v37 = vpop.permute.xlu0 %6556  ;;  %v19028_v44 = vld [vmem:[#allocation122_spill] sm:$0xff] }
 0x558   :  { %19022 = vst [vmem:[#allocation67_spill] sm:$0xff] %v16233_v18  ;;  %v5336_v63 = vsel %vm368_vm3, %v19026_v36, %v19025_v41  ;;  %v7362_v29 = vadd.f32 %v7330_v30, %v6723_v11  ;;  %v6725_v12 = vadd.f32 %v6693_v50, %v6086_v54  ;;  %v6610_v40 = vsel %vm464_vm15, %v16207_v56, %v16246_v13  ;;  %v19027_v19 = vld [vmem:[#allocation121_spill] sm:$0xff]  ;;  %v19031_v54 = vld [vmem:[#allocation108_spill] sm:$0xff]  ;;  %v19032_v11 = vld [vmem:[#allocation99_spill] sm:$0xff] }
 0x559   :  { %v5424_v27 = vmul.f32 %v15341_v55, %v5351_v20  ;;  %v6695_v6 = vmul.f32 %v15890_v34, %v6610_v40  ;;  %v6090_v53 = vadd.f32 %v19027_v19, %v5451_v43  ;;  %v16262_v18 = vadd.f32 %v19028_v44, %v5452_v10  ;;  %v16277_v19 = vpop.permute.xlu1 %6558  ;;  %v19033_v10 = vld [vmem:[#allocation32_spill] sm:$0xff] }
 0x55a   :  { %v16265_v58 = vmul.f32 %v18981_v2, %v7251_v23  ;;  %v16268_v30 = vmul.f32 %v18986_v15, %v7267_v60  ;;  %v7252_v50 = vsel %vm488_vm12, %v19032_v11, %v19031_v54  ;;  %v7364_v20 = vadd.f32 %v16134_v4, %v6725_v12 }
 0x55b   :  { %19029 = vst [vmem:[#allocation140_spill] sm:$0xff] %v16262_v18  ;;  %v5455_v40 = vadd.f32 %v5423_v26, %v15825_v42  ;;  %v5425_v43 = vmul.f32 %v15328_v61, %v5336_v63  ;;  %v6092_v44 = vadd.f32 %v19033_v10, %v5453_v0  ;;  %v16281_v23 = vadd.f32 %v15784_v62, %v5454_v31  ;;  %v16287_v4 = vpop.permute.xlu0 %6588  ;;  %v19034_v26 = vld [vmem:[#allocation30_spill] sm:$0xff] }
 0x55c   :  { %19030 = vst [vmem:[#allocation141_spill] sm:$0xff] %v16268_v30  ;;  %v5352_v60 = vsel %vm368_vm3, %v19025_v41, %v19026_v36  ;;  %v7458_v30 = vmax.f32 %v7362_v29, 0.0  ;;  %v7460_v38 = vmax.f32 %v7364_v20, 0.0  ;;  %v6727_v14 = vadd.f32 %v6695_v6, %v6088_v46  ;;  %v19035_v41 = vld [vmem:[#allocation114_spill] sm:$0xff]  ;;  %v19038_v6 = vld [vmem:[#allocation111_spill] sm:$0xff] }
 0x55d   :  { %v5456_v42 = vadd.f32 %v5424_v27, %v15828_v16  ;;  %v7268_v0 = vsel %vm488_vm12, %v19031_v54, %v19032_v11  ;;  %v7340_v62 = vmul.f32 %v18981_v2, %v7252_v50  ;;  %v6611_v31 = vsel %vm464_vm15, %v16256_v37, %v16287_v4  ;;  %v19037_v27 = vld [vmem:[#allocation120_spill] sm:$0xff]  ;;  %v16320_v50 = vpop.permute.xlu1 %6590 }
 0x55e   :  { %v5337_v46 = vsel %vm368_vm3, %v19035_v41, %v19034_v26  ;;  %v5353_v16 = vsel %vm368_vm3, %v19034_v26, %v19035_v41  ;;  %v16307_v36 = vpack.c.bf16 %v7460_v38, %v7458_v30  ;;  %v6697_v63 = vmul.f32 %v15890_v34, %v6611_v31  ;;  %v19039_v38 = vld [vmem:[#allocation123_spill] sm:$0xff] }
 0x55f   :  { %v5426_v29 = vmul.f32 %v15341_v55, %v5352_v60  ;;  %v5457_v12 = vadd.f32 %v5425_v43, %v15863_v1  ;;  %v7253_v54 = vsel %vm488_vm12, %v19038_v6, %v19037_v27  ;;  %v7269_v11 = vsel %vm488_vm12, %v19037_v27, %v19038_v6  ;;  %v16331_v10 = vpop.permute.xlu0 %6560  ;;  %v19042_v27 = vld [vmem:[#allocation126_spill] sm:$0xff] }
 0x560   :  { %19036 = vst [vmem:[#allocation147_spill] sm:$0xff] %v16307_v36  ;;  %v5338_v30 = vsel %vm368_vm3, %v19039_v38, %v15865_v22  ;;  %v7366_v20 = vadd.f32 %v16189_v48, %v6727_v14  ;;  %v6729_v1 = vadd.f32 %v6697_v63, %v6090_v53  ;;  %v6612_v43 = vsel %vm464_vm15, %v16277_v19, %v16320_v50  ;;  %v19041_v53 = vld [vmem:[#allocation124_spill] sm:$0xff] }
 0x561   :  { %v16334_v60 = vmul.f32 %v18986_v15, %v7268_v0  ;;  %v5427_v31 = vmul.f32 %v15328_v61, %v5337_v46  ;;  %v5428_v26 = vmul.f32 %v15341_v55, %v5353_v16  ;;  %v6699_v41 = vmul.f32 %v15890_v34, %v6612_v43  ;;  %v6563_v43 = vpop.permute.xlu1 %6562 }
 0x562   :  { %v5354_v14 = vsel %vm368_vm3, %v15865_v22, %v19039_v38  ;;  %v7368_v48 = vadd.f32 %v7336_v52, %v6729_v1  ;;  %v6094_v63 = vadd.f32 %v19041_v53, %v5455_v40  ;;  %v16345_v6 = vadd.f32 %v19042_v27, %v5456_v42 }
 0x563   :  { %19040 = vst [vmem:[#allocation27_spill] sm:$0xff] %v16334_v60  ;;  %v5458_v0 = vadd.f32 %v5426_v29, %v15876_v5  ;;  %v7342_v36 = vmul.f32 %v18981_v2, %v7253_v54  ;;  %v16350_v46 = vmul.f32 %v18986_v15, %v7269_v11  ;;  %v5429_v16 = vmul.f32 %v15328_v61, %v5338_v30  ;;  %v6593_v22 = vpop.permute.xlu0 %6592  ;;  %v19044_v54 = vld [vmem:[#allocation53_spill] sm:$0xff]  ;;  %v19045_v11 = vld [vmem:[#allocation118_spill] sm:$0xff] }
 0x564   :  { %v7462_v9 = vmax.f32 %v7366_v20, 0.0  ;;  %v7464_v60 = vmax.f32 %v7368_v48, 0.0  ;;  %v6731_v18 = vadd.f32 %v6699_v41, %v6092_v44  ;;  %v6096_v52 = vadd.f32 %v15843_v51, %v5457_v12  ;;  %v19046_v30 = vld [vmem:[#allocation29_spill] sm:$0xff]  ;;  %v19047_v44 = vld [vmem:[#allocation44_spill] sm:$0xff] }
 0x565   :  { %19043 = vst [vmem:[#allocation75_spill] sm:$0xff] %v16350_v46  ;;  %v5459_v40 = vadd.f32 %v5427_v31, %v15884_v59  ;;  %v5460_v42 = vadd.f32 %v5428_v26, %v15887_v35  ;;  %v5430_v5 = vmul.f32 %v15341_v55, %v5354_v14  ;;  %v6613_v29 = vsel %vm464_vm15, %v16331_v10, %v6593_v22  ;;  %v19049_v20 = vld [vmem:[#allocation129_spill] sm:$0xff]  ;;  %v19050_v31 = vld [vmem:[#allocation132_spill] sm:$0xff]  ;;  %v19051_v26 = vld [vmem:[#allocation46_spill] sm:$0xff] }
 0x566   :  { %v7254_v38 = vsel %vm488_vm12, %v19045_v11, %v19044_v54  ;;  %v5339_v51 = vsel %vm368_vm3, %v19047_v44, %v19046_v30  ;;  %v16368_v12 = vpack.c.bf16 %v7464_v60, %v7462_v9  ;;  %v6701_v59 = vmul.f32 %v15890_v34, %v6613_v29  ;;  %v6595_v60 = vpop.permute.xlu1 %6594  ;;  %v19055_v46 = vld [vmem:[#allocation52_spill] sm:$0xff] }
 0x567   :  { %v7270_v35 = vsel %vm488_vm12, %v19044_v54, %v19045_v11  ;;  %v5461_v1 = vadd.f32 %v5429_v16, %v19049_v20  ;;  %v7255_v41 = vsel %vm488_vm12, %v19051_v26, %v19050_v31  ;;  %v7271_v9 = vsel %vm488_vm12, %v19050_v31, %v19051_v26  ;;  %v6565_v16 = vpop.permute.xlu0 %6564  ;;  %v19052_v11 = vld [vmem:[#allocation49_spill] sm:$0xff] }
 0x568   :  { %19048 = vst [vmem:[#allocation145_spill] sm:$0xff] %v16368_v12  ;;  %v5355_v14 = vsel %vm368_vm3, %v19046_v30, %v19047_v44  ;;  %v7370_v48 = vadd.f32 %v16265_v58, %v6731_v18  ;;  %v6733_v53 = vadd.f32 %v6701_v59, %v6094_v63  ;;  %v6614_v27 = vsel %vm464_vm15, %v6563_v43, %v6595_v60  ;;  %v19053_v44 = vld [vmem:[#allocation127_spill] sm:$0xff] }
 0x569   :  { %v5462_v29 = vadd.f32 %v5430_v5, %v15964_v25  ;;  %v5431_v54 = vmul.f32 %v15328_v61, %v5339_v51  ;;  %v6097_v20 = vadd.f32 %v19052_v11, %v5458_v0  ;;  %v6703_v31 = vmul.f32 %v15890_v34, %v6614_v27  ;;  %v19054_v25 = vld [vmem:[#allocation47_spill] sm:$0xff] }
 0x56a   :  { %v7344_v26 = vmul.f32 %v18981_v2, %v7254_v38  ;;  %v7345_v12 = vmul.f32 %v18986_v15, %v7270_v35  ;;  %v7372_v30 = vadd.f32 %v7340_v62, %v6733_v53  ;;  %v6098_v58 = vadd.f32 %v19053_v44, %v5459_v40  ;;  %v6567_v61 = vpop.permute.xlu1 %6566  ;;  %v19058_v53 = vld [vmem:[#allocation48_spill] sm:$0xff] }
 0x56b   :  { %v7346_v18 = vmul.f32 %v18981_v2, %v7255_v41  ;;  %v7347_v63 = vmul.f32 %v18986_v15, %v7271_v9  ;;  %v5432_v59 = vmul.f32 %v15341_v55, %v5355_v14  ;;  %v6099_v5 = vadd.f32 %v19054_v25, %v5460_v42  ;;  %v6597_v27 = vpop.permute.xlu0 %6596  ;;  %v19056_v41 = vld [vmem:[#allocation61_spill] sm:$0xff]  ;;  %v19057_v55 = vld [vmem:[#allocation130_spill] sm:$0xff] }
 0x56c   :  { %v7466_v51 = vmax.f32 %v7370_v48, 0.0  ;;  %v7468_v0 = vmax.f32 %v7372_v30, 0.0  ;;  %v6735_v11 = vadd.f32 %v6703_v31, %v6096_v52  ;;  %v6100_v38 = vadd.f32 %v19055_v46, %v5461_v1 }
 0x56d   :  { %v5463_v35 = vadd.f32 %v5431_v54, %v15982_v17  ;;  %v6615_v62 = vsel %vm464_vm15, %v6565_v16, %v6597_v27  ;;  %v6631_v40 = vsel %vm464_vm15, %v6597_v27, %v6565_v16  ;;  %v6101_v9 = vadd.f32 %v19056_v41, %v5462_v29 }
 0x56e   :  { %v7256_v42 = vsel %vm488_vm12, %v19057_v55, %v15976_v8  ;;  %v7272_v46 = vsel %vm488_vm12, %v15976_v8, %v19057_v55  ;;  %v16417_v52 = vpack.c.bf16 %v7468_v0, %v7466_v51  ;;  %v6705_v17 = vmul.f32 %v15890_v34, %v6615_v62  ;;  %v6599_v29 = vpop.permute.xlu1 %6598 }
 0x56f   :  { %v5464_v1 = vadd.f32 %v5432_v59, %v15994_v24  ;;  %v6629_v14 = vsel %vm464_vm15, %v6593_v22, %v16331_v10  ;;  %v6630_v48 = vsel %vm464_vm15, %v6595_v60, %v6563_v43  ;;  %v6706_v16 = vmul.f32 %v19058_v53, %v6631_v40  ;;  %v6569_v44 = vpop.permute.xlu0 %6568 }
 0x570   :  { %v7374_v54 = vadd.f32 %v7342_v36, %v6735_v11  ;;  %v6737_v31 = vadd.f32 %v6705_v17, %v6098_v58  ;;  %v6616_v8 = vsel %vm464_vm15, %v6567_v61, %v6599_v29  ;;  %v6632_v30 = vsel %vm464_vm15, %v6599_v29, %v6567_v61 }
 0x571   :  { %v7348_v24 = vmul.f32 %v18981_v2, %v7256_v42  ;;  %v7349_v59 = vmul.f32 %v18986_v15, %v7272_v46  ;;  %v6707_v10 = vmul.f32 %v15890_v34, %v6616_v8  ;;  %v6708_v43 = vmul.f32 %v19058_v53, %v6632_v30  ;;  %v19061_v8 = vld [vmem:[#allocation27_spill] sm:$0xff] }
 0x572   :  { %v6628_v36 = vsel %vm464_vm15, %v16320_v50, %v16277_v19  ;;  %v6704_v22 = vmul.f32 %v19058_v53, %v6630_v48  ;;  %v7376_v60 = vadd.f32 %v7344_v26, %v6737_v31  ;;  %v6102_v58 = vadd.f32 %v15969_v39, %v5463_v35  ;;  %v16446_v0 = vpop.permute.xlu1 %5899 }
 0x573   :  { %v6627_v25 = vsel %vm464_vm15, %v16287_v4, %v16256_v37  ;;  %v6702_v61 = vmul.f32 %v19058_v53, %v6629_v14  ;;  %v6738_v51 = vadd.f32 %v6706_v16, %v6099_v5  ;;  %v6103_v11 = vadd.f32 %v15972_v7, %v5464_v1  ;;  %v6601_v40 = vpop.permute.xlu0 %6600 }
 0x574   :  { %v7470_v27 = vmax.f32 %v7374_v54, 0.0  ;;  %v7472_v62 = vmax.f32 %v7376_v60, 0.0  ;;  %v6739_v19 = vadd.f32 %v6707_v10, %v6100_v38  ;;  %v6740_v50 = vadd.f32 %v6708_v43, %v6101_v9  ;;  %v19060_v54 = vld [vmem:[#allocation140_spill] sm:$0xff]  ;;  %v19064_v60 = vld [vmem:[#allocation58_spill] sm:$0xff] }
 0x575   :  { %v6626_v39 = vsel %vm464_vm15, %v16246_v13, %v16207_v56  ;;  %v6700_v26 = vmul.f32 %v19058_v53, %v6628_v36  ;;  %v6617_v37 = vsel %vm464_vm15, %v6569_v44, %v6601_v40  ;;  %v6633_v4 = vsel %vm464_vm15, %v6601_v40, %v6569_v44  ;;  %v19068_v40 = vld [vmem:[#allocation17_spill] sm:$0xff] }
 0x576   :  { %v6736_v5 = vadd.f32 %v6704_v22, %v6097_v20  ;;  %v16458_v7 = vpack.c.bf16 %v7472_v62, %v7470_v27  ;;  %v6709_v38 = vmul.f32 %v15890_v34, %v6617_v37  ;;  %v6710_v35 = vmul.f32 %v19058_v53, %v6633_v4  ;;  %v16468_v55 = vpop.permute.xlu1 %5931  ;;  %v19069_v37 = vld [vmem:[#allocation76_spill] sm:$0xff] }
 0x577   :  { %v6625_v56 = vsel %vm464_vm15, %v16217_v33, %v16186_v3  ;;  %v6698_v13 = vmul.f32 %v19058_v53, %v6627_v25  ;;  %v6734_v41 = vadd.f32 %v6702_v61, %v16345_v6  ;;  %v7377_v9 = vadd.f32 %v7345_v12, %v6738_v51  ;;  %v16470_v1 = vpop.permute.xlu0 %5901  ;;  %v19065_v25 = vld [vmem:[#allocation141_spill] sm:$0xff] }
 0x578   :  { %v7378_v42 = vadd.f32 %v7346_v18, %v6739_v19  ;;  %v7379_v20 = vadd.f32 %v7347_v63, %v6740_v50  ;;  %v6741_v46 = vadd.f32 %v6709_v38, %v6102_v58  ;;  %v6742_v17 = vadd.f32 %v6710_v35, %v6103_v11  ;;  %v19059_v18 = vld [vmem:[#allocation75_spill] sm:$0xff]  ;;  %v19066_v19 = vld [vmem:[#allocation80_spill] sm:$0xff] }
 0x579   :  { %v6604_v14 = vsel %vm464_vm15, %v15966_v57, %v16006_v32  ;;  %v6623_v3 = vsel %vm464_vm15, %v16140_v45, %v16104_v21  ;;  %v6624_v33 = vsel %vm464_vm15, %v16176_v49, %v16130_v28  ;;  %v6696_v6 = vmul.f32 %v19058_v53, %v6626_v39 }
 0x57a   :  { %v6732_v12 = vadd.f32 %v6700_v26, %v16281_v23  ;;  %v7375_v63 = vadd.f32 %v19059_v18, %v6736_v5  ;;  %v7380_v48 = vadd.f32 %v7348_v24, %v6741_v46  ;;  %v7381_v16 = vadd.f32 %v7349_v59, %v6742_v17  ;;  %v7182_v45 = vpop.permute.xlu1 %7181  ;;  %v19062_v24 = vld [vmem:[#allocation133_spill] sm:$0xff]  ;;  %v19063_v59 = vld [vmem:[#allocation139_spill] sm:$0xff]  ;;  %v19071_v46 = vld [vmem:[#allocation24_spill] sm:$0xff] }
 0x57b   :  { %v6694_v29 = vmul.f32 %v19058_v53, %v6625_v56  ;;  %v6730_v31 = vadd.f32 %v6698_v13, %v19060_v54  ;;  %v7373_v30 = vadd.f32 %v19061_v8, %v6734_v41  ;;  %v7473_v21 = vmax.f32 %v7377_v9, 0.0  ;;  %v16490_v49 = vpop.permute.xlu0 %5933  ;;  %v19070_v9 = vld [vmem:[#allocation59_spill] sm:$0xff]  ;;  %v19073_v18 = vld [vmem:[#allocation65_spill] sm:$0xff]  ;;  %v19075_v54 = vld [vmem:[#allocation70_spill] sm:$0xff] }
 0x57c   :  { %v7474_v44 = vmax.f32 %v7378_v42, 0.0  ;;  %v7475_v10 = vmax.f32 %v7379_v20, 0.0  ;;  %v7476_v43 = vmax.f32 %v7380_v48, 0.0  ;;  %v7477_v28 = vmax.f32 %v7381_v16, 0.0  ;;  %v19074_v48 = vld [vmem:[#allocation72_spill] sm:$0xff] }
 0x57d   :  { %v6620_v23 = vsel %vm464_vm15, %v16006_v32, %v15966_v57  ;;  %v6622_v36 = vsel %vm464_vm15, %v19063_v59, %v19062_v24  ;;  %v6692_v22 = vmul.f32 %v19058_v53, %v6624_v33  ;;  %v6728_v58 = vadd.f32 %v6696_v6, %v19064_v60  ;;  %v19067_v57 = vld [vmem:[#allocation28_spill] sm:$0xff]  ;;  %v19072_v33 = vld [vmem:[#allocation142_spill] sm:$0xff]  ;;  %v19077_v59 = vld [vmem:[#allocation135_spill] sm:$0xff] }
 0x57e   :  { %v7371_v61 = vadd.f32 %v19065_v25, %v6732_v12  ;;  %v7471_v51 = vmax.f32 %v7375_v63, 0.0  ;;  %v16503_v11 = vpack.c.bf16 %v7476_v43, %v7474_v44  ;;  %v16505_v27 = vpack.c.bf16 %v7477_v28, %v7475_v10  ;;  %v7214_v26 = vpop.permute.xlu1 %7213  ;;  %v19076_v10 = vld [vmem:[#allocation69_spill] sm:$0xff]  ;;  %v19078_v25 = vld [vmem:[#allocation64_spill] sm:$0xff] }
 0x57f   :  { %v6683_v62 = vmul.f32 %v15890_v34, %v6604_v14  ;;  %v6605_v32 = vsel %vm464_vm15, %v19067_v57, %v19066_v19  ;;  %v6690_v50 = vmul.f32 %v19058_v53, %v6623_v3  ;;  %v6726_v39 = vadd.f32 %v6694_v29, %v19068_v40  ;;  %v7184_v56 = vpop.permute.xlu0 %7183 }
 0x580   :  { %v7369_v4 = vadd.f32 %v19069_v37, %v6730_v31  ;;  %v7469_v5 = vmax.f32 %v7373_v30, 0.0  ;;  %v16515_v38 = vpack.c.bf16 %v7473_v21, %v7471_v51  ;;  %v7243_v35 = vsel %vm488_vm12, %v7182_v45, %v7214_v26  ;;  %7782 = vmatprep.subr.bf16.mxu1 %v16505_v27  ;;  %8434 = vmatprep.subr.bf16.mxu0 %v16505_v27  ;;  %v19079_v51 = vld [vmem:[#allocation71_spill] sm:$0xff] }
 0x581   :  { %v6621_v13 = vsel %vm464_vm15, %v19066_v19, %v19067_v57  ;;  %v6688_v41 = vmul.f32 %v19058_v53, %v6622_v36  ;;  %v6724_v42 = vadd.f32 %v6692_v22, %v19070_v9  ;;  %7783 = vmatpush1.bf16.msra.mxu1 %v16503_v11  ;;  %v6685_v20 = vmul.f32 %v15890_v34, %v6605_v32 }
 0x582   :  { %v7367_v17 = vadd.f32 %v19071_v46, %v6728_v58  ;;  %v7467_v14 = vmax.f32 %v7371_v61, 0.0  ;;  %v7322_v3 = vmul.f32 %v18981_v2, %v7243_v35  ;;  %8435 = vmatpush1.bf16.msra.mxu0 %v16503_v11  ;;  %7784 = vmatprep.subr.bf16.mxu1 %v16515_v38  ;;  %v7331_v6 = vmul.f32 %v18986_v15, %v19072_v33  ;;  %v6539_v29 = vpop.permute.xlu1 %6538  ;;  %v19081_v35 = vld [vmem:[#allocation138_spill] sm:$0xff] }
 0x583   :  { %v6684_v12 = vmul.f32 %v19058_v53, %v6620_v23  ;;  %v6722_v63 = vadd.f32 %v6690_v50, %v19073_v18  ;;  %v7365_v16 = vadd.f32 %v19074_v48, %v6726_v39  ;;  %8436 = vmatprep.subr.bf16.mxu0 %v16515_v38  ;;  %v6715_v31 = vadd.f32 %v6683_v62, %v19075_v54  ;;  %v7216_v44 = vpop.permute.xlu0 %7215  ;;  %v19080_v50 = vld [vmem:[#allocation136_spill] sm:$0xff]  ;;  %v19082_v48 = vld [vmem:[#allocation55_spill] sm:$0xff] }
 0x584   :  { %v6686_v8 = vmul.f32 %v19058_v53, %v6621_v13  ;;  %v7465_v30 = vmax.f32 %v7369_v4, 0.0  ;;  %v16541_v21 = vpack.c.bf16 %v7469_v5, %v7467_v14  ;;  %v6720_v43 = vadd.f32 %v6688_v41, %v19076_v10  ;;  %v19083_v54 = vld [vmem:[#allocation51_spill] sm:$0xff] }
 0x585   :  { %v7363_v28 = vadd.f32 %v7331_v6, %v6724_v42  ;;  %v7244_v23 = vsel %vm488_vm12, %v7184_v56, %v7216_v44  ;;  %v7260_v24 = vsel %vm488_vm12, %v7216_v44, %v7184_v56  ;;  %7785 = vmatpush1.bf16.msra.mxu1 %v16458_v7  ;;  %v6717_v36 = vadd.f32 %v6685_v20, %v19077_v59 }
 0x586   :  { %v7463_v22 = vmax.f32 %v7367_v17, 0.0  ;;  %v7354_v60 = vadd.f32 %v7322_v3, %v6715_v31  ;;  %v7324_v58 = vmul.f32 %v18981_v2, %v7244_v23  ;;  %8437 = vmatpush1.bf16.msra.mxu0 %v16458_v7  ;;  %7786 = vmatprep.subr.bf16.mxu1 %v16541_v21  ;;  %v7327_v61 = vmul.f32 %v18986_v15, %v19078_v25  ;;  %v6571_v32 = vpop.permute.xlu1 %6570  ;;  %v19086_v25 = vld [vmem:[#allocation68_spill] sm:$0xff] }
 0x587   :  { %v7361_v62 = vadd.f32 %v19079_v51, %v6722_v63  ;;  %v7461_v19 = vmax.f32 %v7365_v16, 0.0  ;;  %v7259_v57 = vsel %vm488_vm12, %v7214_v26, %v7182_v45  ;;  %8438 = vmatprep.subr.bf16.mxu0 %v16541_v21  ;;  %v6716_v40 = vadd.f32 %v6684_v12, %v19080_v50  ;;  %v6541_v5 = vpop.permute.xlu0 %6540  ;;  %v19087_v51 = vld [vmem:[#allocation66_spill] sm:$0xff] }
 0x588   :  { %v16560_v39 = vpack.c.bf16 %v7465_v30, %v7463_v22  ;;  %v7325_v37 = vmul.f32 %v18986_v15, %v7260_v24  ;;  %v7356_v4 = vadd.f32 %v7324_v58, %v6717_v36  ;;  %v6718_v56 = vadd.f32 %v6686_v8, %v19081_v35  ;;  %v19085_v58 = vld [vmem:[#allocation23_spill] sm:$0xff]  ;;  %v19089_v50 = vld [vmem:[#allocation74_spill] sm:$0xff] }
 0x589   :  { %v7359_v13 = vadd.f32 %v7327_v61, %v6720_v43  ;;  %v7459_v41 = vmax.f32 %v7363_v28, 0.0  ;;  %v5963_v45 = vsel %vm440_vm14, %v16446_v0, %v16468_v55  ;;  %7787 = vmatpush1.bf16.msra.mxu1 %v16417_v52  ;;  %v5979_v26 = vsel %vm440_vm14, %v16468_v55, %v16446_v0 }
 0x58a   :  { %v7323_v9 = vmul.f32 %v18986_v15, %v7259_v57  ;;  %v7450_v42 = vmax.f32 %v7354_v60, 0.0  ;;  %v7452_v20 = vmax.f32 %v7356_v4, 0.0  ;;  %8439 = vmatpush1.bf16.msra.mxu0 %v16417_v52  ;;  %7788 = vmatprep.subr.bf16.mxu1 %v16560_v39  ;;  %v7457_v46 = vmax.f32 %v7361_v62, 0.0  ;;  %v7178_v55 = vpop.permute.xlu1 %7177 }
 0x58b   :  { %v16576_v17 = vpack.c.bf16 %v7461_v19, %v7459_v41  ;;  %v5964_v14 = vsel %vm440_vm14, %v16470_v1, %v16490_v49  ;;  %v5980_v0 = vsel %vm440_vm14, %v16490_v49, %v16470_v1  ;;  %8440 = vmatprep.subr.bf16.mxu0 %v16560_v39  ;;  %v7357_v3 = vadd.f32 %v7325_v37, %v6718_v56  ;;  %v6573_v18 = vpop.permute.xlu0 %6572  ;;  %v19084_v49 = vld [vmem:[#allocation145_spill] sm:$0xff] }
 0x58c   :  { %v16587_v33 = vpack.c.bf16 %v7452_v20, %v7450_v42  ;;  %v6602_v6 = vsel %vm464_vm15, %v6539_v29, %v6571_v32  ;;  %v6618_v12 = vsel %vm464_vm15, %v6571_v32, %v6539_v29  ;;  %v7455_v63 = vmax.f32 %v7359_v13, 0.0  ;;  %v19088_v32 = vld [vmem:[#allocation147_spill] sm:$0xff] }
 0x58d   :  { %v6040_v16 = vmul.f32 %v19082_v48, %v5963_v45  ;;  %v6041_v31 = vmul.f32 %v19083_v54, %v5979_v26  ;;  %v6603_v1 = vsel %vm464_vm15, %v6541_v5, %v6573_v18  ;;  %7789 = vmatpush1.bf16.msra.mxu1 %v19084_v49  ;;  %v6042_v8 = vmul.f32 %v19082_v48, %v5964_v14 }
 0x58e   :  { %v7355_v30 = vadd.f32 %v7323_v9, %v6716_v40  ;;  %v6619_v44 = vsel %vm464_vm15, %v6573_v18, %v6541_v5  ;;  %8441 = vmatpush1.bf16.msra.mxu0 %v19084_v49  ;;  %7790 = vmatprep.subr.bf16.mxu1 %v16576_v17  ;;  %v16603_v29 = vpack.c.bf16 %v7457_v46, %v7455_v63  ;;  %v7210_v23 = vpop.permute.xlu1 %7209  ;;  %v7453_v24 = vmax.f32 %v7357_v3, 0.0  ;;  %v19090_v40 = vld [vmem:[#allocation62_spill] sm:$0xff]  ;;  %v19091_v46 = vld [vmem:[#allocation67_spill] sm:$0xff] }
 0x58f   :  { %v6043_v10 = vmul.f32 %v19083_v54, %v5980_v0  ;;  %v6679_v43 = vmul.f32 %v15890_v34, %v6602_v6  ;;  %v6680_v28 = vmul.f32 %v19058_v53, %v6618_v12  ;;  %8442 = vmatprep.subr.bf16.mxu0 %v16576_v17  ;;  %v6681_v59 = vmul.f32 %v15890_v34, %v6603_v1  ;;  %v7180_v60 = vpop.permute.xlu0 %7179  ;;  %v11880_v54 = vld [vmem:[%s18029_s3 + $0x40] sm:$0xff]   ;;  %v11881_v1 = vld [vmem:[%s18029_s3 + $0x8] sm:$0xff]  }
 0x590   :  { %v7241_v36 = vsel %vm488_vm12, %v7178_v55, %v7210_v23  ;;  %v7257_v22 = vsel %vm488_vm12, %v7210_v23, %v7178_v55  ;;  %v5436_v61 = vadd.f32 %v19086_v25, %v19085_v58  ;;  %v6072_v62 = vadd.f32 %v6040_v16, %v19087_v51  ;;  %v11888_v23 = vld [vmem:[%s18029_s3 + $0x80] sm:$0xff]   ;;  %v11894_v58 = vld [vmem:[%s18029_s3 + $0x98] sm:$0xff]   ;;  %v11897_v51 = vld [vmem:[%s18029_s3 + $0x68] sm:$0xff]  }
 0x591   :  { %v6682_v19 = vmul.f32 %v19058_v53, %v6619_v44  ;;  %v7318_v57 = vmul.f32 %v18981_v2, %v7241_v36  ;;  %7791 = vmatpush1.bf16.msra.mxu1 %v19088_v32  ;;  %v6073_v34 = vadd.f32 %v6041_v31, %v19089_v50  ;;  %v6074_v37 = vadd.f32 %v6042_v8, %v19090_v40  ;;  %v11882_v8 = vld [vmem:[%s18029_s3 + $0x48] sm:$0xff]   ;;  %v11884_v44 = vld [vmem:[%s18029_s3 + $0x50] sm:$0xff]   ;;  %v11895_v25 = vld [vmem:[%s18029_s3 + $0x60] sm:$0xff]  }
 0x592   :  { %v7451_v4 = vmax.f32 %v7355_v30, 0.0  ;;  %v7319_v5 = vmul.f32 %v18986_v15, %v7257_v22  ;;  %8443 = vmatpush1.bf16.msra.mxu0 %v19088_v32  ;;  %7792 = vmatprep.subr.bf16.mxu1 %v16603_v29  ;;  %v6075_v35 = vadd.f32 %v6043_v10, %v5436_v61  ;;  %v6711_v56 = vadd.f32 %v6679_v43, %v6072_v62  ;;  %v11883_v30 = vld [vmem:[%s18029_s3 + $0x10] sm:$0xff]   ;;  %v11885_v10 = vld [vmem:[%s18029_s3 + $0x18] sm:$0xff]   ;;  %v11896_v61 = vld [vmem:[%s18029_s3 + $0xc0] sm:$0xff]  }
 0x593   :  { %8444 = vmatprep.subr.bf16.mxu0 %v16603_v29  ;;  %v6712_v13 = vadd.f32 %v6680_v28, %v6073_v34  ;;  %v6713_v41 = vadd.f32 %v6681_v59, %v6074_v37  ;;  %v7212_v45 = vpop.permute.xlu0 %7211  ;;  %v19092_v31 = vmov 0   ;;  %v11886_v43 = vld [vmem:[%s18029_s3 + $0x58] sm:$0xff]   ;;  %v11887_v28 = vld [vmem:[%s18029_s3 + $0x20] sm:$0xff]   ;;  %v11890_v59 = vld [vmem:[%s18029_s3 + $0x88] sm:$0xff]  }
 0x594   :  { %v16626_v53 = vpack.c.bf16 %v7453_v24, %v7451_v4  ;;  %v6714_v26 = vadd.f32 %v6682_v19, %v6075_v35  ;;  %v7350_v9 = vadd.f32 %v7318_v57, %v6711_v56  ;;  %v7242_v42 = vsel %vm488_vm12, %v7180_v60, %v7212_v45  ;;  %v11889_v24 = vld [vmem:[%s18029_s3 + $0x28] sm:$0xff]   ;;  %v11891_v36 = vld [vmem:[%s18029_s3 + $0x30] sm:$0xff]   ;;  %v11899_v50 = vld [vmem:[%s18029_s3 + $0x78] sm:$0xff]  }
 0x595   :  { %v7258_v20 = vsel %vm488_vm12, %v7212_v45, %v7180_v60  ;;  %7793 = vmatpush1.bf16.msra.mxu1 %v19091_v46  ;;  %v7351_v14 = vadd.f32 %v7319_v5, %v6712_v13  ;;  %v7320_v0 = vmul.f32 %v18981_v2, %v7242_v42  ;;  %v11892_v22 = vld [vmem:[%s18029_s3 + $0x90] sm:$0xff]   ;;  %v11893_v60 = vld [vmem:[%s18029_s3 + $0x38] sm:$0xff]   ;;  %v11901_v62 = vld [vmem:[%s18029_s3 + $0xc8] sm:$0xff]  }
 0x596   :  { %v7321_v55 = vmul.f32 %v18986_v15, %v7258_v20  ;;  %8445 = vmatpush1.bf16.msra.mxu0 %v19091_v46  ;;  %7794 = vmatprep.subr.bf16.mxu1 %v16626_v53  ;;  %v7446_v12 = vmax.f32 %v7350_v9, 0.0  ;;  %v11879_v15 = vld [vmem:[%s18029_s3] sm:$0xff]   ;;  %v11898_v19 = vld [vmem:[%s18029_s3 + $0x70] sm:$0xff]   ;;  %v11903_v34 = vld [vmem:[%s18029_s3 + $0xd8] sm:$0xff]  }
 0x597   :  { %8446 = vmatprep.subr.bf16.mxu0 %v16626_v53  ;;  %v7352_v3 = vadd.f32 %v7320_v0, %v6713_v41  ;;  %v7447_v18 = vmax.f32 %v7351_v14, 0.0  ;;  %v11902_v57 = vld [vmem:[%s18029_s3 + $0xd0] sm:$0xff]   ;;  %v11900_v40 = vld [vmem:[%s18029_s3 + $0xa0] sm:$0xff]   ;;  %v11905_v4 = vld [vmem:[%s18029_s3 + $0xa8] sm:$0xff]  }
 0x598   :  { %v7353_v6 = vadd.f32 %v7321_v55, %v6714_v26  ;;  %v11904_v37 = vld [vmem:[%s18029_s3 + $0x100] sm:$0xff]   ;;  %v11906_v5 = vld [vmem:[%s18029_s3 + $0x108] sm:$0xff]  }
 0x599   :  { %7795 = vmatpush1.bf16.msra.mxu1 %v16587_v33  ;;  %v7448_v63 = vmax.f32 %v7352_v3, 0.0 }
 0x59a   :  { %v7449_v48 = vmax.f32 %v7353_v6, 0.0  ;;  %8447 = vmatpush1.bf16.msra.mxu0 %v16587_v33 }
 0x59b   :  { %v16640_v16 = vpack.c.bf16 %v7448_v63, %v7446_v12 }
 0x59c   :  { %v16642_v2 = vpack.c.bf16 %v7449_v48, %v7447_v18 }
 0x59e   :  { %7796 = vmatprep.subr.bf16.mxu1 %v16642_v2  ;;  %8448 = vmatprep.subr.bf16.mxu0 %v16642_v2 }
 0x59f   :  { %7797 = vmatpush1.bf16.msra.mxu1 %v16640_v16  ;;  %8449 = vmatpush1.bf16.msra.mxu0 %v16640_v16 }
 0x5a0   :  { %8108 = vmatprep.subr.bf16.mxu1 %v16505_v27  ;;  %9086 = vmatprep.subr.bf16.mxu0 %v16505_v27 }
 0x5a2   :  { %7815 = vmatmul.mubr.bf16.vlgmr.msra.gmra.mxu1 %v11879_v15  ;;  %8467 = vmatmul.mubr.bf16.vlgmr.msra.gmra.mxu0 %v11880_v54 }
 0x5a3   :  { %8109 = vmatpush1.bf16.msra.mxu1 %v16503_v11  ;;  %9087 = vmatpush1.bf16.msra.mxu0 %v16503_v11 }
 0x5a4   :  { %8110 = vmatprep.subr.bf16.mxu1 %v16515_v38  ;;  %9088 = vmatprep.subr.bf16.mxu0 %v16515_v38 }
 0x5a5   :  { %7824 = vmatprep.mubr.bf16.mxu1 %v19092_v31  ;;  %8476 = vmatprep.mubr.bf16.mxu0 %v19092_v31 }
 0x5a7   :  { %8111 = vmatpush1.bf16.msra.mxu1 %v16458_v7  ;;  %9089 = vmatpush1.bf16.msra.mxu0 %v16458_v7 }
 0x5a8   :  { %8112 = vmatprep.subr.bf16.mxu1 %v16541_v21  ;;  %9090 = vmatprep.subr.bf16.mxu0 %v16541_v21 }
 0x5aa   :  { %7825 = vmatmul.mubr.bf16.gmra.mxu1 %v11881_v1  ;;  %8477 = vmatmul.mubr.bf16.gmra.mxu0 %v11882_v8 }
 0x5ab   :  { %8113 = vmatpush1.bf16.msra.mxu1 %v16417_v52  ;;  %9091 = vmatpush1.bf16.msra.mxu0 %v16417_v52 }
 0x5ac   :  { %8114 = vmatprep.subr.bf16.mxu1 %v16560_v39  ;;  %9092 = vmatprep.subr.bf16.mxu0 %v16560_v39 }
 0x5ad   :  { %7834 = vmatprep.mubr.bf16.mxu1 %v19092_v31  ;;  %8486 = vmatprep.mubr.bf16.mxu0 %v19092_v31 }
 0x5af   :  { %8115 = vmatpush1.bf16.msra.mxu1 %v19084_v49  ;;  %9093 = vmatpush1.bf16.msra.mxu0 %v19084_v49 }
 0x5b0   :  { %8116 = vmatprep.subr.bf16.mxu1 %v16576_v17  ;;  %9094 = vmatprep.subr.bf16.mxu0 %v16576_v17 }
 0x5b2   :  { %7835 = vmatmul.mubr.bf16.gmra.mxu1 %v11883_v30  ;;  %8487 = vmatmul.mubr.bf16.gmra.mxu0 %v11884_v44 }
 0x5b3   :  { %8117 = vmatpush1.bf16.msra.mxu1 %v19088_v32  ;;  %9095 = vmatpush1.bf16.msra.mxu0 %v19088_v32 }
 0x5b4   :  { %8118 = vmatprep.subr.bf16.mxu1 %v16603_v29  ;;  %9096 = vmatprep.subr.bf16.mxu0 %v16603_v29 }
 0x5b5   :  { %7844 = vmatprep.mubr.bf16.mxu1 %v19092_v31  ;;  %8496 = vmatprep.mubr.bf16.mxu0 %v19092_v31 }
 0x5b7   :  { %8119 = vmatpush1.bf16.msra.mxu1 %v19091_v46  ;;  %9097 = vmatpush1.bf16.msra.mxu0 %v19091_v46 }
 0x5b8   :  { %8120 = vmatprep.subr.bf16.mxu1 %v16626_v53  ;;  %9098 = vmatprep.subr.bf16.mxu0 %v16626_v53 }
 0x5ba   :  { %7845 = vmatmul.mubr.bf16.gmra.mxu1 %v11885_v10  ;;  %8497 = vmatmul.mubr.bf16.gmra.mxu0 %v11886_v43 }
 0x5bb   :  { %8121 = vmatpush1.bf16.msra.mxu1 %v16587_v33  ;;  %9099 = vmatpush1.bf16.msra.mxu0 %v16587_v33 }
 0x5bc   :  { %8122 = vmatprep.subr.bf16.mxu1 %v16642_v2  ;;  %9100 = vmatprep.subr.bf16.mxu0 %v16642_v2 }
 0x5bd   :  { %8140 = vmatprep.mubr.bf16.mxu1 %v19092_v31  ;;  %9118 = vmatprep.mubr.bf16.mxu0 %v19092_v31 }
 0x5bf   :  { %8123 = vmatpush1.bf16.msra.mxu1 %v16640_v16  ;;  %9101 = vmatpush1.bf16.msra.mxu0 %v16640_v16 }
 0x5c0   :  { %8760 = vmatprep.subr.bf16.mxu1 %v16505_v27  ;;  %9690 = vmatprep.subr.bf16.mxu0 %v16505_v27 }
 0x5c2   :  { %8141 = vmatmul.mubr.bf16.vlgmr.msra.gmra.mxu1 %v11887_v28  ;;  %9119 = vmatmul.mubr.bf16.vlgmr.msra.gmra.mxu0 %v11888_v23 }
 0x5c3   :  { %8761 = vmatpush1.bf16.msra.mxu1 %v16503_v11  ;;  %9691 = vmatpush1.bf16.msra.mxu0 %v16503_v11 }
 0x5c4   :  { %8762 = vmatprep.subr.bf16.mxu1 %v16515_v38  ;;  %9692 = vmatprep.subr.bf16.mxu0 %v16515_v38 }
 0x5c5   :  { %8150 = vmatprep.mubr.bf16.mxu1 %v19092_v31  ;;  %9128 = vmatprep.mubr.bf16.mxu0 %v19092_v31 }
 0x5c7   :  { %8763 = vmatpush1.bf16.msra.mxu1 %v16458_v7  ;;  %9693 = vmatpush1.bf16.msra.mxu0 %v16458_v7 }
 0x5c8   :  { %8764 = vmatprep.subr.bf16.mxu1 %v16541_v21  ;;  %9694 = vmatprep.subr.bf16.mxu0 %v16541_v21 }
 0x5ca   :  { %8151 = vmatmul.mubr.bf16.gmra.mxu1 %v11889_v24  ;;  %9129 = vmatmul.mubr.bf16.gmra.mxu0 %v11890_v59 }
 0x5cb   :  { %8765 = vmatpush1.bf16.msra.mxu1 %v16417_v52  ;;  %9695 = vmatpush1.bf16.msra.mxu0 %v16417_v52 }
 0x5cc   :  { %8766 = vmatprep.subr.bf16.mxu1 %v16560_v39  ;;  %9696 = vmatprep.subr.bf16.mxu0 %v16560_v39 }
 0x5cd   :  { %8160 = vmatprep.mubr.bf16.mxu1 %v19092_v31  ;;  %9138 = vmatprep.mubr.bf16.mxu0 %v19092_v31 }
 0x5cf   :  { %8767 = vmatpush1.bf16.msra.mxu1 %v19084_v49  ;;  %9697 = vmatpush1.bf16.msra.mxu0 %v19084_v49 }
 0x5d0   :  { %8768 = vmatprep.subr.bf16.mxu1 %v16576_v17  ;;  %9698 = vmatprep.subr.bf16.mxu0 %v16576_v17 }
 0x5d2   :  { %8161 = vmatmul.mubr.bf16.gmra.mxu1 %v11891_v36  ;;  %9139 = vmatmul.mubr.bf16.gmra.mxu0 %v11892_v22 }
 0x5d3   :  { %8769 = vmatpush1.bf16.msra.mxu1 %v19088_v32  ;;  %9699 = vmatpush1.bf16.msra.mxu0 %v19088_v32 }
 0x5d4   :  { %8770 = vmatprep.subr.bf16.mxu1 %v16603_v29  ;;  %9700 = vmatprep.subr.bf16.mxu0 %v16603_v29 }
 0x5d5   :  { %8170 = vmatprep.mubr.bf16.mxu1 %v19092_v31  ;;  %9148 = vmatprep.mubr.bf16.mxu0 %v19092_v31 }
 0x5d7   :  { %8771 = vmatpush1.bf16.msra.mxu1 %v19091_v46  ;;  %9701 = vmatpush1.bf16.msra.mxu0 %v19091_v46 }
 0x5d8   :  { %8772 = vmatprep.subr.bf16.mxu1 %v16626_v53  ;;  %9702 = vmatprep.subr.bf16.mxu0 %v16626_v53 }
 0x5da   :  { %8171 = vmatmul.mubr.bf16.gmra.mxu1 %v11893_v60  ;;  %9149 = vmatmul.mubr.bf16.gmra.mxu0 %v11894_v58 }
 0x5db   :  { %8773 = vmatpush1.bf16.msra.mxu1 %v16587_v33  ;;  %9703 = vmatpush1.bf16.msra.mxu0 %v16587_v33 }
 0x5dc   :  { %8774 = vmatprep.subr.bf16.mxu1 %v16642_v2  ;;  %9704 = vmatprep.subr.bf16.mxu0 %v16642_v2 }
 0x5dd   :  { %8792 = vmatprep.mubr.bf16.mxu1 %v19092_v31  ;;  %9722 = vmatprep.mubr.bf16.mxu0 %v19092_v31 }
 0x5df   :  { %8775 = vmatpush1.bf16.msra.mxu1 %v16640_v16  ;;  %9705 = vmatpush1.bf16.msra.mxu0 %v16640_v16 }
 0x5e0   :  { %9364 = vmatprep.subr.bf16.mxu1 %v16505_v27  ;;  %10342 = vmatprep.subr.bf16.mxu0 %v16505_v27 }
 0x5e2   :  { %8793 = vmatmul.mubr.bf16.vlgmr.msra.gmra.mxu1 %v11895_v25  ;;  %9723 = vmatmul.mubr.bf16.vlgmr.msra.gmra.mxu0 %v11896_v61 }
 0x5e3   :  { %9365 = vmatpush1.bf16.msra.mxu1 %v16503_v11  ;;  %10343 = vmatpush1.bf16.msra.mxu0 %v16503_v11 }
 0x5e4   :  { %9366 = vmatprep.subr.bf16.mxu1 %v16515_v38  ;;  %10344 = vmatprep.subr.bf16.mxu0 %v16515_v38 }
 0x5e5   :  { %8802 = vmatprep.mubr.bf16.mxu1 %v19092_v31  ;;  %9732 = vmatprep.mubr.bf16.mxu0 %v19092_v31 }
 0x5e7   :  { %9367 = vmatpush1.bf16.msra.mxu1 %v16458_v7  ;;  %10345 = vmatpush1.bf16.msra.mxu0 %v16458_v7 }
 0x5e8   :  { %9368 = vmatprep.subr.bf16.mxu1 %v16541_v21  ;;  %10346 = vmatprep.subr.bf16.mxu0 %v16541_v21 }
 0x5ea   :  { %8803 = vmatmul.mubr.bf16.gmra.mxu1 %v11897_v51  ;;  %9733 = vmatmul.mubr.bf16.gmra.mxu0 %v11901_v62 }
 0x5eb   :  { %9369 = vmatpush1.bf16.msra.mxu1 %v16417_v52  ;;  %10347 = vmatpush1.bf16.msra.mxu0 %v16417_v52 }
 0x5ec   :  { %9370 = vmatprep.subr.bf16.mxu1 %v16560_v39  ;;  %10348 = vmatprep.subr.bf16.mxu0 %v16560_v39 }
 0x5ed   :  { %8812 = vmatprep.mubr.bf16.mxu1 %v19092_v31  ;;  %9742 = vmatprep.mubr.bf16.mxu0 %v19092_v31 }
 0x5ef   :  { %9371 = vmatpush1.bf16.msra.mxu1 %v19084_v49  ;;  %10349 = vmatpush1.bf16.msra.mxu0 %v19084_v49 }
 0x5f0   :  { %9372 = vmatprep.subr.bf16.mxu1 %v16576_v17  ;;  %10350 = vmatprep.subr.bf16.mxu0 %v16576_v17 }
 0x5f2   :  { %8813 = vmatmul.mubr.bf16.gmra.mxu1 %v11898_v19  ;;  %9743 = vmatmul.mubr.bf16.gmra.mxu0 %v11902_v57 }
 0x5f3   :  { %9373 = vmatpush1.bf16.msra.mxu1 %v19088_v32  ;;  %10351 = vmatpush1.bf16.msra.mxu0 %v19088_v32 }
 0x5f4   :  { %9374 = vmatprep.subr.bf16.mxu1 %v16603_v29  ;;  %10352 = vmatprep.subr.bf16.mxu0 %v16603_v29 }
 0x5f5   :  { %8822 = vmatprep.mubr.bf16.mxu1 %v19092_v31  ;;  %9752 = vmatprep.mubr.bf16.mxu0 %v19092_v31 }
 0x5f7   :  { %9375 = vmatpush1.bf16.msra.mxu1 %v19091_v46  ;;  %10353 = vmatpush1.bf16.msra.mxu0 %v19091_v46 }
 0x5f8   :  { %9376 = vmatprep.subr.bf16.mxu1 %v16626_v53  ;;  %10354 = vmatprep.subr.bf16.mxu0 %v16626_v53 }
 0x5fa   :  { %8823 = vmatmul.mubr.bf16.gmra.mxu1 %v11899_v50  ;;  %9753 = vmatmul.mubr.bf16.gmra.mxu0 %v11903_v34 }
 0x5fb   :  { %9377 = vmatpush1.bf16.msra.mxu1 %v16587_v33  ;;  %10355 = vmatpush1.bf16.msra.mxu0 %v16587_v33 }
 0x5fc   :  { %9378 = vmatprep.subr.bf16.mxu1 %v16642_v2  ;;  %10356 = vmatprep.subr.bf16.mxu0 %v16642_v2 }
 0x5fd   :  { %9396 = vmatprep.mubr.bf16.mxu1 %v19092_v31  ;;  %10374 = vmatprep.mubr.bf16.mxu0 %v19092_v31 }
 0x5ff   :  { %9379 = vmatpush1.bf16.msra.mxu1 %v16640_v16  ;;  %10357 = vmatpush1.bf16.msra.mxu0 %v16640_v16 }
 0x600   :  { %10016 = vmatprep.subr.bf16.mxu1 %v16505_v27  ;;  %v11910_v27 = vld [vmem:[%s18029_s3 + $0x118] sm:$0xff]  }
 0x602   :  { %9397 = vmatmul.mubr.bf16.vlgmr.msra.gmra.mxu1 %v11900_v40  ;;  %10375 = vmatmul.mubr.bf16.vlgmr.msra.gmra.mxu0 %v11904_v37 }
 0x603   :  { %10017 = vmatpush1.bf16.msra.mxu1 %v16503_v11  ;;  %9406 = vmatprep.mubr.bf16.mxu1 %v19092_v31  ;;  %v11907_v11 = vld [vmem:[%s18029_s3 + $0xb0] sm:$0xff]  }
 0x604   :  { %10018 = vmatprep.subr.bf16.mxu1 %v16515_v38  ;;  %10384 = vmatprep.mubr.bf16.mxu0 %v19092_v31  ;;  %v11911_v38 = vld [vmem:[%s18029_s3 + $0xe0] sm:$0xff]  }
 0x607   :  { %10019 = vmatpush1.bf16.msra.mxu1 %v16458_v7  ;;  %v11908_v7 = vld [vmem:[%s18029_s3 + $0x110] sm:$0xff]  }
 0x608   :  { %10020 = vmatprep.subr.bf16.mxu1 %v16541_v21  ;;  %v11912_v21 = vld [vmem:[%s18029_s3 + $0xe8] sm:$0xff]  }
 0x60a   :  { %9407 = vmatmul.mubr.bf16.gmra.mxu1 %v11905_v4  ;;  %10385 = vmatmul.mubr.bf16.gmra.mxu0 %v11906_v5 }
 0x60b   :  { %10021 = vmatpush1.bf16.msra.mxu1 %v16417_v52  ;;  %9416 = vmatprep.mubr.bf16.mxu1 %v19092_v31  ;;  %v11909_v52 = vld [vmem:[%s18029_s3 + $0xb8] sm:$0xff]  }
 0x60c   :  { %10022 = vmatprep.subr.bf16.mxu1 %v16560_v39  ;;  %10394 = vmatprep.mubr.bf16.mxu0 %v19092_v31  ;;  %v11913_v39 = vld [vmem:[%s18029_s3 + $0xf0] sm:$0xff]  }
 0x60f   :  { %10023 = vmatpush1.bf16.msra.mxu1 %v19084_v49 }
 0x610   :  { %10024 = vmatprep.subr.bf16.mxu1 %v16576_v17  ;;  %v11914_v17 = vld [vmem:[%s18029_s3 + $0xf8] sm:$0xff]  }
 0x612   :  { %9417 = vmatmul.mubr.bf16.gmra.mxu1 %v11907_v11  ;;  %10395 = vmatmul.mubr.bf16.gmra.mxu0 %v11908_v7 }
 0x613   :  { %10025 = vmatpush1.bf16.msra.mxu1 %v19088_v32  ;;  %9426 = vmatprep.mubr.bf16.mxu1 %v19092_v31 }
 0x614   :  { %10026 = vmatprep.subr.bf16.mxu1 %v16603_v29  ;;  %10404 = vmatprep.mubr.bf16.mxu0 %v19092_v31 }
 0x617   :  { %10027 = vmatpush1.bf16.msra.mxu1 %v19091_v46 }
 0x618   :  { %10028 = vmatprep.subr.bf16.mxu1 %v16626_v53 }
 0x61a   :  { %9427 = vmatmul.mubr.bf16.gmra.mxu1 %v11909_v52  ;;  %10405 = vmatmul.mubr.bf16.gmra.mxu0 %v11910_v27 }
 0x61b   :  { %10029 = vmatpush1.bf16.msra.mxu1 %v16587_v33  ;;  %10048 = vmatprep.mubr.bf16.mxu1 %v19092_v31 }
 0x61c   :  { %10030 = vmatprep.subr.bf16.mxu1 %v16642_v2 }
 0x61f   :  { %10031 = vmatpush1.bf16.msra.mxu1 %v16640_v16 }
 0x622   :  { %10049 = vmatmul.mubr.bf16.vlgmr.msra.gmra.mxu1 %v11911_v38 }
 0x623   :  { %10058 = vmatprep.mubr.bf16.mxu1 %v19092_v31 }
 0x62a   :  { %10059 = vmatmul.mubr.bf16.gmra.mxu1 %v11912_v21 }
 0x62b   :  { %10068 = vmatprep.mubr.bf16.mxu1 %v19092_v31 }
 0x632   :  { %10069 = vmatmul.mubr.bf16.gmra.mxu1 %v11913_v39 }
 0x633   :  { %10078 = vmatprep.mubr.bf16.mxu1 %v19092_v31 }
 0x63a   :  { %10079 = vmatmul.mubr.bf16.gmra.mxu1 %v11914_v17 }
 0x63b   :  { %10626 = vmatprep.mubr.bf16.mxu1 %v19092_v31 }
 0x662   :  { %v7816_v33 = vpop.f32.mrf.mxu1  ;;  %v8468_v49 = vpop.f32.mrf.mxu0 }
 0x663   :  { %7855 = vrot.lane.b32.xlu1 %v7816_v33, %s11975_s15 }
 0x664   :  { %v7818_v29 = vpop.f32.mrf.mxu1  ;;  %v8470_v32 = vpop.f32.mrf.mxu0 }
 0x666   :  { %v7820_v35 = vpop.f32.mrf.mxu1  ;;  %v8472_v56 = vpop.f32.mrf.mxu0 }
 0x667   :  { %8507 = vrot.lane.b32.xlu1 %v8468_v49, %s11973_s0  ;;  %7857 = vrot.lane.b32.xlu0 %v7820_v35, %s11975_s15 }
 0x668   :  { %v7822_v53 = vpop.f32.mrf.mxu1  ;;  %v8474_v13 = vpop.f32.mrf.mxu0 }
 0x66a   :  { %v7826_v41 = vpop.f32.mrf.mxu1  ;;  %v8478_v45 = vpop.f32.mrf.mxu0 }
 0x66b   :  { %7871 = vrot.lane.b32.xlu1 %v7818_v29, %s11975_s15  ;;  %8509 = vrot.lane.b32.xlu0 %v8472_v56, %s11973_s0 }
 0x66c   :  { %v7828_v26 = vpop.f32.mrf.mxu1  ;;  %v8480_v9 = vpop.f32.mrf.mxu0 }
 0x66e   :  { %v7830_v42 = vpop.f32.mrf.mxu1  ;;  %v8482_v20 = vpop.f32.mrf.mxu0 }
 0x66f   :  { %8523 = vrot.lane.b32.xlu1 %v8470_v32, %s11973_s0  ;;  %7873 = vrot.lane.b32.xlu0 %v7822_v53, %s11975_s15 }
 0x670   :  { %v7832_v46 = vpop.f32.mrf.mxu1  ;;  %v8484_v14 = vpop.f32.mrf.mxu0 }
 0x672   :  { %v7836_v0 = vpop.f32.mrf.mxu1  ;;  %v8488_v55 = vpop.f32.mrf.mxu0 }
 0x673   :  { %8525 = vrot.lane.b32.xlu0 %v8474_v13, %s11973_s0  ;;  %7859 = vrot.lane.b32.xlu1 %v7826_v41, %s11975_s15 }
 0x674   :  { %v7838_v3 = vpop.f32.mrf.mxu1  ;;  %v8490_v6 = vpop.f32.mrf.mxu0 }
 0x676   :  { %v7840_v12 = vpop.f32.mrf.mxu1  ;;  %v8492_v18 = vpop.f32.mrf.mxu0 }
 0x677   :  { %8511 = vrot.lane.b32.xlu1 %v8478_v45, %s11973_s0  ;;  %7861 = vrot.lane.b32.xlu0 %v7830_v42, %s11975_s15 }
 0x678   :  { %v7842_v63 = vpop.f32.mrf.mxu1  ;;  %v8494_v48 = vpop.f32.mrf.mxu0 }
 0x67a   :  { %v7846_v16 = vpop.f32.mrf.mxu1  ;;  %v8498_v2 = vpop.f32.mrf.mxu0 }
 0x67b   :  { %7875 = vrot.lane.b32.xlu1 %v7828_v26, %s11975_s15  ;;  %8513 = vrot.lane.b32.xlu0 %v8482_v20, %s11973_s0  ;;  %v16980_v26 = vpop.permute.xlu1 %7630  ;;  %v16984_v20 = vpop.permute.xlu0 %7635 }
 0x67c   :  { %v7848_v15 = vpop.f32.mrf.mxu1  ;;  %v8500_v54 = vpop.f32.mrf.mxu0  ;;  %19103 = vst [vmem:[#allocation196_spill] sm:$0xff] %v16980_v26  ;;  %19104 = vst [vmem:[#allocation198_spill] sm:$0xff] %v16984_v20 }
 0x67e   :  { %v7850_v31 = vpop.f32.mrf.mxu1  ;;  %v8502_v1 = vpop.f32.mrf.mxu0 }
 0x67f   :  { %8527 = vrot.lane.b32.xlu1 %v8480_v9, %s11973_s0  ;;  %7877 = vrot.lane.b32.xlu0 %v7832_v46, %s11975_s15  ;;  %v16988_v46 = vpop.permute.xlu1 %7620 }
 0x680   :  { %v7852_v8 = vpop.f32.mrf.mxu1  ;;  %v8504_v30 = vpop.f32.mrf.mxu0  ;;  %19105 = vst [vmem:[#allocation166_spill] sm:$0xff] %v16988_v46  ;;  %v19135_v46 = vld [vmem:[#allocation16_spill] sm:$0xff] }
 0x682   :  { %v8142_v44 = vpop.f32.mrf.mxu1  ;;  %v16918_v10 = vpop.f32.mrf.mxu0 }
 0x683   :  { %8529 = vrot.lane.b32.xlu0 %v8484_v14, %s11973_s0  ;;  %7863 = vrot.lane.b32.xlu1 %v7836_v0, %s11975_s15 }
 0x684   :  { %v8144_v43 = vpop.f32.mrf.mxu1  ;;  %v16922_v23 = vpop.f32.mrf.mxu0 }
 0x686   :  { %v8146_v28 = vpop.f32.mrf.mxu1  ;;  %v16926_v36 = vpop.f32.mrf.mxu0 }
 0x687   :  { %8515 = vrot.lane.b32.xlu1 %v8488_v55, %s11973_s0  ;;  %7865 = vrot.lane.b32.xlu0 %v7840_v12, %s11975_s15  ;;  %v16992_v55 = vpop.permute.xlu0 %7625  ;;  %v16994_v12 = vpop.permute.xlu1 %7610 }
 0x688   :  { %v8148_v24 = vpop.f32.mrf.mxu1  ;;  %v16930_v60 = vpop.f32.mrf.mxu0  ;;  %19106 = vst [vmem:[#allocation199_spill] sm:$0xff] %v16992_v55 }
 0x68a   :  { %v8152_v59 = vpop.f32.mrf.mxu1  ;;  %v16934_v61 = vpop.f32.mrf.mxu0 }
 0x68b   :  { %7879 = vrot.lane.b32.xlu1 %v7838_v3, %s11975_s15  ;;  %8517 = vrot.lane.b32.xlu0 %v8492_v18, %s11973_s0 }
 0x68c   :  { %v8154_v22 = vpop.f32.mrf.mxu1  ;;  %v16938_v19 = vpop.f32.mrf.mxu0 }
 0x68e   :  { %v8156_v58 = vpop.f32.mrf.mxu1  ;;  %v16942_v34 = vpop.f32.mrf.mxu0 }
 0x68f   :  { %8531 = vrot.lane.b32.xlu1 %v8490_v6, %s11973_s0  ;;  %7881 = vrot.lane.b32.xlu0 %v7842_v63, %s11975_s15  ;;  %19093 = vst [vmem:[#allocation151_spill] sm:$0xff] %v16942_v34 }
 0x690   :  { %v8158_v25 = vpop.f32.mrf.mxu1  ;;  %v16946_v4 = vpop.f32.mrf.mxu0 }
 0x691   :  { %19094 = vst [vmem:[#allocation88_spill] sm:$0xff] %v16946_v4 }
 0x692   :  { %v8162_v51 = vpop.f32.mrf.mxu1  ;;  %v16950_v7 = vpop.f32.mrf.mxu0 }
 0x693   :  { %8533 = vrot.lane.b32.xlu0 %v8494_v48, %s11973_s0  ;;  %7867 = vrot.lane.b32.xlu1 %v7846_v16, %s11975_s15  ;;  %19095 = vst [vmem:[#allocation84_spill] sm:$0xff] %v16950_v7  ;;  %v16998_v48 = vpop.permute.xlu0 %7615 }
 0x694   :  { %v8164_v62 = vpop.f32.mrf.mxu1  ;;  %v16954_v27 = vpop.f32.mrf.mxu0 }
 0x695   :  { %19096 = vst [vmem:[#allocation143_spill] sm:$0xff] %v16954_v27 }
 0x696   :  { %v8166_v57 = vpop.f32.mrf.mxu1  ;;  %v16958_v21 = vpop.f32.mrf.mxu0 }
 0x697   :  { %8519 = vrot.lane.b32.xlu1 %v8498_v2, %s11973_s0  ;;  %7869 = vrot.lane.b32.xlu0 %v7850_v31, %s11975_s15  ;;  %19097 = vst [vmem:[#allocation156_spill] sm:$0xff] %v16958_v21 }
 0x698   :  { %v8168_v50 = vpop.f32.mrf.mxu1  ;;  %v16962_v17 = vpop.f32.mrf.mxu0 }
 0x699   :  { %19098 = vst [vmem:[#allocation152_spill] sm:$0xff] %v16962_v17 }
 0x69a   :  { %v8172_v40 = vpop.f32.mrf.mxu1  ;;  %v16966_v29 = vpop.f32.mrf.mxu0 }
 0x69b   :  { %7883 = vrot.lane.b32.xlu1 %v7848_v15, %s11975_s15  ;;  %8521 = vrot.lane.b32.xlu0 %v8502_v1, %s11973_s0  ;;  %19099 = vst [vmem:[#allocation146_spill] sm:$0xff] %v16966_v29  ;;  %v17004_v15 = vpop.permute.xlu1 %7600  ;;  %v17008_v1 = vpop.permute.xlu0 %7605 }
 0x69c   :  { %v8174_v37 = vpop.f32.mrf.mxu1  ;;  %v16970_v35 = vpop.f32.mrf.mxu0 }
 0x69d   :  { %19100 = vst [vmem:[#allocation195_spill] sm:$0xff] %v16970_v35 }
 0x69e   :  { %v8176_v5 = vpop.f32.mrf.mxu1  ;;  %v16974_v53 = vpop.f32.mrf.mxu0 }
 0x69f   :  { %8535 = vrot.lane.b32.xlu1 %v8500_v54, %s11973_s0  ;;  %7885 = vrot.lane.b32.xlu0 %v7852_v8, %s11975_s15  ;;  %19101 = vst [vmem:[#allocation150_spill] sm:$0xff] %v16974_v53 }
 0x6a0   :  { %v8178_v11 = vpop.f32.mrf.mxu1  ;;  %v16978_v41 = vpop.f32.mrf.mxu0 }
 0x6a1   :  { %19102 = vst [vmem:[#allocation144_spill] sm:$0xff] %v16978_v41 }
 0x6a2   :  { %v8794_v52 = vpop.f32.mrf.mxu1  ;;  %v9724_v9 = vpop.f32.mrf.mxu0 }
 0x6a3   :  { %8537 = vrot.lane.b32.xlu0 %v8504_v30, %s11973_s0  ;;  %8181 = vrot.lane.b32.xlu1 %v8142_v44, %s11976_s16 }
 0x6a4   :  { %v8796_v38 = vpop.f32.mrf.mxu1  ;;  %v9726_v14 = vpop.f32.mrf.mxu0 }
 0x6a6   :  { %v8798_v39 = vpop.f32.mrf.mxu1  ;;  %v9728_v3 = vpop.f32.mrf.mxu0 }
 0x6a7   :  { %8197 = vrot.lane.b32.xlu1 %v8144_v43, %s11976_s16  ;;  %8183 = vrot.lane.b32.xlu0 %v8146_v28, %s11976_s16 }
 0x6a8   :  { %v8800_v33 = vpop.f32.mrf.mxu1  ;;  %v9730_v63 = vpop.f32.mrf.mxu0 }
 0x6aa   :  { %v8804_v49 = vpop.f32.mrf.mxu1  ;;  %v9734_v16 = vpop.f32.mrf.mxu0 }
 0x6ab   :  { %8199 = vrot.lane.b32.xlu0 %v8148_v24, %s11976_s16  ;;  %8185 = vrot.lane.b32.xlu1 %v8152_v59, %s11976_s16 }
 0x6ac   :  { %v8806_v32 = vpop.f32.mrf.mxu1  ;;  %v9736_v54 = vpop.f32.mrf.mxu0 }
 0x6ae   :  { %v8808_v56 = vpop.f32.mrf.mxu1  ;;  %v9738_v30 = vpop.f32.mrf.mxu0 }
 0x6af   :  { %8201 = vrot.lane.b32.xlu1 %v8154_v22, %s11976_s16  ;;  %8187 = vrot.lane.b32.xlu0 %v8156_v58, %s11976_s16 }
 0x6b0   :  { %v8810_v13 = vpop.f32.mrf.mxu1  ;;  %v9740_v59 = vpop.f32.mrf.mxu0 }
 0x6b2   :  { %v8814_v45 = vpop.f32.mrf.mxu1 }
 0x6b3   :  { %8203 = vrot.lane.b32.xlu0 %v8158_v25, %s11976_s16  ;;  %8189 = vrot.lane.b32.xlu1 %v8162_v51, %s11976_s16  ;;  %v9744_v25 = vpop.f32.mrf.mxu0 }
 0x6b4   :  { %v8816_v42 = vpop.f32.mrf.mxu1 }
 0x6b6   :  { %v8818_v0 = vpop.f32.mrf.mxu1 }
 0x6b7   :  { %8205 = vrot.lane.b32.xlu1 %v8164_v62, %s11976_s16  ;;  %8191 = vrot.lane.b32.xlu0 %v8166_v57, %s11976_s16 }
 0x6b8   :  { %v8820_v6 = vpop.f32.mrf.mxu1 }
 0x6ba   :  { %v8824_v18 = vpop.f32.mrf.mxu1 }
 0x6bb   :  { %8207 = vrot.lane.b32.xlu0 %v8168_v50, %s11976_s16  ;;  %8193 = vrot.lane.b32.xlu1 %v8172_v40, %s11976_s16  ;;  %v9746_v50 = vpop.f32.mrf.mxu0 }
 0x6bc   :  { %v17002_v2 = vpop.f32.mrf.mxu1 }
 0x6be   :  { %v8828_v31 = vpop.f32.mrf.mxu1 }
 0x6bf   :  { %8209 = vrot.lane.b32.xlu1 %v8174_v37, %s11976_s16  ;;  %8195 = vrot.lane.b32.xlu0 %v8176_v5, %s11976_s16 }
 0x6c0   :  { %v8830_v44 = vpop.f32.mrf.mxu1 }
 0x6c2   :  { %v17018_v24 = vpop.f32.mrf.mxu1 }
 0x6c3   :  { %8211 = vrot.lane.b32.xlu0 %v8178_v11, %s11976_s16  ;;  %8833 = vrot.lane.b32.xlu1 %v8794_v52, %s11972_s13  ;;  %v9748_v11 = vpop.f32.mrf.mxu0 }
 0x6c4   :  { %v17026_v51 = vpop.f32.mrf.mxu1 }
 0x6c6   :  { %v9402_v40 = vpop.f32.mrf.mxu1 }
 0x6c7   :  { %9763 = vrot.lane.b32.xlu1 %v9724_v9, %s11990_s12  ;;  %8835 = vrot.lane.b32.xlu0 %v8798_v39, %s11972_s13 }
 0x6c8   :  { %v9404_v52 = vpop.f32.mrf.mxu1 }
 0x6cb   :  { %8849 = vrot.lane.b32.xlu1 %v8796_v38, %s11972_s13  ;;  %9765 = vrot.lane.b32.xlu0 %v9728_v3, %s11990_s12 }
 0x6cf   :  { %9779 = vrot.lane.b32.xlu1 %v9726_v14, %s11990_s12  ;;  %8851 = vrot.lane.b32.xlu0 %v8800_v33, %s11972_s13  ;;  %v9750_v33 = vpop.f32.mrf.mxu0 }
 0x6d3   :  { %9781 = vrot.lane.b32.xlu0 %v9730_v63, %s11990_s12  ;;  %8837 = vrot.lane.b32.xlu1 %v8804_v49, %s11972_s13  ;;  %v9408_v49 = vpop.f32.mrf.mxu1 }
 0x6d5   :  { %v17010_v8 = vpop.permute.xlu1 %7855 }
 0x6d7   :  { %9767 = vrot.lane.b32.xlu1 %v9734_v16, %s11990_s12  ;;  %8839 = vrot.lane.b32.xlu0 %v8808_v56, %s11972_s13 }
 0x6d9   :  { %v17014_v43 = vpop.permute.xlu1 %8507  ;;  %v17016_v28 = vpop.permute.xlu0 %7857 }
 0x6db   :  { %8853 = vrot.lane.b32.xlu1 %v8806_v32, %s11972_s13  ;;  %9769 = vrot.lane.b32.xlu0 %v9738_v30, %s11990_s12  ;;  %v9754_v32 = vpop.f32.mrf.mxu0 }
 0x6dd   :  { %v17022_v22 = vpop.permute.xlu1 %7871  ;;  %v17024_v58 = vpop.permute.xlu0 %8509 }
 0x6de   :  { %v9756_v9 = vpop.f32.mrf.mxu0 }
 0x6df   :  { %9783 = vrot.lane.b32.xlu1 %v9736_v54, %s11990_s12  ;;  %8855 = vrot.lane.b32.xlu0 %v8810_v13, %s11972_s13 }
 0x6e1   :  { %v17030_v62 = vpop.permute.xlu1 %8523  ;;  %v17032_v57 = vpop.permute.xlu0 %7873 }
 0x6e3   :  { %9785 = vrot.lane.b32.xlu0 %v9740_v59, %s11990_s12  ;;  %8841 = vrot.lane.b32.xlu1 %v8814_v45, %s11972_s13  ;;  %v9410_v45 = vpop.f32.mrf.mxu1 }
 0x6e5   :  { %v17036_v37 = vpop.permute.xlu1 %7859  ;;  %v17038_v5 = vpop.permute.xlu0 %8525 }
 0x6e6   :  { %v9412_v3 = vpop.f32.mrf.mxu1 }
 0x6e7   :  { %8843 = vrot.lane.b32.xlu0 %v8818_v0, %s11972_s13  ;;  %9771 = vrot.lane.b32.xlu1 %v9744_v25, %s11990_s12 }
 0x6e8   :  { %v9414_v54 = vpop.f32.mrf.mxu1 }
 0x6e9   :  { %v17042_v38 = vpop.permute.xlu1 %8511  ;;  %v17044_v39 = vpop.permute.xlu0 %7861 }
 0x6ea   :  { %v9418_v30 = vpop.f32.mrf.mxu1 }
 0x6eb   :  { %9773 = vrot.lane.b32.xlu0 %v9748_v11, %s11990_s12  ;;  %8857 = vrot.lane.b32.xlu1 %v8816_v42, %s11972_s13  ;;  %v9758_v42 = vpop.f32.mrf.mxu0 }
 0x6ed   :  { %v17048_v56 = vpop.permute.xlu1 %7875  ;;  %v17050_v13 = vpop.permute.xlu0 %8513 }
 0x6ef   :  { %8859 = vrot.lane.b32.xlu0 %v8820_v6, %s11972_s13  ;;  %9787 = vrot.lane.b32.xlu1 %v9746_v50, %s11990_s12  ;;  %v9760_v6 = vpop.f32.mrf.mxu0 }
 0x6f1   :  { %v17054_v14 = vpop.permute.xlu1 %8527  ;;  %v17056_v0 = vpop.permute.xlu0 %7877 }
 0x6f2   :  { %v17070_v50 = vpop.f32.mrf.mxu0 }
 0x6f3   :  { %9789 = vrot.lane.b32.xlu0 %v9750_v33, %s11990_s12  ;;  %8845 = vrot.lane.b32.xlu1 %v8824_v18, %s11972_s13  ;;  %19110 = vst [vmem:[#allocation153_spill] sm:$0xff] %v17070_v50  ;;  %v17075_v18 = vpop.f32.mrf.mxu1 }
 0x6f4   :  { %v17081_v33 = vpop.f32.mrf.mxu0 }
 0x6f5   :  { %v17060_v63 = vpop.permute.xlu1 %7863  ;;  %v17062_v16 = vpop.permute.xlu0 %8529  ;;  %19112 = vst [vmem:[#allocation160_spill] sm:$0xff] %v17081_v33 }
 0x6f6   :  { %19107 = vst [vmem:[#allocation149_spill] sm:$0xff] %v17060_v63 }
 0x6f7   :  { %8847 = vrot.lane.b32.xlu0 %v8828_v31, %s11972_s13  ;;  %9775 = vrot.lane.b32.xlu1 %v9754_v32, %s11990_s12  ;;  %v9422_v32 = vpop.f32.mrf.mxu1 }
 0x6f9   :  { %v17066_v59 = vpop.permute.xlu1 %8515  ;;  %v17068_v25 = vpop.permute.xlu0 %7865 }
 0x6fa   :  { %19108 = vst [vmem:[#allocation155_spill] sm:$0xff] %v17066_v59  ;;  %19109 = vst [vmem:[#allocation159_spill] sm:$0xff] %v17068_v25 }
 0x6fb   :  { %9777 = vrot.lane.b32.xlu0 %v9758_v42, %s11990_s12  ;;  %8861 = vrot.lane.b32.xlu1 %v17002_v2, %s11972_s13  ;;  %v17089_v42 = vpop.f32.mrf.mxu0  ;;  %v9424_v2 = vpop.f32.mrf.mxu1 }
 0x6fc   :  { %19115 = vst [vmem:[#allocation169_spill] sm:$0xff] %v17089_v42 }
 0x6fd   :  { %v17077_v11 = vpop.permute.xlu1 %7879  ;;  %v17079_v31 = vpop.permute.xlu0 %8517 }
 0x6fe   :  { %19111 = vst [vmem:[#allocation148_spill] sm:$0xff] %v17079_v31 }
 0x6ff   :  { %8863 = vrot.lane.b32.xlu0 %v8830_v44, %s11972_s13  ;;  %9791 = vrot.lane.b32.xlu1 %v9756_v9, %s11990_s12  ;;  %v17098_v44 = vpop.f32.mrf.mxu0  ;;  %v17100_v9 = vpop.f32.mrf.mxu1 }
 0x700   :  { %19118 = vst [vmem:[#allocation172_spill] sm:$0xff] %v17098_v44 }
 0x701   :  { %v17085_v41 = vpop.permute.xlu1 %8531  ;;  %v17087_v53 = vpop.permute.xlu0 %7881 }
 0x702   :  { %19113 = vst [vmem:[#allocation164_spill] sm:$0xff] %v17085_v41  ;;  %19114 = vst [vmem:[#allocation200_spill] sm:$0xff] %v17087_v53  ;;  %v10386_v26 = vpop.f32.mrf.mxu0 }
 0x703   :  { %9793 = vrot.lane.b32.xlu0 %v9760_v6, %s11990_s12  ;;  %9437 = vrot.lane.b32.xlu1 %v17018_v24, %s11970_s2  ;;  %v17109_v24 = vpop.f32.mrf.mxu1 }
 0x704   :  { %v10388_v44 = vpop.f32.mrf.mxu0 }
 0x705   :  { %v17094_v35 = vpop.permute.xlu1 %7867  ;;  %v17096_v29 = vpop.permute.xlu0 %8533 }
 0x706   :  { %19116 = vst [vmem:[#allocation158_spill] sm:$0xff] %v17094_v35  ;;  %19117 = vst [vmem:[#allocation154_spill] sm:$0xff] %v17096_v29 }
 0x707   :  { %9439 = vrot.lane.b32.xlu0 %v9402_v40, %s11970_s2  ;;  %9453 = vrot.lane.b32.xlu1 %v17026_v51, %s11970_s2  ;;  %v9432_v40 = vpop.f32.mrf.mxu1 }
 0x709   :  { %v17105_v20 = vpop.permute.xlu1 %8519  ;;  %v17107_v6 = vpop.permute.xlu0 %7869 }
 0x70a   :  { %19119 = vst [vmem:[#allocation201_spill] sm:$0xff] %v17105_v20  ;;  %19120 = vst [vmem:[#allocation161_spill] sm:$0xff] %v17107_v6  ;;  %v10390_v6 = vpop.f32.mrf.mxu0  ;;  %v17123_v35 = vpop.f32.mrf.mxu1 }
 0x70b   :  { %9455 = vrot.lane.b32.xlu0 %v9404_v52, %s11970_s2  ;;  %9441 = vrot.lane.b32.xlu1 %v9408_v49, %s11970_s2 }
 0x70d   :  { %v17113_v17 = vpop.permute.xlu1 %7883  ;;  %v17115_v21 = vpop.permute.xlu0 %8521 }
 0x70e   :  { %19121 = vst [vmem:[#allocation157_spill] sm:$0xff] %v17113_v17  ;;  %19122 = vst [vmem:[#allocation202_spill] sm:$0xff] %v17115_v21  ;;  %v17131_v21 = vpop.f32.mrf.mxu1 }
 0x70f   :  { %9443 = vrot.lane.b32.xlu0 %v9412_v3, %s11970_s2  ;;  %10419 = vrot.lane.b32.xlu1 %v10386_v26, %s11988_s27  ;;  %19126 = vst [vmem:[#allocation128_spill] sm:$0xff] %v17131_v21  ;;  %v10392_v26 = vpop.f32.mrf.mxu0 }
 0x710   :  { %v17135_v17 = vpop.f32.mrf.mxu1 }
 0x711   :  { %v17119_v51 = vpop.permute.xlu1 %8535  ;;  %v17121_v20 = vpop.permute.xlu0 %7885  ;;  %19127 = vst [vmem:[#allocation204_spill] sm:$0xff] %v17135_v17 }
 0x712   :  { %19123 = vst [vmem:[#allocation203_spill] sm:$0xff] %v17119_v51  ;;  %19124 = vst [vmem:[#allocation163_spill] sm:$0xff] %v17121_v20  ;;  %v10396_v20 = vpop.f32.mrf.mxu0  ;;  %v17147_v33 = vpop.f32.mrf.mxu1 }
 0x713   :  { %10421 = vrot.lane.b32.xlu0 %v10390_v6, %s11988_s27  ;;  %9457 = vrot.lane.b32.xlu1 %v9410_v45, %s11970_s2  ;;  %19128 = vst [vmem:[#allocation205_spill] sm:$0xff] %v17147_v33 }
 0x715   :  { %v17127_v52 = vpop.permute.xlu1 %8181  ;;  %v17129_v49 = vpop.permute.xlu0 %8537 }
 0x716   :  { %19125 = vst [vmem:[#allocation168_spill] sm:$0xff] %v17129_v49 }
 0x717   :  { %9459 = vrot.lane.b32.xlu0 %v9414_v54, %s11970_s2  ;;  %10435 = vrot.lane.b32.xlu1 %v10388_v44, %s11988_s27  ;;  %v10398_v44 = vpop.f32.mrf.mxu0 }
 0x719   :  { %v8198_v3 = vpop.permute.xlu1 %8197  ;;  %v8184_v51 = vpop.permute.xlu0 %8183 }
 0x71a   :  { %v10400_v7 = vpop.f32.mrf.mxu0 }
 0x71b   :  { %10437 = vrot.lane.b32.xlu0 %v10392_v26, %s11988_s27  ;;  %9445 = vrot.lane.b32.xlu1 %v9418_v30, %s11970_s2 }
 0x71d   :  { %v8186_v45 = vpop.permute.xlu1 %8185  ;;  %v8200_v6 = vpop.permute.xlu0 %8199 }
 0x71e   :  { %v17141_v49 = vsel %vm231_vm9, %v8184_v51, %v8200_v6  ;;  %v17145_v54 = vsel %vm231_vm9, %v8200_v6, %v8184_v51  ;;  %v17159_v51 = vpop.f32.mrf.mxu1 }
 0x71f   :  { %9447 = vrot.lane.b32.xlu0 %v9422_v32, %s11970_s2  ;;  %10423 = vrot.lane.b32.xlu1 %v10396_v20, %s11988_s27  ;;  %19129 = vst [vmem:[#allocation175_spill] sm:$0xff] %v17159_v51 }
 0x721   :  { %v8202_v26 = vpop.permute.xlu1 %8201  ;;  %v8188_v42 = vpop.permute.xlu0 %8187 }
 0x722   :  { %v17153_v30 = vsel %vm231_vm9, %v8186_v45, %v8202_v26  ;;  %v17157_v27 = vsel %vm231_vm9, %v8202_v26, %v8186_v45  ;;  %v17172_v45 = vpop.f32.mrf.mxu1 }
 0x723   :  { %10425 = vrot.lane.b32.xlu0 %v10400_v7, %s11988_s27  ;;  %9461 = vrot.lane.b32.xlu1 %v17075_v18, %s11970_s2  ;;  %v10402_v7 = vpop.f32.mrf.mxu0 }
 0x725   :  { %v8190_v32 = vpop.permute.xlu1 %8189  ;;  %v8204_v20 = vpop.permute.xlu0 %8203 }
 0x726   :  { %v17166_v6 = vsel %vm231_vm9, %v8188_v42, %v8204_v20  ;;  %v17170_v50 = vsel %vm231_vm9, %v8204_v20, %v8188_v42  ;;  %v10406_v51 = vpop.f32.mrf.mxu0  ;;  %v17184_v42 = vpop.f32.mrf.mxu1 }
 0x727   :  { %9463 = vrot.lane.b32.xlu0 %v9424_v2, %s11970_s2  ;;  %10439 = vrot.lane.b32.xlu1 %v10398_v44, %s11988_s27  ;;  %v7919_v2 = vld [vmem:[%s18032_s6] sm:$0x3] }
 0x728   :  { %v17200_v59 = vpop.f32.mrf.mxu1  ;;  %v17210_v17 = vrot.slane %v7919_v2, %v19135_v46 }
 0x729   :  { %v8206_v26 = vpop.permute.xlu1 %8205  ;;  %v8192_v31 = vpop.permute.xlu0 %8191 }
 0x72a   :  { %v17178_v18 = vsel %vm231_vm9, %v8190_v32, %v8206_v26  ;;  %v17182_v29 = vsel %vm231_vm9, %v8206_v26, %v8190_v32  ;;  %v10408_v26 = vpop.f32.mrf.mxu0  ;;  %v17235_v33 = vpop.f32.mrf.mxu1 }
 0x72b   :  { %19130 = vst [vmem:[#allocation170_spill] sm:$0xff] %v17178_v18  ;;  %19131 = vst [vmem:[#allocation176_spill] sm:$0xff] %v17182_v29  ;;  %10441 = vrot.lane.b32.xlu0 %v10402_v7, %s11988_s27  ;;  %9449 = vrot.lane.b32.xlu1 %v17100_v9, %s11970_s2  ;;  %v11282_v9 = vld [vmem:[%s18032_s6 + $0x2] sm:$0x3]  ;;  %v19134_v7 = vld [vmem:[#allocation15_spill] sm:$0xff] }
 0x72c   :  { %v17207_v41 = vrot.slane %v7919_v2, %v19134_v7  ;;  %v17225_v2 = vrot.slane %v11282_v9, %v19135_v46  ;;  %v10410_v29 = vpop.f32.mrf.mxu0  ;;  %v17272_v34 = vpop.f32.mrf.mxu1 }
 0x72d   :  { %v8194_v44 = vpop.permute.xlu1 %8193  ;;  %v8208_v20 = vpop.permute.xlu0 %8207 }
 0x72e   :  { %v17194_v55 = vsel %vm231_vm9, %v8192_v31, %v8208_v20  ;;  %v17198_v32 = vsel %vm231_vm9, %v8208_v20, %v8192_v31  ;;  %v7887_v31 = vsel %vm207_vm8, %v17010_v8, %v17022_v22  ;;  %v7895_v20 = vsel %vm207_vm8, %v17022_v22, %v17010_v8  ;;  %v17304_v25 = vpop.f32.mrf.mxu1 }
 0x72f   :  { %19132 = vst [vmem:[#allocation167_spill] sm:$0xff] %v17194_v55  ;;  %19133 = vst [vmem:[#allocation162_spill] sm:$0xff] %v17198_v32  ;;  %9451 = vrot.lane.b32.xlu0 %v9432_v40, %s11970_s2  ;;  %10427 = vrot.lane.b32.xlu1 %v10406_v51, %s11988_s27  ;;  %v17222_v32 = vrot.slane %v11282_v9, %v19134_v7  ;;  %v8213_v8 = vsel %vm231_vm9, %v17127_v52, %v8198_v3  ;;  %v11369_v9 = vld [vmem:[%s18032_s6 + $0x8] sm:$0x3] }
 0x730   :  { %v8221_v22 = vsel %vm231_vm9, %v8198_v3, %v17127_v52  ;;  %v7896_v52 = vsel %vm207_vm8, %v17032_v57, %v17016_v28  ;;  %v17275_v21 = vrot.slane %v11369_v9, %v19134_v7  ;;  %v8260_v63 = vmul.f32 %v17225_v2, %v17141_v49 }
 0x731   :  { %v8210_v55 = vpop.permute.xlu1 %8209  ;;  %v8196_v40 = vpop.permute.xlu0 %8195  ;;  %v8259_v53 = vmul.f32 %v17222_v32, %v17145_v54 }
 0x732   :  { %v17229_v51 = vsel %vm231_vm9, %v8194_v44, %v8210_v55  ;;  %v17233_v18 = vsel %vm231_vm9, %v8210_v55, %v8194_v44  ;;  %v7931_v55 = vmul.f32 %v17207_v41, %v7895_v20  ;;  %v7932_v44 = vmul.f32 %v17210_v17, %v7887_v31 }
 0x733   :  { %19136 = vst [vmem:[#allocation174_spill] sm:$0xff] %v17229_v51  ;;  %19137 = vst [vmem:[#allocation179_spill] sm:$0xff] %v17233_v18  ;;  %10429 = vrot.lane.b32.xlu0 %v10410_v29, %s11988_s27  ;;  %9465 = vrot.lane.b32.xlu1 %v17109_v24, %s11970_s2  ;;  %v11311_v51 = vld [vmem:[%s18032_s6 + $0x4] sm:$0x3]  ;;  %v7888_v29 = vsel %vm207_vm8, %v17016_v28, %v17032_v57  ;;  %v8257_v31 = vmul.f32 %v17222_v32, %v8221_v22 }
 0x734   :  { %v8258_v24 = vmul.f32 %v17225_v2, %v8213_v8  ;;  %v17278_v28 = vrot.slane %v11369_v9, %v19135_v46  ;;  %v7947_v57 = vadd.f32 %v7931_v55, %v17004_v15  ;;  %v7948_v8 = vadd.f32 %v7932_v44, %v17004_v15  ;;  %v11340_v9 = vld [vmem:[%s18032_s6 + $0x6] sm:$0x3] }
 0x735   :  { %v8834_v3 = vpop.permute.xlu1 %8833  ;;  %v8212_v20 = vpop.permute.xlu0 %8211  ;;  %v17285_v22 = vrot.slane %v11311_v51, %v19134_v7  ;;  %v8547_v15 = vsel %vm255_vm6, %v17030_v62, %v17014_v43  ;;  %v7933_v55 = vmul.f32 %v17207_v41, %v7896_v52 }
 0x736   :  { %v17266_v18 = vsel %vm231_vm9, %v8196_v40, %v8212_v20  ;;  %v17270_v4 = vsel %vm231_vm9, %v8212_v20, %v8196_v40  ;;  %v17288_v40 = vrot.slane %v11311_v51, %v19135_v46  ;;  %v7934_v51 = vmul.f32 %v17210_v17, %v7888_v29 }
 0x737   :  { %19138 = vst [vmem:[#allocation131_spill] sm:$0xff] %v17266_v18  ;;  %19139 = vst [vmem:[#allocation171_spill] sm:$0xff] %v17270_v4  ;;  %9467 = vrot.lane.b32.xlu0 %v17123_v35, %s11970_s2  ;;  %10443 = vrot.lane.b32.xlu1 %v10408_v26, %s11988_s27  ;;  %v8539_v35 = vsel %vm255_vm6, %v17014_v43, %v17030_v62  ;;  %v8273_v20 = vadd.f32 %v8257_v31, %v7947_v57  ;;  %v10412_v4 = vpop.f32.mrf.mxu0 }
 0x738   :  { %v8274_v18 = vadd.f32 %v8258_v24, %v7948_v8  ;;  %v17312_v43 = vrot.slane %v11340_v9, %v19134_v7  ;;  %v17315_v62 = vrot.slane %v11340_v9, %v19135_v46  ;;  %v9187_v29 = vmul.f32 %v17275_v21, %v16918_v10 }
 0x739   :  { %v9764_v44 = vpop.permute.xlu1 %9763  ;;  %v8836_v26 = vpop.permute.xlu0 %8835  ;;  %v9188_v52 = vmul.f32 %v17278_v28, %v16922_v23  ;;  %v8583_v31 = vmul.f32 %v17285_v22, %v8547_v15  ;;  %v8584_v54 = vmul.f32 %v17288_v40, %v8539_v35  ;;  %v7950_v49 = vadd.f32 %v7934_v51, %v17008_v1 }
 0x73a   :  { %v8540_v24 = vsel %vm255_vm6, %v17024_v58, %v17038_v5  ;;  %v8548_v10 = vsel %vm255_vm6, %v17038_v5, %v17024_v58  ;;  %v10074_v35 = vpop.f32.mrf.mxu1  ;;  %v9189_v58 = vmul.f32 %v17275_v21, %v16926_v36  ;;  %v9190_v5 = vmul.f32 %v17278_v28, %v16930_v60 }
 0x73b   :  { %10445 = vrot.lane.b32.xlu0 %v10412_v4, %s11988_s27  ;;  %10093 = vrot.lane.b32.xlu1 %v17172_v45, %s11991_s14  ;;  %v7949_v4 = vadd.f32 %v7933_v55, %v17008_v1  ;;  %v8599_v8 = vadd.f32 %v8583_v31, %v8273_v20  ;;  %v8600_v9 = vadd.f32 %v8584_v54, %v8274_v18 }
 0x73c   :  { %v8276_v55 = vadd.f32 %v8260_v63, %v7950_v49  ;;  %v8585_v18 = vmul.f32 %v17285_v22, %v8548_v10  ;;  %v7897_v36 = vsel %vm207_vm8, %v17048_v56, %v17036_v37  ;;  %v10076_v49 = vpop.f32.mrf.mxu1 }
 0x73d   :  { %v8850_v23 = vpop.permute.xlu1 %8849  ;;  %v9766_v57 = vpop.permute.xlu0 %9765  ;;  %v8275_v15 = vadd.f32 %v8259_v53, %v7949_v4  ;;  %v7889_v53 = vsel %vm207_vm8, %v17036_v37, %v17048_v56  ;;  %v7935_v10 = vmul.f32 %v17207_v41, %v7897_v36 }
 0x73e   :  { %v8865_v45 = vsel %vm327_vm5, %v8834_v3, %v8850_v23  ;;  %v8873_v1 = vsel %vm327_vm5, %v8850_v23, %v8834_v3  ;;  %v8586_v3 = vmul.f32 %v17288_v40, %v8540_v24 }
 0x73f   :  { %v8909_v51 = vmul.f32 %v17312_v43, %v8873_v1  ;;  %v8910_v46 = vmul.f32 %v17315_v62, %v8865_v45  ;;  %10095 = vrot.lane.b32.xlu0 %v17200_v59, %s11991_s14  ;;  %10109 = vrot.lane.b32.xlu1 %v17184_v42, %s11991_s14  ;;  %v8601_v37 = vadd.f32 %v8585_v18, %v8275_v15 }
 0x740   :  { %v8602_v56 = vadd.f32 %v8586_v3, %v8276_v55 }
 0x741   :  { %v8925_v63 = vadd.f32 %v8909_v51, %v8599_v8  ;;  %v8926_v59 = vadd.f32 %v8910_v46, %v8600_v9  ;;  %v9780_v60 = vpop.permute.xlu1 %9779  ;;  %v8852_v20 = vpop.permute.xlu0 %8851  ;;  %v7890_v8 = vsel %vm207_vm8, %v17044_v39, %v17056_v0 }
 0x742   :  { %v17361_v31 = vsel %vm440_vm14, %v9764_v44, %v9780_v60  ;;  %v17365_v42 = vsel %vm440_vm14, %v9780_v60, %v9764_v44  ;;  %v8866_v54 = vsel %vm327_vm5, %v8836_v26, %v8852_v20  ;;  %v8874_v4 = vsel %vm327_vm5, %v8852_v20, %v8836_v26  ;;  %v10080_v51 = vpop.f32.mrf.mxu1 }
 0x743   :  { %v8911_v46 = vmul.f32 %v17312_v43, %v8874_v4  ;;  %v8912_v24 = vmul.f32 %v17315_v62, %v8866_v54  ;;  %10111 = vrot.lane.b32.xlu0 %v17235_v33, %s11991_s14  ;;  %v7936_v44 = vmul.f32 %v17210_v17, %v7889_v53  ;;  %10097 = vrot.lane.b32.xlu1 %v17272_v34, %s11991_s14 }
 0x744   :  { %v17379_v23 = vadd.f32 %v9187_v29, %v8925_v63  ;;  %v17381_v26 = vadd.f32 %v9188_v52, %v8926_v59  ;;  %v7898_v33 = vsel %vm207_vm8, %v17056_v0, %v17044_v39  ;;  %v8261_v34 = vmul.f32 %v17222_v32, %v17157_v27  ;;  %v10082_v36 = vpop.f32.mrf.mxu1 }
 0x745   :  { %v8927_v9 = vadd.f32 %v8911_v46, %v8601_v37  ;;  %v8928_v45 = vadd.f32 %v8912_v24, %v8602_v56  ;;  %v8838_v1 = vpop.permute.xlu1 %8837  ;;  %v9782_v15 = vpop.permute.xlu0 %9781  ;;  %v8262_v29 = vmul.f32 %v17225_v2, %v17153_v30  ;;  %v7951_v27 = vadd.f32 %v7935_v10, %v16994_v12 }
 0x746   :  { %v17397_v52 = vsel %vm440_vm14, %v9766_v57, %v9782_v15  ;;  %v17401_v55 = vsel %vm440_vm14, %v9782_v15, %v9766_v57  ;;  %v7952_v18 = vadd.f32 %v7936_v44, %v16994_v12  ;;  %v8541_v30 = vsel %vm255_vm6, %v17042_v38, %v17054_v14  ;;  %v10084_v56 = vpop.f32.mrf.mxu1 }
 0x747   :  { %10099 = vrot.lane.b32.xlu0 %v10074_v35, %s11991_s14  ;;  %v17404_v39 = vadd.f32 %v9189_v58, %v8927_v9  ;;  %v17406_v0 = vadd.f32 %v9190_v5, %v8928_v45  ;;  %10113 = vrot.lane.b32.xlu1 %v17304_v25, %s11991_s14  ;;  %v8549_v57 = vsel %vm255_vm6, %v17054_v14, %v17042_v38  ;;  %v19140_v9 = vld [vmem:[#allocation149_spill] sm:$0xff] }
 0x748   :  { %v7937_v35 = vmul.f32 %v17207_v41, %v7898_v33  ;;  %v7938_v58 = vmul.f32 %v17210_v17, %v7890_v8  ;;  %v8277_v12 = vadd.f32 %v8261_v34, %v7951_v27  ;;  %v8278_v53 = vadd.f32 %v8262_v29, %v7952_v18 }
 0x749   :  { %v9768_v5 = vpop.permute.xlu1 %9767  ;;  %v8840_v3 = vpop.permute.xlu0 %8839  ;;  %v8263_v25 = vmul.f32 %v17222_v32, %v17170_v50  ;;  %v8264_v63 = vmul.f32 %v17225_v2, %v17166_v6  ;;  %v8587_v59 = vmul.f32 %v17285_v22, %v8549_v57  ;;  %v8588_v38 = vmul.f32 %v17288_v40, %v8541_v30 }
 0x74a   :  { %v7953_v14 = vadd.f32 %v7937_v35, %v16998_v48  ;;  %v7954_v60 = vadd.f32 %v7938_v58, %v16998_v48  ;;  %v8542_v50 = vsel %vm255_vm6, %v17050_v13, %v17062_v16  ;;  %v8550_v6 = vsel %vm255_vm6, %v17062_v16, %v17050_v13  ;;  %v10086_v30 = vpop.f32.mrf.mxu1 }
 0x74b   :  { %10115 = vrot.lane.b32.xlu0 %v10076_v49, %s11991_s14  ;;  %10101 = vrot.lane.b32.xlu1 %v10080_v51, %s11991_s14  ;;  %v8603_v4 = vadd.f32 %v8587_v59, %v8277_v12  ;;  %v8604_v49 = vadd.f32 %v8588_v38, %v8278_v53  ;;  %v9191_v13 = vmul.f32 %v17275_v21, %v16934_v61  ;;  %v19141_v12 = vld [vmem:[#allocation200_spill] sm:$0xff]  ;;  %v19142_v53 = vld [vmem:[#allocation159_spill] sm:$0xff] }
 0x74c   :  { %v8279_v46 = vadd.f32 %v8263_v25, %v7953_v14  ;;  %v8280_v24 = vadd.f32 %v8264_v63, %v7954_v60  ;;  %v9192_v16 = vmul.f32 %v17278_v28, %v16938_v19  ;;  %v8589_v8 = vmul.f32 %v17285_v22, %v8550_v6  ;;  %v19144_v59 = vld [vmem:[#allocation151_spill] sm:$0xff]  ;;  %v19145_v14 = vld [vmem:[#allocation88_spill] sm:$0xff] }
 0x74d   :  { %v8854_v20 = vpop.permute.xlu1 %8853  ;;  %v9770_v54 = vpop.permute.xlu0 %9769  ;;  %v8590_v33 = vmul.f32 %v17288_v40, %v8542_v50  ;;  %v7891_v45 = vsel %vm207_vm8, %v19140_v9, %v17077_v11  ;;  %v9193_v38 = vmul.f32 %v17275_v21, %v19144_v59  ;;  %v9194_v60 = vmul.f32 %v17278_v28, %v19145_v14  ;;  %v19158_v59 = vld [vmem:[#allocation148_spill] sm:$0xff] }
 0x74e   :  { %v8867_v37 = vsel %vm327_vm5, %v8838_v1, %v8854_v20  ;;  %v8875_v48 = vsel %vm327_vm5, %v8854_v20, %v8838_v1  ;;  %v7899_v1 = vsel %vm207_vm8, %v17077_v11, %v19140_v9  ;;  %v8605_v11 = vadd.f32 %v8589_v8, %v8279_v46 }
 0x74f   :  { %v8913_v10 = vmul.f32 %v17312_v43, %v8875_v48  ;;  %v8914_v44 = vmul.f32 %v17315_v62, %v8867_v37  ;;  %10103 = vrot.lane.b32.xlu0 %v10084_v56, %s11991_s14  ;;  %10117 = vrot.lane.b32.xlu1 %v10082_v36, %s11991_s14  ;;  %v8606_v57 = vadd.f32 %v8590_v33, %v8280_v24  ;;  %v19148_v33 = vld [vmem:[#allocation170_spill] sm:$0xff] }
 0x750   :  { %v7900_v36 = vsel %vm207_vm8, %v19141_v12, %v19142_v53  ;;  %v8266_v9 = vmul.f32 %v17225_v2, %v19148_v33 }
 0x751   :  { %v8929_v61 = vadd.f32 %v8913_v10, %v8603_v4  ;;  %v8930_v15 = vadd.f32 %v8914_v44, %v8604_v49  ;;  %v9784_v34 = vpop.permute.xlu1 %9783  ;;  %v8856_v19 = vpop.permute.xlu0 %8855  ;;  %v7939_v4 = vmul.f32 %v17207_v41, %v7899_v1  ;;  %v7940_v49 = vmul.f32 %v17210_v17, %v7891_v45  ;;  %v19146_v10 = vld [vmem:[#allocation205_spill] sm:$0xff]  ;;  %v19150_v45 = vld [vmem:[#allocation162_spill] sm:$0xff] }
 0x752   :  { %v17464_v29 = vsel %vm440_vm14, %v9768_v5, %v9784_v34  ;;  %v17468_v51 = vsel %vm440_vm14, %v9784_v34, %v9768_v5  ;;  %v8868_v27 = vsel %vm327_vm5, %v8840_v3, %v8856_v19  ;;  %v8876_v18 = vsel %vm327_vm5, %v8856_v19, %v8840_v3  ;;  %v19143_v3 = vld [vmem:[#allocation128_spill] sm:$0xff]  ;;  %v19152_v19 = vld [vmem:[#allocation166_spill] sm:$0xff] }
 0x753   :  { %v8915_v35 = vmul.f32 %v17312_v43, %v8876_v18  ;;  %v8916_v58 = vmul.f32 %v17315_v62, %v8868_v27  ;;  %10119 = vrot.lane.b32.xlu0 %v10086_v30, %s11991_s14  ;;  %v7892_v5 = vsel %vm207_vm8, %v19142_v53, %v19141_v12  ;;  %10089 = vrot.lane.b32.xlu1 %v19143_v3, %s11991_s14  ;;  %v19155_v12 = vld [vmem:[#allocation199_spill] sm:$0xff]  ;;  %v19157_v3 = vld [vmem:[#allocation154_spill] sm:$0xff] }
 0x754   :  { %v17487_v25 = vadd.f32 %v9191_v13, %v8929_v61  ;;  %v17489_v63 = vadd.f32 %v9192_v16, %v8930_v15  ;;  %v7941_v46 = vmul.f32 %v17207_v41, %v7900_v36  ;;  %v7942_v24 = vmul.f32 %v17210_v17, %v7892_v5  ;;  %v19147_v16 = vld [vmem:[#allocation176_spill] sm:$0xff]  ;;  %v19151_v61 = vld [vmem:[#allocation167_spill] sm:$0xff] }
 0x755   :  { %v8931_v50 = vadd.f32 %v8915_v35, %v8605_v11  ;;  %v8932_v6 = vadd.f32 %v8916_v58, %v8606_v57  ;;  %v9786_v20 = vpop.permute.xlu0 %9785  ;;  %v8842_v37 = vpop.permute.xlu1 %8841  ;;  %v8265_v8 = vmul.f32 %v17222_v32, %v19147_v16  ;;  %v8267_v1 = vmul.f32 %v17222_v32, %v19150_v45  ;;  %v19153_v11 = vld [vmem:[#allocation164_spill] sm:$0xff]  ;;  %v19154_v57 = vld [vmem:[#allocation155_spill] sm:$0xff] }
 0x756   :  { %v17499_v48 = vsel %vm440_vm14, %v9770_v54, %v9786_v20  ;;  %v17503_v56 = vsel %vm440_vm14, %v9786_v20, %v9770_v54  ;;  %v19149_v54 = vld [vmem:[#allocation204_spill] sm:$0xff]  ;;  %v8268_v15 = vmul.f32 %v17225_v2, %v19151_v61  ;;  %v7955_v27 = vadd.f32 %v7939_v4, %v19152_v19  ;;  %v19156_v36 = vld [vmem:[#allocation175_spill] sm:$0xff] }
 0x757   :  { %10091 = vrot.lane.b32.xlu0 %v19146_v10, %s11991_s14  ;;  %v17509_v44 = vadd.f32 %v9193_v38, %v8931_v50  ;;  %v17511_v13 = vadd.f32 %v9194_v60, %v8932_v6  ;;  %10105 = vrot.lane.b32.xlu1 %v19149_v54, %s11991_s14  ;;  %v7956_v18 = vadd.f32 %v7940_v49, %v19152_v19  ;;  %v19159_v6 = vld [vmem:[#allocation153_spill] sm:$0xff]  ;;  %v19161_v10 = vld [vmem:[#allocation143_spill] sm:$0xff] }
 0x758   :  { %v8543_v35 = vsel %vm255_vm6, %v19154_v57, %v19153_v11  ;;  %v8551_v58 = vsel %vm255_vm6, %v19153_v11, %v19154_v57  ;;  %v7957_v53 = vadd.f32 %v7941_v46, %v19155_v12  ;;  %v7958_v5 = vadd.f32 %v7942_v24, %v19155_v12  ;;  %v19160_v46 = vld [vmem:[#allocation84_spill] sm:$0xff] }
 0x759   :  { %v8844_v34 = vpop.permute.xlu0 %8843  ;;  %v9772_v30 = vpop.permute.xlu1 %9771  ;;  %v8544_v38 = vsel %vm255_vm6, %v19158_v59, %v19157_v3  ;;  %v8552_v14 = vsel %vm255_vm6, %v19157_v3, %v19158_v59  ;;  %v8281_v60 = vadd.f32 %v8265_v8, %v7955_v27  ;;  %v8282_v50 = vadd.f32 %v8266_v9, %v7956_v18  ;;  %v19163_v57 = vld [vmem:[#allocation160_spill] sm:$0xff]  ;;  %v11486_v3 = vld [vmem:[#allocation7] ss:$0 sm:$0xff] }
 0x75a   :  { %v8283_v20 = vadd.f32 %v8267_v1, %v7957_v53  ;;  %v8284_v4 = vadd.f32 %v8268_v15, %v7958_v5  ;;  %v9195_v24 = vmul.f32 %v17275_v21, %v19160_v46  ;;  %v9196_v16 = vmul.f32 %v17278_v28, %v19161_v10  ;;  %v19162_v15 = vld [vmem:[#allocation169_spill] sm:$0xff]  ;;  %v19166_v10 = vld [vmem:[#allocation172_spill] sm:$0xff] }
 0x75b   :  { %10107 = vrot.lane.b32.xlu0 %v19156_v36, %s11991_s14  ;;  %10415 = vrot.lane.b32.xlu1 %v19159_v6, %s11988_s27  ;;  %v8591_v33 = vmul.f32 %v17285_v22, %v8551_v58  ;;  %v8592_v54 = vmul.f32 %v17288_v40, %v8543_v35  ;;  %v8593_v8 = vmul.f32 %v17285_v22, %v8552_v14  ;;  %v19164_v35 = vld [vmem:[#allocation157_spill] sm:$0xff]  ;;  %v19165_v58 = vld [vmem:[#allocation158_spill] sm:$0xff] }
 0x75c   :  { %v8594_v9 = vmul.f32 %v17288_v40, %v8544_v38  ;;  %v7893_v12 = vsel %vm207_vm8, %v19165_v58, %v19164_v35 }
 0x75d   :  { %v9774_v49 = vpop.permute.xlu0 %9773  ;;  %v8858_v45 = vpop.permute.xlu1 %8857  ;;  %v8607_v19 = vadd.f32 %v8591_v33, %v8281_v60  ;;  %v8608_v27 = vadd.f32 %v8592_v54, %v8282_v50  ;;  %v8609_v53 = vadd.f32 %v8593_v8, %v8283_v20  ;;  %v19167_v33 = vld [vmem:[#allocation163_spill] sm:$0xff]  ;;  %v19168_v54 = vld [vmem:[#allocation161_spill] sm:$0xff] }
 0x75e   :  { %v8869_v1 = vsel %vm327_vm5, %v8842_v37, %v8858_v45  ;;  %v8877_v61 = vsel %vm327_vm5, %v8858_v45, %v8842_v37  ;;  %v7901_v37 = vsel %vm207_vm8, %v19164_v35, %v19165_v58  ;;  %v8610_v5 = vadd.f32 %v8594_v9, %v8284_v4  ;;  %v19169_v9 = vld [vmem:[#allocation156_spill] sm:$0xff] }
 0x75f   :  { %10417 = vrot.lane.b32.xlu0 %v19162_v15, %s11988_s27  ;;  %v8917_v18 = vmul.f32 %v17312_v43, %v8877_v61  ;;  %v8918_v11 = vmul.f32 %v17315_v62, %v8869_v1  ;;  %10431 = vrot.lane.b32.xlu1 %v19163_v57, %s11988_s27  ;;  %v7902_v45 = vsel %vm207_vm8, %v19167_v33, %v19168_v54  ;;  %v19170_v61 = vld [vmem:[#allocation152_spill] sm:$0xff] }
 0x760   :  { %v9197_v1 = vmul.f32 %v17275_v21, %v19169_v9  ;;  %v9198_v15 = vmul.f32 %v17278_v28, %v19170_v61  ;;  %v7944_v57 = vmul.f32 %v17210_v17, %v7893_v12  ;;  %v7945_v58 = vmul.f32 %v17207_v41, %v7902_v45  ;;  %v19179_v9 = vld [vmem:[#allocation168_spill] sm:$0xff] }
 0x761   :  { %v8860_v36 = vpop.permute.xlu0 %8859  ;;  %v8933_v59 = vadd.f32 %v8917_v18, %v8607_v19  ;;  %v8934_v38 = vadd.f32 %v8918_v11, %v8608_v27  ;;  %v9788_v14 = vpop.permute.xlu1 %9787  ;;  %v7943_v11 = vmul.f32 %v17207_v41, %v7901_v37  ;;  %v19171_v37 = vld [vmem:[#allocation179_spill] sm:$0xff]  ;;  %v19175_v41 = vld [vmem:[#allocation196_spill] sm:$0xff] }
 0x762   :  { %v8870_v60 = vsel %vm327_vm5, %v8844_v34, %v8860_v36  ;;  %v8878_v50 = vsel %vm327_vm5, %v8860_v36, %v8844_v34  ;;  %v17579_v6 = vsel %vm440_vm14, %v9772_v30, %v9788_v14  ;;  %v17583_v46 = vsel %vm440_vm14, %v9788_v14, %v9772_v30 }
 0x763   :  { %v8919_v20 = vmul.f32 %v17312_v43, %v8878_v50  ;;  %v8920_v4 = vmul.f32 %v17315_v62, %v8870_v60  ;;  %10433 = vrot.lane.b32.xlu0 %v19166_v10, %s11988_s27  ;;  %v7894_v34 = vsel %vm207_vm8, %v19168_v54, %v19167_v33  ;;  %10587 = vperm.xlu1 %11614, %v11486_v3   ;;  %v19172_v3 = vld [vmem:[#allocation174_spill] sm:$0xff]  ;;  %v19174_v60 = vld [vmem:[#allocation131_spill] sm:$0xff]  ;;  %v19177_v33 = vld [vmem:[#allocation201_spill] sm:$0xff] }
 0x764   :  { %v17597_v30 = vadd.f32 %v9195_v24, %v8933_v59  ;;  %v17599_v8 = vadd.f32 %v9196_v16, %v8934_v38  ;;  %v7946_v36 = vmul.f32 %v17210_v17, %v7894_v34  ;;  %v8269_v12 = vmul.f32 %v17222_v32, %v19171_v37  ;;  %v19173_v38 = vld [vmem:[#allocation171_spill] sm:$0xff] }
 0x765   :  { %v8935_v19 = vadd.f32 %v8919_v20, %v8609_v53  ;;  %v8936_v27 = vadd.f32 %v8920_v4, %v8610_v5  ;;  %v9790_v18 = vpop.permute.xlu0 %9789  ;;  %v8846_v35 = vpop.permute.xlu1 %8845  ;;  %v8270_v59 = vmul.f32 %v17225_v2, %v19172_v3  ;;  %v8271_v14 = vmul.f32 %v17222_v32, %v19173_v38  ;;  %v19176_v10 = vld [vmem:[#allocation203_spill] sm:$0xff]  ;;  %v19178_v32 = vld [vmem:[#allocation198_spill] sm:$0xff] }
 0x766   :  { %v17609_v24 = vsel %vm440_vm14, %v9774_v49, %v9790_v18  ;;  %v17613_v16 = vsel %vm440_vm14, %v9790_v18, %v9774_v49  ;;  %v8272_v49 = vmul.f32 %v17225_v2, %v19174_v60  ;;  %v7959_v20 = vadd.f32 %v7943_v11, %v19175_v41 }
 0x767   :  { %v17617_v53 = vadd.f32 %v9197_v1, %v8935_v19  ;;  %v17619_v5 = vadd.f32 %v9198_v15, %v8936_v27  ;;  %v7960_v17 = vadd.f32 %v7944_v57, %v19175_v41  ;;  %v8545_v54 = vsel %vm255_vm6, %v19177_v33, %v19176_v10  ;;  %v19180_v1 = vld [vmem:[#allocation202_spill] sm:$0xff] }
 0x768   :  { %v8553_v34 = vsel %vm255_vm6, %v19176_v10, %v19177_v33  ;;  %v7961_v45 = vadd.f32 %v7945_v58, %v19178_v32  ;;  %v7962_v2 = vadd.f32 %v7946_v36, %v19178_v32  ;;  %v8546_v61 = vsel %vm255_vm6, %v19180_v1, %v19179_v9  ;;  %v19182_v10 = vld [vmem:[#allocation195_spill] sm:$0xff] }
 0x769   :  { %v8848_v50 = vpop.permute.xlu0 %8847  ;;  %v9776_v4 = vpop.permute.xlu1 %9775  ;;  %v8554_v15 = vsel %vm255_vm6, %v19179_v9, %v19180_v1  ;;  %v8285_v19 = vadd.f32 %v8269_v12, %v7959_v20  ;;  %v8286_v27 = vadd.f32 %v8270_v59, %v7960_v17  ;;  %v8595_v37 = vmul.f32 %v17285_v22, %v8553_v34  ;;  %v19181_v20 = vld [vmem:[#allocation146_spill] sm:$0xff] }
 0x76a   :  { %v8287_v18 = vadd.f32 %v8271_v14, %v7961_v45  ;;  %v8288_v11 = vadd.f32 %v8272_v49, %v7962_v2  ;;  %v8596_v58 = vmul.f32 %v17288_v40, %v8545_v54  ;;  %v8597_v3 = vmul.f32 %v17285_v22, %v8554_v15 }
 0x76b   :  { %v8598_v38 = vmul.f32 %v17288_v40, %v8546_v61  ;;  %v8611_v12 = vadd.f32 %v8595_v37, %v8285_v19  ;;  %v9199_v17 = vmul.f32 %v17275_v21, %v19181_v20  ;;  %v9200_v22 = vmul.f32 %v17278_v28, %v19182_v10 }
 0x76c   :  { %v8612_v59 = vadd.f32 %v8596_v58, %v8286_v27  ;;  %v8613_v33 = vadd.f32 %v8597_v3, %v8287_v18  ;;  %v19183_v18 = vld [vmem:[#allocation150_spill] sm:$0xff] }
 0x76d   :  { %v9778_v57 = vpop.permute.xlu0 %9777  ;;  %v8862_v36 = vpop.permute.xlu1 %8861  ;;  %v8614_v40 = vadd.f32 %v8598_v38, %v8288_v11  ;;  %v9201_v11 = vmul.f32 %v17275_v21, %v19183_v18 }
 0x76e   :  { %v8871_v60 = vsel %vm327_vm5, %v8846_v35, %v8862_v36  ;;  %v8879_v41 = vsel %vm327_vm5, %v8862_v36, %v8846_v35 }
 0x76f   :  { %v8921_v14 = vmul.f32 %v17312_v43, %v8879_v41  ;;  %v8922_v49 = vmul.f32 %v17315_v62, %v8871_v60 }
 0x771   :  { %v8864_v54 = vpop.permute.xlu0 %8863  ;;  %v8937_v34 = vadd.f32 %v8921_v14, %v8611_v12  ;;  %v8938_v32 = vadd.f32 %v8922_v49, %v8612_v59  ;;  %v9792_v45 = vpop.permute.xlu1 %9791  ;;  %v19185_v12 = vld [vmem:[#allocation16_spill] sm:$0xff] }
 0x772   :  { %v8872_v35 = vsel %vm327_vm5, %v8848_v50, %v8864_v54  ;;  %v8880_v2 = vsel %vm327_vm5, %v8864_v54, %v8848_v50  ;;  %v17669_v9 = vsel %vm440_vm14, %v9776_v4, %v9792_v45  ;;  %v17673_v1 = vsel %vm440_vm14, %v9792_v45, %v9776_v4  ;;  %v19184_v50 = vld [vmem:[#allocation144_spill] sm:$0xff]  ;;  %v11398_v4 = vld [vmem:[%s18032_s6 + $0xa] sm:$0x3] }
 0x773   :  { %v8923_v61 = vmul.f32 %v17312_v43, %v8880_v2  ;;  %v8924_v15 = vmul.f32 %v17315_v62, %v8872_v35  ;;  %v17677_v19 = vadd.f32 %v9199_v17, %v8937_v34  ;;  %v17679_v27 = vadd.f32 %v9200_v22, %v8938_v32  ;;  %v11427_v43 = vld [vmem:[%s18032_s6 + $0xc] sm:$0x3] }
 0x774   :  { %v9202_v37 = vmul.f32 %v17278_v28, %v19184_v50  ;;  %v17704_v41 = vrot.slane %v11398_v4, %v19134_v7  ;;  %v17707_v59 = vrot.slane %v11398_v4, %v19185_v12  ;;  %v17710_v14 = vrot.slane %v11427_v43, %v19134_v7 }
 0x775   :  { %v8939_v58 = vadd.f32 %v8923_v61, %v8613_v33  ;;  %v8940_v36 = vadd.f32 %v8924_v15, %v8614_v40  ;;  %v9794_v3 = vpop.permute.xlu0 %9793  ;;  %v9438_v62 = vpop.permute.xlu1 %9437  ;;  %v17713_v49 = vrot.slane %v11427_v43, %v19185_v12 }
 0x776   :  { %v17693_v38 = vsel %vm440_vm14, %v9778_v57, %v9794_v3  ;;  %v17697_v21 = vsel %vm440_vm14, %v9794_v3, %v9778_v57  ;;  %v9839_v40 = vmul.f32 %v17710_v14, %v17361_v31 }
 0x777   :  { %v17699_v28 = vadd.f32 %v9201_v11, %v8939_v58  ;;  %v17701_v60 = vadd.f32 %v9202_v37, %v8940_v36  ;;  %v9840_v54 = vmul.f32 %v17713_v49, %v17365_v42  ;;  %v9841_v42 = vmul.f32 %v17710_v14, %v17397_v52 }
 0x779   :  { %v9440_v20 = vpop.permute.xlu0 %9439  ;;  %v9454_v17 = vpop.permute.xlu1 %9453 }
 0x77a   :  { %v9469_v57 = vsel %vm368_vm3, %v9438_v62, %v9454_v17  ;;  %v9477_v10 = vsel %vm368_vm3, %v9454_v17, %v9438_v62 }
 0x77b   :  { %v9513_v22 = vmul.f32 %v17704_v41, %v9469_v57  ;;  %v9514_v33 = vmul.f32 %v17707_v59, %v9477_v10 }
 0x77d   :  { %v9456_v34 = vpop.permute.xlu0 %9455  ;;  %v9529_v32 = vadd.f32 %v9513_v22, %v17379_v23  ;;  %v9530_v45 = vadd.f32 %v9514_v33, %v17381_v26  ;;  %v9442_v35 = vpop.permute.xlu1 %9441  ;;  %v9842_v23 = vmul.f32 %v17713_v49, %v17401_v55 }
 0x77e   :  { %v9470_v2 = vsel %vm368_vm3, %v9440_v20, %v9456_v34  ;;  %v9478_v61 = vsel %vm368_vm3, %v9456_v34, %v9440_v20  ;;  %v9844_v20 = vmul.f32 %v17713_v49, %v17468_v51 }
 0x77f   :  { %v9515_v15 = vmul.f32 %v17704_v41, %v9470_v2  ;;  %v9516_v18 = vmul.f32 %v17707_v59, %v9478_v61  ;;  %v17733_v31 = vadd.f32 %v9839_v40, %v9529_v32  ;;  %v17735_v11 = vadd.f32 %v9840_v54, %v9530_v45 }
 0x780   :  { %v9845_v32 = vmul.f32 %v17710_v14, %v17499_v48  ;;  %v9846_v45 = vmul.f32 %v17713_v49, %v17503_v56 }
 0x781   :  { %v9531_v26 = vadd.f32 %v9515_v15, %v17404_v39  ;;  %v9532_v50 = vadd.f32 %v9516_v18, %v17406_v0  ;;  %v9444_v37 = vpop.permute.xlu0 %9443  ;;  %v10420_v58 = vpop.permute.xlu1 %10419  ;;  %v9843_v0 = vmul.f32 %v17710_v14, %v17464_v29 }
 0x783   :  { %v17743_v36 = vadd.f32 %v9841_v42, %v9531_v26  ;;  %v17745_v3 = vadd.f32 %v9842_v23, %v9532_v50 }
 0x785   :  { %v10422_v4 = vpop.permute.xlu0 %10421  ;;  %v9458_v43 = vpop.permute.xlu1 %9457 }
 0x786   :  { %v9471_v62 = vsel %vm368_vm3, %v9442_v35, %v9458_v43  ;;  %v9479_v52 = vsel %vm368_vm3, %v9458_v43, %v9442_v35  ;;  %v9847_v43 = vmul.f32 %v17710_v14, %v17579_v6 }
 0x787   :  { %v9517_v55 = vmul.f32 %v17704_v41, %v9471_v62  ;;  %v9518_v39 = vmul.f32 %v17707_v59, %v9479_v52  ;;  %v9848_v62 = vmul.f32 %v17713_v49, %v17583_v46 }
 0x789   :  { %v9460_v17 = vpop.permute.xlu0 %9459  ;;  %v9533_v57 = vadd.f32 %v9517_v55, %v17487_v25  ;;  %v9534_v10 = vadd.f32 %v9518_v39, %v17489_v63  ;;  %v10436_v22 = vpop.permute.xlu1 %10435 }
 0x78a   :  { %v9472_v33 = vsel %vm368_vm3, %v9444_v37, %v9460_v17  ;;  %v9480_v40 = vsel %vm368_vm3, %v9460_v17, %v9444_v37  ;;  %v17765_v54 = vsel %vm488_vm12, %v10420_v58, %v10436_v22  ;;  %v17769_v29 = vsel %vm488_vm12, %v10436_v22, %v10420_v58 }
 0x78b   :  { %v9519_v51 = vmul.f32 %v17704_v41, %v9472_v33  ;;  %v9520_v25 = vmul.f32 %v17707_v59, %v9480_v40  ;;  %v17773_v63 = vadd.f32 %v9843_v0, %v9533_v57  ;;  %v17775_v34 = vadd.f32 %v9844_v20, %v9534_v10 }
 0x78d   :  { %v9535_v35 = vadd.f32 %v9519_v51, %v17509_v44  ;;  %v9536_v2 = vadd.f32 %v9520_v25, %v17511_v13  ;;  %v10438_v61 = vpop.permute.xlu0 %10437  ;;  %v9446_v15 = vpop.permute.xlu1 %9445 }
 0x78e   :  { %v17785_v18 = vsel %vm488_vm12, %v10422_v4, %v10438_v61  ;;  %v17789_v42 = vsel %vm488_vm12, %v10438_v61, %v10422_v4 }
 0x78f   :  { %v17791_v23 = vadd.f32 %v9845_v32, %v9535_v35  ;;  %v17793_v48 = vadd.f32 %v9846_v45, %v9536_v2 }
 0x791   :  { %v9448_v26 = vpop.permute.xlu0 %9447  ;;  %v17795_v56 = vpop.permute.xlu1 %10423 }
 0x795   :  { %v17797_v44 = vpop.permute.xlu0 %10425  ;;  %v9462_v13 = vpop.permute.xlu1 %9461 }
 0x796   :  { %v9473_v50 = vsel %vm368_vm3, %v9446_v15, %v9462_v13  ;;  %v9481_v37 = vsel %vm368_vm3, %v9462_v13, %v9446_v15  ;;  %v9851_v15 = vmul.f32 %v17710_v14, %v17669_v9 }
 0x797   :  { %v9521_v58 = vmul.f32 %v17704_v41, %v9473_v50  ;;  %v9522_v4 = vmul.f32 %v17707_v59, %v9481_v37 }
 0x799   :  { %v9464_v52 = vpop.permute.xlu0 %9463  ;;  %v9537_v55 = vadd.f32 %v9521_v58, %v17597_v30  ;;  %v9538_v39 = vadd.f32 %v9522_v4, %v17599_v8  ;;  %v17811_v0 = vpop.permute.xlu1 %10439  ;;  %v9849_v30 = vmul.f32 %v17710_v14, %v17609_v24  ;;  %v9850_v8 = vmul.f32 %v17713_v49, %v17613_v16 }
 0x79a   :  { %v9474_v20 = vsel %vm368_vm3, %v9448_v26, %v9464_v52  ;;  %v9482_v17 = vsel %vm368_vm3, %v9464_v52, %v9448_v26  ;;  %v9852_v26 = vmul.f32 %v17713_v49, %v17673_v1  ;;  %v9853_v1 = vmul.f32 %v17710_v14, %v17693_v38 }
 0x79b   :  { %v9523_v57 = vmul.f32 %v17704_v41, %v9474_v20  ;;  %v9524_v6 = vmul.f32 %v17707_v59, %v9482_v17  ;;  %v17819_v10 = vadd.f32 %v9847_v43, %v9537_v55  ;;  %v17821_v46 = vadd.f32 %v9848_v62, %v9538_v39 }
 0x79d   :  { %v9539_v22 = vadd.f32 %v9523_v57, %v17617_v53  ;;  %v9540_v33 = vadd.f32 %v9524_v6, %v17619_v5  ;;  %v17829_v40 = vpop.permute.xlu0 %10441  ;;  %v9450_v51 = vpop.permute.xlu1 %9449 }
 0x79f   :  { %v17831_v25 = vadd.f32 %v9849_v30, %v9539_v22  ;;  %v17833_v32 = vadd.f32 %v9850_v8, %v9540_v33 }
 0x7a1   :  { %v9452_v45 = vpop.permute.xlu0 %9451  ;;  %v17835_v35 = vpop.permute.xlu1 %10427 }
 0x7a5   :  { %v17837_v2 = vpop.permute.xlu0 %10429  ;;  %v9466_v24 = vpop.permute.xlu1 %9465 }
 0x7a6   :  { %v9475_v16 = vsel %vm368_vm3, %v9450_v51, %v9466_v24  ;;  %v9483_v53 = vsel %vm368_vm3, %v9466_v24, %v9450_v51 }
 0x7a7   :  { %v9525_v5 = vmul.f32 %v17704_v41, %v9475_v16  ;;  %v9526_v61 = vmul.f32 %v17707_v59, %v9483_v53 }
 0x7a9   :  { %v9468_v13 = vpop.permute.xlu0 %9467  ;;  %v9541_v50 = vadd.f32 %v9525_v5, %v17677_v19  ;;  %v9542_v37 = vadd.f32 %v9526_v61, %v17679_v27  ;;  %v10444_v58 = vpop.permute.xlu1 %10443  ;;  %v9854_v19 = vmul.f32 %v17713_v49, %v17697_v21 }
 0x7aa   :  { %v9476_v4 = vsel %vm368_vm3, %v9452_v45, %v9468_v13  ;;  %v9484_v43 = vsel %vm368_vm3, %v9468_v13, %v9452_v45 }
 0x7ab   :  { %v9527_v62 = vmul.f32 %v17704_v41, %v9476_v4  ;;  %v9528_v52 = vmul.f32 %v17707_v59, %v9484_v43  ;;  %v17857_v9 = vadd.f32 %v9851_v15, %v9541_v50  ;;  %v17859_v55 = vadd.f32 %v9852_v26, %v9542_v37  ;;  %v11456_v41 = vld [vmem:[%s18032_s6 + $0xe] sm:$0x3]  ;;  %v11485_v59 = vld [vmem:[%s18032_s6 + $0x10] sm:$0x3] }
 0x7ac   :  { %v17880_v21 = vrot.slane %v11456_v41, %v19134_v7  ;;  %v17889_v14 = vrot.slane %v11485_v59, %v19185_v12 }
 0x7ad   :  { %v9543_v27 = vadd.f32 %v9527_v62, %v17699_v28  ;;  %v9544_v39 = vadd.f32 %v9528_v52, %v17701_v60  ;;  %v17867_v20 = vpop.permute.xlu0 %10445  ;;  %v10094_v17 = vpop.permute.xlu1 %10093  ;;  %v17883_v28 = vrot.slane %v11456_v41, %v19185_v12  ;;  %v17886_v60 = vrot.slane %v11485_v59, %v19134_v7 }
 0x7ae   :  { %v10496_v7 = vmul.f32 %v17889_v14, %v17769_v29  ;;  %v10459_v29 = vsel %vm488_vm12, %v17811_v0, %v17795_v56  ;;  %v10498_v13 = vmul.f32 %v17889_v14, %v17789_v42 }
 0x7af   :  { %v17875_v57 = vadd.f32 %v9853_v1, %v9543_v27  ;;  %v17877_v38 = vadd.f32 %v9854_v19, %v9544_v39  ;;  %v10495_v51 = vmul.f32 %v17886_v60, %v17765_v54  ;;  %v10451_v54 = vsel %vm488_vm12, %v17795_v56, %v17811_v0 }
 0x7b0   :  { %v10497_v26 = vmul.f32 %v17886_v60, %v17785_v18  ;;  %v10499_v43 = vmul.f32 %v17886_v60, %v10451_v54  ;;  %v10500_v56 = vmul.f32 %v17889_v14, %v10459_v29  ;;  %v10452_v0 = vsel %vm488_vm12, %v17797_v44, %v17829_v40 }
 0x7b1   :  { %v10096_v49 = vpop.permute.xlu0 %10095  ;;  %v10110_v6 = vpop.permute.xlu1 %10109  ;;  %v10460_v18 = vsel %vm488_vm12, %v17829_v40, %v17797_v44  ;;  %v10453_v1 = vsel %vm488_vm12, %v17835_v35, %v10444_v58  ;;  %v10461_v19 = vsel %vm488_vm12, %v10444_v58, %v17835_v35 }
 0x7b2   :  { %v10123_v30 = vsel %vm464_vm15, %v10094_v17, %v10110_v6  ;;  %v10131_v8 = vsel %vm464_vm15, %v10110_v6, %v10094_v17 }
 0x7b3   :  { %v10169_v22 = vmul.f32 %v17880_v21, %v10123_v30  ;;  %v10170_v33 = vmul.f32 %v17883_v28, %v10131_v8 }
 0x7b5   :  { %v10112_v12 = vpop.permute.xlu0 %10111  ;;  %v10185_v45 = vadd.f32 %v10169_v22, %v17773_v63  ;;  %v10186_v24 = vadd.f32 %v10170_v33, %v17775_v34  ;;  %v10098_v16 = vpop.permute.xlu1 %10097 }
 0x7b6   :  { %v10124_v53 = vsel %vm464_vm15, %v10096_v49, %v10112_v12  ;;  %v10132_v5 = vsel %vm464_vm15, %v10112_v12, %v10096_v49 }
 0x7b7   :  { %v10171_v63 = vmul.f32 %v17880_v21, %v10124_v53  ;;  %v10172_v34 = vmul.f32 %v17883_v28, %v10132_v5  ;;  %v10511_v61 = vadd.f32 %v10495_v51, %v10185_v45  ;;  %v10512_v15 = vadd.f32 %v10496_v7, %v10186_v24 }
 0x7b8   :  { %v10501_v7 = vmul.f32 %v17886_v60, %v10452_v0  ;;  %v10503_v53 = vmul.f32 %v17886_v60, %v10453_v1  ;;  %v10504_v5 = vmul.f32 %v17889_v14, %v10461_v19 }
 0x7b9   :  { %v10187_v50 = vadd.f32 %v10171_v63, %v17791_v23  ;;  %v10188_v37 = vadd.f32 %v10172_v34, %v17793_v48  ;;  %v10100_v4 = vpop.permute.xlu0 %10099  ;;  %v10114_v42 = vpop.permute.xlu1 %10113  ;;  %v10559_v40 = vmax.f32 %v10511_v61, 0.0  ;;  %v10560_v59 = vmax.f32 %v10512_v15, 0.0 }
 0x7ba   :  { %v10125_v23 = vsel %vm464_vm15, %v10098_v16, %v10114_v42  ;;  %v10133_v48 = vsel %vm464_vm15, %v10114_v42, %v10098_v16 }
 0x7bb   :  { %v10513_v62 = vadd.f32 %v10497_v26, %v10187_v50  ;;  %v10514_v52 = vadd.f32 %v10498_v13, %v10188_v37  ;;  %v10173_v27 = vmul.f32 %v17880_v21, %v10125_v23  ;;  %v10174_v44 = vmul.f32 %v17883_v28, %v10133_v48 }
 0x7bd   :  { %v10561_v39 = vmax.f32 %v10513_v62, 0.0  ;;  %v10116_v41 = vpop.permute.xlu0 %10115  ;;  %v10562_v17 = vmax.f32 %v10514_v52, 0.0  ;;  %v10189_v49 = vadd.f32 %v10173_v27, %v17819_v10  ;;  %v10190_v6 = vadd.f32 %v10174_v44, %v17821_v46  ;;  %v10102_v30 = vpop.permute.xlu1 %10101 }
 0x7be   :  { %v10126_v8 = vsel %vm464_vm15, %v10100_v4, %v10116_v41  ;;  %v10134_v35 = vsel %vm464_vm15, %v10116_v41, %v10100_v4  ;;  %v10502_v10 = vmul.f32 %v17889_v14, %v10460_v18 }
 0x7bf   :  { %v10175_v58 = vmul.f32 %v17880_v21, %v10126_v8  ;;  %v10176_v22 = vmul.f32 %v17883_v28, %v10134_v35  ;;  %v17953_v33 = vpack.c.bf16 %v10562_v17, %v10560_v59  ;;  %v17955_v51 = vpack.c.bf16 %v10561_v39, %v10559_v40 }
 0x7c0   :  { %v10515_v46 = vadd.f32 %v10499_v43, %v10189_v49  ;;  %v10516_v16 = vadd.f32 %v10500_v56, %v10190_v6 }
 0x7c1   :  { %v10191_v12 = vadd.f32 %v10175_v58, %v17831_v25  ;;  %v10192_v45 = vadd.f32 %v10176_v22, %v17833_v32  ;;  %v10104_v24 = vpop.permute.xlu0 %10103  ;;  %v10118_v54 = vpop.permute.xlu1 %10117  ;;  %v10454_v25 = vsel %vm488_vm12, %v17837_v2, %v17867_v20  ;;  %v10462_v32 = vsel %vm488_vm12, %v17867_v20, %v17837_v2 }
 0x7c2   :  { %v10127_v63 = vsel %vm464_vm15, %v10102_v30, %v10118_v54  ;;  %v10135_v34 = vsel %vm464_vm15, %v10118_v54, %v10102_v30  ;;  %v10563_v13 = vmax.f32 %v10515_v46, 0.0  ;;  %v10564_v4 = vmax.f32 %v10516_v16, 0.0 }
 0x7c3   :  { %v10517_v29 = vadd.f32 %v10501_v7, %v10191_v12  ;;  %v10518_v61 = vadd.f32 %v10502_v10, %v10192_v45  ;;  %v10177_v15 = vmul.f32 %v17880_v21, %v10127_v63  ;;  %v10178_v26 = vmul.f32 %v17883_v28, %v10135_v34 }
 0x7c4   :  { %v10505_v52 = vmul.f32 %v17886_v60, %v10454_v25  ;;  %v10506_v1 = vmul.f32 %v17889_v14, %v10462_v32 }
 0x7c5   :  { %v10565_v50 = vmax.f32 %v10517_v29, 0.0  ;;  %v10120_v37 = vpop.permute.xlu0 %10119  ;;  %v10566_v43 = vmax.f32 %v10518_v61, 0.0  ;;  %v10193_v56 = vadd.f32 %v10177_v15, %v17857_v9  ;;  %v10194_v0 = vadd.f32 %v10178_v26, %v17859_v55  ;;  %v10090_v18 = vpop.permute.xlu1 %10089 }
 0x7c6   :  { %v10128_v42 = vsel %vm464_vm15, %v10104_v24, %v10120_v37  ;;  %v10136_v2 = vsel %vm464_vm15, %v10120_v37, %v10104_v24 }
 0x7c7   :  { %v10179_v20 = vmul.f32 %v17880_v21, %v10128_v42  ;;  %v10180_v62 = vmul.f32 %v17883_v28, %v10136_v2  ;;  %v10576_v23 = vpack.c.bf16 %v10566_v43, %v10564_v4  ;;  %v10575_v48 = vpack.c.bf16 %v10565_v50, %v10563_v13 }
 0x7c8   :  { %v10519_v9 = vadd.f32 %v10503_v53, %v10193_v56  ;;  %v10520_v44 = vadd.f32 %v10504_v5, %v10194_v0 }
 0x7c9   :  { %v10195_v55 = vadd.f32 %v10179_v20, %v17875_v57  ;;  %v10196_v19 = vadd.f32 %v10180_v62, %v17877_v38  ;;  %v10092_v27 = vpop.permute.xlu0 %10091  ;;  %v10106_v40 = vpop.permute.xlu1 %10105 }
 0x7ca   :  { %v10567_v59 = vmax.f32 %v10519_v9, 0.0  ;;  %v10568_v6 = vmax.f32 %v10520_v44, 0.0  ;;  %v10121_v8 = vsel %vm464_vm15, %v10090_v18, %v10106_v40  ;;  %v10129_v35 = vsel %vm464_vm15, %v10106_v40, %v10090_v18 }
 0x7cb   :  { %v10521_v39 = vadd.f32 %v10505_v52, %v10195_v55  ;;  %v10522_v41 = vadd.f32 %v10506_v1, %v10196_v19  ;;  %v10165_v10 = vmul.f32 %v17880_v21, %v10121_v8  ;;  %v10166_v46 = vmul.f32 %v17883_v28, %v10129_v35 }
 0x7cd   :  { %v10569_v17 = vmax.f32 %v10521_v39, 0.0  ;;  %v10108_v49 = vpop.permute.xlu0 %10107  ;;  %v10570_v30 = vmax.f32 %v10522_v41, 0.0  ;;  %v10416_v58 = vpop.permute.xlu1 %10415  ;;  %v10181_v63 = vadd.f32 %v10165_v10, %v17733_v31  ;;  %v10182_v34 = vadd.f32 %v10166_v46, %v17735_v11 }
 0x7ce   :  { %v10122_v57 = vsel %vm464_vm15, %v10092_v27, %v10108_v49  ;;  %v10130_v38 = vsel %vm464_vm15, %v10108_v49, %v10092_v27 }
 0x7cf   :  { %v10578_v22 = vpack.c.bf16 %v10570_v30, %v10568_v6  ;;  %v10577_v7 = vpack.c.bf16 %v10569_v17, %v10567_v59  ;;  %v10167_v45 = vmul.f32 %v17880_v21, %v10122_v57  ;;  %v10168_v24 = vmul.f32 %v17883_v28, %v10130_v38 }
 0x7d1   :  { %10602 = vmatprep.subr.bf16.mxu1 %v10578_v22  ;;  %v10418_v12 = vpop.permute.xlu0 %10417  ;;  %v10432_v16 = vpop.permute.xlu1 %10431  ;;  %v10183_v28 = vadd.f32 %v10167_v45, %v17743_v36  ;;  %v10184_v61 = vadd.f32 %v10168_v24, %v17745_v3 }
 0x7d2   :  { %10603 = vmatpush1.bf16.msra.mxu1 %v10577_v7  ;;  %v10447_v53 = vsel %vm488_vm12, %v10416_v58, %v10432_v16  ;;  %v10455_v5 = vsel %vm488_vm12, %v10432_v16, %v10416_v58 }
 0x7d3   :  { %10604 = vmatprep.subr.bf16.mxu1 %v10576_v23  ;;  %v10491_v54 = vmul.f32 %v17886_v60, %v10447_v53  ;;  %v10492_v29 = vmul.f32 %v17889_v14, %v10455_v5 }
 0x7d5   :  { %v10434_v21 = vpop.permute.xlu0 %10433  ;;  %v10507_v15 = vadd.f32 %v10491_v54, %v10181_v63  ;;  %v10508_v26 = vadd.f32 %v10492_v29, %v10182_v34 }
 0x7d6   :  { %v10448_v25 = vsel %vm488_vm12, %v10418_v12, %v10434_v21  ;;  %v10456_v32 = vsel %vm488_vm12, %v10434_v21, %v10418_v12  ;;  %10605 = vmatpush1.bf16.msra.mxu1 %v10575_v48 }
 0x7d7   :  { %v10493_v13 = vmul.f32 %v17886_v60, %v10448_v25  ;;  %v10494_v31 = vmul.f32 %v17889_v14, %v10456_v32  ;;  %10606 = vmatprep.subr.bf16.mxu1 %v17953_v33  ;;  %v10555_v36 = vmax.f32 %v10507_v15, 0.0  ;;  %v10556_v3 = vmax.f32 %v10508_v26, 0.0  ;;  %v10579_v60 = vld [vmem:[%s18030_s4] sm:$0xf]  ;;  %s11993_s4 = smov [#allocation11]  }
 0x7d8   :  { %v10635_v14 = vadd.s32 128, %v18555_v47  ;;  %s10664_s29 = sshll.u32 %s11993_s4, 4  ;;  %s10665_s29 = int_to_ptr.vmem [resolvable:$true] %s10664_s29 }
 0x7d9   :  { %v10509_v11 = vadd.f32 %v10493_v13, %v10183_v28  ;;  %v10510_v50 = vadd.f32 %v10494_v31, %v10184_v61  ;;  %s11941_s30 = scalar_lea.vmem %s10665_s29, 256  ;;  %p11946_p6 = scmp.lt.s32.totalorder %s10665_s29, %s10665_s29 }
 0x7da   :  { %10607 = vmatpush1.bf16.msra.mxu1 %v17955_v51  ;;  %vm10637_vm3 = vcmp.lt.s32.totalorder %v10635_v14, 225  ;;  %p11942_p5 = scmp.ne.s32.totalorder %s10665_s29, %s11941_s30  ;;  %p11947_p7 = scmp.lt.s32.totalorder %s11941_s30, %s11941_s30 }
 0x7db   :  { %v10557_v37 = vmax.f32 %v10509_v11, 0.0  ;;  %v10558_v4 = vmax.f32 %v10510_v50, 0.0 }
 0x7dc   :  { %p11948_p8 = por %p11947_p7, %p11946_p6 }
 0x7dd   :  { %v10571_v43 = vpack.c.bf16 %v10557_v37, %v10555_v36  ;;  %v10572_v56 = vpack.c.bf16 %v10558_v4, %v10556_v3 }
 0x7de   :  { %v10588_v0 = vpop.permute.xlu1 %10587  ;;  %p11949_p9 = pnand %p11948_p8, %p11942_p5 }
 0x7df   :  { %10608 = vmatprep.subr.bf16.mxu1 %v10572_v56 }
 0x7e0   :  { %10609 = vmatpush1.bf16.msra.mxu1 %v10571_v43 }
 0x7e3   :  { %11487 = vmatmul.mubr.msk.bf16.vlgmr.msra.gmra.mxu1 %vm10590_vm0, %v10579_v60 }
 0x8a3   :  { %v10628_v33 = vpop.f32.mrf.mxu1 }
 0x8a4   :  { %v10629_v42 = vadd.f32 %v10628_v33, %v10588_v0 }
 0x8a5   :  { %v10630_v18 = vpop.f32.mrf.mxu1 }
 0x8a6   :  { %v10631_v51 = vadd.f32 %v10630_v18, %v10588_v0 }
 0x8a7   :  { %v10632_v2 = vpop.f32.mrf.mxu1 }
 0x8a8   :  { %v10639_v20 = vsel %vm10637_vm3, %v10631_v51, -1e+30 }
 0x8a9   :  { %v10640_v62 = vmax.f32 %v10629_v42, %v10639_v20  ;;  %v10633_v23 = vpop.f32.mrf.mxu1 }
 0x8ab   :  { %10641 = vmax.xlane.f32.xlu0 %v10640_v62 }
 0x934   :  { %v10642_v48 = vpop.xlane.xlu0 %10641 }
 0x935   :  { %v10643_v52 = vsub.f32 %v10629_v42, %v10642_v48  ;;  %v10644_v1 = vsub.f32 %v10639_v20, %v10642_v48 }
 0x937   :  { %v10645_v9 = vmul.f32 1.442695, %v10643_v52  ;;  %v10647_v55 = vmul.f32 1.442695, %v10644_v1 }
 0x939   :  { %11915 = vpow2.f32 %v10645_v9 }
 0x93a   :  { %11917 = vpow2.f32 %v10647_v55 }
 0x946   :  { %v11916_v19 = vpop.eup %11915 }
 0x947   :  { %v11918_v47 = vpop.eup %11917 }
 0x948   :  { %v10649_v27 = vadd.f32 %v11918_v47, %v11916_v19 }
 0x94a   :  { %10650 = vadd.xlane.f32.xlu1 %v10649_v27 }
 0x9d3   :  { %v10651_v44 = vpop.xlane.xlu1 %10650 }
 0x9d4   :  { %11919 = vlog2.f32 %v10651_v44 }
 0x9e1   :  { %v11920_v40 = vpop.eup %11919 }
 0x9e2   :  { %v10653_v39 = vmul.f32 0.6931472, %v11920_v40 }
 0x9e4   :  { %v10654_v41 = vsub.f32 %v10643_v52, %v10653_v39  ;;  %v10655_v59 = vsub.f32 %v10644_v1, %v10653_v39 }
 0x9e6   :  { %10656 = vst [vmem:[#allocation11] sm:$0xff] %v10654_v41  ;;  %10657 = vst [vmem:[#allocation11 + $0x8] sm:$0xff] %v10655_v59 }
 0x9e7   :  { %11952 = shalt.err (!%p11949_p9)
}
 0x9e8   :  { %10667 = dma.vmem_to_hbm [thread:$0]  %s10665_s29, 256, %s18037_s11, [#allocation10]  }
 0x9e9   :  { %11963 = dma.done.wait [#allocation10], 256  }
 0x9ea   :  { %11964 = vsyncadd [#allocation10], 4294967040 }
 0x9eb   :  { %10671 = vsyncpa [#allocation9], 1 }
 0x9ec   :  { %10672 = vsyncpa [#allocation10], 1 }

</bundles_post_ra>
